<compile_context>
chip_gen: v6e
topology: v6e:2x2x1
jax: 0.10.0
libtpu: 0.0.40
codegen_flags: <defaults>
</compile_context>

<pallas_src>
import jax
import jax.numpy as jnp
from jax.experimental import pallas as pl
from jax.experimental.pallas import tpu as pltpu

_BN_EPS = 1e-5


def _round_up(x, m):
    return (x + m - 1) // m * m


def _pick_divisor_tile(dim, candidates):
    for c in candidates:
        if c <= dim and dim % c == 0:
            return c
    return dim  # full-dim block (always legal)


# --------------------------------------------------------------------------
# Fused Pallas matmul kernel:
#   out = out_act(A @ B + bias)      (bf16 MXU inputs, f32 accumulation)
#   stats row 0 = per-column sum, row 1 = per-column sum of squares (pre-bias)
# The stats feed the *following* BatchNorm, so BN never needs its own pass.
# --------------------------------------------------------------------------
def _make_mm_kernel(multi_k, out_act):
    def _finalize(acc, bias, o_ref, stat_ref):
        # BN partial statistics, computed PRE-bias so zero (padded) A rows
        # contribute nothing; every want_stats consumer is a bias-free conv,
        # so this matches PyTorch train-mode BN.  Single unmasked (8, tn)
        # store (v5e-friendly: one vst, no masked row stores).
        s1 = jnp.sum(acc, axis=0, keepdims=True)
        s2 = jnp.sum(acc * acc, axis=0, keepdims=True)
        row = jax.lax.broadcasted_iota(jnp.int32, stat_ref.shape, 0)
        s1b = jnp.broadcast_to(s1, stat_ref.shape)
        s2b = jnp.broadcast_to(s2, stat_ref.shape)
        stat_ref[...] = jnp.where(row == 0, s1b, jnp.where(row == 1, s2b, 0.0))
        val = acc + bias
        if out_act == "tanh":
            val = jnp.tanh(val)
        o_ref[...] = val.astype(o_ref.dtype)

    if not multi_k:
        # Single K tile: no accumulator scratch, no K grid axis.
        def kernel(a_ref, b_ref, bias_ref, o_ref, stat_ref):
            acc = jnp.dot(a_ref[...], b_ref[...],
                          preferred_element_type=jnp.float32)
            _finalize(acc, bias_ref[...], o_ref, stat_ref)
    else:
        def kernel(a_ref, b_ref, bias_ref, o_ref, stat_ref, acc_ref):
            k = pl.program_id(2)

            @pl.when(k == 0)
            def _():
                acc_ref[...] = jnp.zeros_like(acc_ref)

            acc_ref[...] += jnp.dot(a_ref[...], b_ref[...],
                                    preferred_element_type=jnp.float32)

            @pl.when(k == pl.num_programs(2) - 1)
            def _():
                _finalize(acc_ref[...], bias_ref[...], o_ref, stat_ref)

    return kernel


def pallas_matmul_fused(a, b, bias=None, out_act=None, out_dtype=jnp.float32):
    M, K = a.shape
    K2, N = b.shape
    assert K == K2

    a = a.astype(jnp.bfloat16)
    b = b.astype(jnp.bfloat16)

    # Pad M only when not sublane-aligned (tiny innermost layers, M=2 -> 8).
    Mp = M if M % 8 == 0 else _round_up(M, 8)
    if Mp != M:
        a = jnp.pad(a, ((0, Mp - M), (0, 0)))

    bias_arr = (jnp.zeros((1, N), jnp.float32) if bias is None
                else bias.reshape(1, N).astype(jnp.float32))
    out_bytes = jnp.dtype(out_dtype).itemsize

    # ---- tile selection (no padding of K/N: tiles divide or cover full dim)
    tm = _pick_divisor_tile(Mp, (512, 256, 128, 64, 32, 16, 8))
    tn = _pick_divisor_tile(N, (512, 384, 256, 128))
    # v7x megacore: guarantee >= 2 steps on the parallel axes when possible.
    if (Mp // tm) * (N // tn) < 2 and tm >= 16:
        tm //= 2

    def vmem_need(tk_):
        return (2 * (tm * tk_ + tk_ * tn) * 2                       # A, B (bf16, dbl-buf)
                + 2 * (tm * tn * out_bytes + 8 * tn * 4 + 8 * tn * 4)  # out, stats, bias
                + tm * tn * 4)                                       # f32 accumulator

    budget = 20 * 1024 * 1024  # v7x-safe (64 MiB physical / 32 MiB scoped default)
    if vmem_need(K) <= budget or K % 128 != 0:
        tk, multi_k = K, False
    else:
        tk = 128
        for c in (512, 384, 256):
            if K % c == 0 and vmem_need(c) <= budget:
                tk = c
                break
        multi_k = True

    gm, gn = Mp // tm, N // tn
    kernel = _make_mm_kernel(multi_k, out_act)

    cost = pl.CostEstimate(
        flops=2 * Mp * K * N,
        transcendentals=(Mp * N if out_act == "tanh" else 0),
        bytes_accessed=(Mp * K + K * N) * 2 + Mp * N * out_bytes + gm * 8 * N * 4)
    vmem_limit = int(min(max(3 * vmem_need(tk), 32 * 1024 * 1024),
                         64 * 1024 * 1024))

    out_shapes = (jax.ShapeDtypeStruct((Mp, N), out_dtype),
                  jax.ShapeDtypeStruct((gm * 8, N), jnp.float32))

    if not multi_k:
        grid = (gm, gn)
        in_specs = [pl.BlockSpec((tm, K), lambda i, j: (i, 0)),
                    pl.BlockSpec((K, tn), lambda i, j: (0, j)),
                    pl.BlockSpec((1, tn), lambda i, j: (0, j))]
        out_specs = (pl.BlockSpec((tm, tn), lambda i, j: (i, j)),
                     pl.BlockSpec((8, tn), lambda i, j: (i, j)))
        scratch = []
        dims = ("parallel", "parallel")
    else:
        grid = (gm, gn, K // tk)
        in_specs = [pl.BlockSpec((tm, tk), lambda i, j, k: (i, k)),
                    pl.BlockSpec((tk, tn), lambda i, j, k: (k, j)),
                    pl.BlockSpec((1, tn), lambda i, j, k: (0, j))]
        out_specs = (pl.BlockSpec((tm, tn), lambda i, j, k: (i, j)),
                     pl.BlockSpec((8, tn), lambda i, j, k: (i, j)))
        scratch = [pltpu.VMEM((tm, tn), jnp.float32)]
        dims = ("parallel", "parallel", "arbitrary")

    out, stats = pl.pallas_call(
        kernel,
        out_shape=out_shapes,
        grid=grid,
        in_specs=in_specs,
        out_specs=out_specs,
        scratch_shapes=scratch,
        compiler_params=pltpu.CompilerParams(
            dimension_semantics=dims, vmem_limit_bytes=vmem_limit),
        cost_estimate=cost,
    )(a, b, bias_arr)

    if Mp != M:
        out = out[:M]
    stats = stats.reshape(gm, 8, N)
    return out, stats[:, 0, :].sum(axis=0), stats[:, 1, :].sum(axis=0)


# --------------------------------------------------------------------------
# Lazy BatchNorm + activation applied while building the im2col matrix
# (folded by XLA into that gather; never a standalone full-tensor pass).
# --------------------------------------------------------------------------
def _apply_norm_act(x, norm, act):
    y = x.astype(jnp.float32)
    if norm is not None:
        mean, inv_std = norm            # per-channel, broadcast over NDHW
        y = (y - mean) * inv_std
    if act == "lrelu":
        y = jnp.where(y > 0, y, 0.2 * y)
    elif act == "relu":
        y = jnp.maximum(y, 0.0)
    return y.astype(jnp.bfloat16)       # bf16 im2col halves HBM / DMA bytes


def _bn_affine(col_sum, col_sq, count):
    mean = col_sum / count
    # TODO(synk): a shifted / two-pass variance would be more robust at
    # production sizes; biased variance matches PyTorch train-mode BN.
    var = jnp.maximum(col_sq / count - mean * mean, 0.0)
    inv_std = jax.lax.rsqrt(var + _BN_EPS)
    return mean, inv_std


# --------------------------------------------------------------------------
# Conv3d (k=4, s=2, p=1) over channel-concatenated lazy sources.
# --------------------------------------------------------------------------
def conv3d_down(sources, act, w, *, want_stats, out_dtype=jnp.bfloat16):
    # sources: list of (NDHWC tensor, BN (mean,inv_std) or None)
    # w: PyTorch Conv3d weight (Cout, Cin_total, 4, 4, 4), bias=False (BN follows)
    k, s, p = 4, 2, 1
    cout = w.shape[0]
    taps, b_blocks = [], []
    c_off = 0
    for x, norm in sources:
        xa = _apply_norm_act(x, norm, act)
        xp = jnp.pad(xa, ((0, 0), (p, p), (p, p), (p, p), (0, 0)))
        nb, dp, hp, wp, c = xp.shape
        od, oh, ow = (dp - k) // s + 1, (hp - k) // s + 1, (wp - k) // s + 1
        taps += [xp[:, kd:kd + s * od:s, kh:kh + s * oh:s, kw:kw + s * ow:s, :]
                 for kd in range(k) for kh in range(k) for kw in range(k)]
        b_blocks.append(jnp.transpose(w[:, c_off:c_off + c], (2, 3, 4, 1, 0))
                        .reshape(k * k * k * c, cout))
        c_off += c
    K = k * k * k * c_off
    Kp = _round_up(K, 128)
    if Kp > K:  # zero "tap" -> K padding fused into the same im2col concat
        taps.append(jnp.zeros((nb, od, oh, ow, Kp - K), jnp.bfloat16))
    a = jnp.concatenate(taps, axis=-1).reshape(nb * od * oh * ow, Kp)
    bmat = b_blocks[0] if len(b_blocks) == 1 else jnp.concatenate(b_blocks, axis=0)
    if Kp > K:
        bmat = jnp.concatenate([bmat, jnp.zeros((Kp - K, cout), bmat.dtype)], axis=0)
    out, ssum, ssq = pallas_matmul_fused(a, bmat, out_dtype=out_dtype)
    out = out.reshape(nb, od, oh, ow, cout)
    norm_params = _bn_affine(ssum, ssq, nb * od * oh * ow) if want_stats else None
    return out, norm_params


# --------------------------------------------------------------------------
# ConvTranspose3d (k=4, s=2, p=1) via sub-pixel decomposition.
#   y[2t]   = x_pad[t]   * w[3] + x_pad[t+1] * w[1]      (per spatial dim)
#   y[2t+1] = x_pad[t+1] * w[2] + x_pad[t+2] * w[0]
# -> one stride-1 window-3 conv; B packs all 8 parity phases along N.
# --------------------------------------------------------------------------
_SUBPIX_TAP = {(0, 0): 3, (0, 1): 1, (1, 1): 2, (1, 2): 0}  # (parity, win_pos) -> tap


def _subpixel_weight(wt):
    # wt: PyTorch ConvTranspose3d slice (Cin, Cout, 4, 4, 4)
    # -> (27*Cin, 8*Cout); rows (win_d, win_h, win_w, cin), cols (pd, ph, pw, cout)
    cin, cout = wt.shape[0], wt.shape[1]
    we = jnp.zeros((3, 3, 3, cin, 2, 2, 2, cout), wt.dtype)
    for (pd, a), kd in _SUBPIX_TAP.items():
        for (ph, b), kh in _SUBPIX_TAP.items():
            for (pw, c), kw in _SUBPIX_TAP.items():
                we = we.at[a, b, c, :, pd, ph, pw, :].set(wt[:, :, kd, kh, kw])
    return we.reshape(27 * cin, 8 * cout)


def conv3d_up(sources, act, wt, bias=None, *, want_stats, out_act=None,
              out_dtype=jnp.bfloat16):
    # wt: PyTorch ConvTranspose3d weight (Cin_total, Cout, 4, 4, 4)
    cout = wt.shape[1]
    taps, b_blocks = [], []
    c_off = 0
    for x, norm in sources:
        xa = _apply_norm_act(x, norm, act)
        xp = jnp.pad(xa, ((0, 0), (1, 1), (1, 1), (1, 1), (0, 0)))
        nb, dp, hp, wp, c = xp.shape
        od, oh, ow = dp - 2, hp - 2, wp - 2
        taps += [xp[:, a:a + od, b:b + oh, cc:cc + ow, :]
                 for a in range(3) for b in range(3) for cc in range(3)]
        b_blocks.append(_subpixel_weight(wt[c_off:c_off + c]))
        c_off += c
    K = 27 * c_off
    Kp = _round_up(K, 128)
    if Kp > K:
        taps.append(jnp.zeros((nb, od, oh, ow, Kp - K), jnp.bfloat16))
    a = jnp.concatenate(taps, axis=-1).reshape(nb * od * oh * ow, Kp)
    bmat = b_blocks[0] if len(b_blocks) == 1 else jnp.concatenate(b_blocks, axis=0)
    if Kp > K:
        bmat = jnp.concatenate([bmat, jnp.zeros((Kp - K, 8 * cout), bmat.dtype)],
                               axis=0)
    bias_n = None if bias is None else jnp.tile(bias, 8)
    out, ssum, ssq = pallas_matmul_fused(a, bmat, bias=bias_n, out_act=out_act,
                                         out_dtype=out_dtype)
    # depth-to-space: (M, 8*Cout) -> (N, 2D, 2H, 2W, Cout)
    out = out.reshape(nb, od, oh, ow, 2, 2, 2, cout)
    out = jnp.transpose(out, (0, 1, 4, 2, 5, 3, 6, 7)).reshape(
        nb, 2 * od, 2 * oh, 2 * ow, cout)
    if want_stats:
        norm_params = _bn_affine(ssum.reshape(8, cout).sum(0),
                                 ssq.reshape(8, cout).sum(0),
                                 nb * od * oh * ow * 8)
    else:
        norm_params = None
    return out, norm_params


# --------------------------------------------------------------------------
# UnetGenerator parameters (deterministic, pix2pix-style N(0, 0.02) init).
# Note: the reference __init__ builds exactly 4 U levels regardless of
# num_downs=5 (no loop in the provided code).
# --------------------------------------------------------------------------
def init_params(key, input_nc=1, output_nc=1, ngf=8):
    def nrm(k, shape):
        return jax.random.normal(k, shape, jnp.float32) * 0.02

    ks = jax.random.split(key, 8)
    p = {}
    # down convs, PyTorch Conv3d layout (Cout, Cin, k, k, k), bias=False (BN)
    p["down0_w"] = nrm(ks[0], (ngf,     input_nc, 4, 4, 4))   # outermost
    p["down1_w"] = nrm(ks[1], (ngf * 2, ngf,      4, 4, 4))
    p["down2_w"] = nrm(ks[2], (ngf * 4, ngf * 2,  4, 4, 4))
    p["down3_w"] = nrm(ks[3], (ngf * 4, ngf * 4,  4, 4, 4))   # innermost
    # up convs, PyTorch ConvTranspose3d layout (Cin, Cout, k, k, k)
    p["up3_w"] = nrm(ks[4], (ngf * 4, ngf * 4,  4, 4, 4))     # innermost
    p["up2_w"] = nrm(ks[5], (ngf * 8, ngf * 2,  4, 4, 4))
    p["up1_w"] = nrm(ks[6], (ngf * 4, ngf,      4, 4, 4))
    p["up0_w"] = nrm(ks[7], (ngf * 2, output_nc, 4, 4, 4))    # outermost (bias)
    p["up0_b"] = jnp.zeros((output_nc,), jnp.float32)
    return p


def unet_forward(params, x_ncdhw):
    # layout: accept PyTorch NCDHW, compute in channels-last NDHWC, return NCDHW.
    x = jnp.transpose(x_ncdhw, (0, 2, 3, 4, 1)).astype(jnp.float32)

    # ---- down path (raw conv outputs kept in bf16; BatchNorm stays "lazy" as
    #      per-channel (mean, inv_std) from the fused matmul stats and is
    #      applied inside the consumers' im2col) ----
    d0, _  = conv3d_down([(x, None)],  None,    params["down0_w"], want_stats=False)
    d1, n1 = conv3d_down([(d0, None)], "lrelu", params["down1_w"], want_stats=True)
    d2, n2 = conv3d_down([(d1, n1)],   "lrelu", params["down2_w"], want_stats=True)
    d3, _  = conv3d_down([(d2, n2)],   "lrelu", params["down3_w"], want_stats=False)

    # ---- up path with skip concatenations (torch.cat([x, model(x)], 1)) ----
    u3, m3 = conv3d_up([(d3, None)],           "relu", params["up3_w"], want_stats=True)
    u2, m2 = conv3d_up([(d2, n2), (u3, m3)],   "relu", params["up2_w"], want_stats=True)
    u1, m1 = conv3d_up([(d1, n1), (u2, m2)],   "relu", params["up1_w"], want_stats=True)
    out, _ = conv3d_up([(d0, None), (u1, m1)], "relu", params["up0_w"],
                       bias=params["up0_b"], want_stats=False,
                       out_act="tanh", out_dtype=jnp.float32)

    return jnp.transpose(out, (0, 4, 1, 2, 3))


if __name__ == "__main__":
    key = jax.random.PRNGKey(0)
    kp, kx = jax.random.split(key)
    ngf = 8  # small synthetic size (PyTorch default is 64)
    params = init_params(kp, input_nc=1, output_nc=1, ngf=ngf)
    # NCDHW input, spatial must be divisible by 2**4 = 16
    x = jax.random.normal(kx, (2, 1, 16, 16, 16), jnp.float32)

    fwd = jax.jit(unet_forward)
    y = jax.block_until_ready(fwd(params, x))

    assert y.shape == (2, 1, 16, 16, 16), y.shape
    assert bool(jnp.all(jnp.isfinite(y)))
    assert bool(jnp.all(jnp.abs(y) <= 1.0 + 1e-6))   # tanh output range
    print("KERNEL_OK")
</pallas_src>

<mosaic_0001>
module attributes {stable_mosaic.version = 11 : i64} {
  func.func @kernel(%arg0: i32, %arg1: i32, %arg2: memref<512x128xbf16, #tpu.memory_space<vmem>>, %arg3: memref<128x8xbf16, #tpu.memory_space<vmem>>, %arg4: memref<1x8xf32, #tpu.memory_space<vmem>>, %arg5: memref<512x8xbf16, #tpu.memory_space<vmem>>, %arg6: memref<8x8xf32, #tpu.memory_space<vmem>>) attributes {dimension_semantics = [#tpu.dimension_semantics<parallel>, #tpu.dimension_semantics<parallel>], iteration_bounds = array<i64: 2, 1>, scalar_prefetch = 0 : i64, scratch_operands = 0 : i64, tpu.core_type = #tpu.core_type<tc>, window_params = [{transform_indices = @transform_0, window_bounds = array<i64: 512, 128>}, {transform_indices = @transform_1, window_bounds = array<i64: 128, 8>}, {transform_indices = @transform_2, window_bounds = array<i64: 1, 8>}, {transform_indices = @transform_3, window_bounds = array<i64: 512, 8>}, {transform_indices = @transform_4, window_bounds = array<i64: 8, 8>}]} {
    %c0 = arith.constant 0 : index
    %c0_0 = arith.constant 0 : index
    %0 = vector.load %arg2[%c0, %c0_0] : memref<512x128xbf16, #tpu.memory_space<vmem>>, vector<512x128xbf16>
    %c0_1 = arith.constant 0 : index
    %c0_2 = arith.constant 0 : index
    %1 = vector.load %arg3[%c0_1, %c0_2] : memref<128x8xbf16, #tpu.memory_space<vmem>>, vector<128x8xbf16>
    %cst = arith.constant dense<0.000000e+00> : vector<512x8xf32>
    %2 = tpu.matmul %0, %1, %cst {dimension_numbers = #tpu.dot_dimension_numbers<[1], [0], [0], [1], [0, 0, 1, 1], [], []>} : vector<512x128xbf16>, vector<128x8xbf16>, vector<512x8xf32> -> vector<512x8xf32>
    %c0_3 = arith.constant 0 : index
    %c0_4 = arith.constant 0 : index
    %3 = vector.load %arg4[%c0_3, %c0_4] : memref<1x8xf32, #tpu.memory_space<vmem>>, vector<1x8xf32>
    %cst_5 = arith.constant dense<0.000000e+00> : vector<8xf32>
    %4 = vector.multi_reduction <add>, %2, %cst_5 [0] : vector<512x8xf32> to vector<8xf32>
    %5 = vector.shape_cast %4 : vector<8xf32> to vector<1x8xf32>
    %6 = arith.mulf %2, %2 : vector<512x8xf32>
    %cst_6 = arith.constant dense<0.000000e+00> : vector<8xf32>
    %7 = vector.multi_reduction <add>, %6, %cst_6 [0] : vector<512x8xf32> to vector<8xf32>
    %8 = vector.shape_cast %7 : vector<8xf32> to vector<1x8xf32>
    %9 = tpu.iota {dimensions = array<i32: 0>} : vector<8x8xi32>
    %10 = vector.shape_cast %5 : vector<1x8xf32> to vector<1x8xf32>
    %11 = vector.broadcast %10 : vector<1x8xf32> to vector<8x8xf32>
    %12 = vector.shape_cast %8 : vector<1x8xf32> to vector<1x8xf32>
    %13 = vector.broadcast %12 : vector<1x8xf32> to vector<8x8xf32>
    %c0_i32 = arith.constant 0 : i32
    %14 = vector.broadcast %c0_i32 : i32 to vector<8x8xi32>
    %15 = arith.cmpi eq, %9, %14 : vector<8x8xi32>
    %c1_i32 = arith.constant 1 : i32
    %16 = vector.broadcast %c1_i32 : i32 to vector<8x8xi32>
    %17 = arith.cmpi eq, %9, %16 : vector<8x8xi32>
    %cst_7 = arith.constant 0.000000e+00 : f32
    %18 = vector.broadcast %cst_7 : f32 to vector<8x8xf32>
    %19 = arith.select %17, %13, %18 : vector<8x8xi1>, vector<8x8xf32>
    %20 = arith.select %15, %11, %19 : vector<8x8xi1>, vector<8x8xf32>
    %c0_8 = arith.constant 0 : index
    %c0_9 = arith.constant 0 : index
    %21 = vector.load %arg6[%c0_8, %c0_9] : memref<8x8xf32, #tpu.memory_space<vmem>>, vector<8x8xf32>
    tpu.vector_store %arg6[%c0_8, %c0_9], %20 {strides = array<i32>} : memref<8x8xf32, #tpu.memory_space<vmem>>, vector<8x8xf32>,
    %22 = vector.broadcast %3 : vector<1x8xf32> to vector<512x8xf32>
    %23 = arith.addf %2, %22 : vector<512x8xf32>
    %24 = arith.truncf %23 : vector<512x8xf32> to vector<512x8xbf16>
    %c0_10 = arith.constant 0 : index
    %c0_11 = arith.constant 0 : index
    %25 = vector.load %arg5[%c0_10, %c0_11] : memref<512x8xbf16, #tpu.memory_space<vmem>>, vector<512x8xbf16>
    tpu.vector_store %arg5[%c0_10, %c0_11], %24 {strides = array<i32>} : memref<512x8xbf16, #tpu.memory_space<vmem>>, vector<512x8xbf16>,
    return
  }
  func.func @transform_0(%arg0: i32, %arg1: i32) -> (i32, i32) {
    %c0_i32 = arith.constant 0 : i32
    %c0_i32_0 = arith.constant 0 : i32
    return %arg0, %c0_i32 : i32, i32
  }
  func.func @transform_1(%arg0: i32, %arg1: i32) -> (i32, i32) {
    %c0_i32 = arith.constant 0 : i32
    %c0_i32_0 = arith.constant 0 : i32
    return %c0_i32, %arg1 : i32, i32
  }
  func.func @transform_2(%arg0: i32, %arg1: i32) -> (i32, i32) {
    %c0_i32 = arith.constant 0 : i32
    %c0_i32_0 = arith.constant 0 : i32
    return %c0_i32, %arg1 : i32, i32
  }
  func.func @transform_3(%arg0: i32, %arg1: i32) -> (i32, i32) {
    %c0_i32 = arith.constant 0 : i32
    return %arg0, %arg1 : i32, i32
  }
  func.func @transform_4(%arg0: i32, %arg1: i32) -> (i32, i32) {
    %c0_i32 = arith.constant 0 : i32
    return %arg0, %arg1 : i32, i32
  }
}

module attributes {stable_mosaic.version = 11 : i64} {
  func.func @kernel(%arg0: i32, %arg1: i32, %arg2: memref<64x512xbf16, #tpu.memory_space<vmem>>, %arg3: memref<512x16xbf16, #tpu.memory_space<vmem>>, %arg4: memref<1x16xf32, #tpu.memory_space<vmem>>, %arg5: memref<64x16xbf16, #tpu.memory_space<vmem>>, %arg6: memref<8x16xf32, #tpu.memory_space<vmem>>) attributes {dimension_semantics = [#tpu.dimension_semantics<parallel>, #tpu.dimension_semantics<parallel>], iteration_bounds = array<i64: 2, 1>, scalar_prefetch = 0 : i64, scratch_operands = 0 : i64, tpu.core_type = #tpu.core_type<tc>, window_params = [{transform_indices = @transform_0, window_bounds = array<i64: 64, 512>}, {transform_indices = @transform_1, window_bounds = array<i64: 512, 16>}, {transform_indices = @transform_2, window_bounds = array<i64: 1, 16>}, {transform_indices = @transform_3, window_bounds = array<i64: 64, 16>}, {transform_indices = @transform_4, window_bounds = array<i64: 8, 16>}]} {
    %c0 = arith.constant 0 : index
    %c0_0 = arith.constant 0 : index
    %0 = vector.load %arg2[%c0, %c0_0] : memref<64x512xbf16, #tpu.memory_space<vmem>>, vector<64x512xbf16>
    %c0_1 = arith.constant 0 : index
    %c0_2 = arith.constant 0 : index
    %1 = vector.load %arg3[%c0_1, %c0_2] : memref<512x16xbf16, #tpu.memory_space<vmem>>, vector<512x16xbf16>
    %cst = arith.constant dense<0.000000e+00> : vector<64x16xf32>
    %2 = tpu.matmul %0, %1, %cst {dimension_numbers = #tpu.dot_dimension_numbers<[1], [0], [0], [1], [0, 0, 1, 1], [], []>} : vector<64x512xbf16>, vector<512x16xbf16>, vector<64x16xf32> -> vector<64x16xf32>
    %c0_3 = arith.constant 0 : index
    %c0_4 = arith.constant 0 : index
    %3 = vector.load %arg4[%c0_3, %c0_4] : memref<1x16xf32, #tpu.memory_space<vmem>>, vector<1x16xf32>
    %cst_5 = arith.constant dense<0.000000e+00> : vector<16xf32>
    %4 = vector.multi_reduction <add>, %2, %cst_5 [0] : vector<64x16xf32> to vector<16xf32>
    %5 = vector.shape_cast %4 : vector<16xf32> to vector<1x16xf32>
    %6 = arith.mulf %2, %2 : vector<64x16xf32>
    %cst_6 = arith.constant dense<0.000000e+00> : vector<16xf32>
    %7 = vector.multi_reduction <add>, %6, %cst_6 [0] : vector<64x16xf32> to vector<16xf32>
    %8 = vector.shape_cast %7 : vector<16xf32> to vector<1x16xf32>
    %9 = tpu.iota {dimensions = array<i32: 0>} : vector<8x16xi32>
    %10 = vector.shape_cast %5 : vector<1x16xf32> to vector<1x16xf32>
    %11 = vector.broadcast %10 : vector<1x16xf32> to vector<8x16xf32>
    %12 = vector.shape_cast %8 : vector<1x16xf32> to vector<1x16xf32>
    %13 = vector.broadcast %12 : vector<1x16xf32> to vector<8x16xf32>
    %c0_i32 = arith.constant 0 : i32
    %14 = vector.broadcast %c0_i32 : i32 to vector<8x16xi32>
    %15 = arith.cmpi eq, %9, %14 : vector<8x16xi32>
    %c1_i32 = arith.constant 1 : i32
    %16 = vector.broadcast %c1_i32 : i32 to vector<8x16xi32>
    %17 = arith.cmpi eq, %9, %16 : vector<8x16xi32>
    %cst_7 = arith.constant 0.000000e+00 : f32
    %18 = vector.broadcast %cst_7 : f32 to vector<8x16xf32>
    %19 = arith.select %17, %13, %18 : vector<8x16xi1>, vector<8x16xf32>
    %20 = arith.select %15, %11, %19 : vector<8x16xi1>, vector<8x16xf32>
    %c0_8 = arith.constant 0 : index
    %c0_9 = arith.constant 0 : index
    %21 = vector.load %arg6[%c0_8, %c0_9] : memref<8x16xf32, #tpu.memory_space<vmem>>, vector<8x16xf32>
    tpu.vector_store %arg6[%c0_8, %c0_9], %20 {strides = array<i32>} : memref<8x16xf32, #tpu.memory_space<vmem>>, vector<8x16xf32>,
    %22 = vector.broadcast %3 : vector<1x16xf32> to vector<64x16xf32>
    %23 = arith.addf %2, %22 : vector<64x16xf32>
    %24 = arith.truncf %23 : vector<64x16xf32> to vector<64x16xbf16>
    %c0_10 = arith.constant 0 : index
    %c0_11 = arith.constant 0 : index
    %25 = vector.load %arg5[%c0_10, %c0_11] : memref<64x16xbf16, #tpu.memory_space<vmem>>, vector<64x16xbf16>
    tpu.vector_store %arg5[%c0_10, %c0_11], %24 {strides = array<i32>} : memref<64x16xbf16, #tpu.memory_space<vmem>>, vector<64x16xbf16>,
    return
  }
  func.func @transform_0(%arg0: i32, %arg1: i32) -> (i32, i32) {
    %c0_i32 = arith.constant 0 : i32
    %c0_i32_0 = arith.constant 0 : i32
    return %arg0, %c0_i32 : i32, i32
  }
  func.func @transform_1(%arg0: i32, %arg1: i32) -> (i32, i32) {
    %c0_i32 = arith.constant 0 : i32
    %c0_i32_0 = arith.constant 0 : i32
    return %c0_i32, %arg1 : i32, i32
  }
  func.func @transform_2(%arg0: i32, %arg1: i32) -> (i32, i32) {
    %c0_i32 = arith.constant 0 : i32
    %c0_i32_0 = arith.constant 0 : i32
    return %c0_i32, %arg1 : i32, i32
  }
  func.func @transform_3(%arg0: i32, %arg1: i32) -> (i32, i32) {
    %c0_i32 = arith.constant 0 : i32
    return %arg0, %arg1 : i32, i32
  }
  func.func @transform_4(%arg0: i32, %arg1: i32) -> (i32, i32) {
    %c0_i32 = arith.constant 0 : i32
    return %arg0, %arg1 : i32, i32
  }
}

module attributes {stable_mosaic.version = 11 : i64} {
  func.func @kernel(%arg0: i32, %arg1: i32, %arg2: memref<8x1024xbf16, #tpu.memory_space<vmem>>, %arg3: memref<1024x32xbf16, #tpu.memory_space<vmem>>, %arg4: memref<1x32xf32, #tpu.memory_space<vmem>>, %arg5: memref<8x32xbf16, #tpu.memory_space<vmem>>, %arg6: memref<8x32xf32, #tpu.memory_space<vmem>>) attributes {dimension_semantics = [#tpu.dimension_semantics<parallel>, #tpu.dimension_semantics<parallel>], iteration_bounds = array<i64: 2, 1>, scalar_prefetch = 0 : i64, scratch_operands = 0 : i64, tpu.core_type = #tpu.core_type<tc>, window_params = [{transform_indices = @transform_0, window_bounds = array<i64: 8, 1024>}, {transform_indices = @transform_1, window_bounds = array<i64: 1024, 32>}, {transform_indices = @transform_2, window_bounds = array<i64: 1, 32>}, {transform_indices = @transform_3, window_bounds = array<i64: 8, 32>}, {transform_indices = @transform_4, window_bounds = array<i64: 8, 32>}]} {
    %c0 = arith.constant 0 : index
    %c0_0 = arith.constant 0 : index
    %0 = vector.load %arg2[%c0, %c0_0] : memref<8x1024xbf16, #tpu.memory_space<vmem>>, vector<8x1024xbf16>
    %c0_1 = arith.constant 0 : index
    %c0_2 = arith.constant 0 : index
    %1 = vector.load %arg3[%c0_1, %c0_2] : memref<1024x32xbf16, #tpu.memory_space<vmem>>, vector<1024x32xbf16>
    %cst = arith.constant dense<0.000000e+00> : vector<8x32xf32>
    %2 = tpu.matmul %0, %1, %cst {dimension_numbers = #tpu.dot_dimension_numbers<[1], [0], [0], [1], [0, 0, 1, 1], [], []>} : vector<8x1024xbf16>, vector<1024x32xbf16>, vector<8x32xf32> -> vector<8x32xf32>
    %c0_3 = arith.constant 0 : index
    %c0_4 = arith.constant 0 : index
    %3 = vector.load %arg4[%c0_3, %c0_4] : memref<1x32xf32, #tpu.memory_space<vmem>>, vector<1x32xf32>
    %cst_5 = arith.constant dense<0.000000e+00> : vector<32xf32>
    %4 = vector.multi_reduction <add>, %2, %cst_5 [0] : vector<8x32xf32> to vector<32xf32>
    %5 = vector.shape_cast %4 : vector<32xf32> to vector<1x32xf32>
    %6 = arith.mulf %2, %2 : vector<8x32xf32>
    %cst_6 = arith.constant dense<0.000000e+00> : vector<32xf32>
    %7 = vector.multi_reduction <add>, %6, %cst_6 [0] : vector<8x32xf32> to vector<32xf32>
    %8 = vector.shape_cast %7 : vector<32xf32> to vector<1x32xf32>
    %9 = tpu.iota {dimensions = array<i32: 0>} : vector<8x32xi32>
    %10 = vector.shape_cast %5 : vector<1x32xf32> to vector<1x32xf32>
    %11 = vector.broadcast %10 : vector<1x32xf32> to vector<8x32xf32>
    %12 = vector.shape_cast %8 : vector<1x32xf32> to vector<1x32xf32>
    %13 = vector.broadcast %12 : vector<1x32xf32> to vector<8x32xf32>
    %c0_i32 = arith.constant 0 : i32
    %14 = vector.broadcast %c0_i32 : i32 to vector<8x32xi32>
    %15 = arith.cmpi eq, %9, %14 : vector<8x32xi32>
    %c1_i32 = arith.constant 1 : i32
    %16 = vector.broadcast %c1_i32 : i32 to vector<8x32xi32>
    %17 = arith.cmpi eq, %9, %16 : vector<8x32xi32>
    %cst_7 = arith.constant 0.000000e+00 : f32
    %18 = vector.broadcast %cst_7 : f32 to vector<8x32xf32>
    %19 = arith.select %17, %13, %18 : vector<8x32xi1>, vector<8x32xf32>
    %20 = arith.select %15, %11, %19 : vector<8x32xi1>, vector<8x32xf32>
    %c0_8 = arith.constant 0 : index
    %c0_9 = arith.constant 0 : index
    %21 = vector.load %arg6[%c0_8, %c0_9] : memref<8x32xf32, #tpu.memory_space<vmem>>, vector<8x32xf32>
    tpu.vector_store %arg6[%c0_8, %c0_9], %20 {strides = array<i32>} : memref<8x32xf32, #tpu.memory_space<vmem>>, vector<8x32xf32>,
    %22 = vector.broadcast %3 : vector<1x32xf32> to vector<8x32xf32>
    %23 = arith.addf %2, %22 : vector<8x32xf32>
    %24 = arith.truncf %23 : vector<8x32xf32> to vector<8x32xbf16>
    %c0_10 = arith.constant 0 : index
    %c0_11 = arith.constant 0 : index
    %25 = vector.load %arg5[%c0_10, %c0_11] : memref<8x32xbf16, #tpu.memory_space<vmem>>, vector<8x32xbf16>
    tpu.vector_store %arg5[%c0_10, %c0_11], %24 {strides = array<i32>} : memref<8x32xbf16, #tpu.memory_space<vmem>>, vector<8x32xbf16>,
    return
  }
  func.func @transform_0(%arg0: i32, %arg1: i32) -> (i32, i32) {
    %c0_i32 = arith.constant 0 : i32
    %c0_i32_0 = arith.constant 0 : i32
    return %arg0, %c0_i32 : i32, i32
  }
  func.func @transform_1(%arg0: i32, %arg1: i32) -> (i32, i32) {
    %c0_i32 = arith.constant 0 : i32
    %c0_i32_0 = arith.constant 0 : i32
    return %c0_i32, %arg1 : i32, i32
  }
  func.func @transform_2(%arg0: i32, %arg1: i32) -> (i32, i32) {
    %c0_i32 = arith.constant 0 : i32
    %c0_i32_0 = arith.constant 0 : i32
    return %c0_i32, %arg1 : i32, i32
  }
  func.func @transform_3(%arg0: i32, %arg1: i32) -> (i32, i32) {
    %c0_i32 = arith.constant 0 : i32
    return %arg0, %arg1 : i32, i32
  }
  func.func @transform_4(%arg0: i32, %arg1: i32) -> (i32, i32) {
    %c0_i32 = arith.constant 0 : i32
    return %arg0, %arg1 : i32, i32
  }
}

module attributes {stable_mosaic.version = 11 : i64} {
  func.func @kernel(%arg0: i32, %arg1: i32, %arg2: memref<8x2048xbf16, #tpu.memory_space<vmem>>, %arg3: memref<2048x32xbf16, #tpu.memory_space<vmem>>, %arg4: memref<1x32xf32, #tpu.memory_space<vmem>>, %arg5: memref<8x32xbf16, #tpu.memory_space<vmem>>, %arg6: memref<8x32xf32, #tpu.memory_space<vmem>>) attributes {dimension_semantics = [#tpu.dimension_semantics<parallel>, #tpu.dimension_semantics<parallel>], iteration_bounds = array<i64: 1, 1>, scalar_prefetch = 0 : i64, scratch_operands = 0 : i64, tpu.core_type = #tpu.core_type<tc>, window_params = [{transform_indices = @transform_0, window_bounds = array<i64: 8, 2048>}, {transform_indices = @transform_1, window_bounds = array<i64: 2048, 32>}, {transform_indices = @transform_2, window_bounds = array<i64: 1, 32>}, {transform_indices = @transform_3, window_bounds = array<i64: 8, 32>}, {transform_indices = @transform_4, window_bounds = array<i64: 8, 32>}]} {
    %c0 = arith.constant 0 : index
    %c0_0 = arith.constant 0 : index
    %0 = vector.load %arg2[%c0, %c0_0] : memref<8x2048xbf16, #tpu.memory_space<vmem>>, vector<8x2048xbf16>
    %c0_1 = arith.constant 0 : index
    %c0_2 = arith.constant 0 : index
    %1 = vector.load %arg3[%c0_1, %c0_2] : memref<2048x32xbf16, #tpu.memory_space<vmem>>, vector<2048x32xbf16>
    %cst = arith.constant dense<0.000000e+00> : vector<8x32xf32>
    %2 = tpu.matmul %0, %1, %cst {dimension_numbers = #tpu.dot_dimension_numbers<[1], [0], [0], [1], [0, 0, 1, 1], [], []>} : vector<8x2048xbf16>, vector<2048x32xbf16>, vector<8x32xf32> -> vector<8x32xf32>
    %c0_3 = arith.constant 0 : index
    %c0_4 = arith.constant 0 : index
    %3 = vector.load %arg4[%c0_3, %c0_4] : memref<1x32xf32, #tpu.memory_space<vmem>>, vector<1x32xf32>
    %cst_5 = arith.constant dense<0.000000e+00> : vector<32xf32>
    %4 = vector.multi_reduction <add>, %2, %cst_5 [0] : vector<8x32xf32> to vector<32xf32>
    %5 = vector.shape_cast %4 : vector<32xf32> to vector<1x32xf32>
    %6 = arith.mulf %2, %2 : vector<8x32xf32>
    %cst_6 = arith.constant dense<0.000000e+00> : vector<32xf32>
    %7 = vector.multi_reduction <add>, %6, %cst_6 [0] : vector<8x32xf32> to vector<32xf32>
    %8 = vector.shape_cast %7 : vector<32xf32> to vector<1x32xf32>
    %9 = tpu.iota {dimensions = array<i32: 0>} : vector<8x32xi32>
    %10 = vector.shape_cast %5 : vector<1x32xf32> to vector<1x32xf32>
    %11 = vector.broadcast %10 : vector<1x32xf32> to vector<8x32xf32>
    %12 = vector.shape_cast %8 : vector<1x32xf32> to vector<1x32xf32>
    %13 = vector.broadcast %12 : vector<1x32xf32> to vector<8x32xf32>
    %c0_i32 = arith.constant 0 : i32
    %14 = vector.broadcast %c0_i32 : i32 to vector<8x32xi32>
    %15 = arith.cmpi eq, %9, %14 : vector<8x32xi32>
    %c1_i32 = arith.constant 1 : i32
    %16 = vector.broadcast %c1_i32 : i32 to vector<8x32xi32>
    %17 = arith.cmpi eq, %9, %16 : vector<8x32xi32>
    %cst_7 = arith.constant 0.000000e+00 : f32
    %18 = vector.broadcast %cst_7 : f32 to vector<8x32xf32>
    %19 = arith.select %17, %13, %18 : vector<8x32xi1>, vector<8x32xf32>
    %20 = arith.select %15, %11, %19 : vector<8x32xi1>, vector<8x32xf32>
    %c0_8 = arith.constant 0 : index
    %c0_9 = arith.constant 0 : index
    %21 = vector.load %arg6[%c0_8, %c0_9] : memref<8x32xf32, #tpu.memory_space<vmem>>, vector<8x32xf32>
    tpu.vector_store %arg6[%c0_8, %c0_9], %20 {strides = array<i32>} : memref<8x32xf32, #tpu.memory_space<vmem>>, vector<8x32xf32>,
    %22 = vector.broadcast %3 : vector<1x32xf32> to vector<8x32xf32>
    %23 = arith.addf %2, %22 : vector<8x32xf32>
    %24 = arith.truncf %23 : vector<8x32xf32> to vector<8x32xbf16>
    %c0_10 = arith.constant 0 : index
    %c0_11 = arith.constant 0 : index
    %25 = vector.load %arg5[%c0_10, %c0_11] : memref<8x32xbf16, #tpu.memory_space<vmem>>, vector<8x32xbf16>
    tpu.vector_store %arg5[%c0_10, %c0_11], %24 {strides = array<i32>} : memref<8x32xbf16, #tpu.memory_space<vmem>>, vector<8x32xbf16>,
    return
  }
  func.func @transform_0(%arg0: i32, %arg1: i32) -> (i32, i32) {
    %c0_i32 = arith.constant 0 : i32
    %c0_i32_0 = arith.constant 0 : i32
    return %arg0, %c0_i32 : i32, i32
  }
  func.func @transform_1(%arg0: i32, %arg1: i32) -> (i32, i32) {
    %c0_i32 = arith.constant 0 : i32
    %c0_i32_0 = arith.constant 0 : i32
    return %c0_i32, %arg1 : i32, i32
  }
  func.func @transform_2(%arg0: i32, %arg1: i32) -> (i32, i32) {
    %c0_i32 = arith.constant 0 : i32
    %c0_i32_0 = arith.constant 0 : i32
    return %c0_i32, %arg1 : i32, i32
  }
  func.func @transform_3(%arg0: i32, %arg1: i32) -> (i32, i32) {
    %c0_i32 = arith.constant 0 : i32
    return %arg0, %arg1 : i32, i32
  }
  func.func @transform_4(%arg0: i32, %arg1: i32) -> (i32, i32) {
    %c0_i32 = arith.constant 0 : i32
    return %arg0, %arg1 : i32, i32
  }
}

module attributes {stable_mosaic.version = 11 : i64} {
  func.func @kernel(%arg0: i32, %arg1: i32, %arg2: memref<8x896xbf16, #tpu.memory_space<vmem>>, %arg3: memref<896x256xbf16, #tpu.memory_space<vmem>>, %arg4: memref<1x256xf32, #tpu.memory_space<vmem>>, %arg5: memref<8x256xbf16, #tpu.memory_space<vmem>>, %arg6: memref<8x256xf32, #tpu.memory_space<vmem>>) attributes {dimension_semantics = [#tpu.dimension_semantics<parallel>, #tpu.dimension_semantics<parallel>], iteration_bounds = array<i64: 1, 1>, scalar_prefetch = 0 : i64, scratch_operands = 0 : i64, tpu.core_type = #tpu.core_type<tc>, window_params = [{transform_indices = @transform_0, window_bounds = array<i64: 8, 896>}, {transform_indices = @transform_1, window_bounds = array<i64: 896, 256>}, {transform_indices = @transform_2, window_bounds = array<i64: 1, 256>}, {transform_indices = @transform_3, window_bounds = array<i64: 8, 256>}, {transform_indices = @transform_4, window_bounds = array<i64: 8, 256>}]} {
    %c0 = arith.constant 0 : index
    %c0_0 = arith.constant 0 : index
    %0 = vector.load %arg2[%c0, %c0_0] : memref<8x896xbf16, #tpu.memory_space<vmem>>, vector<8x896xbf16>
    %c0_1 = arith.constant 0 : index
    %c0_2 = arith.constant 0 : index
    %1 = vector.load %arg3[%c0_1, %c0_2] : memref<896x256xbf16, #tpu.memory_space<vmem>>, vector<896x256xbf16>
    %cst = arith.constant dense<0.000000e+00> : vector<8x256xf32>
    %2 = tpu.matmul %0, %1, %cst {dimension_numbers = #tpu.dot_dimension_numbers<[1], [0], [0], [1], [0, 0, 1, 1], [], []>} : vector<8x896xbf16>, vector<896x256xbf16>, vector<8x256xf32> -> vector<8x256xf32>
    %c0_3 = arith.constant 0 : index
    %c0_4 = arith.constant 0 : index
    %3 = vector.load %arg4[%c0_3, %c0_4] : memref<1x256xf32, #tpu.memory_space<vmem>>, vector<1x256xf32>
    %cst_5 = arith.constant dense<0.000000e+00> : vector<256xf32>
    %4 = vector.multi_reduction <add>, %2, %cst_5 [0] : vector<8x256xf32> to vector<256xf32>
    %5 = vector.shape_cast %4 : vector<256xf32> to vector<1x256xf32>
    %6 = arith.mulf %2, %2 : vector<8x256xf32>
    %cst_6 = arith.constant dense<0.000000e+00> : vector<256xf32>
    %7 = vector.multi_reduction <add>, %6, %cst_6 [0] : vector<8x256xf32> to vector<256xf32>
    %8 = vector.shape_cast %7 : vector<256xf32> to vector<1x256xf32>
    %9 = tpu.iota {dimensions = array<i32: 0>} : vector<8x256xi32>
    %10 = vector.shape_cast %5 : vector<1x256xf32> to vector<1x256xf32>
    %11 = vector.broadcast %10 : vector<1x256xf32> to vector<8x256xf32>
    %12 = vector.shape_cast %8 : vector<1x256xf32> to vector<1x256xf32>
    %13 = vector.broadcast %12 : vector<1x256xf32> to vector<8x256xf32>
    %c0_i32 = arith.constant 0 : i32
    %14 = vector.broadcast %c0_i32 : i32 to vector<8x256xi32>
    %15 = arith.cmpi eq, %9, %14 : vector<8x256xi32>
    %c1_i32 = arith.constant 1 : i32
    %16 = vector.broadcast %c1_i32 : i32 to vector<8x256xi32>
    %17 = arith.cmpi eq, %9, %16 : vector<8x256xi32>
    %cst_7 = arith.constant 0.000000e+00 : f32
    %18 = vector.broadcast %cst_7 : f32 to vector<8x256xf32>
    %19 = arith.select %17, %13, %18 : vector<8x256xi1>, vector<8x256xf32>
    %20 = arith.select %15, %11, %19 : vector<8x256xi1>, vector<8x256xf32>
    %c0_8 = arith.constant 0 : index
    %c0_9 = arith.constant 0 : index
    %21 = vector.load %arg6[%c0_8, %c0_9] : memref<8x256xf32, #tpu.memory_space<vmem>>, vector<8x256xf32>
    tpu.vector_store %arg6[%c0_8, %c0_9], %20 {strides = array<i32>} : memref<8x256xf32, #tpu.memory_space<vmem>>, vector<8x256xf32>,
    %22 = vector.broadcast %3 : vector<1x256xf32> to vector<8x256xf32>
    %23 = arith.addf %2, %22 : vector<8x256xf32>
    %24 = arith.truncf %23 : vector<8x256xf32> to vector<8x256xbf16>
    %c0_10 = arith.constant 0 : index
    %c0_11 = arith.constant 0 : index
    %25 = vector.load %arg5[%c0_10, %c0_11] : memref<8x256xbf16, #tpu.memory_space<vmem>>, vector<8x256xbf16>
    tpu.vector_store %arg5[%c0_10, %c0_11], %24 {strides = array<i32>} : memref<8x256xbf16, #tpu.memory_space<vmem>>, vector<8x256xbf16>,
    return
  }
  func.func @transform_0(%arg0: i32, %arg1: i32) -> (i32, i32) {
    %c0_i32 = arith.constant 0 : i32
    %c0_i32_0 = arith.constant 0 : i32
    return %arg0, %c0_i32 : i32, i32
  }
  func.func @transform_1(%arg0: i32, %arg1: i32) -> (i32, i32) {
    %c0_i32 = arith.constant 0 : i32
    %c0_i32_0 = arith.constant 0 : i32
    return %c0_i32, %arg1 : i32, i32
  }
  func.func @transform_2(%arg0: i32, %arg1: i32) -> (i32, i32) {
    %c0_i32 = arith.constant 0 : i32
    %c0_i32_0 = arith.constant 0 : i32
    return %c0_i32, %arg1 : i32, i32
  }
  func.func @transform_3(%arg0: i32, %arg1: i32) -> (i32, i32) {
    %c0_i32 = arith.constant 0 : i32
    return %arg0, %arg1 : i32, i32
  }
  func.func @transform_4(%arg0: i32, %arg1: i32) -> (i32, i32) {
    %c0_i32 = arith.constant 0 : i32
    return %arg0, %arg1 : i32, i32
  }
}

module attributes {stable_mosaic.version = 11 : i64} {
  func.func @kernel(%arg0: i32, %arg1: i32, %arg2: memref<8x1792xbf16, #tpu.memory_space<vmem>>, %arg3: memref<1792x128xbf16, #tpu.memory_space<vmem>>, %arg4: memref<1x128xf32, #tpu.memory_space<vmem>>, %arg5: memref<8x128xbf16, #tpu.memory_space<vmem>>, %arg6: memref<8x128xf32, #tpu.memory_space<vmem>>) attributes {dimension_semantics = [#tpu.dimension_semantics<parallel>, #tpu.dimension_semantics<parallel>], iteration_bounds = array<i64: 2, 1>, scalar_prefetch = 0 : i64, scratch_operands = 0 : i64, tpu.core_type = #tpu.core_type<tc>, window_params = [{transform_indices = @transform_0, window_bounds = array<i64: 8, 1792>}, {transform_indices = @transform_1, window_bounds = array<i64: 1792, 128>}, {transform_indices = @transform_2, window_bounds = array<i64: 1, 128>}, {transform_indices = @transform_3, window_bounds = array<i64: 8, 128>}, {transform_indices = @transform_4, window_bounds = array<i64: 8, 128>}]} {
    %c0 = arith.constant 0 : index
    %c0_0 = arith.constant 0 : index
    %0 = vector.load %arg2[%c0, %c0_0] : memref<8x1792xbf16, #tpu.memory_space<vmem>>, vector<8x1792xbf16>
    %c0_1 = arith.constant 0 : index
    %c0_2 = arith.constant 0 : index
    %1 = vector.load %arg3[%c0_1, %c0_2] : memref<1792x128xbf16, #tpu.memory_space<vmem>>, vector<1792x128xbf16>
    %cst = arith.constant dense<0.000000e+00> : vector<8x128xf32>
    %2 = tpu.matmul %0, %1, %cst {dimension_numbers = #tpu.dot_dimension_numbers<[1], [0], [0], [1], [0, 0, 1, 1], [], []>} : vector<8x1792xbf16>, vector<1792x128xbf16>, vector<8x128xf32> -> vector<8x128xf32>
    %c0_3 = arith.constant 0 : index
    %c0_4 = arith.constant 0 : index
    %3 = vector.load %arg4[%c0_3, %c0_4] : memref<1x128xf32, #tpu.memory_space<vmem>>, vector<1x128xf32>
    %cst_5 = arith.constant dense<0.000000e+00> : vector<128xf32>
    %4 = vector.multi_reduction <add>, %2, %cst_5 [0] : vector<8x128xf32> to vector<128xf32>
    %5 = vector.shape_cast %4 : vector<128xf32> to vector<1x128xf32>
    %6 = arith.mulf %2, %2 : vector<8x128xf32>
    %cst_6 = arith.constant dense<0.000000e+00> : vector<128xf32>
    %7 = vector.multi_reduction <add>, %6, %cst_6 [0] : vector<8x128xf32> to vector<128xf32>
    %8 = vector.shape_cast %7 : vector<128xf32> to vector<1x128xf32>
    %9 = tpu.iota {dimensions = array<i32: 0>} : vector<8x128xi32>
    %10 = vector.shape_cast %5 : vector<1x128xf32> to vector<1x128xf32>
    %11 = vector.broadcast %10 : vector<1x128xf32> to vector<8x128xf32>
    %12 = vector.shape_cast %8 : vector<1x128xf32> to vector<1x128xf32>
    %13 = vector.broadcast %12 : vector<1x128xf32> to vector<8x128xf32>
    %c0_i32 = arith.constant 0 : i32
    %14 = vector.broadcast %c0_i32 : i32 to vector<8x128xi32>
    %15 = arith.cmpi eq, %9, %14 : vector<8x128xi32>
    %c1_i32 = arith.constant 1 : i32
    %16 = vector.broadcast %c1_i32 : i32 to vector<8x128xi32>
    %17 = arith.cmpi eq, %9, %16 : vector<8x128xi32>
    %cst_7 = arith.constant 0.000000e+00 : f32
    %18 = vector.broadcast %cst_7 : f32 to vector<8x128xf32>
    %19 = arith.select %17, %13, %18 : vector<8x128xi1>, vector<8x128xf32>
    %20 = arith.select %15, %11, %19 : vector<8x128xi1>, vector<8x128xf32>
    %c0_8 = arith.constant 0 : index
    %c0_9 = arith.constant 0 : index
    %21 = vector.load %arg6[%c0_8, %c0_9] : memref<8x128xf32, #tpu.memory_space<vmem>>, vector<8x128xf32>
    tpu.vector_store %arg6[%c0_8, %c0_9], %20 {strides = array<i32>} : memref<8x128xf32, #tpu.memory_space<vmem>>, vector<8x128xf32>,
    %22 = vector.broadcast %3 : vector<1x128xf32> to vector<8x128xf32>
    %23 = arith.addf %2, %22 : vector<8x128xf32>
    %24 = arith.truncf %23 : vector<8x128xf32> to vector<8x128xbf16>
    %c0_10 = arith.constant 0 : index
    %c0_11 = arith.constant 0 : index
    %25 = vector.load %arg5[%c0_10, %c0_11] : memref<8x128xbf16, #tpu.memory_space<vmem>>, vector<8x128xbf16>
    tpu.vector_store %arg5[%c0_10, %c0_11], %24 {strides = array<i32>} : memref<8x128xbf16, #tpu.memory_space<vmem>>, vector<8x128xbf16>,
    return
  }
  func.func @transform_0(%arg0: i32, %arg1: i32) -> (i32, i32) {
    %c0_i32 = arith.constant 0 : i32
    %c0_i32_0 = arith.constant 0 : i32
    return %arg0, %c0_i32 : i32, i32
  }
  func.func @transform_1(%arg0: i32, %arg1: i32) -> (i32, i32) {
    %c0_i32 = arith.constant 0 : i32
    %c0_i32_0 = arith.constant 0 : i32
    return %c0_i32, %arg1 : i32, i32
  }
  func.func @transform_2(%arg0: i32, %arg1: i32) -> (i32, i32) {
    %c0_i32 = arith.constant 0 : i32
    %c0_i32_0 = arith.constant 0 : i32
    return %c0_i32, %arg1 : i32, i32
  }
  func.func @transform_3(%arg0: i32, %arg1: i32) -> (i32, i32) {
    %c0_i32 = arith.constant 0 : i32
    return %arg0, %arg1 : i32, i32
  }
  func.func @transform_4(%arg0: i32, %arg1: i32) -> (i32, i32) {
    %c0_i32 = arith.constant 0 : i32
    return %arg0, %arg1 : i32, i32
  }
}

module attributes {stable_mosaic.version = 11 : i64} {
  func.func @kernel(%arg0: i32, %arg1: i32, %arg2: memref<64x896xbf16, #tpu.memory_space<vmem>>, %arg3: memref<896x64xbf16, #tpu.memory_space<vmem>>, %arg4: memref<1x64xf32, #tpu.memory_space<vmem>>, %arg5: memref<64x64xbf16, #tpu.memory_space<vmem>>, %arg6: memref<8x64xf32, #tpu.memory_space<vmem>>) attributes {dimension_semantics = [#tpu.dimension_semantics<parallel>, #tpu.dimension_semantics<parallel>], iteration_bounds = array<i64: 2, 1>, scalar_prefetch = 0 : i64, scratch_operands = 0 : i64, tpu.core_type = #tpu.core_type<tc>, window_params = [{transform_indices = @transform_0, window_bounds = array<i64: 64, 896>}, {transform_indices = @transform_1, window_bounds = array<i64: 896, 64>}, {transform_indices = @transform_2, window_bounds = array<i64: 1, 64>}, {transform_indices = @transform_3, window_bounds = array<i64: 64, 64>}, {transform_indices = @transform_4, window_bounds = array<i64: 8, 64>}]} {
    %c0 = arith.constant 0 : index
    %c0_0 = arith.constant 0 : index
    %0 = vector.load %arg2[%c0, %c0_0] : memref<64x896xbf16, #tpu.memory_space<vmem>>, vector<64x896xbf16>
    %c0_1 = arith.constant 0 : index
    %c0_2 = arith.constant 0 : index
    %1 = vector.load %arg3[%c0_1, %c0_2] : memref<896x64xbf16, #tpu.memory_space<vmem>>, vector<896x64xbf16>
    %cst = arith.constant dense<0.000000e+00> : vector<64x64xf32>
    %2 = tpu.matmul %0, %1, %cst {dimension_numbers = #tpu.dot_dimension_numbers<[1], [0], [0], [1], [0, 0, 1, 1], [], []>} : vector<64x896xbf16>, vector<896x64xbf16>, vector<64x64xf32> -> vector<64x64xf32>
    %c0_3 = arith.constant 0 : index
    %c0_4 = arith.constant 0 : index
    %3 = vector.load %arg4[%c0_3, %c0_4] : memref<1x64xf32, #tpu.memory_space<vmem>>, vector<1x64xf32>
    %cst_5 = arith.constant dense<0.000000e+00> : vector<64xf32>
    %4 = vector.multi_reduction <add>, %2, %cst_5 [0] : vector<64x64xf32> to vector<64xf32>
    %5 = vector.shape_cast %4 : vector<64xf32> to vector<1x64xf32>
    %6 = arith.mulf %2, %2 : vector<64x64xf32>
    %cst_6 = arith.constant dense<0.000000e+00> : vector<64xf32>
    %7 = vector.multi_reduction <add>, %6, %cst_6 [0] : vector<64x64xf32> to vector<64xf32>
    %8 = vector.shape_cast %7 : vector<64xf32> to vector<1x64xf32>
    %9 = tpu.iota {dimensions = array<i32: 0>} : vector<8x64xi32>
    %10 = vector.shape_cast %5 : vector<1x64xf32> to vector<1x64xf32>
    %11 = vector.broadcast %10 : vector<1x64xf32> to vector<8x64xf32>
    %12 = vector.shape_cast %8 : vector<1x64xf32> to vector<1x64xf32>
    %13 = vector.broadcast %12 : vector<1x64xf32> to vector<8x64xf32>
    %c0_i32 = arith.constant 0 : i32
    %14 = vector.broadcast %c0_i32 : i32 to vector<8x64xi32>
    %15 = arith.cmpi eq, %9, %14 : vector<8x64xi32>
    %c1_i32 = arith.constant 1 : i32
    %16 = vector.broadcast %c1_i32 : i32 to vector<8x64xi32>
    %17 = arith.cmpi eq, %9, %16 : vector<8x64xi32>
    %cst_7 = arith.constant 0.000000e+00 : f32
    %18 = vector.broadcast %cst_7 : f32 to vector<8x64xf32>
    %19 = arith.select %17, %13, %18 : vector<8x64xi1>, vector<8x64xf32>
    %20 = arith.select %15, %11, %19 : vector<8x64xi1>, vector<8x64xf32>
    %c0_8 = arith.constant 0 : index
    %c0_9 = arith.constant 0 : index
    %21 = vector.load %arg6[%c0_8, %c0_9] : memref<8x64xf32, #tpu.memory_space<vmem>>, vector<8x64xf32>
    tpu.vector_store %arg6[%c0_8, %c0_9], %20 {strides = array<i32>} : memref<8x64xf32, #tpu.memory_space<vmem>>, vector<8x64xf32>,
    %22 = vector.broadcast %3 : vector<1x64xf32> to vector<64x64xf32>
    %23 = arith.addf %2, %22 : vector<64x64xf32>
    %24 = arith.truncf %23 : vector<64x64xf32> to vector<64x64xbf16>
    %c0_10 = arith.constant 0 : index
    %c0_11 = arith.constant 0 : index
    %25 = vector.load %arg5[%c0_10, %c0_11] : memref<64x64xbf16, #tpu.memory_space<vmem>>, vector<64x64xbf16>
    tpu.vector_store %arg5[%c0_10, %c0_11], %24 {strides = array<i32>} : memref<64x64xbf16, #tpu.memory_space<vmem>>, vector<64x64xbf16>,
    return
  }
  func.func @transform_0(%arg0: i32, %arg1: i32) -> (i32, i32) {
    %c0_i32 = arith.constant 0 : i32
    %c0_i32_0 = arith.constant 0 : i32
    return %arg0, %c0_i32 : i32, i32
  }
  func.func @transform_1(%arg0: i32, %arg1: i32) -> (i32, i32) {
    %c0_i32 = arith.constant 0 : i32
    %c0_i32_0 = arith.constant 0 : i32
    return %c0_i32, %arg1 : i32, i32
  }
  func.func @transform_2(%arg0: i32, %arg1: i32) -> (i32, i32) {
    %c0_i32 = arith.constant 0 : i32
    %c0_i32_0 = arith.constant 0 : i32
    return %c0_i32, %arg1 : i32, i32
  }
  func.func @transform_3(%arg0: i32, %arg1: i32) -> (i32, i32) {
    %c0_i32 = arith.constant 0 : i32
    return %arg0, %arg1 : i32, i32
  }
  func.func @transform_4(%arg0: i32, %arg1: i32) -> (i32, i32) {
    %c0_i32 = arith.constant 0 : i32
    return %arg0, %arg1 : i32, i32
  }
}

module attributes {stable_mosaic.version = 11 : i64} {
  func.func @kernel(%arg0: i32, %arg1: i32, %arg2: memref<512x512xbf16, #tpu.memory_space<vmem>>, %arg3: memref<512x8xbf16, #tpu.memory_space<vmem>>, %arg4: memref<1x8xf32, #tpu.memory_space<vmem>>, %arg5: memref<512x8xf32, #tpu.memory_space<vmem>>, %arg6: memref<8x8xf32, #tpu.memory_space<vmem>>) attributes {dimension_semantics = [#tpu.dimension_semantics<parallel>, #tpu.dimension_semantics<parallel>], iteration_bounds = array<i64: 2, 1>, scalar_prefetch = 0 : i64, scratch_operands = 0 : i64, tpu.core_type = #tpu.core_type<tc>, window_params = [{transform_indices = @transform_0, window_bounds = array<i64: 512, 512>}, {transform_indices = @transform_1, window_bounds = array<i64: 512, 8>}, {transform_indices = @transform_2, window_bounds = array<i64: 1, 8>}, {transform_indices = @transform_3, window_bounds = array<i64: 512, 8>}, {transform_indices = @transform_4, window_bounds = array<i64: 8, 8>}]} {
    %c0 = arith.constant 0 : index
    %c0_0 = arith.constant 0 : index
    %0 = vector.load %arg2[%c0, %c0_0] : memref<512x512xbf16, #tpu.memory_space<vmem>>, vector<512x512xbf16>
    %c0_1 = arith.constant 0 : index
    %c0_2 = arith.constant 0 : index
    %1 = vector.load %arg3[%c0_1, %c0_2] : memref<512x8xbf16, #tpu.memory_space<vmem>>, vector<512x8xbf16>
    %cst = arith.constant dense<0.000000e+00> : vector<512x8xf32>
    %2 = tpu.matmul %0, %1, %cst {dimension_numbers = #tpu.dot_dimension_numbers<[1], [0], [0], [1], [0, 0, 1, 1], [], []>} : vector<512x512xbf16>, vector<512x8xbf16>, vector<512x8xf32> -> vector<512x8xf32>
    %c0_3 = arith.constant 0 : index
    %c0_4 = arith.constant 0 : index
    %3 = vector.load %arg4[%c0_3, %c0_4] : memref<1x8xf32, #tpu.memory_space<vmem>>, vector<1x8xf32>
    %cst_5 = arith.constant dense<0.000000e+00> : vector<8xf32>
    %4 = vector.multi_reduction <add>, %2, %cst_5 [0] : vector<512x8xf32> to vector<8xf32>
    %5 = vector.shape_cast %4 : vector<8xf32> to vector<1x8xf32>
    %6 = arith.mulf %2, %2 : vector<512x8xf32>
    %cst_6 = arith.constant dense<0.000000e+00> : vector<8xf32>
    %7 = vector.multi_reduction <add>, %6, %cst_6 [0] : vector<512x8xf32> to vector<8xf32>
    %8 = vector.shape_cast %7 : vector<8xf32> to vector<1x8xf32>
    %9 = tpu.iota {dimensions = array<i32: 0>} : vector<8x8xi32>
    %10 = vector.shape_cast %5 : vector<1x8xf32> to vector<1x8xf32>
    %11 = vector.broadcast %10 : vector<1x8xf32> to vector<8x8xf32>
    %12 = vector.shape_cast %8 : vector<1x8xf32> to vector<1x8xf32>
    %13 = vector.broadcast %12 : vector<1x8xf32> to vector<8x8xf32>
    %c0_i32 = arith.constant 0 : i32
    %14 = vector.broadcast %c0_i32 : i32 to vector<8x8xi32>
    %15 = arith.cmpi eq, %9, %14 : vector<8x8xi32>
    %c1_i32 = arith.constant 1 : i32
    %16 = vector.broadcast %c1_i32 : i32 to vector<8x8xi32>
    %17 = arith.cmpi eq, %9, %16 : vector<8x8xi32>
    %cst_7 = arith.constant 0.000000e+00 : f32
    %18 = vector.broadcast %cst_7 : f32 to vector<8x8xf32>
    %19 = arith.select %17, %13, %18 : vector<8x8xi1>, vector<8x8xf32>
    %20 = arith.select %15, %11, %19 : vector<8x8xi1>, vector<8x8xf32>
    %c0_8 = arith.constant 0 : index
    %c0_9 = arith.constant 0 : index
    %21 = vector.load %arg6[%c0_8, %c0_9] : memref<8x8xf32, #tpu.memory_space<vmem>>, vector<8x8xf32>
    tpu.vector_store %arg6[%c0_8, %c0_9], %20 {strides = array<i32>} : memref<8x8xf32, #tpu.memory_space<vmem>>, vector<8x8xf32>,
    %22 = vector.broadcast %3 : vector<1x8xf32> to vector<512x8xf32>
    %23 = arith.addf %2, %22 : vector<512x8xf32>
    %24 = math.tanh %23 : vector<512x8xf32>
    %c0_10 = arith.constant 0 : index
    %c0_11 = arith.constant 0 : index
    %25 = vector.load %arg5[%c0_10, %c0_11] : memref<512x8xf32, #tpu.memory_space<vmem>>, vector<512x8xf32>
    tpu.vector_store %arg5[%c0_10, %c0_11], %24 {strides = array<i32>} : memref<512x8xf32, #tpu.memory_space<vmem>>, vector<512x8xf32>,
    return
  }
  func.func @transform_0(%arg0: i32, %arg1: i32) -> (i32, i32) {
    %c0_i32 = arith.constant 0 : i32
    %c0_i32_0 = arith.constant 0 : i32
    return %arg0, %c0_i32 : i32, i32
  }
  func.func @transform_1(%arg0: i32, %arg1: i32) -> (i32, i32) {
    %c0_i32 = arith.constant 0 : i32
    %c0_i32_0 = arith.constant 0 : i32
    return %c0_i32, %arg1 : i32, i32
  }
  func.func @transform_2(%arg0: i32, %arg1: i32) -> (i32, i32) {
    %c0_i32 = arith.constant 0 : i32
    %c0_i32_0 = arith.constant 0 : i32
    return %c0_i32, %arg1 : i32, i32
  }
  func.func @transform_3(%arg0: i32, %arg1: i32) -> (i32, i32) {
    %c0_i32 = arith.constant 0 : i32
    return %arg0, %arg1 : i32, i32
  }
  func.func @transform_4(%arg0: i32, %arg1: i32) -> (i32, i32) {
    %c0_i32 = arith.constant 0 : i32
    return %arg0, %arg1 : i32, i32
  }
}

</mosaic_0001>

<bundles_post_ra>
// kernel: unet_forward.8
= control target key start
LH: loop header
LB: loop body
LE: loop exit
PB: predicated region body
PF: predicated region fallthrough
CT: control target
= control target key end

     0   :  { %10 = vsyncpa [#allocation3], 0  ;;  %s2971_s0 = inlined_call_operand.vmem [shape: bf16[1024,128], index: 0, kind: input, shape index: {}]   ;;  %s2972_s1 = inlined_call_operand.vmem [shape: bf16[128,8], index: 1, kind: input, shape index: {}]   ;;  %s2973_s2 = inlined_call_operand.vmem [shape: f32[1,8], index: 2, kind: input, shape index: {}]   ;;  %s2974_s3 = inlined_call_operand.vmem [shape: bf16[1024,8], index: 3, kind: output, shape index: {0}]   ;;  %s2975_s4 = inlined_call_operand.hbm [shape: f32[16,8], index: 4, kind: output, shape index: {1}]  }
   0x1   :  { %12 = vsyncpa [#allocation3 + $0x1], 0  ;;  %s2279_s15 = smov 0   ;;  %s2281_s16 = smov 0  }
   0x2   :  { %s2283_s17 = smov 0   ;;  %s2285_s18 = smov 0  }
   0x3   :  { %s2287_s19 = smov 0   ;;  %s2289_s20 = smov 0  }
   0x4 LB: > { %s1759_s21 = sadd.s32 4294967295, %s2251_s20   ;;  %s1760_s22 = sadd.s32 4294967294, %s2251_s20   ;;  %s2251_s20 = sphi %s2289_s20, %s18_s20   ;;  %s2247_s19 = sphi %s2287_s19, %s2982_s19   ;;  %s2243_s18 = sphi %s2285_s18, %s2981_s18   ;;  %s2239_s17 = sphi %s2283_s17, %s2980_s17   ;;  %s2235_s16 = sphi %s2281_s16, %s2979_s16   ;;  %s2231_s15 = sphi %s2279_s15, %s2978_s15  }
   0x5   : > { %s30_s23 = sadd.s32 1, %s2247_s19  ;;  %s145_s24 = sadd.s32 1, %s2239_s17 }
   0x6   : > { %p32_p0 = scmp.ge.s32.totalorder %s30_s23, 2  ;;  %p155_p1 = scmp.ne.s32.totalorder %s2239_s17, %s2235_s16 }
   0x7   : > { %p156_p2 = scmp.eq.s32.totalorder %s1759_s21, 1  ;;  %p161_p3 = scmp.ne.s32.totalorder %s2235_s16, %s2231_s15 }
   0x8   : > { %s2984_s23 = smov (%p32_p0, %s30_s23), 0  ;;  %p162_p5 = scmp.eq.s32.totalorder %s1760_s22, 1 }
   0x9   : > { %p2319_p4 = por %p156_p2, %p155_p1  ;;  %s140_s26 = ssub.s32 %s2247_s19, %s2984_s23 }
   0xa   : > { %p1765_p6 = scmp.ge.s32.totalorder %s2251_s20, 1  ;;  %p143_p7 = scmp.eq.s32.totalorder %s140_s26, 0 }
   0xb   : > { %p2326_p8 = por %p162_p5, %p161_p3  ;;  %p202_p9 = scmp.lt.s32.totalorder %s2251_s20, 3 }
   0xc   : > { %s2332_s28 = scalar_select %p143_p7, %s2239_s17, %s145_s24  }
   0xd   : > { %p203_p10 = pnand %p1765_p6, %p202_p9 }
   0xe   : > { %s1767_s5 = sshll.u32 (!%p203_p10), %s2243_s18, 6 }
   0xf   : > { %206 = sbr.rel (%p203_p10) target bundleno = 408 (0x198), region = 32  ;;  %p244_p11 = scmp.lt.s32.totalorder (!%p203_p10), %s1767_s5, 127 }
  0x14   : > { %v2135_v0 = vld [vmem:[%s2972_s1 + $0x38] sm:$0xff]   ;;  %v2136_v1 = vld [vmem:[%s2972_s1 + $0x30] sm:$0xff]   ;;  %s2986_s5 = smov (!%p244_p11, %s1767_s5), 127  ;;  %v2137_v2 = vld [vmem:[%s2972_s1 + $0x28] sm:$0xff]   ;;  %vm1540_vm0 = vcmask 60416   ;;  %vm876_vm1 = vcmask 64512  }
  0x15   : > { %1984 = vmatprep.subr.bf16.mxu0 %v2135_v0  ;;  %2064 = vmatprep.subr.bf16.mxu1 %v2135_v0  ;;  %s1768_s10 = sshll.u32 %s2986_s5, 2  ;;  %v2138_v3 = vld [vmem:[%s2972_s1 + $0x20] sm:$0xff]   ;;  %v2139_v5 = vld [vmem:[%s2972_s1 + $0x18] sm:$0xff]   ;;  %v2140_v6 = vld [vmem:[%s2972_s1 + $0x10] sm:$0xff]   ;;  %s240_s5 = sand.u32 1, %s2235_s16  }
  0x16   : > { %1985 = vmatpush3.bf16.msra.mxu0 %v2135_v0  ;;  %2072 = vmatpush3.bf16.msra.mxu1 %v2135_v0  ;;  %s2352_s13 = scalar_lea.vmem %s2971_s0, %s1768_s10  ;;  %v2141_v7 = vld [vmem:[%s2972_s1 + $0x8] sm:$0xff]   ;;  %v2142_v8 = vld [vmem:[%s2972_s1] sm:$0xff]   ;;  %s2414_s21 = scalar_lea.vmem %s2974_s3, %s1768_s10 }
  0x17   : > { %1986 = vmatprep.subr.bf16.mxu0 %v2136_v1  ;;  %2065 = vmatprep.subr.bf16.mxu1 %v2136_v1  ;;  %v2143_v4 = vld [vmem:[%s2352_s13] sm:$0xff]   ;;  %v2144_v10 = vld [vmem:[%s2352_s13 + $0x8] sm:$0xff]   ;;  %v2145_v11 = vld [vmem:[%s2352_s13 + $0x10] sm:$0xff]   ;;  %s1766_s10 = sshll.u32 %s240_s5, 3  ;;  %s1614_s6 = scalar_lea.sflag [#allocation3], %s240_s5 }
  0x18   : > { %2000 = vmatprep.mubr.bf16.mxu0 %v2143_v4  ;;  %v2159_v9 = vld [vmem:[%s2352_s13 + $0x80] sm:$0xff]   ;;  %v2160_v12 = vld [vmem:[%s2352_s13 + $0x88] sm:$0xff]   ;;  %v2161_v13 = vld [vmem:[%s2352_s13 + $0x90] sm:$0xff]   ;;  %s242_s22 = scalar_lea.vmem [#allocation2], %s1766_s10 }
  0x19   : > { %2032 = vmatprep.mubr.bf16.mxu1 %v2159_v9  ;;  %v2146_v14 = vld [vmem:[%s2352_s13 + $0x18] sm:$0xff]   ;;  %v2147_v15 = vld [vmem:[%s2352_s13 + $0x20] sm:$0xff]   ;;  %v2148_v18 = vld [vmem:[%s2352_s13 + $0x28] sm:$0xff]   ;;  %s1632_s24 = sshll.u32 %s242_s22, 4  ;;  %s1633_s24 = int_to_ptr.vmem [resolvable:$true] %s1632_s24 }
  0x1a   : > { %1987 = vmatpush3.bf16.msra.mxu0 %v2136_v1  ;;  %2073 = vmatpush3.bf16.msra.mxu1 %v2136_v1  ;;  %v2162_v16 = vld [vmem:[%s2352_s13 + $0x98] sm:$0xff]   ;;  %v2163_v17 = vld [vmem:[%s2352_s13 + $0xa0] sm:$0xff]   ;;  %v2164_v19 = vld [vmem:[%s2352_s13 + $0xa8] sm:$0xff]   ;;  %s2175_s7 = scalar_lea.vmem %s1633_s24, 128 }
  0x1b   : > { %1988 = vmatprep.subr.bf16.mxu0 %v2137_v2  ;;  %2066 = vmatprep.subr.bf16.mxu1 %v2137_v2  ;;  %v2149_v20 = vld [vmem:[%s2352_s13 + $0x30] sm:$0xff]   ;;  %v2150_v22 = vld [vmem:[%s2352_s13 + $0x38] sm:$0xff]   ;;  %v2151_v24 = vld [vmem:[%s2352_s13 + $0x40] sm:$0xff]   ;;  %p2176_p12 = scmp.ne.s32.totalorder %s1633_s24, %s2175_s7 }
  0x1c   : > { %v2165_v21 = vld [vmem:[%s2352_s13 + $0xb0] sm:$0xff]   ;;  %v2166_v23 = vld [vmem:[%s2352_s13 + $0xb8] sm:$0xff]   ;;  %v2167_v25 = vld [vmem:[%s2352_s13 + $0xc0] sm:$0xff]  }
  0x1d   : > { %v2152_v26 = vld [vmem:[%s2352_s13 + $0x48] sm:$0xff]   ;;  %v2153_v28 = vld [vmem:[%s2352_s13 + $0x50] sm:$0xff]   ;;  %v2154_v30 = vld [vmem:[%s2352_s13 + $0x58] sm:$0xff]   ;;  %p2177_p13 = pnand %p2176_p12, %p2319_p4 }
  0x1e   : > { %1989 = vmatpush3.bf16.msra.mxu0 %v2137_v2  ;;  %2074 = vmatpush3.bf16.msra.mxu1 %v2137_v2  ;;  %v2168_v27 = vld [vmem:[%s2352_s13 + $0xc8] sm:$0xff]   ;;  %v2169_v29 = vld [vmem:[%s2352_s13 + $0xd0] sm:$0xff]   ;;  %v2170_v31 = vld [vmem:[%s2352_s13 + $0xd8] sm:$0xff]  }
  0x1f   : > { %1990 = vmatprep.subr.bf16.mxu0 %v2138_v3  ;;  %2067 = vmatprep.subr.bf16.mxu1 %v2138_v3  ;;  %v2155_v32 = vld [vmem:[%s2352_s13 + $0x60] sm:$0xff]   ;;  %v2156_v34 = vld [vmem:[%s2352_s13 + $0x68] sm:$0xff]   ;;  %v2157_v36 = vld [vmem:[%s2352_s13 + $0x70] sm:$0xff]   ;;  %p2178_p0 = pneg %p2177_p13 }
  0x20   : > { %v2171_v33 = vld [vmem:[%s2352_s13 + $0xe0] sm:$0xff]   ;;  %v2172_v35 = vld [vmem:[%s2352_s13 + $0xe8] sm:$0xff]   ;;  %v2173_v37 = vld [vmem:[%s2352_s13 + $0xf0] sm:$0xff]  }
  0x21   : > { %v2158_v38 = vld [vmem:[%s2352_s13 + $0x78] sm:$0xff]   ;;  %v2404_v40 = vld [vmem:[%s2973_s2] ss:$0 sm:$0xff] }
  0x22   : > { %1991 = vmatpush3.bf16.msra.mxu0 %v2138_v3  ;;  %2075 = vmatpush3.bf16.msra.mxu1 %v2138_v3  ;;  %v2174_v39 = vld [vmem:[%s2352_s13 + $0xf8] sm:$0xff]   ;;  %s1877_s13 = sshll.u32 %s2243_s18, 7  ;;  %s2253_s18 = smov [#allocation2]  }
  0x23   : > { %1992 = vmatprep.subr.bf16.mxu0 %v2139_v5  ;;  %2068 = vmatprep.subr.bf16.mxu1 %v2139_v5  ;;  %s2930_s30 = scalar_lea.hbm %s2975_s4, %s1877_s13  ;;  %s2179_s8 = sshll.u32 %s2253_s18, 4  ;;  %s2180_s8 = int_to_ptr.vmem [resolvable:$false] %s2179_s8 }
  0x24   : > { %s2181_s9 = scalar_lea.vmem %s2180_s8, 256  ;;  %p2182_p1 = scmp.lt.s32.totalorder %s1633_s24, %s2180_s8 }
  0x25   : > { %p2183_p2 = scmp.lt.s32.totalorder %s2181_s9, %s2175_s7 }
  0x26   : > { %1993 = vmatpush3.bf16.msra.mxu0 %v2139_v5  ;;  %2076 = vmatpush3.bf16.msra.mxu1 %v2139_v5 }
  0x27   : > { %1994 = vmatprep.subr.bf16.mxu0 %v2140_v6  ;;  %2069 = vmatprep.subr.bf16.mxu1 %v2140_v6  ;;  %p2184_p3 = por %p2183_p2, %p2182_p1 }
  0x29   : > { %p2185_p5 = pnand %p2184_p3, %p2178_p0 }
  0x2a   : > { %1995 = vmatpush3.bf16.msra.mxu0 %v2140_v6  ;;  %2077 = vmatpush3.bf16.msra.mxu1 %v2140_v6 }
  0x2b   : > { %1996 = vmatprep.subr.bf16.mxu0 %v2141_v7  ;;  %2070 = vmatprep.subr.bf16.mxu1 %v2141_v7 }
  0x2e   : > { %1997 = vmatpush3.bf16.msra.mxu0 %v2141_v7  ;;  %2078 = vmatpush3.bf16.msra.mxu1 %v2141_v7 }
  0x2f   : > { %1998 = vmatprep.subr.bf16.mxu0 %v2142_v8  ;;  %2071 = vmatprep.subr.bf16.mxu1 %v2142_v8 }
  0x32   : > { %1999 = vmatpush3.bf16.msra.mxu0 %v2142_v8  ;;  %2079 = vmatpush3.bf16.msra.mxu1 %v2142_v8 }
  0x35   : > { %2001 = vmatmul.mubr.bf16.vlgmr.msra.gmra.mxu0 %v2144_v10  ;;  %2033 = vmatmul.mubr.bf16.vlgmr.msra.gmra.mxu1 %v2160_v12 }
  0x36   : > { %2004 = vmatprep.mubr.bf16.mxu0 %v2145_v11  ;;  %2036 = vmatprep.mubr.bf16.mxu1 %v2161_v13 }
  0x3d   : > { %2005 = vmatmul.mubr.bf16.gmra.mxu0 %v2146_v14  ;;  %2037 = vmatmul.mubr.bf16.gmra.mxu1 %v2162_v16 }
  0x3e   : > { %2008 = vmatprep.mubr.bf16.mxu0 %v2147_v15  ;;  %2040 = vmatprep.mubr.bf16.mxu1 %v2163_v17 }
  0x45   : > { %2009 = vmatmul.mubr.bf16.gmra.mxu0 %v2148_v18  ;;  %2041 = vmatmul.mubr.bf16.gmra.mxu1 %v2164_v19 }
  0x46   : > { %2012 = vmatprep.mubr.bf16.mxu0 %v2149_v20  ;;  %2044 = vmatprep.mubr.bf16.mxu1 %v2165_v21 }
  0x4d   : > { %2013 = vmatmul.mubr.bf16.gmra.mxu0 %v2150_v22  ;;  %2045 = vmatmul.mubr.bf16.gmra.mxu1 %v2166_v23 }
  0x4e   : > { %2016 = vmatprep.mubr.bf16.mxu0 %v2151_v24  ;;  %2048 = vmatprep.mubr.bf16.mxu1 %v2167_v25 }
  0x55   : > { %2017 = vmatmul.mubr.bf16.gmra.mxu0 %v2152_v26  ;;  %2049 = vmatmul.mubr.bf16.gmra.mxu1 %v2168_v27 }
  0x56   : > { %2020 = vmatprep.mubr.bf16.mxu0 %v2153_v28  ;;  %2052 = vmatprep.mubr.bf16.mxu1 %v2169_v29 }
  0x5d   : > { %2021 = vmatmul.mubr.bf16.gmra.mxu0 %v2154_v30  ;;  %2053 = vmatmul.mubr.bf16.gmra.mxu1 %v2170_v31 }
  0x5e   : > { %2024 = vmatprep.mubr.bf16.mxu0 %v2155_v32  ;;  %2056 = vmatprep.mubr.bf16.mxu1 %v2171_v33 }
  0x65   : > { %2025 = vmatmul.mubr.bf16.gmra.mxu0 %v2156_v34  ;;  %2057 = vmatmul.mubr.bf16.gmra.mxu1 %v2172_v35 }
  0x66   : > { %2028 = vmatprep.mubr.bf16.mxu0 %v2157_v36  ;;  %2060 = vmatprep.mubr.bf16.mxu1 %v2173_v37 }
  0x6d   : > { %2029 = vmatmul.mubr.bf16.gmra.mxu0 %v2158_v38  ;;  %2061 = vmatmul.mubr.bf16.gmra.mxu1 %v2174_v39 }
  0xf5   : > { %v2002_v41 = vpop.f32.mrf.mxu0  ;;  %v2406_v42 = vpop.f32.mrf.mxu1 }
  0xf6   : > { %v1222_v43 = vadd.f32 %v2002_v41, %v2404_v40  ;;  %v1254_v45 = vadd.f32 %v2406_v42, %v2404_v40  ;;  %v1012_v54 = vmul.f32 %v2002_v41, %v2002_v41  ;;  %v880_v63 = vsel %vm876_vm1, %v2002_v41, 0.0 }
  0xf7   : > { %v620_v44 = vpop.f32.mrf.mxu0  ;;  %v2418_v46 = vpop.f32.mrf.mxu1 }
  0xf8   : > { %v1882_v47 = vpack.c.bf16 %v1222_v43, %v1222_v43  ;;  %v1220_v48 = vadd.f32 %v2404_v40, %v620_v44  ;;  %v1914_v50 = vpack.c.bf16 %v1254_v45, %v1254_v45  ;;  %v1010_v52 = vmul.f32 %v620_v44, %v620_v44 }
  0xf9   : > { %v2003_v49 = vpop.f32.mrf.mxu0  ;;  %v2421_v51 = vpop.f32.mrf.mxu1  ;;  %v1252_v57 = vadd.f32 %v2404_v40, %v2418_v46  ;;  %v877_v59 = vsel %vm876_vm1, %v620_v44, 0.0  ;;  %v1077_v14 = vsel %vm876_vm1, %v1012_v54, 0.0 }
  0xfa   : > { %1543 = vst.msk [vmem:[%s2414_s21 + $0x8] sm:$0xf] %vm1540_vm0, %v1882_v47  ;;  %v1223_v53 = vadd.f32 %v2003_v49, %v2404_v40  ;;  %v1880_v55 = vpack.c.bf16 %v1220_v48, %v1220_v48  ;;  %1575 = vst.msk [vmem:[%s2414_s21 + $0x88] sm:$0xf] %vm1540_vm0, %v1914_v50  ;;  %v1074_v5 = vsel %vm876_vm1, %v1010_v52, 0.0  ;;  %v1013_v6 = vmul.f32 %v2003_v49, %v2003_v49 }
  0xfb   : > { %v623_v56 = vpop.f32.mrf.mxu0  ;;  %v2430_v58 = vpop.f32.mrf.mxu1  ;;  %v1912_v3 = vpack.c.bf16 %v1252_v57, %v1252_v57  ;;  %v882_v15 = vsel %vm876_vm1, %v2003_v49, 0.0  ;;  %v1255_v31 = vadd.f32 %v2421_v51, %v2404_v40 }
  0xfc   : > { %v1883_v60 = vpack.c.bf16 %v1223_v53, %v1223_v53  ;;  %v878_v61 = vsel %vm876_vm1, %v623_v56, 0.0  ;;  %v1011_v62 = vmul.f32 %v623_v56, %v623_v56  ;;  %1541 = vst.msk [vmem:[%s2414_s21] sm:$0xf] %vm1540_vm0, %v1880_v55  ;;  %v1221_v1 = vadd.f32 %v2404_v40, %v623_v56 }
  0xfd   : > { %v879_v0 = vadd.f32 %v878_v61, %v877_v59  ;;  %v2006_v2 = vpop.f32.mrf.mxu0  ;;  %v2438_v4 = vpop.f32.mrf.mxu1  ;;  %1573 = vst.msk [vmem:[%s2414_s21 + $0x80] sm:$0xf] %vm1540_vm0, %v1912_v3  ;;  %v1079_v23 = vsel %vm876_vm1, %v1013_v6, 0.0  ;;  %v1915_v43 = vpack.c.bf16 %v1255_v31, %v1255_v31 }
  0xfe   : > { %1544 = vst.msk [vmem:[%s2414_s21 + $0xc] sm:$0xf] %vm1540_vm0, %v1883_v60  ;;  %v1075_v7 = vsel %vm876_vm1, %v1011_v62, 0.0  ;;  %v1226_v8 = vadd.f32 %v2006_v2, %v2404_v40  ;;  %v1881_v11 = vpack.c.bf16 %v1221_v1, %v1221_v1  ;;  %v1016_v24 = vmul.f32 %v2006_v2, %v2006_v2 }
  0xff   : > { %v881_v9 = vadd.f32 %v880_v63, %v879_v0  ;;  %v1076_v10 = vadd.f32 %v1075_v7, %v1074_v5  ;;  %v636_v12 = vpop.f32.mrf.mxu0  ;;  %v2447_v13 = vpop.f32.mrf.mxu1  ;;  %v888_v45 = vsel %vm876_vm1, %v2006_v2, 0.0  ;;  %1576 = vst.msk [vmem:[%s2414_s21 + $0x8c] sm:$0xf] %vm1540_vm0, %v1915_v43 }
 0x100   : > { %v1886_v16 = vpack.c.bf16 %v1226_v8, %v1226_v8  ;;  %v1014_v17 = vmul.f32 %v636_v12, %v636_v12  ;;  %1542 = vst.msk [vmem:[%s2414_s21 + $0x4] sm:$0xf] %vm1540_vm0, %v1881_v11  ;;  %v1224_v20 = vadd.f32 %v2404_v40, %v636_v12  ;;  %v884_v25 = vsel %vm876_vm1, %v636_v12, 0.0 }
 0x101   : > { %v1078_v18 = vadd.f32 %v1077_v14, %v1076_v10  ;;  %v883_v19 = vadd.f32 %v882_v15, %v881_v9  ;;  %v2007_v21 = vpop.f32.mrf.mxu0  ;;  %v2454_v22 = vpop.f32.mrf.mxu1  ;;  %v1085_v56 = vsel %vm876_vm1, %v1016_v24, 0.0 }
 0x102   : > { %1547 = vst.msk [vmem:[%s2414_s21 + $0x18] sm:$0xf] %vm1540_vm0, %v1886_v16  ;;  %v1227_v26 = vadd.f32 %v2007_v21, %v2404_v40  ;;  %v1884_v29 = vpack.c.bf16 %v1224_v20, %v1224_v20  ;;  %v1081_v33 = vsel %vm876_vm1, %v1014_v17, 0.0  ;;  %v1017_v47 = vmul.f32 %v2007_v21, %v2007_v21 }
 0x103   : > { %v885_v27 = vadd.f32 %v884_v25, %v883_v19  ;;  %v1080_v28 = vadd.f32 %v1079_v23, %v1078_v18  ;;  %v639_v30 = vpop.f32.mrf.mxu0  ;;  %v2463_v32 = vpop.f32.mrf.mxu1  ;;  %v890_v57 = vsel %vm876_vm1, %v2007_v21, 0.0  ;;  %v1253_v21 = vadd.f32 %v2404_v40, %v2430_v58 }
 0x104   : > { %v1887_v34 = vpack.c.bf16 %v1227_v26, %v1227_v26  ;;  %v886_v35 = vsel %vm876_vm1, %v639_v30, 0.0  ;;  %v1015_v36 = vmul.f32 %v639_v30, %v639_v30  ;;  %1545 = vst.msk [vmem:[%s2414_s21 + $0x10] sm:$0xf] %vm1540_vm0, %v1884_v29  ;;  %v1225_v39 = vadd.f32 %v2404_v40, %v639_v30 }
 0x105   : > { %v1082_v37 = vadd.f32 %v1081_v33, %v1080_v28  ;;  %v887_v38 = vadd.f32 %v886_v35, %v885_v27  ;;  %v2010_v41 = vpop.f32.mrf.mxu0  ;;  %v2470_v44 = vpop.f32.mrf.mxu1  ;;  %v1087_v2 = vsel %vm876_vm1, %v1017_v47, 0.0  ;;  %v1913_v33 = vpack.c.bf16 %v1253_v21, %v1253_v21 }
 0x106   : > { %1548 = vst.msk [vmem:[%s2414_s21 + $0x1c] sm:$0xf] %vm1540_vm0, %v1887_v34  ;;  %v1083_v48 = vsel %vm876_vm1, %v1015_v36, 0.0  ;;  %v1230_v49 = vadd.f32 %v2010_v41, %v2404_v40  ;;  %v1885_v53 = vpack.c.bf16 %v1225_v39, %v1225_v39  ;;  %v1020_v6 = vmul.f32 %v2010_v41, %v2010_v41 }
 0x107   : > { %v889_v50 = vadd.f32 %v888_v45, %v887_v38  ;;  %v1084_v52 = vadd.f32 %v1083_v48, %v1082_v37  ;;  %v652_v54 = vpop.f32.mrf.mxu0  ;;  %v2479_v55 = vpop.f32.mrf.mxu1  ;;  %v896_v23 = vsel %vm876_vm1, %v2010_v41, 0.0  ;;  %1574 = vst.msk [vmem:[%s2414_s21 + $0x84] sm:$0xf] %vm1540_vm0, %v1913_v33 }
 0x108   : > { %v1890_v59 = vpack.c.bf16 %v1230_v49, %v1230_v49  ;;  %v1018_v60 = vmul.f32 %v652_v54, %v652_v54  ;;  %1546 = vst.msk [vmem:[%s2414_s21 + $0x14] sm:$0xf] %vm1540_vm0, %v1885_v53  ;;  %v1228_v63 = vadd.f32 %v2404_v40, %v652_v54  ;;  %v892_v3 = vsel %vm876_vm1, %v652_v54, 0.0 }
 0x109   : > { %v1086_v61 = vadd.f32 %v1085_v56, %v1084_v52  ;;  %v891_v62 = vadd.f32 %v890_v57, %v889_v50  ;;  %v2011_v0 = vpop.f32.mrf.mxu0  ;;  %v2486_v1 = vpop.f32.mrf.mxu1  ;;  %v1093_v34 = vsel %vm876_vm1, %v1020_v6, 0.0 }
 0x10a   : > { %1551 = vst.msk [vmem:[%s2414_s21 + $0x28] sm:$0xf] %vm1540_vm0, %v1890_v59  ;;  %v1231_v5 = vadd.f32 %v2011_v0, %v2404_v40  ;;  %v1888_v9 = vpack.c.bf16 %v1228_v63, %v1228_v63  ;;  %v1089_v12 = vsel %vm876_vm1, %v1018_v60, 0.0  ;;  %v1021_v24 = vmul.f32 %v2011_v0, %v2011_v0 }
 0x10b   : > { %v893_v7 = vadd.f32 %v892_v3, %v891_v62  ;;  %v1088_v8 = vadd.f32 %v1087_v2, %v1086_v61  ;;  %v655_v10 = vpop.f32.mrf.mxu0  ;;  %v2493_v11 = vpop.f32.mrf.mxu1  ;;  %v898_v35 = vsel %vm876_vm1, %v2011_v0, 0.0 }
 0x10c   : > { %v1891_v14 = vpack.c.bf16 %v1231_v5, %v1231_v5  ;;  %v894_v15 = vsel %vm876_vm1, %v655_v10, 0.0  ;;  %v1019_v16 = vmul.f32 %v655_v10, %v655_v10  ;;  %1549 = vst.msk [vmem:[%s2414_s21 + $0x20] sm:$0xf] %vm1540_vm0, %v1888_v9  ;;  %v1229_v19 = vadd.f32 %v2404_v40, %v655_v10 }
 0x10d   : > { %v1090_v17 = vadd.f32 %v1089_v12, %v1088_v8  ;;  %v895_v18 = vadd.f32 %v894_v15, %v893_v7  ;;  %v2014_v20 = vpop.f32.mrf.mxu0  ;;  %v2507_v27 = vpop.f32.mrf.mxu1  ;;  %v1095_v45 = vsel %vm876_vm1, %v1021_v24, 0.0  ;;  %v1258_v15 = vadd.f32 %v2438_v4, %v2404_v40 }
 0x10e   : > { %1552 = vst.msk [vmem:[%s2414_s21 + $0x2c] sm:$0xf] %vm1540_vm0, %v1891_v14  ;;  %v1091_v25 = vsel %vm876_vm1, %v1019_v16, 0.0  ;;  %v1234_v26 = vadd.f32 %v2014_v20, %v2404_v40  ;;  %v1889_v30 = vpack.c.bf16 %v1229_v19, %v1229_v19  ;;  %v1024_v50 = vmul.f32 %v2014_v20, %v2014_v20 }
 0x10f   : > { %v897_v28 = vadd.f32 %v896_v23, %v895_v18  ;;  %v1092_v29 = vadd.f32 %v1091_v25, %v1090_v17  ;;  %v668_v31 = vpop.f32.mrf.mxu0  ;;  %v2521_v49 = vpop.f32.mrf.mxu1  ;;  %v904_v3 = vsel %vm876_vm1, %v2014_v20, 0.0  ;;  %v1918_v25 = vpack.c.bf16 %v1258_v15, %v1258_v15 }
 0x110   : > { %v1894_v36 = vpack.c.bf16 %v1234_v26, %v1234_v26  ;;  %v1022_v37 = vmul.f32 %v668_v31, %v668_v31  ;;  %1550 = vst.msk [vmem:[%s2414_s21 + $0x24] sm:$0xf] %vm1540_vm0, %v1889_v30  ;;  %v1232_v41 = vadd.f32 %v2404_v40, %v668_v31  ;;  %v900_v47 = vsel %vm876_vm1, %v668_v31, 0.0 }
 0x111   : > { %v1094_v38 = vadd.f32 %v1093_v34, %v1092_v29  ;;  %v899_v39 = vadd.f32 %v898_v35, %v897_v28  ;;  %v2015_v43 = vpop.f32.mrf.mxu0  ;;  %v2533_v8 = vpop.f32.mrf.mxu1  ;;  %v1101_v16 = vsel %vm876_vm1, %v1024_v50, 0.0  ;;  %1579 = vst.msk [vmem:[%s2414_s21 + $0x98] sm:$0xf] %vm1540_vm0, %v1918_v25 }
 0x112   : > { %1555 = vst.msk [vmem:[%s2414_s21 + $0x38] sm:$0xf] %vm1540_vm0, %v1894_v36  ;;  %v1235_v48 = vadd.f32 %v2015_v43, %v2404_v40  ;;  %v1892_v54 = vpack.c.bf16 %v1232_v41, %v1232_v41  ;;  %v1097_v57 = vsel %vm876_vm1, %v1022_v37, 0.0  ;;  %v1025_v5 = vmul.f32 %v2015_v43, %v2015_v43 }
 0x113   : > { %v901_v52 = vadd.f32 %v900_v47, %v899_v39  ;;  %v1096_v53 = vadd.f32 %v1095_v45, %v1094_v38  ;;  %v671_v56 = vpop.f32.mrf.mxu0  ;;  %v906_v17 = vsel %vm876_vm1, %v2015_v43, 0.0  ;;  %v2547_v30 = vpop.f32.mrf.mxu1 }
 0x114   : > { %v1895_v59 = vpack.c.bf16 %v1235_v48, %v1235_v48  ;;  %v902_v60 = vsel %vm876_vm1, %v671_v56, 0.0  ;;  %v1023_v61 = vmul.f32 %v671_v56, %v671_v56  ;;  %1553 = vst.msk [vmem:[%s2414_s21 + $0x30] sm:$0xf] %vm1540_vm0, %v1892_v54  ;;  %v1233_v0 = vadd.f32 %v2404_v40, %v671_v56 }
 0x115   : > { %v1098_v62 = vadd.f32 %v1097_v57, %v1096_v53  ;;  %v903_v63 = vadd.f32 %v902_v60, %v901_v52  ;;  %v2018_v2 = vpop.f32.mrf.mxu0  ;;  %v1103_v26 = vsel %vm876_vm1, %v1025_v5, 0.0  ;;  %v2561_v56 = vpop.f32.mrf.mxu1 }
 0x116   : > { %1556 = vst.msk [vmem:[%s2414_s21 + $0x3c] sm:$0xf] %vm1540_vm0, %v1895_v59  ;;  %v1099_v6 = vsel %vm876_vm1, %v1023_v61, 0.0  ;;  %v1238_v7 = vadd.f32 %v2018_v2, %v2404_v40  ;;  %v1893_v12 = vpack.c.bf16 %v1233_v0, %v1233_v0  ;;  %v1028_v31 = vmul.f32 %v2018_v2, %v2018_v2 }
 0x117   : > { %v905_v9 = vadd.f32 %v904_v3, %v903_v63  ;;  %v1100_v10 = vadd.f32 %v1099_v6, %v1098_v62  ;;  %v684_v14 = vpop.f32.mrf.mxu0  ;;  %v912_v50 = vsel %vm876_vm1, %v2018_v2, 0.0 }
 0x118   : > { %v1898_v18 = vpack.c.bf16 %v1238_v7, %v1238_v7  ;;  %v1026_v19 = vmul.f32 %v684_v14, %v684_v14  ;;  %1554 = vst.msk [vmem:[%s2414_s21 + $0x34] sm:$0xf] %vm1540_vm0, %v1893_v12  ;;  %v1236_v23 = vadd.f32 %v2404_v40, %v684_v14  ;;  %v908_v28 = vsel %vm876_vm1, %v684_v14, 0.0 }
 0x119   : > { %v1102_v20 = vadd.f32 %v1101_v16, %v1100_v10  ;;  %v907_v21 = vadd.f32 %v906_v17, %v905_v9  ;;  %v2019_v24 = vpop.f32.mrf.mxu0  ;;  %v1109_v62 = vsel %vm876_vm1, %v1028_v31, 0.0  ;;  %v1256_v9 = vadd.f32 %v2404_v40, %v2447_v13  ;;  %v2575_v16 = vpop.f32.mrf.mxu1 }
 0x11a   : > { %1559 = vst.msk [vmem:[%s2414_s21 + $0x48] sm:$0xf] %vm1540_vm0, %v1898_v18  ;;  %v1239_v29 = vadd.f32 %v2019_v24, %v2404_v40  ;;  %v1896_v35 = vpack.c.bf16 %v1236_v23, %v1236_v23  ;;  %v1105_v37 = vsel %vm876_vm1, %v1026_v19, 0.0  ;;  %v1029_v52 = vmul.f32 %v2019_v24, %v2019_v24 }
 0x11b   : > { %v909_v33 = vadd.f32 %v908_v28, %v907_v21  ;;  %v1104_v34 = vadd.f32 %v1103_v26, %v1102_v20  ;;  %v687_v36 = vpop.f32.mrf.mxu0  ;;  %v914_v63 = vsel %vm876_vm1, %v2019_v24, 0.0  ;;  %v1916_v21 = vpack.c.bf16 %v1256_v9, %v1256_v9 }
 0x11c   : > { %v1899_v38 = vpack.c.bf16 %v1239_v29, %v1239_v29  ;;  %v910_v39 = vsel %vm876_vm1, %v687_v36, 0.0  ;;  %v1027_v41 = vmul.f32 %v687_v36, %v687_v36  ;;  %1557 = vst.msk [vmem:[%s2414_s21 + $0x40] sm:$0xf] %vm1540_vm0, %v1896_v35  ;;  %v1237_v47 = vadd.f32 %v2404_v40, %v687_v36 }
 0x11d   : > { %v1106_v43 = vadd.f32 %v1105_v37, %v1104_v34  ;;  %v911_v45 = vadd.f32 %v910_v39, %v909_v33  ;;  %v2022_v48 = vpop.f32.mrf.mxu0  ;;  %v1111_v10 = vsel %vm876_vm1, %v1029_v52, 0.0  ;;  %1577 = vst.msk [vmem:[%s2414_s21 + $0x90] sm:$0xf] %vm1540_vm0, %v1916_v21 }
 0x11e   : > { %1560 = vst.msk [vmem:[%s2414_s21 + $0x4c] sm:$0xf] %vm1540_vm0, %v1899_v38  ;;  %v1107_v53 = vsel %vm876_vm1, %v1027_v41, 0.0  ;;  %v1242_v54 = vadd.f32 %v2022_v48, %v2404_v40  ;;  %v1897_v60 = vpack.c.bf16 %v1237_v47, %v1237_v47  ;;  %v1032_v12 = vmul.f32 %v2022_v48, %v2022_v48  ;;  %v2589_v38 = vpop.f32.mrf.mxu1 }
 0x11f   : > { %v913_v57 = vadd.f32 %v912_v50, %v911_v45  ;;  %v1108_v59 = vadd.f32 %v1107_v53, %v1106_v43  ;;  %v700_v61 = vpop.f32.mrf.mxu0  ;;  %v920_v34 = vsel %vm876_vm1, %v2022_v48, 0.0 }
 0x120   : > { %v1902_v0 = vpack.c.bf16 %v1242_v54, %v1242_v54  ;;  %v1030_v2 = vmul.f32 %v700_v61, %v700_v61  ;;  %1558 = vst.msk [vmem:[%s2414_s21 + $0x44] sm:$0xf] %vm1540_vm0, %v1897_v60  ;;  %v1240_v6 = vadd.f32 %v2404_v40, %v700_v61  ;;  %v916_v14 = vsel %vm876_vm1, %v700_v61, 0.0 }
 0x121   : > { %v1110_v3 = vadd.f32 %v1109_v62, %v1108_v59  ;;  %v915_v5 = vadd.f32 %v914_v63, %v913_v57  ;;  %v2023_v7 = vpop.f32.mrf.mxu0  ;;  %v1117_v47 = vsel %vm876_vm1, %v1032_v12, 0.0 }
 0x122   : > { %1563 = vst.msk [vmem:[%s2414_s21 + $0x58] sm:$0xf] %vm1540_vm0, %v1902_v0  ;;  %v1243_v15 = vadd.f32 %v2023_v7, %v2404_v40  ;;  %v1900_v19 = vpack.c.bf16 %v1240_v6, %v1240_v6  ;;  %v1113_v23 = vsel %vm876_vm1, %v1030_v2, 0.0  ;;  %v1033_v35 = vmul.f32 %v2023_v7, %v2023_v7  ;;  %v2601_v0 = vpop.f32.mrf.mxu1 }
 0x123   : > { %v917_v17 = vadd.f32 %v916_v14, %v915_v5  ;;  %v1112_v18 = vadd.f32 %v1111_v10, %v1110_v3  ;;  %v703_v20 = vpop.f32.mrf.mxu0  ;;  %v922_v50 = vsel %vm876_vm1, %v2023_v7, 0.0  ;;  %v1259_v7 = vadd.f32 %v2454_v22, %v2404_v40 }
 0x124   : > { %v1903_v24 = vpack.c.bf16 %v1243_v15, %v1243_v15  ;;  %v918_v25 = vsel %vm876_vm1, %v703_v20, 0.0  ;;  %v1031_v26 = vmul.f32 %v703_v20, %v703_v20  ;;  %1561 = vst.msk [vmem:[%s2414_s21 + $0x50] sm:$0xf] %vm1540_vm0, %v1900_v19  ;;  %v1241_v31 = vadd.f32 %v2404_v40, %v703_v20 }
 0x125   : > { %v1114_v28 = vadd.f32 %v1113_v23, %v1112_v18  ;;  %v919_v29 = vadd.f32 %v918_v25, %v917_v17  ;;  %v2026_v33 = vpop.f32.mrf.mxu0  ;;  %v1119_v60 = vsel %vm876_vm1, %v1033_v35, 0.0  ;;  %v1919_v20 = vpack.c.bf16 %v1259_v7, %v1259_v7 }
 0x126   : > { %1564 = vst.msk [vmem:[%s2414_s21 + $0x5c] sm:$0xf] %vm1540_vm0, %v1903_v24  ;;  %v1115_v36 = vsel %vm876_vm1, %v1031_v26, 0.0  ;;  %v1246_v37 = vadd.f32 %v2026_v33, %v2404_v40  ;;  %v1901_v43 = vpack.c.bf16 %v1241_v31, %v1241_v31  ;;  %v1036_v61 = vmul.f32 %v2026_v33, %v2026_v33  ;;  %v2615_v26 = vpop.f32.mrf.mxu1 }
 0x127   : > { %v921_v39 = vadd.f32 %v920_v34, %v919_v29  ;;  %v1116_v41 = vadd.f32 %v1115_v36, %v1114_v28  ;;  %v716_v45 = vpop.f32.mrf.mxu0  ;;  %v928_v21 = vsel %vm876_vm1, %v2026_v33, 0.0  ;;  %1580 = vst.msk [vmem:[%s2414_s21 + $0x9c] sm:$0xf] %vm1540_vm0, %v1919_v20  ;;  %v1257_v7 = vadd.f32 %v2404_v40, %v2463_v32 }
 0x128   : > { %v1906_v52 = vpack.c.bf16 %v1246_v37, %v1246_v37  ;;  %v1034_v48 = vmul.f32 %v716_v45, %v716_v45  ;;  %1562 = vst.msk [vmem:[%s2414_s21 + $0x54] sm:$0xf] %vm1540_vm0, %v1901_v43  ;;  %v1244_v57 = vadd.f32 %v2404_v40, %v716_v45  ;;  %v924_v62 = vsel %vm876_vm1, %v716_v45, 0.0 }
 0x129   : > { %v1118_v53 = vadd.f32 %v1117_v47, %v1116_v41  ;;  %v923_v54 = vadd.f32 %v922_v50, %v921_v39  ;;  %v2027_v59 = vpop.f32.mrf.mxu0  ;;  %v1125_v35 = vsel %vm876_vm1, %v1036_v61, 0.0 }
 0x12a   : > { %1567 = vst.msk [vmem:[%s2414_s21 + $0x68] sm:$0xf] %vm1540_vm0, %v1906_v52  ;;  %v1247_v63 = vadd.f32 %v2027_v59, %v2404_v40  ;;  %v1904_v5 = vpack.c.bf16 %v1244_v57, %v1244_v57  ;;  %v1121_v9 = vsel %vm876_vm1, %v1034_v48, 0.0  ;;  %v1037_v23 = vmul.f32 %v2027_v59, %v2027_v59  ;;  %v2629_v48 = vpop.f32.mrf.mxu1 }
 0x12b   : > { %v925_v2 = vadd.f32 %v924_v62, %v923_v54  ;;  %v1120_v3 = vadd.f32 %v1119_v60, %v1118_v53  ;;  %v719_v6 = vpop.f32.mrf.mxu0  ;;  %v930_v33 = vsel %vm876_vm1, %v2027_v59, 0.0 }
 0x12c   : > { %v1907_v10 = vpack.c.bf16 %v1247_v63, %v1247_v63  ;;  %v926_v12 = vsel %vm876_vm1, %v719_v6, 0.0  ;;  %v1035_v14 = vmul.f32 %v719_v6, %v719_v6  ;;  %1565 = vst.msk [vmem:[%s2414_s21 + $0x60] sm:$0xf] %vm1540_vm0, %v1904_v5  ;;  %v1245_v18 = vadd.f32 %v2404_v40, %v719_v6 }
 0x12d   : > { %v1122_v15 = vadd.f32 %v1121_v9, %v1120_v3  ;;  %v927_v17 = vadd.f32 %v926_v12, %v925_v2  ;;  %v2030_v19 = vpop.f32.mrf.mxu0  ;;  %v1127_v47 = vsel %vm876_vm1, %v1037_v23, 0.0 }
 0x12e   : > { %1568 = vst.msk [vmem:[%s2414_s21 + $0x6c] sm:$0xf] %vm1540_vm0, %v1907_v10  ;;  %v1123_v24 = vsel %vm876_vm1, %v1035_v14, 0.0  ;;  %v1250_v25 = vadd.f32 %v2030_v19, %v2404_v40  ;;  %v1905_v31 = vpack.c.bf16 %v1245_v18, %v1245_v18  ;;  %v1040_v53 = vmul.f32 %v2030_v19, %v2030_v19 }
 0x12f   : > { %v929_v28 = vadd.f32 %v928_v21, %v927_v17  ;;  %v1124_v29 = vadd.f32 %v1123_v24, %v1122_v15  ;;  %v732_v34 = vpop.f32.mrf.mxu0  ;;  %v936_v9 = vsel %vm876_vm1, %v2030_v19, 0.0  ;;  %v1262_v14 = vadd.f32 %v2470_v44, %v2404_v40  ;;  %v2644_v15 = vpop.f32.mrf.mxu1 }
 0x130   : > { %v1910_v36 = vpack.c.bf16 %v1250_v25, %v1250_v25  ;;  %v1038_v37 = vmul.f32 %v732_v34, %v732_v34  ;;  %1566 = vst.msk [vmem:[%s2414_s21 + $0x64] sm:$0xf] %vm1540_vm0, %v1905_v31  ;;  %v1248_v43 = vadd.f32 %v2404_v40, %v732_v34  ;;  %v932_v50 = vsel %vm876_vm1, %v732_v34, 0.0 }
 0x131   : > { %v1126_v39 = vadd.f32 %v1125_v35, %v1124_v29  ;;  %v931_v41 = vadd.f32 %v930_v33, %v929_v28  ;;  %v2031_v45 = vpop.f32.mrf.mxu0  ;;  %v1917_v21 = vpack.c.bf16 %v1257_v7, %v1257_v7  ;;  %v1133_v23 = vsel %vm876_vm1, %v1040_v53, 0.0 }
 0x132   : > { %1571 = vst.msk [vmem:[%s2414_s21 + $0x78] sm:$0xf] %vm1540_vm0, %v1910_v36  ;;  %v1251_v52 = vadd.f32 %v2031_v45, %v2404_v40  ;;  %v1908_v59 = vpack.c.bf16 %v1248_v43, %v1248_v43  ;;  %v1129_v61 = vsel %vm876_vm1, %v1038_v37, 0.0  ;;  %v1041_v10 = vmul.f32 %v2031_v45, %v2031_v45  ;;  %v2665_v37 = vpop.f32.mrf.mxu1 }
 0x133   : > { %v933_v54 = vadd.f32 %v932_v50, %v931_v41  ;;  %v1128_v57 = vadd.f32 %v1127_v47, %v1126_v39  ;;  %v735_v60 = vpop.f32.mrf.mxu0  ;;  %v938_v19 = vsel %vm876_vm1, %v2031_v45, 0.0  ;;  %v1042_v24 = vmul.f32 %v2418_v46, %v2418_v46  ;;  %1578 = vst.msk [vmem:[%s2414_s21 + $0x94] sm:$0xf] %vm1540_vm0, %v1917_v21 }
 0x134   : > { %v1911_v62 = vpack.c.bf16 %v1251_v52, %v1251_v52  ;;  %v934_v63 = vsel %vm876_vm1, %v735_v60, 0.0  ;;  %v1039_v2 = vmul.f32 %v735_v60, %v735_v60  ;;  %1569 = vst.msk [vmem:[%s2414_s21 + $0x70] sm:$0xf] %vm1540_vm0, %v1908_v59  ;;  %v1249_v6 = vadd.f32 %v2404_v40, %v735_v60 }
 0x135   : > { %v1130_v3 = vadd.f32 %v1129_v61, %v1128_v57  ;;  %v935_v5 = vadd.f32 %v934_v63, %v933_v54  ;;  %v1922_v25 = vpack.c.bf16 %v1262_v14, %v1262_v14  ;;  %v1260_v31 = vadd.f32 %v2404_v40, %v2479_v55 }
 0x136   : > { %1572 = vst.msk [vmem:[%s2414_s21 + $0x7c] sm:$0xf] %vm1540_vm0, %v1911_v62  ;;  %v1131_v12 = vsel %vm876_vm1, %v1039_v2, 0.0  ;;  %v1909_v20 = vpack.c.bf16 %v1249_v6, %v1249_v6  ;;  %v1135_v34 = vsel %vm876_vm1, %v1041_v10, 0.0  ;;  %v940_v35 = vsel %vm876_vm1, %v2418_v46, 0.0  ;;  %v2685_v62 = vpop.f32.mrf.mxu1 }
 0x137   : > { %v937_v17 = vadd.f32 %v936_v9, %v935_v5  ;;  %v1132_v18 = vadd.f32 %v1131_v12, %v1130_v3  ;;  %v1043_v33 = vmul.f32 %v2430_v58, %v2430_v58  ;;  %1583 = vst.msk [vmem:[%s2414_s21 + $0xa8] sm:$0xf] %vm1540_vm0, %v1922_v25  ;;  %v1263_v36 = vadd.f32 %v2486_v1, %v2404_v40 }
 0x138   : > { %1570 = vst.msk [vmem:[%s2414_s21 + $0x74] sm:$0xf] %vm1540_vm0, %v1909_v20  ;;  %v1044_v39 = vmul.f32 %v2406_v42, %v2406_v42  ;;  %v1920_v45 = vpack.c.bf16 %v1260_v31, %v1260_v31  ;;  %v1137_v46 = vsel %vm876_vm1, %v1042_v24, 0.0  ;;  %v942_v47 = vsel %vm876_vm1, %v2430_v58, 0.0  ;;  %v2707_v21 = vpop.f32.mrf.mxu1 }
 0x139   : > { %v939_v28 = vadd.f32 %v938_v19, %v937_v17  ;;  %v1134_v29 = vadd.f32 %v1133_v23, %v1132_v18  ;;  %v1923_v50 = vpack.c.bf16 %v1263_v36, %v1263_v36  ;;  %v1261_v52 = vadd.f32 %v2404_v40, %v2493_v11 }
 0x13a   : > { %v944_v53 = vsel %vm876_vm1, %v2406_v42, 0.0  ;;  %1581 = vst.msk [vmem:[%s2414_s21 + $0xa0] sm:$0xf] %vm1540_vm0, %v1920_v45  ;;  %v1045_v59 = vmul.f32 %v2421_v51, %v2421_v51  ;;  %v1139_v60 = vsel %vm876_vm1, %v1043_v33, 0.0  ;;  %v1266_v61 = vadd.f32 %v2507_v27, %v2404_v40 }
 0x13b   : > { %v1136_v41 = vadd.f32 %v1135_v34, %v1134_v29  ;;  %v941_v43 = vadd.f32 %v940_v35, %v939_v28  ;;  %1584 = vst.msk [vmem:[%s2414_s21 + $0xac] sm:$0xf] %vm1540_vm0, %v1923_v50  ;;  %v1921_v58 = vpack.c.bf16 %v1261_v52, %v1261_v52  ;;  %v1264_v2 = vadd.f32 %v2404_v40, %v2521_v49 }
 0x13c   : > { %v1141_v3 = vsel %vm876_vm1, %v1044_v39, 0.0  ;;  %v946_v5 = vsel %vm876_vm1, %v2421_v51, 0.0  ;;  %v1046_v6 = vmul.f32 %v2447_v13, %v2447_v13  ;;  %v1926_v7 = vpack.c.bf16 %v1266_v61, %v1266_v61 }
 0x13d   : > { %v943_v54 = vadd.f32 %v942_v47, %v941_v43  ;;  %v1138_v57 = vadd.f32 %v1137_v46, %v1136_v41  ;;  %1582 = vst.msk [vmem:[%s2414_s21 + $0xa4] sm:$0xf] %vm1540_vm0, %v1921_v58  ;;  %v1924_v12 = vpack.c.bf16 %v1264_v2, %v1264_v2  ;;  %v1267_v14 = vadd.f32 %v2533_v8, %v2404_v40  ;;  %v2729_v43 = vpop.f32.mrf.mxu1 }
 0x13e   : > { %v1143_v17 = vsel %vm876_vm1, %v1045_v59, 0.0  ;;  %v948_v18 = vsel %vm876_vm1, %v2447_v13, 0.0  ;;  %v1047_v51 = vmul.f32 %v2463_v32, %v2463_v32  ;;  %1587 = vst.msk [vmem:[%s2414_s21 + $0xb8] sm:$0xf] %vm1540_vm0, %v1926_v7  ;;  %v1265_v20 = vadd.f32 %v2404_v40, %v2547_v30 }
 0x13f   : > { %v945_v42 = vadd.f32 %v944_v53, %v943_v54  ;;  %v1140_v63 = vadd.f32 %v1139_v60, %v1138_v57  ;;  %v1048_v23 = vmul.f32 %v2438_v4, %v2438_v4  ;;  %1585 = vst.msk [vmem:[%s2414_s21 + $0xb0] sm:$0xf] %vm1540_vm0, %v1924_v12  ;;  %v1927_v13 = vpack.c.bf16 %v1267_v14, %v1267_v14 }
 0x140   : > { %v1145_v25 = vsel %vm876_vm1, %v1046_v6, 0.0  ;;  %v950_v28 = vsel %vm876_vm1, %v2463_v32, 0.0  ;;  %v1925_v29 = vpack.c.bf16 %v1265_v20, %v1265_v20  ;;  %v1270_v31 = vadd.f32 %v2561_v56, %v2404_v40 }
 0x141   : > { %v1142_v9 = vadd.f32 %v1141_v3, %v1140_v63  ;;  %v947_v10 = vadd.f32 %v946_v5, %v945_v42  ;;  %v1049_v35 = vmul.f32 %v2454_v22, %v2454_v22  ;;  %1588 = vst.msk [vmem:[%s2414_s21 + $0xbc] sm:$0xf] %vm1540_vm0, %v1927_v13  ;;  %v952_v36 = vsel %vm876_vm1, %v2438_v4, 0.0  ;;  %v2751_v63 = vpop.f32.mrf.mxu1 }
 0x142   : > { %v1147_v39 = vsel %vm876_vm1, %v1047_v51, 0.0  ;;  %1586 = vst.msk [vmem:[%s2414_s21 + $0xb4] sm:$0xf] %vm1540_vm0, %v1925_v29  ;;  %v1930_v32 = vpack.c.bf16 %v1270_v31, %v1270_v31  ;;  %v1268_v41 = vadd.f32 %v2404_v40, %v2575_v16  ;;  %v1149_v45 = vsel %vm876_vm1, %v1048_v23, 0.0 }
 0x143   : > { %v949_v19 = vadd.f32 %v948_v18, %v947_v10  ;;  %v1144_v24 = vadd.f32 %v1143_v17, %v1142_v9  ;;  %v954_v50 = vsel %vm876_vm1, %v2454_v22, 0.0  ;;  %v1050_v4 = vmul.f32 %v2479_v55, %v2479_v55  ;;  %v2771_v23 = vpop.f32.mrf.mxu1 }
 0x144   : > { %1591 = vst.msk [vmem:[%s2414_s21 + $0xc8] sm:$0xf] %vm1540_vm0, %v1930_v32  ;;  %v1928_v52 = vpack.c.bf16 %v1268_v41, %v1268_v41  ;;  %v1271_v53 = vadd.f32 %v2589_v38, %v2404_v40  ;;  %v1151_v54 = vsel %vm876_vm1, %v1049_v35, 0.0  ;;  %v1269_v60 = vadd.f32 %v2404_v40, %v2601_v0 }
 0x145   : > { %v1146_v34 = vadd.f32 %v1145_v25, %v1144_v24  ;;  %v951_v33 = vadd.f32 %v950_v28, %v949_v19  ;;  %v1052_v22 = vmul.f32 %v2470_v44, %v2470_v44  ;;  %v956_v58 = vsel %vm876_vm1, %v2479_v55, 0.0  ;;  %v2793_v32 = vpop.f32.mrf.mxu1 }
 0x146   : > { %v1051_v61 = vmul.f32 %v2493_v11, %v2493_v11  ;;  %1589 = vst.msk [vmem:[%s2414_s21 + $0xc0] sm:$0xf] %vm1540_vm0, %v1928_v52  ;;  %v1931_v42 = vpack.c.bf16 %v1271_v53, %v1271_v53  ;;  %v1929_v5 = vpack.c.bf16 %v1269_v60, %v1269_v60  ;;  %v1274_v6 = vadd.f32 %v2615_v26, %v2404_v40 }
 0x147   : > { %v953_v46 = vadd.f32 %v952_v36, %v951_v33  ;;  %v1148_v47 = vadd.f32 %v1147_v39, %v1146_v34  ;;  %v1153_v7 = vsel %vm876_vm1, %v1050_v4, 0.0  ;;  %v958_v55 = vsel %vm876_vm1, %v2493_v11, 0.0 }
 0x148   : > { %1592 = vst.msk [vmem:[%s2414_s21 + $0xcc] sm:$0xf] %vm1540_vm0, %v1931_v42  ;;  %v1272_v9 = vadd.f32 %v2404_v40, %v2629_v48  ;;  %v1053_v12 = vmul.f32 %v2486_v1, %v2486_v1  ;;  %1590 = vst.msk [vmem:[%s2414_s21 + $0xc4] sm:$0xf] %vm1540_vm0, %v1929_v5  ;;  %v1934_v17 = vpack.c.bf16 %v1274_v6, %v1274_v6  ;;  %v960_v18 = vsel %vm876_vm1, %v2470_v44, 0.0 }
 0x149   : > { %v1150_v57 = vadd.f32 %v1149_v45, %v1148_v47  ;;  %v955_v59 = vadd.f32 %v954_v50, %v953_v46  ;;  %v1155_v11 = vsel %vm876_vm1, %v1051_v61, 0.0  ;;  %v1275_v20 = vadd.f32 %v2644_v15, %v2404_v40 }
 0x14a   : > { %v1932_v51 = vpack.c.bf16 %v1272_v9, %v1272_v9  ;;  %v1157_v19 = vsel %vm876_vm1, %v1052_v22, 0.0  ;;  %1595 = vst.msk [vmem:[%s2414_s21 + $0xd8] sm:$0xf] %vm1540_vm0, %v1934_v17  ;;  %v962_v25 = vsel %vm876_vm1, %v2486_v1, 0.0  ;;  %v1054_v44 = vmul.f32 %v2521_v49, %v2521_v49 }
 0x14b   : > { %v957_v2 = vadd.f32 %v956_v58, %v955_v59  ;;  %v1152_v3 = vadd.f32 %v1151_v54, %v1150_v57  ;;  %v1935_v28 = vpack.c.bf16 %v1275_v20, %v1275_v20  ;;  %v1273_v29 = vadd.f32 %v2404_v40, %v2665_v37  ;;  %v2815_v58 = vpop.f32.mrf.mxu1 }
 0x14c   : > { %1593 = vst.msk [vmem:[%s2414_s21 + $0xd0] sm:$0xf] %vm1540_vm0, %v1932_v51  ;;  %v1159_v31 = vsel %vm876_vm1, %v1053_v12, 0.0  ;;  %v964_v33 = vsel %vm876_vm1, %v2521_v49, 0.0  ;;  %v1055_v1 = vmul.f32 %v2547_v30, %v2547_v30  ;;  %v1278_v39 = vadd.f32 %v2685_v62, %v2404_v40 }
 0x14d   : > { %v1154_v10 = vadd.f32 %v1153_v7, %v1152_v3  ;;  %v959_v14 = vadd.f32 %v958_v55, %v957_v2  ;;  %1596 = vst.msk [vmem:[%s2414_s21 + $0xdc] sm:$0xf] %vm1540_vm0, %v1935_v28  ;;  %v1933_v36 = vpack.c.bf16 %v1273_v29, %v1273_v29  ;;  %v1056_v41 = vmul.f32 %v2507_v27, %v2507_v27 }
 0x14e   : > { %v1276_v49 = vadd.f32 %v2404_v40, %v2707_v21  ;;  %v1161_v47 = vsel %vm876_vm1, %v1054_v44, 0.0  ;;  %v1057_v50 = vmul.f32 %v2533_v8, %v2533_v8  ;;  %v966_v4 = vsel %vm876_vm1, %v2547_v30, 0.0 }
 0x14f   : > { %v961_v24 = vadd.f32 %v960_v18, %v959_v14  ;;  %v1156_v13 = vadd.f32 %v1155_v11, %v1154_v10  ;;  %1594 = vst.msk [vmem:[%s2414_s21 + $0xd4] sm:$0xf] %vm1540_vm0, %v1933_v36  ;;  %v1938_v52 = vpack.c.bf16 %v1278_v39, %v1278_v39  ;;  %v1279_v59 = vadd.f32 %v2729_v43, %v2404_v40  ;;  %v2837_v18 = vpop.f32.mrf.mxu1 }
 0x150   : > { %v1936_v57 = vpack.c.bf16 %v1276_v49, %v1276_v49  ;;  %v968_v60 = vsel %vm876_vm1, %v2507_v27, 0.0  ;;  %v1163_v22 = vsel %vm876_vm1, %v1055_v1, 0.0  ;;  %v1277_v30 = vadd.f32 %v2404_v40, %v2751_v63 }
 0x151   : > { %v1158_v34 = vadd.f32 %v1157_v19, %v1156_v13  ;;  %v963_v35 = vadd.f32 %v962_v25, %v961_v24  ;;  %1599 = vst.msk [vmem:[%s2414_s21 + $0xe8] sm:$0xf] %vm1540_vm0, %v1938_v52  ;;  %v1165_v61 = vsel %vm876_vm1, %v1056_v41, 0.0  ;;  %v1939_v3 = vpack.c.bf16 %v1279_v59, %v1279_v59 }
 0x152   : > { %1597 = vst.msk [vmem:[%s2414_s21 + $0xe0] sm:$0xf] %vm1540_vm0, %v1936_v57  ;;  %v970_v27 = vsel %vm876_vm1, %v2533_v8, 0.0  ;;  %v1058_v5 = vmul.f32 %v2575_v16, %v2575_v16  ;;  %v1937_v6 = vpack.c.bf16 %v1277_v30, %v1277_v30  ;;  %v1282_v7 = vadd.f32 %v2771_v23, %v2404_v40 }
 0x153   : > { %v965_v45 = vadd.f32 %v964_v33, %v963_v35  ;;  %v1160_v46 = vadd.f32 %v1159_v31, %v1158_v34  ;;  %v1167_v55 = vsel %vm876_vm1, %v1057_v50, 0.0  ;;  %1600 = vst.msk [vmem:[%s2414_s21 + $0xec] sm:$0xf] %vm1540_vm0, %v1939_v3  ;;  %v972_v12 = vsel %vm876_vm1, %v2575_v16, 0.0 }
 0x154   : > { %v1059_v8 = vmul.f32 %v2601_v0, %v2601_v0  ;;  %1598 = vst.msk [vmem:[%s2414_s21 + $0xe4] sm:$0xf] %vm1540_vm0, %v1937_v6  ;;  %v1942_v14 = vpack.c.bf16 %v1282_v7, %v1282_v7  ;;  %v1280_v17 = vadd.f32 %v2404_v40, %v2793_v32  ;;  %v1060_v11 = vmul.f32 %v2561_v56, %v2561_v56 }
 0x155   : > { %v1162_v53 = vadd.f32 %v1161_v47, %v1160_v46  ;;  %v967_v54 = vadd.f32 %v966_v4, %v965_v45  ;;  %v1169_v19 = vsel %vm876_vm1, %v1058_v5, 0.0  ;;  %v974_v16 = vsel %vm876_vm1, %v2601_v0, 0.0 }
 0x156   : > { %1603 = vst.msk [vmem:[%s2414_s21 + $0xf8] sm:$0xf] %vm1540_vm0, %v1942_v14  ;;  %v1940_v24 = vpack.c.bf16 %v1280_v17, %v1280_v17  ;;  %v1283_v13 = vadd.f32 %v2815_v58, %v2404_v40  ;;  %v1281_v28 = vadd.f32 %v2404_v40, %v2837_v18  ;;  %v976_v29 = vsel %vm876_vm1, %v2561_v56, 0.0 }
 0x157   : > { %v969_v42 = vadd.f32 %v968_v60, %v967_v54  ;;  %v1164_v2 = vadd.f32 %v1163_v22, %v1162_v53  ;;  %v1061_v31 = vmul.f32 %v2589_v38, %v2589_v38  ;;  %v1171_v0 = vsel %vm876_vm1, %v1059_v8, 0.0 }
 0x158   : > { %1601 = vst.msk [vmem:[%s2414_s21 + $0xf0] sm:$0xf] %vm1540_vm0, %v1940_v24  ;;  %v1943_v34 = vpack.c.bf16 %v1283_v13, %v1283_v13  ;;  %v1941_v1 = vpack.c.bf16 %v1281_v28, %v1281_v28  ;;  %v1173_v36 = vsel %vm876_vm1, %v1060_v11, 0.0  ;;  %v978_v39 = vsel %vm876_vm1, %v2589_v38, 0.0 }
 0x159   : > { %v1166_v9 = vadd.f32 %v1165_v61, %v1164_v2  ;;  %v971_v10 = vadd.f32 %v970_v27, %v969_v42  ;;  %v1062_v40 = vmul.f32 %v2629_v48, %v2629_v48  ;;  %v1175_v45 = vsel %vm876_vm1, %v1061_v31, 0.0 }
 0x15a   : > { %1604 = vst.msk [vmem:[%s2414_s21 + $0xfc] sm:$0xf] %vm1540_vm0, %v1943_v34  ;;  %1602 = vst.msk [vmem:[%s2414_s21 + $0xf4] sm:$0xf] %vm1540_vm0, %v1941_v1  ;;  %v980_v46 = vsel %vm876_vm1, %v2629_v48, 0.0  ;;  %v1063_v49 = vmul.f32 %v2665_v37, %v2665_v37  ;;  %v1064_v38 = vmul.f32 %v2615_v26, %v2615_v26  ;;  %v982_v52 = vsel %vm876_vm1, %v2665_v37, 0.0 }
 0x15b   : > { %v973_v51 = vadd.f32 %v972_v12, %v971_v10  ;;  %v1168_v20 = vadd.f32 %v1167_v55, %v1166_v9  ;;  %v1177_v4 = vsel %vm876_vm1, %v1062_v40, 0.0  ;;  %v984_v57 = vsel %vm876_vm1, %v2615_v26, 0.0 }
 0x15c   : > { %v1065_v48 = vmul.f32 %v2644_v15, %v2644_v15  ;;  %v1179_v59 = vsel %vm876_vm1, %v1063_v49, 0.0  ;;  %v1181_v30 = vsel %vm876_vm1, %v1064_v38, 0.0  ;;  %v986_v61 = vsel %vm876_vm1, %v2644_v15, 0.0 }
 0x15d   : > { %v1170_v25 = vadd.f32 %v1169_v19, %v1168_v20  ;;  %v975_v44 = vadd.f32 %v974_v16, %v973_v51  ;;  %v1066_v37 = vmul.f32 %v2707_v21, %v2707_v21  ;;  %v988_v26 = vsel %vm876_vm1, %v2707_v21, 0.0 }
 0x15e   : > { %v1183_v3 = vsel %vm876_vm1, %v1065_v48, 0.0  ;;  %v1067_v27 = vmul.f32 %v2751_v63, %v2751_v63  ;;  %v1068_v7 = vmul.f32 %v2685_v62, %v2685_v62  ;;  %v990_v55 = vsel %vm876_vm1, %v2751_v63, 0.0 }
 0x15f   : > { %v977_v35 = vadd.f32 %v976_v29, %v975_v44  ;;  %v1172_v33 = vadd.f32 %v1171_v0, %v1170_v25  ;;  %v1185_v15 = vsel %vm876_vm1, %v1066_v37, 0.0  ;;  %v992_v12 = vsel %vm876_vm1, %v2685_v62, 0.0 }
 0x160   : > { %v1069_v21 = vmul.f32 %v2729_v43, %v2729_v43  ;;  %v1187_v8 = vsel %vm876_vm1, %v1067_v27, 0.0  ;;  %v1189_v11 = vsel %vm876_vm1, %v1068_v7, 0.0  ;;  %v994_v51 = vsel %vm876_vm1, %v2729_v43, 0.0 }
 0x161   : > { %v1174_v56 = vadd.f32 %v1173_v36, %v1172_v33  ;;  %v979_v41 = vadd.f32 %v978_v39, %v977_v35  ;;  %v1070_v63 = vmul.f32 %v2793_v32, %v2793_v32  ;;  %v996_v62 = vsel %vm876_vm1, %v2793_v32, 0.0 }
 0x162   : > { %v1191_v16 = vsel %vm876_vm1, %v1069_v21, 0.0  ;;  %v1071_v24 = vmul.f32 %v2837_v18, %v2837_v18  ;;  %v1072_v44 = vmul.f32 %v2771_v23, %v2771_v23  ;;  %v998_v28 = vsel %vm876_vm1, %v2837_v18, 0.0 }
 0x163   : > { %v981_v47 = vadd.f32 %v980_v46, %v979_v41  ;;  %v1176_v50 = vadd.f32 %v1175_v45, %v1174_v56  ;;  %v1193_v43 = vsel %vm876_vm1, %v1070_v63, 0.0  ;;  %v1000_v0 = vsel %vm876_vm1, %v2771_v23, 0.0 }
 0x164   : > { %v1073_v32 = vmul.f32 %v2815_v58, %v2815_v58  ;;  %v1195_v34 = vsel %vm876_vm1, %v1071_v24, 0.0  ;;  %v1197_v1 = vsel %vm876_vm1, %v1072_v44, 0.0  ;;  %v1002_v36 = vsel %vm876_vm1, %v2815_v58, 0.0 }
 0x165   : > { %v1178_v53 = vadd.f32 %v1177_v4, %v1176_v50  ;;  %v983_v54 = vadd.f32 %v982_v52, %v981_v47  ;;  %v1207_v46 = vlaneseq }
 0x166   : > { %v1199_v40 = vsel %vm876_vm1, %v1073_v32, 0.0 }
 0x167   : > { %v985_v60 = vadd.f32 %v984_v57, %v983_v54  ;;  %v1180_v22 = vadd.f32 %v1179_v59, %v1178_v53  ;;  %v1208_v4 = vshrl.u32 %v1207_v46, 7 }
 0x169   : > { %v1182_v42 = vadd.f32 %v1181_v30, %v1180_v22  ;;  %v987_v2 = vadd.f32 %v986_v61, %v985_v60  ;;  %vm1210_vm2 = vcmp.eq.s32.totalorder %v1208_v4, 1  ;;  %vm1209_vm3 = vcmp.eq.s32.totalorder %v1208_v4, 0 }
 0x16b   : > { %v989_v5 = vadd.f32 %v988_v26, %v987_v2  ;;  %v1184_v6 = vadd.f32 %v1183_v3, %v1182_v42 }
 0x16d   : > { %v1186_v9 = vadd.f32 %v1185_v15, %v1184_v6  ;;  %v991_v10 = vadd.f32 %v990_v55, %v989_v5 }
 0x16f   : > { %v993_v14 = vadd.f32 %v992_v12, %v991_v10  ;;  %v1188_v17 = vadd.f32 %v1187_v8, %v1186_v9 }
 0x171   : > { %v1190_v20 = vadd.f32 %v1189_v11, %v1188_v17  ;;  %v995_v19 = vadd.f32 %v994_v51, %v993_v14 }
 0x173   : > { %v997_v13 = vadd.f32 %v996_v62, %v995_v19  ;;  %v1192_v25 = vadd.f32 %v1191_v16, %v1190_v20 }
 0x175   : > { %v1194_v29 = vadd.f32 %v1193_v43, %v1192_v25  ;;  %v999_v31 = vadd.f32 %v998_v28, %v997_v13 }
 0x177   : > { %v1001_v35 = vadd.f32 %v1000_v0, %v999_v31  ;;  %v1196_v33 = vadd.f32 %v1195_v34, %v1194_v29 }
 0x179   : > { %v1003_v39 = vadd.f32 %v1002_v36, %v1001_v35  ;;  %v1198_v18 = vadd.f32 %v1197_v1, %v1196_v33 }
 0x17b   : > { %v1004_v56 = vrot.slane %v1003_v39, 4  ;;  %v1200_v41 = vadd.f32 %v1199_v40, %v1198_v18 }
 0x17d   : > { %v1005_v23 = vadd.f32 %v1004_v56, %v1003_v39  ;;  %v1201_v45 = vrot.slane %v1200_v41, 4 }
 0x17f   : > { %v1006_v49 = vrot.slane %v1005_v23, 2  ;;  %v1202_v47 = vadd.f32 %v1201_v45, %v1200_v41 }
 0x181   : > { %v1007_v50 = vadd.f32 %v1006_v49, %v1005_v23  ;;  %v1203_v38 = vrot.slane %v1202_v47, 2 }
 0x183   : > { %v1204_v52 = vadd.f32 %v1203_v38, %v1202_v47  ;;  %v1008_v53 = vrot.slane %v1007_v50, 1 }
 0x185   : > { %v1205_v58 = vrot.slane %v1204_v52, 1  ;;  %v1009_v57 = vadd.f32 %v1008_v53, %v1007_v50 }
 0x187   : > { %v1206_v54 = vadd.f32 %v1205_v58, %v1204_v52 }
 0x189   : > { %v1211_v48 = vsel %vm1210_vm2, %v1206_v54, 0.0 }
 0x18a   : > { %v1212_v59 = vsel %vm1209_vm3, %v1009_v57, %v1211_v48 }
 0x18b   : > { %1213 = vst.msk [vmem:[%s242_s22] sm:$0xff] %vm876_vm1, %v1212_v59 }
 0x18c   : > { %2188 = shalt.err (!%p2185_p5)
}
 0x18d   : > { %s2189_s11 = scalar_lea.hbm %s2930_s30, 128  ;;  %s2193_s21 = scalar_lea.hbm %s2975_s4, 256 }
 0x18e   : > { %p2190_p6 = scmp.ne.s32.totalorder %s2930_s30, %s2189_s11  ;;  %p2194_p10 = scmp.lt.s32.totalorder %s2930_s30, %s2975_s4 }
 0x18f   : > { %p2195_p11 = scmp.lt.s32.totalorder %s2193_s21, %s2189_s11 }
 0x190   : > { %p2191_p7 = pnand %p2190_p6, %p2319_p4 }
 0x191   : > { %p2196_p12 = por %p2195_p11, %p2194_p10 }
 0x192   : > { %p2192_p9 = pneg %p2191_p7 }
 0x194   : > { %p2197_p13 = pnand %p2196_p12, %p2192_p9 }
 0x196   : > { %2200 = shalt.err (!%p2197_p13)
}
 0x197   : > { %2080 = dma.vmem_to_hbm [thread:$0]  (%p2319_p4), %s1633_s24, 128, %s2930_s30, %s1614_s6  }
 0x198 PF: > { %p2086_p0 = scmp.ge.s32.totalorder %s2251_s20, 2  ;;  %s1655_s13 = sand.u32 1, %s2231_s15  }
 0x199   : > { %s1656_s22 = scalar_lea.sflag [#allocation3], %s1655_s13 }
 0x19a   : > { %p2083_p1 = pnand %p2086_p0, %p2326_p8 }
 0x19c   : > { %p2084_p2 = pneg %p2083_p1 }
 0x19e   : > { %2226 = dma.done.wait (%p2084_p2), %s1656_s22, 128  }
 0x19f   : > { %2228 = vsyncadd (%p2084_p2), %s1656_s22, 4294967168  ;;  %s18_s20 = sadd.s32 1, %s2251_s20   ;;  %s2978_s15 = smov %s2235_s16 }
 0x1a0   : > { %p15_p3 = scmp.ge.s32.totalorder %s18_s20, 4   ;;  %s2979_s16 = smov %s2239_s17 }
 0x1a1   : > { %s2980_s17 = smov %s2332_s28  ;;  %s2981_s18 = smov %s2247_s19 }
 0x1a2   : > { %s2982_s19 = smov %s2984_s23  ;;  %17 = sbr.rel (!%p15_p3) target bundleno = 4 (0x4), region = 85 }
 0x1a7   :  { %1661 = vsyncpa [#allocation3], 1 }
 0x1a8   :  { %1663 = vsyncpa [#allocation3 + $0x1], 1 }

// kernel: unet_forward.9
= control target key start
LH: loop header
LB: loop body
LE: loop exit
PB: predicated region body
PF: predicated region fallthrough
CT: control target
= control target key end

     0   :  { %s1304_s15 = smov 0   ;;  %s1306_s16 = smov 0   ;;  %s1511_s0 = inlined_call_operand.vmem [shape: bf16[128,512], index: 0, kind: input, shape index: {}]   ;;  %s1512_s1 = inlined_call_operand.vmem [shape: bf16[512,16], index: 1, kind: input, shape index: {}]   ;;  %s1513_s2 = inlined_call_operand.vmem [shape: f32[1,16], index: 2, kind: input, shape index: {}]   ;;  %s1514_s3 = inlined_call_operand.vmem [shape: bf16[128,16], index: 3, kind: output, shape index: {0}]   ;;  %s1515_s4 = inlined_call_operand.vmem [shape: f32[16,16], index: 4, kind: output, shape index: {1}]  }
   0x1   :  { %s1308_s17 = smov 0  }
   0x2 LB: > { %s27_s18 = sadd.s32 1, %s1273_s16  ;;  %p1020_p0 = scmp.ge.s32.totalorder %s1277_s17, 1  ;;  %s1277_s17 = sphi %s1308_s17, %s15_s17   ;;  %s1273_s16 = sphi %s1306_s16, %s1517_s16   ;;  %s1269_s15 = sphi %s1304_s15, %s1516_s15  }
   0x3   : > { %p29_p1 = scmp.ge.s32.totalorder %s27_s18, 2  ;;  %p200_p2 = scmp.lt.s32.totalorder %s1277_s17, 3 }
   0x5   : > { %s1519_s18 = smov (%p29_p1, %s27_s18), 0  ;;  %p201_p3 = pnand %p1020_p0, %p200_p2 }
   0x6   : > { %s1021_s29 = sshll.u32 (!%p201_p3), %s1269_s15, 3  ;;  %p267_p5 = scmp.lt.s32.totalorder (!%p201_p3), %s1269_s15, 1 }
   0x7   : > { %204 = sbr.rel (%p201_p3) target bundleno = 294 (0x126), region = 32  ;;  %p245_p4 = scmp.lt.s32.totalorder (!%p201_p3), %s1021_s29, 15 }
   0xc   : > { %v1199_v0 = vld [vmem:[%s1512_s1 + $0x78] sm:$0xff]   ;;  %v1203_v4 = vld [vmem:[%s1512_s1 + $0x70] sm:$0xff]   ;;  %v1207_v8 = vld [vmem:[%s1512_s1 + $0x68] sm:$0xff]   ;;  %s1521_s29 = smov (!%p245_p4, %s1021_s29), 15  ;;  %vm862_vm0 = vcmask 125952   ;;  %vm758_vm1 = vcmask 130048  }
   0xd   : > { %v1200_v1 = vld [vmem:[%s1512_s1 + $0xf8] sm:$0xff]   ;;  %1095 = vmatprep.subr.bf16.mxu0 %v1199_v0  ;;  %v1204_v5 = vld [vmem:[%s1512_s1 + $0xf0] sm:$0xff]   ;;  %v1208_v9 = vld [vmem:[%s1512_s1 + $0xe8] sm:$0xff]   ;;  %s1086_s5 = sshll.u32 %s1521_s29, 4  ;;  %s1025_s25 = sshll.u32 %s1521_s29, 2 }
   0xe   : > { %v1201_v2 = vld [vmem:[%s1512_s1 + $0x38] sm:$0xff]   ;;  %1135 = vmatprep.subr.bf16.mxu1 %v1200_v1  ;;  %v1205_v6 = vld [vmem:[%s1512_s1 + $0x30] sm:$0xff]   ;;  %v1209_v10 = vld [vmem:[%s1512_s1 + $0x28] sm:$0xff]   ;;  %s1421_s14 = scalar_lea.vmem %s1511_s0, %s1086_s5  ;;  %s1455_s28 = scalar_lea.vmem %s1514_s3, %s1025_s25 }
   0xf   : > { %v1202_v3 = vld [vmem:[%s1512_s1 + $0xb8] sm:$0xff]   ;;  %1096 = vmatpush3.bf16.msra.mxu0 %v1201_v2  ;;  %v1206_v7 = vld [vmem:[%s1512_s1 + $0xb0] sm:$0xff]   ;;  %v1210_v11 = vld [vmem:[%s1512_s1 + $0xa8] sm:$0xff]   ;;  %s1523_s15 = smov (!%p267_p5, %s1269_s15), 1 }
  0x10   : > { %1136 = vmatpush3.bf16.msra.mxu1 %v1202_v3  ;;  %1097 = vmatprep.subr.bf16.mxu0 %v1203_v4  ;;  %v1211_v12 = vld [vmem:[%s1512_s1 + $0x60] sm:$0xff]   ;;  %v1215_v16 = vld [vmem:[%s1512_s1 + $0x58] sm:$0xff]   ;;  %v1219_v20 = vld [vmem:[%s1512_s1 + $0x50] sm:$0xff]   ;;  %s1026_s29 = sshll.u32 %s1523_s15, 3 }
  0x11   : > { %1137 = vmatprep.subr.bf16.mxu1 %v1204_v5  ;;  %v1212_v13 = vld [vmem:[%s1512_s1 + $0xe0] sm:$0xff]   ;;  %v1216_v17 = vld [vmem:[%s1512_s1 + $0xd8] sm:$0xff]   ;;  %v1220_v21 = vld [vmem:[%s1512_s1 + $0xd0] sm:$0xff]   ;;  %s273_s6 = scalar_lea.vmem %s1515_s4, %s1026_s29 }
  0x12   : > { %v1213_v14 = vld [vmem:[%s1512_s1 + $0x20] sm:$0xff]   ;;  %v1217_v18 = vld [vmem:[%s1512_s1 + $0x18] sm:$0xff]   ;;  %v1221_v22 = vld [vmem:[%s1512_s1 + $0x10] sm:$0xff]  }
  0x13   : > { %1098 = vmatpush3.bf16.msra.mxu0 %v1205_v6  ;;  %v1214_v15 = vld [vmem:[%s1512_s1 + $0xa0] sm:$0xff]   ;;  %v1218_v19 = vld [vmem:[%s1512_s1 + $0x98] sm:$0xff]   ;;  %v1222_v23 = vld [vmem:[%s1512_s1 + $0x90] sm:$0xff]  }
  0x14   : > { %1138 = vmatpush3.bf16.msra.mxu1 %v1206_v7  ;;  %1099 = vmatprep.subr.bf16.mxu0 %v1207_v8  ;;  %v1223_v24 = vld [vmem:[%s1512_s1 + $0x48] sm:$0xff]   ;;  %v1227_v28 = vld [vmem:[%s1512_s1 + $0x40] sm:$0xff]  }
  0x15   : > { %1139 = vmatprep.subr.bf16.mxu1 %v1208_v9  ;;  %v1224_v25 = vld [vmem:[%s1512_s1 + $0xc8] sm:$0xff]   ;;  %v1228_v29 = vld [vmem:[%s1512_s1 + $0xc0] sm:$0xff]  }
  0x16   : > { %v1225_v26 = vld [vmem:[%s1512_s1 + $0x8] sm:$0xff]   ;;  %v1229_v30 = vld [vmem:[%s1512_s1] sm:$0xff]  }
  0x17   : > { %1100 = vmatpush3.bf16.msra.mxu0 %v1209_v10  ;;  %v1226_v27 = vld [vmem:[%s1512_s1 + $0x88] sm:$0xff]   ;;  %v1230_v31 = vld [vmem:[%s1512_s1 + $0x80] sm:$0xff]  }
  0x18   : > { %1140 = vmatpush3.bf16.msra.mxu1 %v1210_v11  ;;  %1101 = vmatprep.subr.bf16.mxu0 %v1211_v12  ;;  %v1231_v32 = vld [vmem:[%s1421_s14] ss:$16 sps:$4 sm:$0xff]   ;;  %v1233_v33 = vld [vmem:[%s1421_s14 + $0x4] ss:$16 sps:$4 sm:$0xff]   ;;  %v1234_v34 = vld [vmem:[%s1421_s14 + $0x8] ss:$16 sps:$4 sm:$0xff]  }
  0x19   : > { %1141 = vmatprep.subr.bf16.mxu1 %v1212_v13  ;;  %v1236_v35 = vld [vmem:[%s1421_s14 + $0xc] ss:$16 sps:$4 sm:$0xff]   ;;  %659 = vmatprep.mubr.bf16.mxu0 %v1233_v33  ;;  %v1237_v36 = vld [vmem:[%s1421_s14 + $0x24] ss:$16 sps:$4 sm:$0xff]   ;;  %v1241_v38 = vld [vmem:[%s1421_s14 + $0x20] ss:$16 sps:$4 sm:$0xff]  }
  0x1a   : > { %724 = vmatprep.mubr.bf16.mxu1 %v1236_v35  ;;  %v1239_v37 = vld [vmem:[%s1421_s14 + $0x2c] ss:$16 sps:$4 sm:$0xff]   ;;  %v1242_v39 = vld [vmem:[%s1421_s14 + $0x28] ss:$16 sps:$4 sm:$0xff]   ;;  %v1243_v40 = vld [vmem:[%s1421_s14 + $0x44] ss:$16 sps:$4 sm:$0xff]  }
  0x1b   : > { %1102 = vmatpush3.bf16.msra.mxu0 %v1213_v14  ;;  %v1245_v41 = vld [vmem:[%s1421_s14 + $0x4c] ss:$16 sps:$4 sm:$0xff]   ;;  %v1247_v42 = vld [vmem:[%s1421_s14 + $0x40] ss:$16 sps:$4 sm:$0xff]   ;;  %v1248_v43 = vld [vmem:[%s1421_s14 + $0x48] ss:$16 sps:$4 sm:$0xff]  }
  0x1c   : > { %1142 = vmatpush3.bf16.msra.mxu1 %v1214_v15  ;;  %1103 = vmatprep.subr.bf16.mxu0 %v1215_v16  ;;  %v1249_v44 = vld [vmem:[%s1421_s14 + $0x64] ss:$16 sps:$4 sm:$0xff]   ;;  %v1251_v45 = vld [vmem:[%s1421_s14 + $0x6c] ss:$16 sps:$4 sm:$0xff]   ;;  %v1253_v46 = vld [vmem:[%s1421_s14 + $0x60] ss:$16 sps:$4 sm:$0xff]  }
  0x1d   : > { %1143 = vmatprep.subr.bf16.mxu1 %v1216_v17  ;;  %v1254_v47 = vld [vmem:[%s1421_s14 + $0x68] ss:$16 sps:$4 sm:$0xff]   ;;  %v1448_v55 = vld [vmem:[%s1513_s2] ss:$0 sm:$0xff] }
  0x1f   : > { %1104 = vmatpush3.bf16.msra.mxu0 %v1217_v18 }
  0x20   : > { %1144 = vmatpush3.bf16.msra.mxu1 %v1218_v19  ;;  %1105 = vmatprep.subr.bf16.mxu0 %v1219_v20 }
  0x21   : > { %1145 = vmatprep.subr.bf16.mxu1 %v1220_v21 }
  0x23   : > { %1106 = vmatpush3.bf16.msra.mxu0 %v1221_v22 }
  0x24   : > { %1146 = vmatpush3.bf16.msra.mxu1 %v1222_v23  ;;  %1107 = vmatprep.subr.bf16.mxu0 %v1223_v24 }
  0x25   : > { %1147 = vmatprep.subr.bf16.mxu1 %v1224_v25 }
  0x27   : > { %1108 = vmatpush3.bf16.msra.mxu0 %v1225_v26 }
  0x28   : > { %1148 = vmatpush3.bf16.msra.mxu1 %v1226_v27  ;;  %1109 = vmatprep.subr.bf16.mxu0 %v1227_v28 }
  0x29   : > { %1149 = vmatprep.subr.bf16.mxu1 %v1228_v29 }
  0x2b   : > { %1110 = vmatpush3.bf16.msra.mxu0 %v1229_v30 }
  0x2c   : > { %1150 = vmatpush3.bf16.msra.mxu1 %v1230_v31 }
  0x2e   : > { %660 = vmatmul.mubr.bf16.vlgmr.msra.gmra.mxu0 %v1231_v32 }
  0x2f   : > { %725 = vmatmul.mubr.bf16.vlgmr.msra.gmra.mxu1 %v1234_v34  ;;  %667 = vmatprep.mubr.bf16.mxu0 %v1237_v36 }
  0x30   : > { %732 = vmatprep.mubr.bf16.mxu1 %v1239_v37 }
  0x36   : > { %668 = vmatmul.mubr.bf16.gmra.mxu0 %v1241_v38 }
  0x37   : > { %733 = vmatmul.mubr.bf16.gmra.mxu1 %v1242_v39  ;;  %675 = vmatprep.mubr.bf16.mxu0 %v1243_v40 }
  0x38   : > { %740 = vmatprep.mubr.bf16.mxu1 %v1245_v41 }
  0x3e   : > { %676 = vmatmul.mubr.bf16.gmra.mxu0 %v1247_v42 }
  0x3f   : > { %741 = vmatmul.mubr.bf16.gmra.mxu1 %v1248_v43  ;;  %683 = vmatprep.mubr.bf16.mxu0 %v1249_v44 }
  0x40   : > { %748 = vmatprep.mubr.bf16.mxu1 %v1251_v45 }
  0x46   : > { %684 = vmatmul.mubr.bf16.gmra.mxu0 %v1253_v46 }
  0x47   : > { %749 = vmatmul.mubr.bf16.gmra.mxu1 %v1254_v47 }
  0xee   : > { %v1111_v48 = vpop.f32.mrf.mxu0 }
  0xef   : > { %v1151_v49 = vpop.f32.mrf.mxu1 }
  0xf0   : > { %v1112_v50 = vpop.f32.mrf.mxu0 }
  0xf1   : > { %v1113_v51 = vadd.f32 %v1112_v50, %v1111_v48  ;;  %v1152_v52 = vpop.f32.mrf.mxu1 }
  0xf2   : > { %v1153_v53 = vadd.f32 %v1152_v52, %v1151_v49  ;;  %v1114_v54 = vpop.f32.mrf.mxu0 }
  0xf3   : > { %v1154_v56 = vpop.f32.mrf.mxu1 }
  0xf4   : > { %v727_v57 = vadd.f32 %v1153_v53, %v1113_v51  ;;  %v1115_v58 = vpop.f32.mrf.mxu0 }
  0xf5   : > { %v1116_v59 = vadd.f32 %v1115_v58, %v1114_v54  ;;  %v1155_v60 = vpop.f32.mrf.mxu1 }
  0xf6   : > { %v822_v61 = vadd.f32 %v1448_v55, %v727_v57  ;;  %v1156_v62 = vadd.f32 %v1155_v60, %v1154_v56  ;;  %v1117_v63 = vpop.f32.mrf.mxu0  ;;  %v780_v28 = vmul.f32 %v727_v57, %v727_v57  ;;  %v759_v35 = vsel %vm758_vm1, %v727_v57, 0.0 }
  0xf7   : > { %v1157_v0 = vpop.f32.mrf.mxu1 }
  0xf8   : > { %v1087_v1 = vpack.c.bf16 %v822_v61, %v822_v61  ;;  %v730_v2 = vadd.f32 %v1156_v62, %v1116_v59  ;;  %v1118_v3 = vpop.f32.mrf.mxu0  ;;  %v788_v44 = vsel %vm758_vm1, %v780_v28, 0.0 }
  0xf9   : > { %v1119_v4 = vadd.f32 %v1118_v3, %v1117_v63  ;;  %v1158_v5 = vpop.f32.mrf.mxu1 }
  0xfa   : > { %863 = vst.msk [vmem:[%s1455_s28] sm:$0xf] %vm862_vm0, %v1087_v1  ;;  %v823_v6 = vadd.f32 %v1448_v55, %v730_v2  ;;  %v1159_v7 = vadd.f32 %v1158_v5, %v1157_v0  ;;  %v1120_v8 = vpop.f32.mrf.mxu0  ;;  %v781_v24 = vmul.f32 %v730_v2, %v730_v2  ;;  %v760_v31 = vsel %vm758_vm1, %v730_v2, 0.0 }
  0xfb   : > { %v1160_v9 = vpop.f32.mrf.mxu1  ;;  %v761_v45 = vadd.f32 %v760_v31, %v759_v35  ;;  %v809_v35 = vlaneseq }
  0xfc   : > { %v1088_v10 = vpack.c.bf16 %v823_v6, %v823_v6  ;;  %v735_v11 = vadd.f32 %v1159_v7, %v1119_v4  ;;  %v1121_v12 = vpop.f32.mrf.mxu0  ;;  %v789_v39 = vsel %vm758_vm1, %v781_v24, 0.0 }
  0xfd   : > { %v1122_v13 = vadd.f32 %v1121_v12, %v1120_v8  ;;  %v1161_v14 = vpop.f32.mrf.mxu1  ;;  %v790_v53 = vadd.f32 %v789_v39, %v788_v44 }
  0xfe   : > { %864 = vst.msk [vmem:[%s1455_s28 + $0x4] sm:$0xf] %vm862_vm0, %v1088_v10  ;;  %v824_v15 = vadd.f32 %v1448_v55, %v735_v11  ;;  %v1162_v16 = vadd.f32 %v1161_v14, %v1160_v9  ;;  %v1123_v17 = vpop.f32.mrf.mxu0  ;;  %v782_v29 = vmul.f32 %v735_v11, %v735_v11  ;;  %v762_v40 = vsel %vm758_vm1, %v735_v11, 0.0 }
  0xff   : > { %v1163_v18 = vpop.f32.mrf.mxu1  ;;  %v763_v54 = vadd.f32 %v762_v40, %v761_v45  ;;  %v810_v40 = vshrl.u32 %v809_v35, 7 }
 0x100   : > { %v1089_v19 = vpack.c.bf16 %v824_v15, %v824_v15  ;;  %v738_v20 = vadd.f32 %v1162_v16, %v1122_v13  ;;  %v1124_v21 = vpop.f32.mrf.mxu0  ;;  %v791_v46 = vsel %vm758_vm1, %v782_v29, 0.0 }
 0x101   : > { %v1125_v22 = vadd.f32 %v1124_v21, %v1123_v17  ;;  %v1164_v23 = vpop.f32.mrf.mxu1  ;;  %v792_v0 = vadd.f32 %v791_v46, %v790_v53  ;;  %vm812_vm2 = vcmp.eq.s32.totalorder %v810_v40, 1  ;;  %vm811_vm3 = vcmp.eq.s32.totalorder %v810_v40, 0 }
 0x102   : > { %865 = vst.msk [vmem:[%s1455_s28 + $0x8] sm:$0xf] %vm862_vm0, %v1089_v19  ;;  %v825_v25 = vadd.f32 %v1448_v55, %v738_v20  ;;  %v1165_v26 = vadd.f32 %v1164_v23, %v1163_v18  ;;  %v1126_v27 = vpop.f32.mrf.mxu0  ;;  %v783_v36 = vmul.f32 %v738_v20, %v738_v20  ;;  %v764_v48 = vsel %vm758_vm1, %v738_v20, 0.0 }
 0x103   : > { %v1166_v30 = vpop.f32.mrf.mxu1  ;;  %v765_v1 = vadd.f32 %v764_v48, %v763_v54 }
 0x104   : > { %v1090_v32 = vpack.c.bf16 %v825_v25, %v825_v25  ;;  %v743_v33 = vadd.f32 %v1165_v26, %v1125_v22  ;;  %v1127_v34 = vpop.f32.mrf.mxu0  ;;  %v793_v56 = vsel %vm758_vm1, %v783_v36, 0.0 }
 0x105   : > { %v1128_v37 = vadd.f32 %v1127_v34, %v1126_v27  ;;  %v1167_v38 = vpop.f32.mrf.mxu1  ;;  %v794_v8 = vadd.f32 %v793_v56, %v792_v0 }
 0x106   : > { %866 = vst.msk [vmem:[%s1455_s28 + $0xc] sm:$0xf] %vm862_vm0, %v1090_v32  ;;  %v826_v41 = vadd.f32 %v1448_v55, %v743_v33  ;;  %v1168_v42 = vadd.f32 %v1167_v38, %v1166_v30  ;;  %v1129_v43 = vpop.f32.mrf.mxu0  ;;  %v784_v49 = vmul.f32 %v743_v33, %v743_v33  ;;  %v766_v59 = vsel %vm758_vm1, %v743_v33, 0.0 }
 0x107   : > { %v1169_v47 = vpop.f32.mrf.mxu1  ;;  %v767_v9 = vadd.f32 %v766_v59, %v765_v1 }
 0x108   : > { %v1091_v50 = vpack.c.bf16 %v826_v41, %v826_v41  ;;  %v746_v51 = vadd.f32 %v1168_v42, %v1128_v37  ;;  %v1130_v52 = vpop.f32.mrf.mxu0  ;;  %v795_v3 = vsel %vm758_vm1, %v784_v49, 0.0 }
 0x109   : > { %v1131_v57 = vadd.f32 %v1130_v52, %v1129_v43  ;;  %v1170_v58 = vpop.f32.mrf.mxu1  ;;  %v796_v17 = vadd.f32 %v795_v3, %v794_v8 }
 0x10a   : > { %867 = vst.msk [vmem:[%s1455_s28 + $0x10] sm:$0xf] %vm862_vm0, %v1091_v50  ;;  %v785_v60 = vmul.f32 %v746_v51, %v746_v51  ;;  %v827_v61 = vadd.f32 %v1448_v55, %v746_v51  ;;  %v1171_v62 = vadd.f32 %v1170_v58, %v1169_v47  ;;  %v1132_v63 = vpop.f32.mrf.mxu0  ;;  %v768_v4 = vsel %vm758_vm1, %v746_v51, 0.0 }
 0x10b   : > { %v1172_v2 = vpop.f32.mrf.mxu1  ;;  %v769_v18 = vadd.f32 %v768_v4, %v767_v9 }
 0x10c   : > { %v1092_v5 = vpack.c.bf16 %v827_v61, %v827_v61  ;;  %v751_v6 = vadd.f32 %v1171_v62, %v1131_v57  ;;  %v1133_v7 = vpop.f32.mrf.mxu0  ;;  %v797_v10 = vsel %vm758_vm1, %v785_v60, 0.0 }
 0x10d   : > { %v1134_v11 = vadd.f32 %v1133_v7, %v1132_v63  ;;  %v1173_v12 = vpop.f32.mrf.mxu1  ;;  %v798_v22 = vadd.f32 %v797_v10, %v796_v17 }
 0x10e   : > { %868 = vst.msk [vmem:[%s1455_s28 + $0x14] sm:$0xf] %vm862_vm0, %v1092_v5  ;;  %v770_v13 = vsel %vm758_vm1, %v751_v6, 0.0  ;;  %v786_v14 = vmul.f32 %v751_v6, %v751_v6  ;;  %v828_v15 = vadd.f32 %v1448_v55, %v751_v6  ;;  %v1174_v16 = vadd.f32 %v1173_v12, %v1172_v2 }
 0x10f   : > { %v771_v23 = vadd.f32 %v770_v13, %v769_v18 }
 0x110   : > { %v799_v19 = vsel %vm758_vm1, %v786_v14, 0.0  ;;  %v1093_v20 = vpack.c.bf16 %v828_v15, %v828_v15  ;;  %v754_v21 = vadd.f32 %v1174_v16, %v1134_v11 }
 0x111   : > { %v800_v27 = vadd.f32 %v799_v19, %v798_v22 }
 0x112   : > { %869 = vst.msk [vmem:[%s1455_s28 + $0x18] sm:$0xf] %vm862_vm0, %v1093_v20  ;;  %v772_v24 = vsel %vm758_vm1, %v754_v21, 0.0  ;;  %v787_v25 = vmul.f32 %v754_v21, %v754_v21  ;;  %v829_v26 = vadd.f32 %v1448_v55, %v754_v21 }
 0x113   : > { %v773_v28 = vadd.f32 %v772_v24, %v771_v23 }
 0x114   : > { %v801_v29 = vsel %vm758_vm1, %v787_v25, 0.0  ;;  %v1094_v30 = vpack.c.bf16 %v829_v26, %v829_v26 }
 0x115   : > { %v774_v31 = vrot.slane %v773_v28, 4  ;;  %v802_v32 = vadd.f32 %v801_v29, %v800_v27 }
 0x116   : > { %870 = vst.msk [vmem:[%s1455_s28 + $0x1c] sm:$0xf] %vm862_vm0, %v1094_v30 }
 0x117   : > { %v775_v33 = vadd.f32 %v774_v31, %v773_v28  ;;  %v803_v34 = vrot.slane %v802_v32, 4 }
 0x119   : > { %v776_v36 = vrot.slane %v775_v33, 2  ;;  %v804_v37 = vadd.f32 %v803_v34, %v802_v32 }
 0x11b   : > { %v777_v38 = vadd.f32 %v776_v36, %v775_v33  ;;  %v805_v39 = vrot.slane %v804_v37, 2 }
 0x11d   : > { %v806_v55 = vadd.f32 %v805_v39, %v804_v37  ;;  %v778_v41 = vrot.slane %v777_v38, 1 }
 0x11f   : > { %v807_v42 = vrot.slane %v806_v55, 1  ;;  %v779_v44 = vadd.f32 %v778_v41, %v777_v38 }
 0x121   : > { %v808_v43 = vadd.f32 %v807_v42, %v806_v55 }
 0x123   : > { %v813_v45 = vsel %vm812_vm2, %v808_v43, 0.0 }
 0x124   : > { %v814_v46 = vsel %vm811_vm3, %v779_v44, %v813_v45 }
 0x125   : > { %815 = vst.msk [vmem:[%s273_s6] sm:$0xff] %vm758_vm1, %v814_v46 }
 0x126 PF: > { %s15_s17 = sadd.s32 1, %s1277_s17   ;;  %s1516_s15 = smov %s1273_s16 }
 0x127   : > { %p12_p6 = scmp.ge.s32.totalorder %s15_s17, 4   ;;  %s1517_s16 = smov %s1519_s18 }
 0x129   :  { %14 = sbr.rel (!%p12_p6) target bundleno = 2 (0x2), region = 80 }

// kernel: unet_forward.10
= control target key start
LH: loop header
LB: loop body
LE: loop exit
PB: predicated region body
PF: predicated region fallthrough
CT: control target
= control target key end

     0   :  { %s1465_s15 = smov 0   ;;  %s1467_s16 = smov 0   ;;  %s1714_s0 = inlined_call_operand.vmem [shape: bf16[16,1024], index: 0, kind: input, shape index: {}]   ;;  %s1715_s1 = inlined_call_operand.vmem [shape: bf16[1024,32], index: 1, kind: input, shape index: {}]   ;;  %s1716_s2 = inlined_call_operand.vmem [shape: f32[1,32], index: 2, kind: input, shape index: {}]   ;;  %s1717_s3 = inlined_call_operand.vmem [shape: bf16[16,32], index: 3, kind: output, shape index: {0}]   ;;  %s1718_s4 = inlined_call_operand.vmem [shape: f32[16,32], index: 4, kind: output, shape index: {1}]  }
   0x1   :  { %s1469_s17 = smov 0  }
   0x2 LB: > { %s27_s18 = sadd.s32 1, %s1434_s16  ;;  %p1151_p0 = scmp.ge.s32.totalorder %s1438_s17, 1  ;;  %s1438_s17 = sphi %s1469_s17, %s15_s17   ;;  %s1434_s16 = sphi %s1467_s16, %s1720_s16   ;;  %s1430_s15 = sphi %s1465_s15, %s1719_s15  }
   0x3   : > { %p29_p1 = scmp.ge.s32.totalorder %s27_s18, 2  ;;  %p198_p2 = scmp.lt.s32.totalorder %s1438_s17, 3 }
   0x5   : > { %s1722_s18 = smov (%p29_p1, %s27_s18), 0  ;;  %p199_p3 = pnand %p1151_p0, %p198_p2 }
   0x6   : > { %p240_p4 = scmp.lt.s32.totalorder (!%p199_p3), %s1430_s15, 1 }
   0x7   : > { %202 = sbr.rel (%p199_p3) target bundleno = 297 (0x129), region = 32 }
   0xc   : > { %v1344_v0 = vld [vmem:[%s1715_s1 + $0x78] sm:$0xff]   ;;  %v1348_v4 = vld [vmem:[%s1715_s1 + $0x70] sm:$0xff]   ;;  %v1352_v8 = vld [vmem:[%s1715_s1 + $0x68] sm:$0xff]   ;;  %s1724_s15 = smov (!%p240_p4, %s1430_s15), 1  ;;  %vm972_vm0 = vcmask 261120   ;;  %vm1003_vm1 = vcmask 257024  }
   0xd   : > { %v1345_v1 = vld [vmem:[%s1715_s1 + $0xf8] sm:$0xff]   ;;  %1232 = vmatprep.subr.bf16.mxu0 %v1344_v0  ;;  %v1349_v5 = vld [vmem:[%s1715_s1 + $0xf0] sm:$0xff]   ;;  %v1353_v9 = vld [vmem:[%s1715_s1 + $0xe8] sm:$0xff]   ;;  %s1231_s29 = sshll.u32 %s1724_s15, 5  ;;  %s1154_s23 = sshll.u32 %s1724_s15, 2 }
   0xe   : > { %v1346_v2 = vld [vmem:[%s1715_s1 + $0x38] sm:$0xff]   ;;  %1254 = vmatprep.subr.bf16.mxu1 %v1345_v1  ;;  %v1350_v6 = vld [vmem:[%s1715_s1 + $0x30] sm:$0xff]   ;;  %v1354_v10 = vld [vmem:[%s1715_s1 + $0x28] sm:$0xff]   ;;  %s1583_s12 = scalar_lea.vmem %s1714_s0, %s1231_s29  ;;  %s258_s26 = scalar_lea.vmem %s1717_s3, %s1154_s23 }
   0xf   : > { %v1347_v3 = vld [vmem:[%s1715_s1 + $0xb8] sm:$0xff]   ;;  %1233 = vmatpush3.bf16.msra.mxu0 %v1346_v2  ;;  %v1351_v7 = vld [vmem:[%s1715_s1 + $0xb0] sm:$0xff]   ;;  %v1355_v11 = vld [vmem:[%s1715_s1 + $0xa8] sm:$0xff]   ;;  %s1155_s27 = sshll.u32 %s1724_s15, 3 }
  0x10   : > { %1255 = vmatpush3.bf16.msra.mxu1 %v1347_v3  ;;  %1234 = vmatprep.subr.bf16.mxu0 %v1348_v4  ;;  %v1356_v12 = vld [vmem:[%s1715_s1 + $0x60] sm:$0xff]   ;;  %v1360_v16 = vld [vmem:[%s1715_s1 + $0x58] sm:$0xff]   ;;  %v1364_v20 = vld [vmem:[%s1715_s1 + $0x50] sm:$0xff]   ;;  %s265_s30 = scalar_lea.vmem %s1718_s4, %s1155_s27 }
  0x11   : > { %1256 = vmatprep.subr.bf16.mxu1 %v1349_v5  ;;  %v1357_v13 = vld [vmem:[%s1715_s1 + $0xe0] sm:$0xff]   ;;  %v1361_v17 = vld [vmem:[%s1715_s1 + $0xd8] sm:$0xff]   ;;  %v1365_v21 = vld [vmem:[%s1715_s1 + $0xd0] sm:$0xff]  }
  0x12   : > { %v1358_v14 = vld [vmem:[%s1715_s1 + $0x20] sm:$0xff]   ;;  %v1362_v18 = vld [vmem:[%s1715_s1 + $0x18] sm:$0xff]   ;;  %v1366_v22 = vld [vmem:[%s1715_s1 + $0x10] sm:$0xff]  }
  0x13   : > { %1235 = vmatpush3.bf16.msra.mxu0 %v1350_v6  ;;  %v1359_v15 = vld [vmem:[%s1715_s1 + $0xa0] sm:$0xff]   ;;  %v1363_v19 = vld [vmem:[%s1715_s1 + $0x98] sm:$0xff]   ;;  %v1367_v23 = vld [vmem:[%s1715_s1 + $0x90] sm:$0xff]  }
  0x14   : > { %1257 = vmatpush3.bf16.msra.mxu1 %v1351_v7  ;;  %1236 = vmatprep.subr.bf16.mxu0 %v1352_v8  ;;  %v1368_v24 = vld [vmem:[%s1715_s1 + $0x48] sm:$0xff]   ;;  %v1372_v28 = vld [vmem:[%s1715_s1 + $0x40] sm:$0xff]   ;;  %v1380_v38 = vld [vmem:[%s1715_s1 + $0x178] sm:$0xff]  }
  0x15   : > { %1258 = vmatprep.subr.bf16.mxu1 %v1353_v9  ;;  %v1369_v25 = vld [vmem:[%s1715_s1 + $0xc8] sm:$0xff]   ;;  %v1373_v29 = vld [vmem:[%s1715_s1 + $0xc0] sm:$0xff]   ;;  %v1381_v39 = vld [vmem:[%s1715_s1 + $0x1f8] sm:$0xff]  }
  0x16   : > { %v1370_v26 = vld [vmem:[%s1715_s1 + $0x8] sm:$0xff]   ;;  %v1374_v30 = vld [vmem:[%s1715_s1] sm:$0xff]   ;;  %v1382_v40 = vld [vmem:[%s1715_s1 + $0x138] sm:$0xff]  }
  0x17   : > { %1237 = vmatpush3.bf16.msra.mxu0 %v1354_v10  ;;  %v1371_v27 = vld [vmem:[%s1715_s1 + $0x88] sm:$0xff]   ;;  %v1375_v31 = vld [vmem:[%s1715_s1 + $0x80] sm:$0xff]   ;;  %v1383_v41 = vld [vmem:[%s1715_s1 + $0x1b8] sm:$0xff]  }
  0x18   : > { %1259 = vmatpush3.bf16.msra.mxu1 %v1355_v11  ;;  %1238 = vmatprep.subr.bf16.mxu0 %v1356_v12  ;;  %v267_v32 = vld [vmem:[%s1583_s12] sm:$0xff]  ;;  %v268_v33 = vld [vmem:[%s1583_s12 + $0x8] sm:$0xff]  ;;  %v1384_v42 = vld [vmem:[%s1715_s1 + $0x170] sm:$0xff]  }
  0x19   : > { %1260 = vmatprep.subr.bf16.mxu1 %v1357_v13  ;;  %v1156_v34 = vcombine.low %v267_v32, %v267_v32  ;;  %v1157_v35 = vcombine.high %v267_v32, %v267_v32  ;;  %v1158_v36 = vcombine.low %v268_v33, %v268_v33  ;;  %v1159_v37 = vcombine.high %v268_v33, %v268_v33  ;;  %v1385_v43 = vld [vmem:[%s1715_s1 + $0x1f0] sm:$0xff]   ;;  %v1388_v46 = vld [vmem:[%s1715_s1 + $0x168] sm:$0xff]   ;;  %v1392_v50 = vld [vmem:[%s1715_s1 + $0x160] sm:$0xff]  }
  0x1a   : > { %v1386_v44 = vld [vmem:[%s1715_s1 + $0x130] sm:$0xff]   ;;  %v1389_v47 = vld [vmem:[%s1715_s1 + $0x1e8] sm:$0xff]   ;;  %v1393_v51 = vld [vmem:[%s1715_s1 + $0x1e0] sm:$0xff]  }
  0x1b   : > { %1239 = vmatpush3.bf16.msra.mxu0 %v1358_v14  ;;  %843 = vmatprep.mubr.bf16.mxu0 %v1157_v35  ;;  %v1387_v45 = vld [vmem:[%s1715_s1 + $0x1b0] sm:$0xff]   ;;  %v1390_v48 = vld [vmem:[%s1715_s1 + $0x128] sm:$0xff]   ;;  %v1394_v52 = vld [vmem:[%s1715_s1 + $0x120] sm:$0xff]  }
  0x1c   : > { %1261 = vmatpush3.bf16.msra.mxu1 %v1359_v15  ;;  %1240 = vmatprep.subr.bf16.mxu0 %v1360_v16  ;;  %v1391_v49 = vld [vmem:[%s1715_s1 + $0x1a8] sm:$0xff]   ;;  %v1395_v53 = vld [vmem:[%s1715_s1 + $0x1a0] sm:$0xff]   ;;  %v1396_v54 = vld [vmem:[%s1715_s1 + $0x158] sm:$0xff]  }
  0x1d   : > { %1262 = vmatprep.subr.bf16.mxu1 %v1361_v17  ;;  %883 = vmatprep.mubr.bf16.mxu1 %v1159_v37  ;;  %v1397_v55 = vld [vmem:[%s1715_s1 + $0x1d8] sm:$0xff]   ;;  %v1400_v58 = vld [vmem:[%s1715_s1 + $0x150] sm:$0xff]   ;;  %v1404_v62 = vld [vmem:[%s1715_s1 + $0x148] sm:$0xff]  }
  0x1e   : > { %v1398_v56 = vld [vmem:[%s1715_s1 + $0x118] sm:$0xff]   ;;  %v1401_v59 = vld [vmem:[%s1715_s1 + $0x1d0] sm:$0xff]   ;;  %v1405_v63 = vld [vmem:[%s1715_s1 + $0x1c8] sm:$0xff]  }
  0x1f   : > { %1241 = vmatpush3.bf16.msra.mxu0 %v1362_v18  ;;  %v1399_v57 = vld [vmem:[%s1715_s1 + $0x198] sm:$0xff]   ;;  %v1402_v60 = vld [vmem:[%s1715_s1 + $0x110] sm:$0xff]   ;;  %v1406_v0 = vld [vmem:[%s1715_s1 + $0x108] sm:$0xff]  }
  0x20   : > { %1263 = vmatpush3.bf16.msra.mxu1 %v1363_v19  ;;  %1242 = vmatprep.subr.bf16.mxu0 %v1364_v20  ;;  %v1403_v61 = vld [vmem:[%s1715_s1 + $0x190] sm:$0xff]   ;;  %v1407_v1 = vld [vmem:[%s1715_s1 + $0x188] sm:$0xff]   ;;  %v1408_v2 = vld [vmem:[%s1715_s1 + $0x140] sm:$0xff]  }
  0x21   : > { %1264 = vmatprep.subr.bf16.mxu1 %v1365_v21  ;;  %v1409_v3 = vld [vmem:[%s1715_s1 + $0x1c0] sm:$0xff]   ;;  %v269_v6 = vld [vmem:[%s1583_s12 + $0x10] sm:$0xff]  ;;  %v270_v9 = vld [vmem:[%s1583_s12 + $0x18] sm:$0xff] }
  0x22   : > { %v1410_v4 = vld [vmem:[%s1715_s1 + $0x100] sm:$0xff]   ;;  %v1160_v7 = vcombine.low %v269_v6, %v269_v6  ;;  %v1161_v8 = vcombine.high %v269_v6, %v269_v6  ;;  %v1162_v10 = vcombine.low %v270_v9, %v270_v9  ;;  %v1163_v11 = vcombine.high %v270_v9, %v270_v9 }
  0x23   : > { %1243 = vmatpush3.bf16.msra.mxu0 %v1366_v22  ;;  %v1411_v5 = vld [vmem:[%s1715_s1 + $0x180] sm:$0xff]  }
  0x24   : > { %1265 = vmatpush3.bf16.msra.mxu1 %v1367_v23  ;;  %1244 = vmatprep.subr.bf16.mxu0 %v1368_v24  ;;  %v1228_v32 = vld [vmem:[%s1716_s2] ss:$0 sm:$0xff] }
  0x25   : > { %1266 = vmatprep.subr.bf16.mxu1 %v1369_v25 }
  0x27   : > { %1245 = vmatpush3.bf16.msra.mxu0 %v1370_v26 }
  0x28   : > { %1267 = vmatpush3.bf16.msra.mxu1 %v1371_v27  ;;  %1246 = vmatprep.subr.bf16.mxu0 %v1372_v28 }
  0x29   : > { %1268 = vmatprep.subr.bf16.mxu1 %v1373_v29 }
  0x2b   : > { %1247 = vmatpush3.bf16.msra.mxu0 %v1374_v30 }
  0x2c   : > { %1269 = vmatpush3.bf16.msra.mxu1 %v1375_v31  ;;  %1276 = vmatprep.subr.bf16.mxu0 %v1380_v38 }
  0x2d   : > { %1298 = vmatprep.subr.bf16.mxu1 %v1381_v39 }
  0x2e   : > { %844 = vmatmul.mubr.bf16.vlgmr.msra.gmra.mxu0 %v1156_v34 }
  0x2f   : > { %884 = vmatmul.mubr.bf16.vlgmr.msra.gmra.mxu1 %v1158_v36  ;;  %1277 = vmatpush3.bf16.msra.mxu0 %v1382_v40 }
  0x30   : > { %1299 = vmatpush3.bf16.msra.mxu1 %v1383_v41  ;;  %1278 = vmatprep.subr.bf16.mxu0 %v1384_v42 }
  0x31   : > { %1300 = vmatprep.subr.bf16.mxu1 %v1385_v43  ;;  %923 = vmatprep.mubr.bf16.mxu0 %v1161_v8 }
  0x32   : > { %963 = vmatprep.mubr.bf16.mxu1 %v1163_v11 }
  0x33   : > { %1279 = vmatpush3.bf16.msra.mxu0 %v1386_v44  ;;  %v988_v44 = vlaneseq }
  0x34   : > { %1301 = vmatpush3.bf16.msra.mxu1 %v1387_v45  ;;  %1280 = vmatprep.subr.bf16.mxu0 %v1388_v46 }
  0x35   : > { %1302 = vmatprep.subr.bf16.mxu1 %v1389_v47 }
  0x37   : > { %1281 = vmatpush3.bf16.msra.mxu0 %v1390_v48 }
  0x38   : > { %1303 = vmatpush3.bf16.msra.mxu1 %v1391_v49  ;;  %1282 = vmatprep.subr.bf16.mxu0 %v1392_v50  ;;  %v989_v49 = vshrl.u32 %v988_v44, 7 }
  0x39   : > { %1304 = vmatprep.subr.bf16.mxu1 %v1393_v51 }
  0x3a   : > { %vm991_vm2 = vcmp.eq.s32.totalorder %v989_v49, 1  ;;  %vm990_vm3 = vcmp.eq.s32.totalorder %v989_v49, 0 }
  0x3b   : > { %1283 = vmatpush3.bf16.msra.mxu0 %v1394_v52 }
  0x3c   : > { %1305 = vmatpush3.bf16.msra.mxu1 %v1395_v53  ;;  %1284 = vmatprep.subr.bf16.mxu0 %v1396_v54 }
  0x3d   : > { %1306 = vmatprep.subr.bf16.mxu1 %v1397_v55 }
  0x3f   : > { %1285 = vmatpush3.bf16.msra.mxu0 %v1398_v56 }
  0x40   : > { %1307 = vmatpush3.bf16.msra.mxu1 %v1399_v57  ;;  %1286 = vmatprep.subr.bf16.mxu0 %v1400_v58 }
  0x41   : > { %1308 = vmatprep.subr.bf16.mxu1 %v1401_v59 }
  0x43   : > { %1287 = vmatpush3.bf16.msra.mxu0 %v1402_v60 }
  0x44   : > { %1309 = vmatpush3.bf16.msra.mxu1 %v1403_v61  ;;  %1288 = vmatprep.subr.bf16.mxu0 %v1404_v62 }
  0x45   : > { %1310 = vmatprep.subr.bf16.mxu1 %v1405_v63 }
  0x47   : > { %1289 = vmatpush3.bf16.msra.mxu0 %v1406_v0 }
  0x48   : > { %1311 = vmatpush3.bf16.msra.mxu1 %v1407_v1  ;;  %1290 = vmatprep.subr.bf16.mxu0 %v1408_v2 }
  0x49   : > { %1312 = vmatprep.subr.bf16.mxu1 %v1409_v3 }
  0x4b   : > { %1291 = vmatpush3.bf16.msra.mxu0 %v1410_v4 }
  0x4c   : > { %1313 = vmatpush3.bf16.msra.mxu1 %v1411_v5 }
  0x4e   : > { %924 = vmatmul.mubr.bf16.vlgmr.msra.gmra.mxu0 %v1160_v7 }
  0x4f   : > { %964 = vmatmul.mubr.bf16.vlgmr.msra.gmra.mxu1 %v1162_v10 }
  0xee   : > { %v1248_v12 = vpop.f32.mrf.mxu0 }
  0xef   : > { %v1270_v13 = vpop.f32.mrf.mxu1 }
  0xf0   : > { %v1249_v14 = vpop.f32.mrf.mxu0 }
  0xf1   : > { %v1271_v15 = vpop.f32.mrf.mxu1  ;;  %v1250_v20 = vadd.f32 %v1249_v14, %v1248_v12 }
  0xf2   : > { %v1251_v16 = vpop.f32.mrf.mxu0  ;;  %v1272_v21 = vadd.f32 %v1271_v15, %v1270_v13 }
  0xf3   : > { %v1273_v17 = vpop.f32.mrf.mxu1 }
  0xf4   : > { %v1252_v18 = vpop.f32.mrf.mxu0  ;;  %v886_v26 = vadd.f32 %v1272_v21, %v1250_v20 }
  0xf5   : > { %v1274_v19 = vpop.f32.mrf.mxu1 }
 0x10e   : > { %v1292_v22 = vpop.f32.mrf.mxu0 }
 0x10f   : > { %v1314_v23 = vpop.f32.mrf.mxu1 }
 0x110   : > { %v1293_v24 = vpop.f32.mrf.mxu0 }
 0x111   : > { %v1315_v25 = vpop.f32.mrf.mxu1  ;;  %v1294_v27 = vadd.f32 %v1293_v24, %v1292_v22 }
 0x112   : > { %v1295_v28 = vpop.f32.mrf.mxu0  ;;  %v1316_v31 = vadd.f32 %v1315_v25, %v1314_v23 }
 0x113   : > { %v1317_v29 = vpop.f32.mrf.mxu1  ;;  %v926_v30 = vadd.f32 %v1294_v27, %v886_v26 }
 0x114   : > { %v1296_v33 = vpop.f32.mrf.mxu0 }
 0x115   : > { %v1318_v34 = vpop.f32.mrf.mxu1  ;;  %v966_v35 = vadd.f32 %v1316_v31, %v926_v30 }
 0x117   : > { %v973_v36 = vsel %vm972_vm0, %v966_v35, 0.0  ;;  %v980_v37 = vmul.f32 %v966_v35, %v966_v35  ;;  %v1001_v38 = vadd.f32 %v1228_v32, %v966_v35 }
 0x118   : > { %v974_v39 = vrot.slane %v973_v36, 4 }
 0x119   : > { %v981_v40 = vsel %vm972_vm0, %v980_v37, 0.0  ;;  %v1002_v41 = vpack.c.bf16 %v1001_v38, %v1001_v38 }
 0x11a   : > { %v975_v42 = vadd.f32 %v974_v39, %v973_v36  ;;  %v982_v43 = vrot.slane %v981_v40, 4 }
 0x11b   : > { %1004 = vst.msk [vmem:[%s258_s26] sm:$0xf] %vm1003_vm1, %v1002_v41 }
 0x11c   : > { %v976_v45 = vrot.slane %v975_v42, 2  ;;  %v983_v46 = vadd.f32 %v982_v43, %v981_v40 }
 0x11e   : > { %v977_v47 = vadd.f32 %v976_v45, %v975_v42  ;;  %v984_v48 = vrot.slane %v983_v46, 2 }
 0x120   : > { %v985_v50 = vadd.f32 %v984_v48, %v983_v46  ;;  %v978_v51 = vrot.slane %v977_v47, 1 }
 0x122   : > { %v986_v52 = vrot.slane %v985_v50, 1  ;;  %v979_v54 = vadd.f32 %v978_v51, %v977_v47 }
 0x124   : > { %v987_v53 = vadd.f32 %v986_v52, %v985_v50 }
 0x126   : > { %v992_v55 = vsel %vm991_vm2, %v987_v53, 0.0 }
 0x127   : > { %v993_v56 = vsel %vm990_vm3, %v979_v54, %v992_v55 }
 0x128   : > { %994 = vst.msk [vmem:[%s265_s30] sm:$0xff] %vm972_vm0, %v993_v56 }
 0x129 PF: > { %s15_s17 = sadd.s32 1, %s1438_s17   ;;  %s1719_s15 = smov %s1434_s16 }
 0x12a   : > { %p12_p5 = scmp.ge.s32.totalorder %s15_s17, 4   ;;  %s1720_s16 = smov %s1722_s18 }
 0x12c   :  { %14 = sbr.rel (!%p12_p5) target bundleno = 2 (0x2), region = 80 }

// kernel: unet_forward.11
= control target key start
LH: loop header
LB: loop body
LE: loop exit
PB: predicated region body
PF: predicated region fallthrough
CT: control target
= control target key end

     0   :  { %s2412_s0 = inlined_call_operand.vmem [shape: bf16[8,2048], index: 0, kind: input, shape index: {}]   ;;  %s2413_s1 = inlined_call_operand.vmem [shape: bf16[2048,32], index: 1, kind: input, shape index: {}]   ;;  %s2414_s2 = inlined_call_operand.vmem [shape: f32[1,32], index: 2, kind: input, shape index: {}]   ;;  %s2415_s3 = inlined_call_operand.vmem [shape: bf16[8,32], index: 3, kind: output, shape index: {0}]   ;;  %s2416_s4 = inlined_call_operand.hbm [shape: f32[8,32], index: 4, kind: output, shape index: {1}]  }
   0x1   :  { %v1800_v0 = vld [vmem:[%s2413_s1 + $0x78] sm:$0xff]   ;;  %v1804_v4 = vld [vmem:[%s2413_s1 + $0x70] sm:$0xff]   ;;  %v1808_v8 = vld [vmem:[%s2413_s1 + $0x68] sm:$0xff]  }
   0x2   :  { %v1801_v1 = vld [vmem:[%s2413_s1 + $0xf8] sm:$0xff]   ;;  %1623 = vmatprep.subr.bf16.mxu0 %v1800_v0  ;;  %v1805_v5 = vld [vmem:[%s2413_s1 + $0xf0] sm:$0xff]   ;;  %v1809_v9 = vld [vmem:[%s2413_s1 + $0xe8] sm:$0xff]  }
   0x3   :  { %v1802_v2 = vld [vmem:[%s2413_s1 + $0x38] sm:$0xff]   ;;  %1645 = vmatprep.subr.bf16.mxu1 %v1801_v1  ;;  %v1806_v6 = vld [vmem:[%s2413_s1 + $0x30] sm:$0xff]   ;;  %v1810_v10 = vld [vmem:[%s2413_s1 + $0x28] sm:$0xff]  }
   0x4   :  { %v1803_v3 = vld [vmem:[%s2413_s1 + $0xb8] sm:$0xff]   ;;  %1624 = vmatpush3.bf16.msra.mxu0 %v1802_v2  ;;  %v1807_v7 = vld [vmem:[%s2413_s1 + $0xb0] sm:$0xff]   ;;  %v1811_v11 = vld [vmem:[%s2413_s1 + $0xa8] sm:$0xff]  }
   0x5   :  { %1646 = vmatpush3.bf16.msra.mxu1 %v1803_v3  ;;  %1625 = vmatprep.subr.bf16.mxu0 %v1804_v4  ;;  %v1812_v12 = vld [vmem:[%s2413_s1 + $0x60] sm:$0xff]   ;;  %v1816_v16 = vld [vmem:[%s2413_s1 + $0x58] sm:$0xff]   ;;  %v1820_v20 = vld [vmem:[%s2413_s1 + $0x50] sm:$0xff]  }
   0x6   :  { %1647 = vmatprep.subr.bf16.mxu1 %v1805_v5  ;;  %v1813_v13 = vld [vmem:[%s2413_s1 + $0xe0] sm:$0xff]   ;;  %v1817_v17 = vld [vmem:[%s2413_s1 + $0xd8] sm:$0xff]   ;;  %v1821_v21 = vld [vmem:[%s2413_s1 + $0xd0] sm:$0xff]  }
   0x7   :  { %v1814_v14 = vld [vmem:[%s2413_s1 + $0x20] sm:$0xff]   ;;  %v1818_v18 = vld [vmem:[%s2413_s1 + $0x18] sm:$0xff]   ;;  %v1822_v22 = vld [vmem:[%s2413_s1 + $0x10] sm:$0xff]  }
   0x8   :  { %1626 = vmatpush3.bf16.msra.mxu0 %v1806_v6  ;;  %v1815_v15 = vld [vmem:[%s2413_s1 + $0xa0] sm:$0xff]   ;;  %v1819_v19 = vld [vmem:[%s2413_s1 + $0x98] sm:$0xff]   ;;  %v1823_v23 = vld [vmem:[%s2413_s1 + $0x90] sm:$0xff]  }
   0x9   :  { %1648 = vmatpush3.bf16.msra.mxu1 %v1807_v7  ;;  %1627 = vmatprep.subr.bf16.mxu0 %v1808_v8  ;;  %v1824_v24 = vld [vmem:[%s2413_s1 + $0x48] sm:$0xff]   ;;  %v1828_v28 = vld [vmem:[%s2413_s1 + $0x40] sm:$0xff]   ;;  %v1836_v38 = vld [vmem:[%s2413_s1 + $0x178] sm:$0xff]  }
   0xa   :  { %1649 = vmatprep.subr.bf16.mxu1 %v1809_v9  ;;  %v1825_v25 = vld [vmem:[%s2413_s1 + $0xc8] sm:$0xff]   ;;  %v1829_v29 = vld [vmem:[%s2413_s1 + $0xc0] sm:$0xff]   ;;  %v1837_v39 = vld [vmem:[%s2413_s1 + $0x1f8] sm:$0xff]  }
   0xb   :  { %v1826_v26 = vld [vmem:[%s2413_s1 + $0x8] sm:$0xff]   ;;  %v1830_v30 = vld [vmem:[%s2413_s1] sm:$0xff]   ;;  %v1838_v40 = vld [vmem:[%s2413_s1 + $0x138] sm:$0xff]  }
   0xc   :  { %1628 = vmatpush3.bf16.msra.mxu0 %v1810_v10  ;;  %v1827_v27 = vld [vmem:[%s2413_s1 + $0x88] sm:$0xff]   ;;  %v1831_v31 = vld [vmem:[%s2413_s1 + $0x80] sm:$0xff]   ;;  %v1839_v41 = vld [vmem:[%s2413_s1 + $0x1b8] sm:$0xff]  }
   0xd   :  { %1650 = vmatpush3.bf16.msra.mxu1 %v1811_v11  ;;  %1629 = vmatprep.subr.bf16.mxu0 %v1812_v12  ;;  %v18_v32 = vld [vmem:[%s2412_s0] sm:$0xff]  ;;  %v19_v33 = vld [vmem:[%s2412_s0 + $0x8] sm:$0xff]  ;;  %v1840_v42 = vld [vmem:[%s2413_s1 + $0x170] sm:$0xff]  }
   0xe   :  { %1651 = vmatprep.subr.bf16.mxu1 %v1813_v13  ;;  %v1478_v34 = vcombine.low %v18_v32, %v18_v32  ;;  %v1479_v35 = vcombine.high %v18_v32, %v18_v32  ;;  %v1480_v36 = vcombine.low %v19_v33, %v19_v33  ;;  %v1481_v37 = vcombine.high %v19_v33, %v19_v33  ;;  %v1841_v43 = vld [vmem:[%s2413_s1 + $0x1f0] sm:$0xff]   ;;  %v1844_v46 = vld [vmem:[%s2413_s1 + $0x168] sm:$0xff]   ;;  %v1848_v50 = vld [vmem:[%s2413_s1 + $0x160] sm:$0xff]  }
   0xf   :  { %v1842_v44 = vld [vmem:[%s2413_s1 + $0x130] sm:$0xff]   ;;  %v1845_v47 = vld [vmem:[%s2413_s1 + $0x1e8] sm:$0xff]   ;;  %v1849_v51 = vld [vmem:[%s2413_s1 + $0x1e0] sm:$0xff]  }
  0x10   :  { %1630 = vmatpush3.bf16.msra.mxu0 %v1814_v14  ;;  %1138 = vmatprep.mubr.bf16.mxu0 %v1479_v35  ;;  %v1843_v45 = vld [vmem:[%s2413_s1 + $0x1b0] sm:$0xff]   ;;  %v1846_v48 = vld [vmem:[%s2413_s1 + $0x128] sm:$0xff]   ;;  %v1850_v52 = vld [vmem:[%s2413_s1 + $0x120] sm:$0xff]  }
  0x11   :  { %1652 = vmatpush3.bf16.msra.mxu1 %v1815_v15  ;;  %1631 = vmatprep.subr.bf16.mxu0 %v1816_v16  ;;  %v1847_v49 = vld [vmem:[%s2413_s1 + $0x1a8] sm:$0xff]   ;;  %v1851_v53 = vld [vmem:[%s2413_s1 + $0x1a0] sm:$0xff]   ;;  %v1852_v54 = vld [vmem:[%s2413_s1 + $0x158] sm:$0xff]  }
  0x12   :  { %1653 = vmatprep.subr.bf16.mxu1 %v1817_v17  ;;  %1178 = vmatprep.mubr.bf16.mxu1 %v1481_v37  ;;  %v1853_v55 = vld [vmem:[%s2413_s1 + $0x1d8] sm:$0xff]   ;;  %v1856_v58 = vld [vmem:[%s2413_s1 + $0x150] sm:$0xff]   ;;  %v1860_v62 = vld [vmem:[%s2413_s1 + $0x148] sm:$0xff]  }
  0x13   :  { %v1854_v56 = vld [vmem:[%s2413_s1 + $0x118] sm:$0xff]   ;;  %v1857_v59 = vld [vmem:[%s2413_s1 + $0x1d0] sm:$0xff]   ;;  %v1861_v63 = vld [vmem:[%s2413_s1 + $0x1c8] sm:$0xff]  }
  0x14   :  { %1632 = vmatpush3.bf16.msra.mxu0 %v1818_v18  ;;  %v1855_v57 = vld [vmem:[%s2413_s1 + $0x198] sm:$0xff]   ;;  %v1858_v60 = vld [vmem:[%s2413_s1 + $0x110] sm:$0xff]   ;;  %v1862_v0 = vld [vmem:[%s2413_s1 + $0x108] sm:$0xff]  }
  0x15   :  { %1654 = vmatpush3.bf16.msra.mxu1 %v1819_v19  ;;  %1633 = vmatprep.subr.bf16.mxu0 %v1820_v20  ;;  %v1859_v61 = vld [vmem:[%s2413_s1 + $0x190] sm:$0xff]   ;;  %v1863_v1 = vld [vmem:[%s2413_s1 + $0x188] sm:$0xff]   ;;  %v1864_v2 = vld [vmem:[%s2413_s1 + $0x140] sm:$0xff]  }
  0x16   :  { %1655 = vmatprep.subr.bf16.mxu1 %v1821_v21  ;;  %v1865_v3 = vld [vmem:[%s2413_s1 + $0x1c0] sm:$0xff]   ;;  %v20_v6 = vld [vmem:[%s2412_s0 + $0x10] sm:$0xff]  ;;  %v21_v9 = vld [vmem:[%s2412_s0 + $0x18] sm:$0xff] }
  0x17   :  { %v1866_v4 = vld [vmem:[%s2413_s1 + $0x100] sm:$0xff]   ;;  %v1482_v7 = vcombine.low %v20_v6, %v20_v6  ;;  %v1483_v8 = vcombine.high %v20_v6, %v20_v6  ;;  %v1484_v10 = vcombine.low %v21_v9, %v21_v9  ;;  %v1485_v11 = vcombine.high %v21_v9, %v21_v9  ;;  %v1872_v12 = vld [vmem:[%s2413_s1 + $0x278] sm:$0xff]   ;;  %v1876_v16 = vld [vmem:[%s2413_s1 + $0x270] sm:$0xff]  }
  0x18   :  { %1634 = vmatpush3.bf16.msra.mxu0 %v1822_v22  ;;  %v1867_v5 = vld [vmem:[%s2413_s1 + $0x180] sm:$0xff]   ;;  %v1873_v13 = vld [vmem:[%s2413_s1 + $0x2f8] sm:$0xff]   ;;  %v1877_v17 = vld [vmem:[%s2413_s1 + $0x2f0] sm:$0xff]  }
  0x19   :  { %1656 = vmatpush3.bf16.msra.mxu1 %v1823_v23  ;;  %1635 = vmatprep.subr.bf16.mxu0 %v1824_v24  ;;  %v1874_v14 = vld [vmem:[%s2413_s1 + $0x238] sm:$0xff]   ;;  %v1878_v18 = vld [vmem:[%s2413_s1 + $0x230] sm:$0xff]   ;;  %v1880_v20 = vld [vmem:[%s2413_s1 + $0x268] sm:$0xff]  }
  0x1a   :  { %1657 = vmatprep.subr.bf16.mxu1 %v1825_v25  ;;  %v1875_v15 = vld [vmem:[%s2413_s1 + $0x2b8] sm:$0xff]   ;;  %v1879_v19 = vld [vmem:[%s2413_s1 + $0x2b0] sm:$0xff]   ;;  %v1881_v21 = vld [vmem:[%s2413_s1 + $0x2e8] sm:$0xff]  }
  0x1b   :  { %v1882_v22 = vld [vmem:[%s2413_s1 + $0x228] sm:$0xff]   ;;  %v1884_v24 = vld [vmem:[%s2413_s1 + $0x260] sm:$0xff]   ;;  %v1892_v32 = vld [vmem:[%s2413_s1 + $0x250] sm:$0xff]  }
  0x1c   :  { %1636 = vmatpush3.bf16.msra.mxu0 %v1826_v26  ;;  %v1883_v23 = vld [vmem:[%s2413_s1 + $0x2a8] sm:$0xff]   ;;  %v1885_v25 = vld [vmem:[%s2413_s1 + $0x2e0] sm:$0xff]   ;;  %v1893_v33 = vld [vmem:[%s2413_s1 + $0x2d0] sm:$0xff]  }
  0x1d   :  { %1658 = vmatpush3.bf16.msra.mxu1 %v1827_v27  ;;  %1637 = vmatprep.subr.bf16.mxu0 %v1828_v28  ;;  %v1886_v26 = vld [vmem:[%s2413_s1 + $0x220] sm:$0xff]   ;;  %v1888_v28 = vld [vmem:[%s2413_s1 + $0x258] sm:$0xff]   ;;  %v1895_v35 = vld [vmem:[%s2413_s1 + $0x290] sm:$0xff]  }
  0x1e   :  { %1659 = vmatprep.subr.bf16.mxu1 %v1829_v29  ;;  %v1887_v27 = vld [vmem:[%s2413_s1 + $0x2a0] sm:$0xff]   ;;  %v1889_v29 = vld [vmem:[%s2413_s1 + $0x2d8] sm:$0xff]   ;;  %v1897_v37 = vld [vmem:[%s2413_s1 + $0x2c8] sm:$0xff]  }
  0x1f   :  { %v1928_v6 = vld [vmem:[%s2413_s1 + $0x350] sm:$0xff]  }
  0x20   :  { %1638 = vmatpush3.bf16.msra.mxu0 %v1830_v30  ;;  %v1890_v30 = vld [vmem:[%s2413_s1 + $0x218] sm:$0xff]   ;;  %v1931_v9 = vld [vmem:[%s2413_s1 + $0x390] sm:$0xff]  }
  0x21   :  { %1660 = vmatpush3.bf16.msra.mxu1 %v1831_v31  ;;  %1667 = vmatprep.subr.bf16.mxu0 %v1836_v38  ;;  %v1891_v31 = vld [vmem:[%s2413_s1 + $0x298] sm:$0xff]   ;;  %v1898_v38 = vld [vmem:[%s2413_s1 + $0x208] sm:$0xff]  }
  0x22   :  { %1689 = vmatprep.subr.bf16.mxu1 %v1837_v39  ;;  %v1899_v39 = vld [vmem:[%s2413_s1 + $0x288] sm:$0xff]  }
  0x23   :  { %1139 = vmatmul.mubr.bf16.vlgmr.msra.gmra.mxu0 %v1478_v34  ;;  %v1894_v34 = vld [vmem:[%s2413_s1 + $0x210] sm:$0xff]  }
  0x24   :  { %1179 = vmatmul.mubr.bf16.vlgmr.msra.gmra.mxu1 %v1480_v36  ;;  %1668 = vmatpush3.bf16.msra.mxu0 %v1838_v40  ;;  %v1896_v36 = vld [vmem:[%s2413_s1 + $0x248] sm:$0xff]   ;;  %v1900_v40 = vld [vmem:[%s2413_s1 + $0x240] sm:$0xff]  }
  0x25   :  { %1690 = vmatpush3.bf16.msra.mxu1 %v1839_v41  ;;  %1669 = vmatprep.subr.bf16.mxu0 %v1840_v42  ;;  %v1901_v41 = vld [vmem:[%s2413_s1 + $0x2c0] sm:$0xff]  }
  0x26   :  { %1691 = vmatprep.subr.bf16.mxu1 %v1841_v43  ;;  %1218 = vmatprep.mubr.bf16.mxu0 %v1483_v8  ;;  %v1902_v42 = vld [vmem:[%s2413_s1 + $0x200] sm:$0xff]   ;;  %v1930_v8 = vld [vmem:[%s2413_s1 + $0x310] sm:$0xff]  }
  0x27   :  { %1258 = vmatprep.mubr.bf16.mxu1 %v1485_v11  ;;  %v1903_v43 = vld [vmem:[%s2413_s1 + $0x280] sm:$0xff]   ;;  %v1933_v11 = vld [vmem:[%s2413_s1 + $0x3c8] sm:$0xff]  }
  0x28   :  { %1670 = vmatpush3.bf16.msra.mxu0 %v1842_v44  ;;  %v22_v44 = vld [vmem:[%s2412_s0 + $0x20] sm:$0xff] }
  0x29   :  { %1692 = vmatpush3.bf16.msra.mxu1 %v1843_v45  ;;  %1671 = vmatprep.subr.bf16.mxu0 %v1844_v46  ;;  %v23_v45 = vld [vmem:[%s2412_s0 + $0x28] sm:$0xff]  ;;  %v1486_v46 = vcombine.low %v22_v44, %v22_v44 }
  0x2a   :  { %1693 = vmatprep.subr.bf16.mxu1 %v1845_v47  ;;  %v1487_v47 = vcombine.high %v22_v44, %v22_v44 }
  0x2c   :  { %1672 = vmatpush3.bf16.msra.mxu0 %v1846_v48  ;;  %v1488_v48 = vcombine.low %v23_v45, %v23_v45 }
  0x2d   :  { %1694 = vmatpush3.bf16.msra.mxu1 %v1847_v49  ;;  %1673 = vmatprep.subr.bf16.mxu0 %v1848_v50  ;;  %v1489_v49 = vcombine.high %v23_v45, %v23_v45  ;;  %v1908_v50 = vld [vmem:[%s2413_s1 + $0x378] sm:$0xff]  }
  0x2e   :  { %1695 = vmatprep.subr.bf16.mxu1 %v1849_v51  ;;  %v1909_v51 = vld [vmem:[%s2413_s1 + $0x3f8] sm:$0xff]  }
  0x30   :  { %1674 = vmatpush3.bf16.msra.mxu0 %v1850_v52  ;;  %v1910_v52 = vld [vmem:[%s2413_s1 + $0x338] sm:$0xff]  }
  0x31   :  { %1696 = vmatpush3.bf16.msra.mxu1 %v1851_v53  ;;  %1675 = vmatprep.subr.bf16.mxu0 %v1852_v54  ;;  %v1911_v53 = vld [vmem:[%s2413_s1 + $0x3b8] sm:$0xff]   ;;  %v1912_v54 = vld [vmem:[%s2413_s1 + $0x370] sm:$0xff]  }
  0x32   :  { %1697 = vmatprep.subr.bf16.mxu1 %v1853_v55  ;;  %v1913_v55 = vld [vmem:[%s2413_s1 + $0x3f0] sm:$0xff]  }
  0x34   :  { %1676 = vmatpush3.bf16.msra.mxu0 %v1854_v56  ;;  %v1914_v56 = vld [vmem:[%s2413_s1 + $0x330] sm:$0xff]  }
  0x35   :  { %1698 = vmatpush3.bf16.msra.mxu1 %v1855_v57  ;;  %1677 = vmatprep.subr.bf16.mxu0 %v1856_v58  ;;  %v1915_v57 = vld [vmem:[%s2413_s1 + $0x3b0] sm:$0xff]   ;;  %v1916_v58 = vld [vmem:[%s2413_s1 + $0x368] sm:$0xff]  }
  0x36   :  { %1699 = vmatprep.subr.bf16.mxu1 %v1857_v59  ;;  %v1917_v59 = vld [vmem:[%s2413_s1 + $0x3e8] sm:$0xff]  }
  0x38   :  { %1678 = vmatpush3.bf16.msra.mxu0 %v1858_v60  ;;  %v1918_v60 = vld [vmem:[%s2413_s1 + $0x328] sm:$0xff]  }
  0x39   :  { %1700 = vmatpush3.bf16.msra.mxu1 %v1859_v61  ;;  %1679 = vmatprep.subr.bf16.mxu0 %v1860_v62  ;;  %v1919_v61 = vld [vmem:[%s2413_s1 + $0x3a8] sm:$0xff]   ;;  %v1920_v62 = vld [vmem:[%s2413_s1 + $0x360] sm:$0xff]  }
  0x3a   :  { %1701 = vmatprep.subr.bf16.mxu1 %v1861_v63  ;;  %v1921_v63 = vld [vmem:[%s2413_s1 + $0x3e0] sm:$0xff]  }
  0x3c   :  { %1680 = vmatpush3.bf16.msra.mxu0 %v1862_v0  ;;  %v1922_v0 = vld [vmem:[%s2413_s1 + $0x320] sm:$0xff]  }
  0x3d   :  { %1702 = vmatpush3.bf16.msra.mxu1 %v1863_v1  ;;  %1681 = vmatprep.subr.bf16.mxu0 %v1864_v2  ;;  %v1923_v1 = vld [vmem:[%s2413_s1 + $0x3a0] sm:$0xff]   ;;  %v1924_v2 = vld [vmem:[%s2413_s1 + $0x358] sm:$0xff]  }
  0x3e   :  { %1703 = vmatprep.subr.bf16.mxu1 %v1865_v3  ;;  %v1925_v3 = vld [vmem:[%s2413_s1 + $0x3d8] sm:$0xff]  }
  0x40   :  { %1682 = vmatpush3.bf16.msra.mxu0 %v1866_v4  ;;  %v1926_v4 = vld [vmem:[%s2413_s1 + $0x318] sm:$0xff]  }
  0x41   :  { %1704 = vmatpush3.bf16.msra.mxu1 %v1867_v5  ;;  %1711 = vmatprep.subr.bf16.mxu0 %v1872_v12  ;;  %v1927_v5 = vld [vmem:[%s2413_s1 + $0x398] sm:$0xff]   ;;  %v1934_v12 = vld [vmem:[%s2413_s1 + $0x308] sm:$0xff]  }
  0x42   :  { %1733 = vmatprep.subr.bf16.mxu1 %v1873_v13  ;;  %v1935_v13 = vld [vmem:[%s2413_s1 + $0x388] sm:$0xff]  }
  0x43   :  { %1219 = vmatmul.mubr.bf16.vlgmr.msra.gmra.mxu0 %v1482_v7  ;;  %v1929_v7 = vld [vmem:[%s2413_s1 + $0x3d0] sm:$0xff]  }
  0x44   :  { %1259 = vmatmul.mubr.bf16.vlgmr.msra.gmra.mxu1 %v1484_v10  ;;  %1712 = vmatpush3.bf16.msra.mxu0 %v1874_v14  ;;  %v1932_v10 = vld [vmem:[%s2413_s1 + $0x348] sm:$0xff]   ;;  %v1936_v14 = vld [vmem:[%s2413_s1 + $0x340] sm:$0xff]  }
  0x45   :  { %1734 = vmatpush3.bf16.msra.mxu1 %v1875_v15  ;;  %1713 = vmatprep.subr.bf16.mxu0 %v1876_v16  ;;  %v1937_v15 = vld [vmem:[%s2413_s1 + $0x3c0] sm:$0xff]  }
  0x46   :  { %1735 = vmatprep.subr.bf16.mxu1 %v1877_v17  ;;  %1298 = vmatprep.mubr.bf16.mxu0 %v1487_v47  ;;  %v1938_v16 = vld [vmem:[%s2413_s1 + $0x300] sm:$0xff]  }
  0x47   :  { %1338 = vmatprep.mubr.bf16.mxu1 %v1489_v49  ;;  %v1939_v17 = vld [vmem:[%s2413_s1 + $0x380] sm:$0xff]  }
  0x48   :  { %1714 = vmatpush3.bf16.msra.mxu0 %v1878_v18  ;;  %v24_v18 = vld [vmem:[%s2412_s0 + $0x30] sm:$0xff] }
  0x49   :  { %1736 = vmatpush3.bf16.msra.mxu1 %v1879_v19  ;;  %1715 = vmatprep.subr.bf16.mxu0 %v1880_v20  ;;  %v25_v19 = vld [vmem:[%s2412_s0 + $0x38] sm:$0xff] }
  0x4a   :  { %1737 = vmatprep.subr.bf16.mxu1 %v1881_v21 }
  0x4c   :  { %1716 = vmatpush3.bf16.msra.mxu0 %v1882_v22 }
  0x4d   :  { %1738 = vmatpush3.bf16.msra.mxu1 %v1883_v23  ;;  %1717 = vmatprep.subr.bf16.mxu0 %v1884_v24 }
  0x4e   :  { %1739 = vmatprep.subr.bf16.mxu1 %v1885_v25 }
  0x50   :  { %1718 = vmatpush3.bf16.msra.mxu0 %v1886_v26 }
  0x51   :  { %1740 = vmatpush3.bf16.msra.mxu1 %v1887_v27  ;;  %1719 = vmatprep.subr.bf16.mxu0 %v1888_v28 }
  0x52   :  { %1741 = vmatprep.subr.bf16.mxu1 %v1889_v29 }
  0x54   :  { %1720 = vmatpush3.bf16.msra.mxu0 %v1890_v30 }
  0x55   :  { %1742 = vmatpush3.bf16.msra.mxu1 %v1891_v31  ;;  %1721 = vmatprep.subr.bf16.mxu0 %v1892_v32 }
  0x56   :  { %1743 = vmatprep.subr.bf16.mxu1 %v1893_v33 }
  0x58   :  { %1722 = vmatpush3.bf16.msra.mxu0 %v1894_v34 }
  0x59   :  { %1744 = vmatpush3.bf16.msra.mxu1 %v1895_v35  ;;  %1723 = vmatprep.subr.bf16.mxu0 %v1896_v36 }
  0x5a   :  { %1745 = vmatprep.subr.bf16.mxu1 %v1897_v37 }
  0x5c   :  { %1724 = vmatpush3.bf16.msra.mxu0 %v1898_v38 }
  0x5d   :  { %1746 = vmatpush3.bf16.msra.mxu1 %v1899_v39  ;;  %1725 = vmatprep.subr.bf16.mxu0 %v1900_v40 }
  0x5e   :  { %1747 = vmatprep.subr.bf16.mxu1 %v1901_v41 }
  0x60   :  { %1726 = vmatpush3.bf16.msra.mxu0 %v1902_v42 }
  0x61   :  { %1748 = vmatpush3.bf16.msra.mxu1 %v1903_v43  ;;  %1755 = vmatprep.subr.bf16.mxu0 %v1908_v50 }
  0x62   :  { %1777 = vmatprep.subr.bf16.mxu1 %v1909_v51 }
  0x63   :  { %1299 = vmatmul.mubr.bf16.vlgmr.msra.gmra.mxu0 %v1486_v46 }
  0x64   :  { %1339 = vmatmul.mubr.bf16.vlgmr.msra.gmra.mxu1 %v1488_v48  ;;  %1756 = vmatpush3.bf16.msra.mxu0 %v1910_v52 }
  0x65   :  { %1778 = vmatpush3.bf16.msra.mxu1 %v1911_v53  ;;  %1757 = vmatprep.subr.bf16.mxu0 %v1912_v54 }
  0x66   :  { %1779 = vmatprep.subr.bf16.mxu1 %v1913_v55 }
  0x68   :  { %1758 = vmatpush3.bf16.msra.mxu0 %v1914_v56 }
  0x69   :  { %1780 = vmatpush3.bf16.msra.mxu1 %v1915_v57  ;;  %1759 = vmatprep.subr.bf16.mxu0 %v1916_v58 }
  0x6a   :  { %1781 = vmatprep.subr.bf16.mxu1 %v1917_v59 }
  0x6c   :  { %1760 = vmatpush3.bf16.msra.mxu0 %v1918_v60 }
  0x6d   :  { %1782 = vmatpush3.bf16.msra.mxu1 %v1919_v61  ;;  %1761 = vmatprep.subr.bf16.mxu0 %v1920_v62 }
  0x6e   :  { %1783 = vmatprep.subr.bf16.mxu1 %v1921_v63 }
  0x70   :  { %1762 = vmatpush3.bf16.msra.mxu0 %v1922_v0 }
  0x71   :  { %1784 = vmatpush3.bf16.msra.mxu1 %v1923_v1  ;;  %1763 = vmatprep.subr.bf16.mxu0 %v1924_v2 }
  0x72   :  { %1785 = vmatprep.subr.bf16.mxu1 %v1925_v3 }
  0x74   :  { %1764 = vmatpush3.bf16.msra.mxu0 %v1926_v4 }
  0x75   :  { %1786 = vmatpush3.bf16.msra.mxu1 %v1927_v5  ;;  %1765 = vmatprep.subr.bf16.mxu0 %v1928_v6 }
  0x76   :  { %1787 = vmatprep.subr.bf16.mxu1 %v1929_v7 }
  0x78   :  { %1766 = vmatpush3.bf16.msra.mxu0 %v1930_v8 }
  0x79   :  { %1788 = vmatpush3.bf16.msra.mxu1 %v1931_v9  ;;  %1767 = vmatprep.subr.bf16.mxu0 %v1932_v10 }
  0x7a   :  { %1789 = vmatprep.subr.bf16.mxu1 %v1933_v11 }
  0x7c   :  { %1768 = vmatpush3.bf16.msra.mxu0 %v1934_v12 }
  0x7d   :  { %1790 = vmatpush3.bf16.msra.mxu1 %v1935_v13  ;;  %1769 = vmatprep.subr.bf16.mxu0 %v1936_v14 }
  0x7e   :  { %1791 = vmatprep.subr.bf16.mxu1 %v1937_v15 }
  0x7f   :  { %10 = vsyncpa [#allocation3], 0  ;;  %v1490_v20 = vcombine.low %v24_v18, %v24_v18  ;;  %v1491_v21 = vcombine.high %v24_v18, %v24_v18  ;;  %v1492_v22 = vcombine.low %v25_v19, %v25_v19  ;;  %v1493_v23 = vcombine.high %v25_v19, %v25_v19  ;;  %v1622_v4 = vld [vmem:[%s2414_s2] ss:$0 sm:$0xff]  ;;  %s1966_s2 = smov [#allocation2]  }
  0x80   :  { %1770 = vmatpush3.bf16.msra.mxu0 %v1938_v16  ;;  %vm1427_vm0 = vcmask 261120   ;;  %vm1458_vm1 = vcmask 257024   ;;  %v1443_v16 = vlaneseq  ;;  %s1468_s29 = sshll.u32 %s1966_s2, 4  ;;  %s1469_s29 = int_to_ptr.vmem [resolvable:$true] %s1468_s29 }
  0x81   :  { %1792 = vmatpush3.bf16.msra.mxu1 %v1939_v17  ;;  %1378 = vmatprep.mubr.bf16.mxu0 %v1491_v21  ;;  %p1949_p1 = scmp.lt.s32.totalorder %s1469_s29, %s1469_s29 }
  0x82   :  { %1418 = vmatprep.mubr.bf16.mxu1 %v1493_v23  ;;  %v1444_v21 = vshrl.u32 %v1443_v16, 7 }
  0x83   :  { %1379 = vmatmul.mubr.bf16.vlgmr.msra.gmra.mxu0 %v1490_v20 }
  0x84   :  { %1419 = vmatmul.mubr.bf16.vlgmr.msra.gmra.mxu1 %v1492_v22  ;;  %vm1446_vm2 = vcmp.eq.s32.totalorder %v1444_v21, 1  ;;  %vm1445_vm3 = vcmp.eq.s32.totalorder %v1444_v21, 0 }
  0xe3   :  { %v1639_v24 = vpop.f32.mrf.mxu0 }
  0xe4   :  { %v1661_v25 = vpop.f32.mrf.mxu1 }
  0xe5   :  { %v1640_v26 = vpop.f32.mrf.mxu0 }
  0xe6   :  { %v1662_v27 = vpop.f32.mrf.mxu1  ;;  %v1641_v28 = vadd.f32 %v1640_v26, %v1639_v24 }
  0xe7   :  { %v1663_v29 = vadd.f32 %v1662_v27, %v1661_v25  ;;  %v1642_v30 = vpop.f32.mrf.mxu0 }
  0xe8   :  { %v1664_v31 = vpop.f32.mrf.mxu1 }
  0xe9   :  { %v1181_v32 = vadd.f32 %v1663_v29, %v1641_v28  ;;  %v1643_v33 = vpop.f32.mrf.mxu0 }
  0xea   :  { %v1665_v34 = vpop.f32.mrf.mxu1 }
 0x103   :  { %v1683_v35 = vpop.f32.mrf.mxu0 }
 0x104   :  { %v1705_v36 = vpop.f32.mrf.mxu1 }
 0x105   :  { %v1684_v37 = vpop.f32.mrf.mxu0 }
 0x106   :  { %v1706_v38 = vpop.f32.mrf.mxu1  ;;  %v1685_v51 = vadd.f32 %v1684_v37, %v1683_v35 }
 0x107   :  { %v1686_v39 = vpop.f32.mrf.mxu0  ;;  %v1707_v53 = vadd.f32 %v1706_v38, %v1705_v36 }
 0x108   :  { %v1708_v40 = vpop.f32.mrf.mxu1  ;;  %v1221_v52 = vadd.f32 %v1685_v51, %v1181_v32 }
 0x109   :  { %v1687_v41 = vpop.f32.mrf.mxu0 }
 0x10a   :  { %v1709_v42 = vpop.f32.mrf.mxu1  ;;  %v1261_v55 = vadd.f32 %v1707_v53, %v1221_v52 }
 0x123   :  { %v1727_v43 = vpop.f32.mrf.mxu0 }
 0x124   :  { %v1749_v44 = vpop.f32.mrf.mxu1 }
 0x125   :  { %v1728_v45 = vpop.f32.mrf.mxu0 }
 0x126   :  { %v1750_v46 = vpop.f32.mrf.mxu1  ;;  %v1729_v54 = vadd.f32 %v1728_v45, %v1727_v43 }
 0x127   :  { %v1730_v47 = vpop.f32.mrf.mxu0  ;;  %v1751_v57 = vadd.f32 %v1750_v46, %v1749_v44 }
 0x128   :  { %v1752_v48 = vpop.f32.mrf.mxu1  ;;  %v1301_v56 = vadd.f32 %v1729_v54, %v1261_v55 }
 0x129   :  { %v1731_v49 = vpop.f32.mrf.mxu0 }
 0x12a   :  { %v1753_v50 = vpop.f32.mrf.mxu1  ;;  %v1341_v61 = vadd.f32 %v1751_v57, %v1301_v56 }
 0x143   :  { %v1771_v58 = vpop.f32.mrf.mxu0 }
 0x144   :  { %v1793_v59 = vpop.f32.mrf.mxu1 }
 0x145   :  { %v1772_v60 = vpop.f32.mrf.mxu0 }
 0x146   :  { %v1773_v62 = vadd.f32 %v1772_v60, %v1771_v58  ;;  %v1794_v63 = vpop.f32.mrf.mxu1 }
 0x147   :  { %v1774_v0 = vpop.f32.mrf.mxu0  ;;  %v1795_v2 = vadd.f32 %v1794_v63, %v1793_v59 }
 0x148   :  { %v1381_v1 = vadd.f32 %v1773_v62, %v1341_v61  ;;  %v1796_v3 = vpop.f32.mrf.mxu1 }
 0x149   :  { %v1775_v5 = vpop.f32.mrf.mxu0 }
 0x14a   :  { %v1421_v6 = vadd.f32 %v1795_v2, %v1381_v1  ;;  %v1797_v7 = vpop.f32.mrf.mxu1 }
 0x14c   :  { %v1435_v8 = vmul.f32 %v1421_v6, %v1421_v6  ;;  %v1456_v9 = vadd.f32 %v1622_v4, %v1421_v6  ;;  %v1428_v10 = vsel %vm1427_vm0, %v1421_v6, 0.0 }
 0x14d   :  { %v1429_v11 = vrot.slane %v1428_v10, 4 }
 0x14e   :  { %v1457_v12 = vpack.c.bf16 %v1456_v9, %v1456_v9  ;;  %v1436_v13 = vsel %vm1427_vm0, %v1435_v8, 0.0 }
 0x14f   :  { %v1430_v14 = vadd.f32 %v1429_v11, %v1428_v10  ;;  %v1437_v15 = vrot.slane %v1436_v13, 4 }
 0x150   :  { %1459 = vst.msk [vmem:[%s2415_s3] sm:$0xf] %vm1458_vm1, %v1457_v12  ;;  %s1944_s3 = scalar_lea.vmem %s1469_s29, 128 }
 0x151   :  { %v1431_v17 = vrot.slane %v1430_v14, 2  ;;  %v1438_v18 = vadd.f32 %v1437_v15, %v1436_v13  ;;  %p1945_p0 = scmp.ne.s32.totalorder %s1469_s29, %s1944_s3  ;;  %p1950_p2 = scmp.lt.s32.totalorder %s1944_s3, %s1944_s3 }
 0x153   :  { %v1432_v19 = vadd.f32 %v1431_v17, %v1430_v14  ;;  %v1439_v20 = vrot.slane %v1438_v18, 2  ;;  %p1951_p3 = por %p1950_p2, %p1949_p1 }
 0x155   :  { %v1440_v22 = vadd.f32 %v1439_v20, %v1438_v18  ;;  %v1433_v23 = vrot.slane %v1432_v19, 1  ;;  %p1952_p4 = pnand %p1951_p3, %p1945_p0 }
 0x157   :  { %v1441_v24 = vrot.slane %v1440_v22, 1  ;;  %v1434_v26 = vadd.f32 %v1433_v23, %v1432_v19 }
 0x159   :  { %v1442_v25 = vadd.f32 %v1441_v24, %v1440_v22 }
 0x15b   :  { %v1447_v27 = vsel %vm1446_vm2, %v1442_v25, 0.0 }
 0x15c   :  { %v1448_v28 = vsel %vm1445_vm3, %v1434_v26, %v1447_v27 }
 0x15d   :  { %1449 = vst.msk [vmem:[#allocation2] sm:$0xff] %vm1427_vm0, %v1448_v28 }
 0x15e   :  { %1955 = shalt.err (!%p1952_p4)
}
 0x15f   :  { %1471 = dma.vmem_to_hbm [thread:$0]  %s1469_s29, 128, %s2416_s4, [#allocation3]  }
 0x160   :  { %1964 = dma.done.wait [#allocation3], 128  }
 0x161   :  { %1965 = vsyncadd [#allocation3], 4294967168 }
 0x162   :  { %1477 = vsyncpa [#allocation3], 1 }

// kernel: unet_forward.12
= control target key start
LH: loop header
LB: loop body
LE: loop exit
PB: predicated region body
PF: predicated region fallthrough
CT: control target
= control target key end

     0   :  { %s1638_s1 = inlined_call_operand.vmem [shape: bf16[896,256], index: 1, kind: input, shape index: {}]   ;;  %s1639_s0 = inlined_call_operand.vmem [shape: bf16[8,896], index: 0, kind: input, shape index: {}]   ;;  %s1640_s2 = inlined_call_operand.vmem [shape: f32[1,256], index: 2, kind: input, shape index: {}]   ;;  %s1641_s3 = inlined_call_operand.vmem [shape: bf16[8,256], index: 3, kind: output, shape index: {0}]   ;;  %s1642_s4 = inlined_call_operand.vmem [shape: f32[8,256], index: 4, kind: output, shape index: {1}]  }
   0x1   :  { %v1071_v0 = vld [vmem:[%s1638_s1 + $0x74] ss:$8 sps:$4 sm:$0xff]   ;;  %v1075_v2 = vld [vmem:[%s1638_s1 + $0x70] ss:$8 sps:$4 sm:$0xff]   ;;  %v1077_v4 = vld [vmem:[%s1638_s1 + $0x64] ss:$8 sps:$4 sm:$0xff]  }
   0x2   :  { %v1073_v1 = vld [vmem:[%s1638_s1 + $0x174] ss:$8 sps:$4 sm:$0xff]   ;;  %718 = vmatprep.subr.bf16.mxu0 %v1071_v0  ;;  %v1076_v3 = vld [vmem:[%s1638_s1 + $0x170] ss:$8 sps:$4 sm:$0xff]   ;;  %v1079_v5 = vld [vmem:[%s1638_s1 + $0x164] ss:$8 sps:$4 sm:$0xff]  }
   0x3   :  { %759 = vmatprep.subr.bf16.mxu1 %v1073_v1  ;;  %719 = vmatpush1.bf16.msra.mxu0 %v1075_v2  ;;  %v1081_v6 = vld [vmem:[%s1638_s1 + $0x60] ss:$8 sps:$4 sm:$0xff]   ;;  %v1083_v8 = vld [vmem:[%s1638_s1 + $0x54] ss:$8 sps:$4 sm:$0xff]   ;;  %v1087_v10 = vld [vmem:[%s1638_s1 + $0x50] ss:$8 sps:$4 sm:$0xff]  }
   0x4   :  { %760 = vmatpush1.bf16.msra.mxu1 %v1076_v3  ;;  %720 = vmatprep.subr.bf16.mxu0 %v1077_v4  ;;  %v1082_v7 = vld [vmem:[%s1638_s1 + $0x160] ss:$8 sps:$4 sm:$0xff]   ;;  %v1085_v9 = vld [vmem:[%s1638_s1 + $0x154] ss:$8 sps:$4 sm:$0xff]   ;;  %v1088_v11 = vld [vmem:[%s1638_s1 + $0x150] ss:$8 sps:$4 sm:$0xff]  }
   0x5   :  { %761 = vmatprep.subr.bf16.mxu1 %v1079_v5  ;;  %v1089_v12 = vld [vmem:[%s1638_s1 + $0x44] ss:$8 sps:$4 sm:$0xff]   ;;  %v1093_v14 = vld [vmem:[%s1638_s1 + $0x40] ss:$8 sps:$4 sm:$0xff]   ;;  %v1095_v16 = vld [vmem:[%s1638_s1 + $0x34] ss:$8 sps:$4 sm:$0xff]  }
   0x6   :  { %v1091_v13 = vld [vmem:[%s1638_s1 + $0x144] ss:$8 sps:$4 sm:$0xff]   ;;  %v1094_v15 = vld [vmem:[%s1638_s1 + $0x140] ss:$8 sps:$4 sm:$0xff]   ;;  %v1097_v17 = vld [vmem:[%s1638_s1 + $0x134] ss:$8 sps:$4 sm:$0xff]  }
   0x7   :  { %721 = vmatpush1.bf16.msra.mxu0 %v1081_v6  ;;  %v1099_v18 = vld [vmem:[%s1638_s1 + $0x30] ss:$8 sps:$4 sm:$0xff]   ;;  %v1101_v20 = vld [vmem:[%s1638_s1 + $0x24] ss:$8 sps:$4 sm:$0xff]   ;;  %v1105_v22 = vld [vmem:[%s1638_s1 + $0x20] ss:$8 sps:$4 sm:$0xff]  }
   0x8   :  { %762 = vmatpush1.bf16.msra.mxu1 %v1082_v7  ;;  %722 = vmatprep.subr.bf16.mxu0 %v1083_v8  ;;  %v1100_v19 = vld [vmem:[%s1638_s1 + $0x130] ss:$8 sps:$4 sm:$0xff]   ;;  %v1103_v21 = vld [vmem:[%s1638_s1 + $0x124] ss:$8 sps:$4 sm:$0xff]   ;;  %v1106_v23 = vld [vmem:[%s1638_s1 + $0x120] ss:$8 sps:$4 sm:$0xff]  }
   0x9   :  { %763 = vmatprep.subr.bf16.mxu1 %v1085_v9  ;;  %v1107_v24 = vld [vmem:[%s1638_s1 + $0x14] ss:$8 sps:$4 sm:$0xff]   ;;  %v1111_v26 = vld [vmem:[%s1638_s1 + $0x10] ss:$8 sps:$4 sm:$0xff]   ;;  %v1113_v28 = vld [vmem:[%s1638_s1 + $0x4] ss:$8 sps:$4 sm:$0xff]  }
   0xa   :  { %v1109_v25 = vld [vmem:[%s1638_s1 + $0x114] ss:$8 sps:$4 sm:$0xff]   ;;  %v1112_v27 = vld [vmem:[%s1638_s1 + $0x110] ss:$8 sps:$4 sm:$0xff]   ;;  %v1115_v29 = vld [vmem:[%s1638_s1 + $0x104] ss:$8 sps:$4 sm:$0xff]  }
   0xb   :  { %723 = vmatpush1.bf16.msra.mxu0 %v1087_v10  ;;  %v1117_v30 = vld [vmem:[%s1638_s1] ss:$8 sps:$4 sm:$0xff]   ;;  %v1119_v32 = vld [vmem:[%s1638_s1 + $0xf4] ss:$8 sps:$4 sm:$0xff]   ;;  %v1123_v34 = vld [vmem:[%s1638_s1 + $0xf0] ss:$8 sps:$4 sm:$0xff]  }
   0xc   :  { %764 = vmatpush1.bf16.msra.mxu1 %v1088_v11  ;;  %724 = vmatprep.subr.bf16.mxu0 %v1089_v12  ;;  %v1118_v31 = vld [vmem:[%s1638_s1 + $0x100] ss:$8 sps:$4 sm:$0xff]   ;;  %v1121_v33 = vld [vmem:[%s1638_s1 + $0x1f4] ss:$8 sps:$4 sm:$0xff]   ;;  %v1124_v35 = vld [vmem:[%s1638_s1 + $0x1f0] ss:$8 sps:$4 sm:$0xff]  }
   0xd   :  { %765 = vmatprep.subr.bf16.mxu1 %v1091_v13  ;;  %v1125_v36 = vld [vmem:[%s1638_s1 + $0xe4] ss:$8 sps:$4 sm:$0xff]   ;;  %v1129_v38 = vld [vmem:[%s1638_s1 + $0xe0] ss:$8 sps:$4 sm:$0xff]   ;;  %v1131_v40 = vld [vmem:[%s1638_s1 + $0xd4] ss:$8 sps:$4 sm:$0xff]  }
   0xe   :  { %v1127_v37 = vld [vmem:[%s1638_s1 + $0x1e4] ss:$8 sps:$4 sm:$0xff]   ;;  %v1130_v39 = vld [vmem:[%s1638_s1 + $0x1e0] ss:$8 sps:$4 sm:$0xff]   ;;  %v1133_v41 = vld [vmem:[%s1638_s1 + $0x1d4] ss:$8 sps:$4 sm:$0xff]  }
   0xf   :  { %725 = vmatpush1.bf16.msra.mxu0 %v1093_v14  ;;  %v1135_v42 = vld [vmem:[%s1638_s1 + $0xd0] ss:$8 sps:$4 sm:$0xff]   ;;  %v1137_v44 = vld [vmem:[%s1638_s1 + $0xc4] ss:$8 sps:$4 sm:$0xff]   ;;  %v1141_v49 = vld [vmem:[%s1638_s1 + $0xc0] ss:$8 sps:$4 sm:$0xff]  }
  0x10   :  { %766 = vmatpush1.bf16.msra.mxu1 %v1094_v15  ;;  %726 = vmatprep.subr.bf16.mxu0 %v1095_v16  ;;  %v1136_v43 = vld [vmem:[%s1638_s1 + $0x1d0] ss:$8 sps:$4 sm:$0xff]   ;;  %v1139_v45 = vld [vmem:[%s1638_s1 + $0x1c4] ss:$8 sps:$4 sm:$0xff]   ;;  %v1142_v50 = vld [vmem:[%s1638_s1 + $0x1c0] ss:$8 sps:$4 sm:$0xff]  }
  0x11   :  { %767 = vmatprep.subr.bf16.mxu1 %v1097_v17  ;;  %v17_v46 = vld [vmem:[%s1639_s0] sm:$0xff]  ;;  %v18_v48 = vld [vmem:[%s1639_s0 + $0x8] sm:$0xff]  ;;  %v1143_v52 = vld [vmem:[%s1638_s1 + $0xb4] ss:$8 sps:$4 sm:$0xff]   ;;  %v1246_v16 = vmov 0  }
  0x12   :  { %v950_v47 = vcombine.high %v17_v46, %v17_v46  ;;  %v952_v51 = vcombine.high %v18_v48, %v18_v48  ;;  %v1145_v53 = vld [vmem:[%s1638_s1 + $0x1b4] ss:$8 sps:$4 sm:$0xff]   ;;  %v1147_v54 = vld [vmem:[%s1638_s1 + $0xb0] ss:$8 sps:$4 sm:$0xff]   ;;  %v1149_v56 = vld [vmem:[%s1638_s1 + $0xa4] ss:$8 sps:$4 sm:$0xff]   ;;  %v949_v6 = vcombine.low %v17_v46, %v17_v46  ;;  %v951_v7 = vcombine.low %v18_v48, %v18_v48 }
  0x13   :  { %727 = vmatpush1.bf16.msra.mxu0 %v1099_v18  ;;  %v1148_v55 = vld [vmem:[%s1638_s1 + $0x1b0] ss:$8 sps:$4 sm:$0xff]   ;;  %v1151_v57 = vld [vmem:[%s1638_s1 + $0x1a4] ss:$8 sps:$4 sm:$0xff]   ;;  %v1153_v58 = vld [vmem:[%s1638_s1 + $0xa0] ss:$8 sps:$4 sm:$0xff]  }
  0x14   :  { %768 = vmatpush1.bf16.msra.mxu1 %v1100_v19  ;;  %728 = vmatprep.subr.bf16.mxu0 %v1101_v20  ;;  %v1154_v59 = vld [vmem:[%s1638_s1 + $0x1a0] ss:$8 sps:$4 sm:$0xff]   ;;  %v1155_v60 = vld [vmem:[%s1638_s1 + $0x94] ss:$8 sps:$4 sm:$0xff]   ;;  %v1159_v62 = vld [vmem:[%s1638_s1 + $0x90] ss:$8 sps:$4 sm:$0xff]  }
  0x15   :  { %769 = vmatprep.subr.bf16.mxu1 %v1103_v21  ;;  %750 = vmatprep.mubr.bf16.mxu0 %v950_v47  ;;  %v1157_v61 = vld [vmem:[%s1638_s1 + $0x194] ss:$8 sps:$4 sm:$0xff]   ;;  %v1160_v63 = vld [vmem:[%s1638_s1 + $0x190] ss:$8 sps:$4 sm:$0xff]   ;;  %v1161_v0 = vld [vmem:[%s1638_s1 + $0x84] ss:$8 sps:$4 sm:$0xff]  }
  0x16   :  { %791 = vmatprep.mubr.bf16.mxu1 %v952_v51  ;;  %v1163_v1 = vld [vmem:[%s1638_s1 + $0x184] ss:$8 sps:$4 sm:$0xff]   ;;  %v1165_v2 = vld [vmem:[%s1638_s1 + $0x80] ss:$8 sps:$4 sm:$0xff]   ;;  %v1173_v4 = vld [vmem:[%s1638_s1 + $0x274] ss:$8 sps:$4 sm:$0xff]  }
  0x17   :  { %729 = vmatpush1.bf16.msra.mxu0 %v1105_v22  ;;  %v1166_v3 = vld [vmem:[%s1638_s1 + $0x180] ss:$8 sps:$4 sm:$0xff]   ;;  %v1197_v5 = vld [vmem:[%s1638_s1 + $0x374] ss:$8 sps:$4 sm:$0xff]   ;;  %v1171_v8 = vld [vmem:[%s1638_s1 + $0x270] ss:$8 sps:$4 sm:$0xff]  }
  0x18   :  { %770 = vmatpush1.bf16.msra.mxu1 %v1106_v23  ;;  %730 = vmatprep.subr.bf16.mxu0 %v1107_v24  ;;  %v1195_v9 = vld [vmem:[%s1638_s1 + $0x370] ss:$8 sps:$4 sm:$0xff]   ;;  %v1176_v10 = vld [vmem:[%s1638_s1 + $0x264] ss:$8 sps:$4 sm:$0xff]   ;;  %v1174_v12 = vld [vmem:[%s1638_s1 + $0x260] ss:$8 sps:$4 sm:$0xff]  }
  0x19   :  { %771 = vmatprep.subr.bf16.mxu1 %v1109_v25  ;;  %v1203_v11 = vld [vmem:[%s1638_s1 + $0x364] ss:$8 sps:$4 sm:$0xff]   ;;  %v1201_v13 = vld [vmem:[%s1638_s1 + $0x360] ss:$8 sps:$4 sm:$0xff]   ;;  %v1179_v14 = vld [vmem:[%s1638_s1 + $0x254] ss:$8 sps:$4 sm:$0xff]  }
  0x1a   :  { %v1209_v15 = vld [vmem:[%s1638_s1 + $0x354] ss:$8 sps:$4 sm:$0xff]   ;;  %v1177_v17 = vld [vmem:[%s1638_s1 + $0x250] ss:$8 sps:$4 sm:$0xff]   ;;  %v1182_v19 = vld [vmem:[%s1638_s1 + $0x244] ss:$8 sps:$4 sm:$0xff]  }
  0x1b   :  { %731 = vmatpush1.bf16.msra.mxu0 %v1111_v26  ;;  %v1207_v18 = vld [vmem:[%s1638_s1 + $0x350] ss:$8 sps:$4 sm:$0xff]   ;;  %v1215_v20 = vld [vmem:[%s1638_s1 + $0x344] ss:$8 sps:$4 sm:$0xff]   ;;  %v1180_v21 = vld [vmem:[%s1638_s1 + $0x240] ss:$8 sps:$4 sm:$0xff]  }
  0x1c   :  { %772 = vmatpush1.bf16.msra.mxu1 %v1112_v27  ;;  %732 = vmatprep.subr.bf16.mxu0 %v1113_v28  ;;  %v1213_v22 = vld [vmem:[%s1638_s1 + $0x340] ss:$8 sps:$4 sm:$0xff]   ;;  %v1521_v23 = vld [vmem:[%s1639_s0 + $0x10] sm:$0xff]  ;;  %v1218_v48 = vld [vmem:[%s1638_s1 + $0x2c4] ss:$8 sps:$4 sm:$0xff]  }
  0x1d   :  { %773 = vmatprep.subr.bf16.mxu1 %v1115_v29  ;;  %v1185_v24 = vld [vmem:[%s1638_s1 + $0x234] ss:$8 sps:$4 sm:$0xff]   ;;  %v954_v26 = vcombine.high %v1521_v23, %v1521_v23  ;;  %v1183_v27 = vld [vmem:[%s1638_s1 + $0x230] ss:$8 sps:$4 sm:$0xff]   ;;  %v1188_v29 = vld [vmem:[%s1638_s1 + $0x224] ss:$8 sps:$4 sm:$0xff]  }
  0x1e   :  { %v1221_v25 = vld [vmem:[%s1638_s1 + $0x334] ss:$8 sps:$4 sm:$0xff]   ;;  %v1219_v28 = vld [vmem:[%s1638_s1 + $0x330] ss:$8 sps:$4 sm:$0xff]  }
  0x1f   :  { %733 = vmatpush1.bf16.msra.mxu0 %v1117_v30  ;;  %v1227_v30 = vld [vmem:[%s1638_s1 + $0x324] ss:$8 sps:$4 sm:$0xff]   ;;  %v1212_v46 = vld [vmem:[%s1638_s1 + $0x2d4] ss:$8 sps:$4 sm:$0xff]   ;;  %v1210_v47 = vld [vmem:[%s1638_s1 + $0x2d0] ss:$8 sps:$4 sm:$0xff]  }
  0x20   :  { %774 = vmatpush1.bf16.msra.mxu1 %v1118_v31  ;;  %734 = vmatprep.subr.bf16.mxu0 %v1119_v32  ;;  %v1186_v31 = vld [vmem:[%s1638_s1 + $0x220] ss:$8 sps:$4 sm:$0xff]   ;;  %v1222_v51 = vld [vmem:[%s1638_s1 + $0x2b0] ss:$8 sps:$4 sm:$0xff]  }
  0x21   :  { %775 = vmatprep.subr.bf16.mxu1 %v1121_v33  ;;  %v1225_v32 = vld [vmem:[%s1638_s1 + $0x320] ss:$8 sps:$4 sm:$0xff]   ;;  %v1191_v33 = vld [vmem:[%s1638_s1 + $0x214] ss:$8 sps:$4 sm:$0xff]  }
  0x23   :  { %735 = vmatpush2.bf16.msra.mxu0 %v1123_v34  ;;  %v1233_v34 = vld [vmem:[%s1638_s1 + $0x314] ss:$8 sps:$4 sm:$0xff]  }
  0x24   :  { %776 = vmatpush2.bf16.msra.mxu1 %v1124_v35  ;;  %736 = vmatprep.subr.bf16.mxu0 %v1125_v36  ;;  %v1189_v35 = vld [vmem:[%s1638_s1 + $0x210] ss:$8 sps:$4 sm:$0xff]  }
  0x25   :  { %777 = vmatprep.subr.bf16.mxu1 %v1127_v37  ;;  %v1231_v36 = vld [vmem:[%s1638_s1 + $0x310] ss:$8 sps:$4 sm:$0xff]   ;;  %v1194_v37 = vld [vmem:[%s1638_s1 + $0x204] ss:$8 sps:$4 sm:$0xff]  }
  0x27   :  { %737 = vmatpush2.bf16.msra.mxu0 %v1129_v38  ;;  %v1239_v38 = vld [vmem:[%s1638_s1 + $0x304] ss:$8 sps:$4 sm:$0xff]  }
  0x28   :  { %778 = vmatpush2.bf16.msra.mxu1 %v1130_v39  ;;  %738 = vmatprep.subr.bf16.mxu0 %v1131_v40  ;;  %v1192_v39 = vld [vmem:[%s1638_s1 + $0x200] ss:$8 sps:$4 sm:$0xff]  }
  0x29   :  { %779 = vmatprep.subr.bf16.mxu1 %v1133_v41  ;;  %v1237_v40 = vld [vmem:[%s1638_s1 + $0x300] ss:$8 sps:$4 sm:$0xff]   ;;  %v1200_v41 = vld [vmem:[%s1638_s1 + $0x2f4] ss:$8 sps:$4 sm:$0xff]  }
  0x2b   :  { %739 = vmatpush2.bf16.msra.mxu0 %v1135_v42  ;;  %v1243_v42 = vld [vmem:[%s1639_s0 + $0x18] ss:$0 sps:$4 sm:$0xff]  }
  0x2c   :  { %780 = vmatpush2.bf16.msra.mxu1 %v1136_v43  ;;  %740 = vmatprep.subr.bf16.mxu0 %v1137_v44  ;;  %v1198_v43 = vld [vmem:[%s1638_s1 + $0x2f0] ss:$8 sps:$4 sm:$0xff]   ;;  %v1206_v44 = vld [vmem:[%s1638_s1 + $0x2e4] ss:$8 sps:$4 sm:$0xff]  }
  0x2d   :  { %781 = vmatprep.subr.bf16.mxu1 %v1139_v45  ;;  %v1204_v45 = vld [vmem:[%s1638_s1 + $0x2e0] ss:$8 sps:$4 sm:$0xff]  }
  0x2f   :  { %741 = vmatpush2.bf16.msra.mxu0 %v1141_v49  ;;  %v1216_v49 = vld [vmem:[%s1638_s1 + $0x2c0] ss:$8 sps:$4 sm:$0xff]  }
  0x30   :  { %782 = vmatpush2.bf16.msra.mxu1 %v1142_v50  ;;  %742 = vmatprep.subr.bf16.mxu0 %v1143_v52  ;;  %v1224_v50 = vld [vmem:[%s1638_s1 + $0x2b4] ss:$8 sps:$4 sm:$0xff]   ;;  %v1230_v52 = vld [vmem:[%s1638_s1 + $0x2a4] ss:$8 sps:$4 sm:$0xff]  }
  0x31   :  { %783 = vmatprep.subr.bf16.mxu1 %v1145_v53  ;;  %v1228_v53 = vld [vmem:[%s1638_s1 + $0x2a0] ss:$8 sps:$4 sm:$0xff]  }
  0x33   :  { %743 = vmatpush2.bf16.msra.mxu0 %v1147_v54  ;;  %v1236_v54 = vld [vmem:[%s1638_s1 + $0x294] ss:$8 sps:$4 sm:$0xff]  }
  0x34   :  { %784 = vmatpush2.bf16.msra.mxu1 %v1148_v55  ;;  %744 = vmatprep.subr.bf16.mxu0 %v1149_v56  ;;  %v1234_v55 = vld [vmem:[%s1638_s1 + $0x290] ss:$8 sps:$4 sm:$0xff]   ;;  %v1242_v56 = vld [vmem:[%s1638_s1 + $0x284] ss:$8 sps:$4 sm:$0xff]  }
  0x35   :  { %785 = vmatprep.subr.bf16.mxu1 %v1151_v57  ;;  %v1240_v57 = vld [vmem:[%s1638_s1 + $0x280] ss:$8 sps:$4 sm:$0xff]  }
  0x37   :  { %745 = vmatpush2.bf16.msra.mxu0 %v1153_v58  ;;  %v953_v58 = vcombine.low %v1521_v23, %v1521_v23 }
  0x38   :  { %786 = vmatpush2.bf16.msra.mxu1 %v1154_v59  ;;  %746 = vmatprep.subr.bf16.mxu0 %v1155_v60 }
  0x39   :  { %787 = vmatprep.subr.bf16.mxu1 %v1157_v61 }
  0x3b   :  { %747 = vmatpush2.bf16.msra.mxu0 %v1159_v62 }
  0x3c   :  { %788 = vmatpush2.bf16.msra.mxu1 %v1160_v63  ;;  %748 = vmatprep.subr.bf16.mxu0 %v1161_v0 }
  0x3d   :  { %789 = vmatprep.subr.bf16.mxu1 %v1163_v1 }
  0x3f   :  { %749 = vmatpush2.bf16.msra.mxu0 %v1165_v2 }
  0x40   :  { %790 = vmatpush2.bf16.msra.mxu1 %v1166_v3  ;;  %800 = vmatprep.subr.bf16.mxu0 %v1173_v4 }
  0x41   :  { %841 = vmatprep.subr.bf16.mxu1 %v1197_v5 }
  0x42   :  { %751 = vmatmul.mubr.bf16.vlgmr.msra.gmra.mxu0 %v949_v6 }
  0x43   :  { %792 = vmatmul.mubr.bf16.vlgmr.msra.gmra.mxu1 %v951_v7  ;;  %801 = vmatpush1.bf16.msra.mxu0 %v1171_v8  ;;  %v909_v7 = vlaneseq }
  0x44   :  { %842 = vmatpush1.bf16.msra.mxu1 %v1195_v9  ;;  %802 = vmatprep.subr.bf16.mxu0 %v1176_v10 }
  0x45   :  { %843 = vmatprep.subr.bf16.mxu1 %v1203_v11  ;;  %873 = vmatprep.mubr.bf16.mxu1 %v1246_v16  ;;  %v910_v8 = vshrl.u32 %v909_v7, 7 }
  0x46   :  { %832 = vmatprep.mubr.bf16.mxu0 %v954_v26 }
  0x47   :  { %803 = vmatpush1.bf16.msra.mxu0 %v1174_v12  ;;  %v922_v11 = vsub.s32 0, %v910_v8  ;;  %v926_v12 = vsub.s32 1, %v910_v8  ;;  %vm912_vm0 = vcmp.eq.s32.totalorder %v910_v8, 1  ;;  %vm911_vm1 = vcmp.eq.s32.totalorder %v910_v8, 0 }
  0x48   :  { %844 = vmatpush1.bf16.msra.mxu1 %v1201_v13  ;;  %804 = vmatprep.subr.bf16.mxu0 %v1179_v14 }
  0x49   :  { %845 = vmatprep.subr.bf16.mxu1 %v1209_v15  ;;  %v882_v15 = vld [vmem:[%s1640_s2] sm:$0x3] }
  0x4b   :  { %805 = vmatpush1.bf16.msra.mxu0 %v1177_v17 }
  0x4c   :  { %846 = vmatpush1.bf16.msra.mxu1 %v1207_v18  ;;  %806 = vmatprep.subr.bf16.mxu0 %v1182_v19  ;;  %v923_v19 = vrot.slane %v882_v15, %v922_v11 }
  0x4d   :  { %847 = vmatprep.subr.bf16.mxu1 %v1215_v20  ;;  %v927_v20 = vrot.slane %v882_v15, %v926_v12 }
  0x4f   :  { %807 = vmatpush1.bf16.msra.mxu0 %v1180_v21 }
  0x50   :  { %848 = vmatpush1.bf16.msra.mxu1 %v1213_v22  ;;  %808 = vmatprep.subr.bf16.mxu0 %v1185_v24 }
  0x51   :  { %849 = vmatprep.subr.bf16.mxu1 %v1221_v25 }
  0x53   :  { %809 = vmatpush1.bf16.msra.mxu0 %v1183_v27 }
  0x54   :  { %850 = vmatpush1.bf16.msra.mxu1 %v1219_v28  ;;  %810 = vmatprep.subr.bf16.mxu0 %v1188_v29 }
  0x55   :  { %851 = vmatprep.subr.bf16.mxu1 %v1227_v30 }
  0x57   :  { %811 = vmatpush1.bf16.msra.mxu0 %v1186_v31 }
  0x58   :  { %852 = vmatpush1.bf16.msra.mxu1 %v1225_v32  ;;  %812 = vmatprep.subr.bf16.mxu0 %v1191_v33 }
  0x59   :  { %853 = vmatprep.subr.bf16.mxu1 %v1233_v34 }
  0x5b   :  { %813 = vmatpush1.bf16.msra.mxu0 %v1189_v35 }
  0x5c   :  { %854 = vmatpush1.bf16.msra.mxu1 %v1231_v36  ;;  %814 = vmatprep.subr.bf16.mxu0 %v1194_v37 }
  0x5d   :  { %855 = vmatprep.subr.bf16.mxu1 %v1239_v38 }
  0x5f   :  { %815 = vmatpush1.bf16.msra.mxu0 %v1192_v39 }
  0x60   :  { %856 = vmatpush1.bf16.msra.mxu1 %v1237_v40  ;;  %816 = vmatprep.subr.bf16.mxu0 %v1200_v41 }
  0x63   :  { %874 = vmatmul.mubr.bf16.vlgmr.msra.gmra.mxu1 %v1243_v42  ;;  %817 = vmatpush2.bf16.msra.mxu0 %v1198_v43 }
  0x64   :  { %818 = vmatprep.subr.bf16.mxu0 %v1206_v44 }
  0x67   :  { %819 = vmatpush2.bf16.msra.mxu0 %v1204_v45 }
  0x68   :  { %820 = vmatprep.subr.bf16.mxu0 %v1212_v46 }
  0x6b   :  { %821 = vmatpush2.bf16.msra.mxu0 %v1210_v47 }
  0x6c   :  { %822 = vmatprep.subr.bf16.mxu0 %v1218_v48 }
  0x6f   :  { %823 = vmatpush2.bf16.msra.mxu0 %v1216_v49 }
  0x70   :  { %824 = vmatprep.subr.bf16.mxu0 %v1224_v50 }
  0x73   :  { %825 = vmatpush2.bf16.msra.mxu0 %v1222_v51 }
  0x74   :  { %826 = vmatprep.subr.bf16.mxu0 %v1230_v52 }
  0x77   :  { %827 = vmatpush2.bf16.msra.mxu0 %v1228_v53 }
  0x78   :  { %828 = vmatprep.subr.bf16.mxu0 %v1236_v54 }
  0x7b   :  { %829 = vmatpush2.bf16.msra.mxu0 %v1234_v55 }
  0x7c   :  { %830 = vmatprep.subr.bf16.mxu0 %v1242_v56 }
  0x7f   :  { %831 = vmatpush2.bf16.msra.mxu0 %v1240_v57 }
  0x82   :  { %833 = vmatmul.mubr.bf16.vlgmr.msra.gmra.mxu0 %v953_v58 }
 0x102   :  { %v752_v59 = vpop.f32.mrf.mxu0 }
 0x103   :  { %v793_v60 = vpop.f32.mrf.mxu1 }
 0x104   :  { %v754_v61 = vpop.f32.mrf.mxu0  ;;  %v794_v9 = vadd.f32 %v793_v60, %v752_v59 }
 0x105   :  { %v795_v62 = vpop.f32.mrf.mxu1 }
 0x106   :  { %v756_v63 = vpop.f32.mrf.mxu0  ;;  %v796_v13 = vadd.f32 %v795_v62, %v754_v61 }
 0x107   :  { %v797_v0 = vpop.f32.mrf.mxu1 }
 0x108   :  { %v757_v1 = vpop.f32.mrf.mxu0 }
 0x109   :  { %v798_v2 = vpop.f32.mrf.mxu1 }
 0x123   :  { %v875_v3 = vpop.f32.mrf.mxu1 }
 0x125   :  { %v877_v4 = vpop.f32.mrf.mxu1 }
 0x127   :  { %v879_v5 = vpop.f32.mrf.mxu1 }
 0x129   :  { %v880_v6 = vpop.f32.mrf.mxu1 }
 0x142   :  { %v834_v10 = vpop.f32.mrf.mxu0 }
 0x143   :  { %v835_v14 = vadd.f32 %v834_v10, %v794_v9 }
 0x144   :  { %v836_v16 = vpop.f32.mrf.mxu0 }
 0x145   :  { %v876_v17 = vadd.f32 %v875_v3, %v835_v14  ;;  %v837_v18 = vadd.f32 %v836_v16, %v796_v13 }
 0x146   :  { %v838_v21 = vpop.f32.mrf.mxu0 }
 0x147   :  { %v883_v22 = vrot.slane %v876_v17, 4  ;;  %v895_v23 = vmul.f32 %v876_v17, %v876_v17  ;;  %v878_v24 = vadd.f32 %v877_v4, %v837_v18  ;;  %v930_v30 = vadd.f32 %v923_v19, %v876_v17 }
 0x148   :  { %v839_v25 = vpop.f32.mrf.mxu0 }
 0x149   :  { %v884_v26 = vadd.f32 %v883_v22, %v876_v17  ;;  %v897_v27 = vrot.slane %v895_v23, 4  ;;  %v889_v28 = vrot.slane %v878_v24, 4  ;;  %v896_v29 = vmul.f32 %v878_v24, %v878_v24 }
 0x14a   :  { %v931_v31 = vadd.f32 %v927_v20, %v878_v24 }
 0x14b   :  { %v885_v32 = vrot.slane %v884_v26, 2  ;;  %v898_v33 = vadd.f32 %v897_v27, %v895_v23  ;;  %v890_v34 = vadd.f32 %v889_v28, %v878_v24  ;;  %v903_v35 = vrot.slane %v896_v29, 4 }
 0x14c   :  { %v1069_v36 = vpack.c.bf16 %v931_v31, %v930_v30 }
 0x14d   :  { %v886_v37 = vadd.f32 %v885_v32, %v884_v26  ;;  %v899_v38 = vrot.slane %v898_v33, 2  ;;  %v891_v39 = vrot.slane %v890_v34, 2  ;;  %v904_v40 = vadd.f32 %v903_v35, %v896_v29 }
 0x14e   :  { %940 = vst [vmem:[%s1641_s3] sm:$0xff] %v1069_v36 }
 0x14f   :  { %v900_v41 = vadd.f32 %v899_v38, %v898_v33  ;;  %v892_v42 = vadd.f32 %v891_v39, %v890_v34  ;;  %v905_v43 = vrot.slane %v904_v40, 2  ;;  %v887_v44 = vrot.slane %v886_v37, 1 }
 0x151   :  { %v901_v45 = vrot.slane %v900_v41, 1  ;;  %v906_v46 = vadd.f32 %v905_v43, %v904_v40  ;;  %v893_v47 = vrot.slane %v892_v42, 1  ;;  %v888_v50 = vadd.f32 %v887_v44, %v886_v37 }
 0x153   :  { %v902_v48 = vadd.f32 %v901_v45, %v900_v41  ;;  %v907_v49 = vrot.slane %v906_v46, 1  ;;  %v894_v54 = vadd.f32 %v893_v47, %v892_v42 }
 0x155   :  { %v913_v51 = vsel %vm912_vm0, %v902_v48, 0.0  ;;  %v908_v52 = vadd.f32 %v907_v49, %v906_v46 }
 0x156   :  { %v915_v53 = vsel %vm911_vm1, %v888_v50, %v913_v51 }
 0x157   :  { %917 = vst [vmem:[%s1642_s4] sm:$0xff] %v915_v53  ;;  %v914_v55 = vsel %vm912_vm0, %v908_v52, 0.0 }
 0x158   :  { %v916_v56 = vsel %vm911_vm1, %v894_v54, %v914_v55 }
 0x159   :  { %918 = vst [vmem:[%s1642_s4 + $0x8] sm:$0xff] %v916_v56 }

// kernel: unet_forward.13
= control target key start
LH: loop header
LB: loop body
LE: loop exit
PB: predicated region body
PF: predicated region fallthrough
CT: control target
= control target key end

     0   :  { %s2162_s15 = smov 0   ;;  %s2164_s16 = smov 0   ;;  %s2555_s0 = inlined_call_operand.vmem [shape: bf16[16,1792], index: 0, kind: input, shape index: {}]   ;;  %s2556_s1 = inlined_call_operand.vmem [shape: bf16[1792,128], index: 1, kind: input, shape index: {}]   ;;  %s2557_s2 = inlined_call_operand.vmem [shape: f32[1,128], index: 2, kind: input, shape index: {}]   ;;  %s2558_s3 = inlined_call_operand.vmem [shape: bf16[16,128], index: 3, kind: output, shape index: {0}]   ;;  %s2559_s4 = inlined_call_operand.vmem [shape: f32[16,128], index: 4, kind: output, shape index: {1}]  }
   0x1   :  { %s2166_s17 = smov 0  }
   0x2 LB: > { %s27_s18 = sadd.s32 1, %s2131_s16  ;;  %p1675_p0 = scmp.ge.s32.totalorder %s2135_s17, 1  ;;  %s2135_s17 = sphi %s2166_s17, %s15_s17   ;;  %s2131_s16 = sphi %s2164_s16, %s2561_s16   ;;  %s2127_s15 = sphi %s2162_s15, %s2560_s15  }
   0x3   : > { %p29_p1 = scmp.ge.s32.totalorder %s27_s18, 2  ;;  %p198_p2 = scmp.lt.s32.totalorder %s2135_s17, 3 }
   0x5   : > { %s2563_s18 = smov (%p29_p1, %s27_s18), 0  ;;  %p199_p3 = pnand %p1675_p0, %p198_p2 }
   0x6   : > { %p240_p4 = scmp.lt.s32.totalorder (!%p199_p3), %s2127_s15, 1 }
   0x7   : > { %202 = sbr.rel (%p199_p3) target bundleno = 358 (0x166), region = 32 }
   0xc   : > { %v1987_v0 = vld [vmem:[%s2556_s1 + $0x78] sm:$0xff]   ;;  %v1991_v4 = vld [vmem:[%s2556_s1 + $0x70] sm:$0xff]   ;;  %v1995_v8 = vld [vmem:[%s2556_s1 + $0x68] sm:$0xff]   ;;  %s2565_s15 = smov (!%p240_p4, %s2127_s15), 1 }
   0xd   : > { %v1988_v1 = vld [vmem:[%s2556_s1 + $0xf8] sm:$0xff]   ;;  %1808 = vmatprep.subr.bf16.mxu0 %v1987_v0  ;;  %v1992_v5 = vld [vmem:[%s2556_s1 + $0xf0] sm:$0xff]   ;;  %v1996_v9 = vld [vmem:[%s2556_s1 + $0xe8] sm:$0xff]   ;;  %s1962_s27 = smul.u32 56, %s2565_s15  ;;  %s1677_s9 = sshll.u32 %s2565_s15, 2 }
   0xe   : > { %v1989_v2 = vld [vmem:[%s2556_s1 + $0x38] sm:$0xff]   ;;  %1830 = vmatprep.subr.bf16.mxu1 %v1988_v1  ;;  %v1993_v6 = vld [vmem:[%s2556_s1 + $0x30] sm:$0xff]   ;;  %v1997_v10 = vld [vmem:[%s2556_s1 + $0x28] sm:$0xff]   ;;  %s258_s13 = scalar_lea.vmem %s2558_s3, %s1677_s9  ;;  %s1678_s14 = sshll.u32 %s2565_s15, 3 }
   0xf   : > { %v1990_v3 = vld [vmem:[%s2556_s1 + $0xb8] sm:$0xff]   ;;  %1809 = vmatpush3.bf16.msra.mxu0 %v1989_v2  ;;  %v1994_v7 = vld [vmem:[%s2556_s1 + $0xb0] sm:$0xff]   ;;  %v1998_v11 = vld [vmem:[%s2556_s1 + $0xa8] sm:$0xff]   ;;  %s2280_s12 = scalar_lea.vmem %s2555_s0, %s1962_s27  ;;  %s265_s21 = scalar_lea.vmem %s2559_s4, %s1678_s14 }
  0x10   : > { %1831 = vmatpush3.bf16.msra.mxu1 %v1990_v3  ;;  %1810 = vmatprep.subr.bf16.mxu0 %v1991_v4  ;;  %v1999_v12 = vld [vmem:[%s2556_s1 + $0x60] sm:$0xff]   ;;  %v2003_v16 = vld [vmem:[%s2556_s1 + $0x58] sm:$0xff]   ;;  %v2007_v20 = vld [vmem:[%s2556_s1 + $0x50] sm:$0xff]  }
  0x11   : > { %1832 = vmatprep.subr.bf16.mxu1 %v1992_v5  ;;  %v2000_v13 = vld [vmem:[%s2556_s1 + $0xe0] sm:$0xff]   ;;  %v2004_v17 = vld [vmem:[%s2556_s1 + $0xd8] sm:$0xff]   ;;  %v2008_v21 = vld [vmem:[%s2556_s1 + $0xd0] sm:$0xff]  }
  0x12   : > { %v2001_v14 = vld [vmem:[%s2556_s1 + $0x20] sm:$0xff]   ;;  %v2005_v18 = vld [vmem:[%s2556_s1 + $0x18] sm:$0xff]   ;;  %v2009_v22 = vld [vmem:[%s2556_s1 + $0x10] sm:$0xff]  }
  0x13   : > { %1811 = vmatpush3.bf16.msra.mxu0 %v1993_v6  ;;  %v2002_v15 = vld [vmem:[%s2556_s1 + $0xa0] sm:$0xff]   ;;  %v2006_v19 = vld [vmem:[%s2556_s1 + $0x98] sm:$0xff]   ;;  %v2010_v23 = vld [vmem:[%s2556_s1 + $0x90] sm:$0xff]  }
  0x14   : > { %1833 = vmatpush3.bf16.msra.mxu1 %v1994_v7  ;;  %1812 = vmatprep.subr.bf16.mxu0 %v1995_v8  ;;  %v2011_v24 = vld [vmem:[%s2556_s1 + $0x48] sm:$0xff]   ;;  %v2015_v28 = vld [vmem:[%s2556_s1 + $0x40] sm:$0xff]   ;;  %v2023_v38 = vld [vmem:[%s2556_s1 + $0x178] sm:$0xff]  }
  0x15   : > { %1834 = vmatprep.subr.bf16.mxu1 %v1996_v9  ;;  %v2012_v25 = vld [vmem:[%s2556_s1 + $0xc8] sm:$0xff]   ;;  %v2016_v29 = vld [vmem:[%s2556_s1 + $0xc0] sm:$0xff]   ;;  %v2024_v39 = vld [vmem:[%s2556_s1 + $0x138] sm:$0xff]  }
  0x16   : > { %v2013_v26 = vld [vmem:[%s2556_s1 + $0x8] sm:$0xff]   ;;  %v2017_v30 = vld [vmem:[%s2556_s1] sm:$0xff]   ;;  %v2025_v40 = vld [vmem:[%s2556_s1 + $0x1f8] sm:$0xff]  }
  0x17   : > { %1813 = vmatpush3.bf16.msra.mxu0 %v1997_v10  ;;  %v2014_v27 = vld [vmem:[%s2556_s1 + $0x88] sm:$0xff]   ;;  %v2018_v31 = vld [vmem:[%s2556_s1 + $0x80] sm:$0xff]   ;;  %v2026_v41 = vld [vmem:[%s2556_s1 + $0x1b8] sm:$0xff]  }
  0x18   : > { %1835 = vmatpush3.bf16.msra.mxu1 %v1998_v11  ;;  %1814 = vmatprep.subr.bf16.mxu0 %v1999_v12  ;;  %v267_v32 = vld [vmem:[%s2280_s12] sm:$0xff]  ;;  %v268_v33 = vld [vmem:[%s2280_s12 + $0x8] sm:$0xff]  ;;  %v2027_v42 = vld [vmem:[%s2556_s1 + $0x170] sm:$0xff]  }
  0x19   : > { %1836 = vmatprep.subr.bf16.mxu1 %v2000_v13  ;;  %v1679_v34 = vcombine.low %v267_v32, %v267_v32  ;;  %v1680_v35 = vcombine.high %v267_v32, %v267_v32  ;;  %v1681_v36 = vcombine.low %v268_v33, %v268_v33  ;;  %v1682_v37 = vcombine.high %v268_v33, %v268_v33  ;;  %v2028_v43 = vld [vmem:[%s2556_s1 + $0x130] sm:$0xff]   ;;  %v2031_v46 = vld [vmem:[%s2556_s1 + $0x168] sm:$0xff]   ;;  %v2035_v50 = vld [vmem:[%s2556_s1 + $0x160] sm:$0xff]  }
  0x1a   : > { %v2029_v44 = vld [vmem:[%s2556_s1 + $0x1f0] sm:$0xff]   ;;  %v2032_v47 = vld [vmem:[%s2556_s1 + $0x128] sm:$0xff]   ;;  %v2036_v51 = vld [vmem:[%s2556_s1 + $0x120] sm:$0xff]  }
  0x1b   : > { %1815 = vmatpush3.bf16.msra.mxu0 %v2001_v14  ;;  %1251 = vmatprep.mubr.bf16.mxu0 %v1680_v35  ;;  %v2030_v45 = vld [vmem:[%s2556_s1 + $0x1b0] sm:$0xff]   ;;  %v2033_v48 = vld [vmem:[%s2556_s1 + $0x1e8] sm:$0xff]   ;;  %v2037_v52 = vld [vmem:[%s2556_s1 + $0x1e0] sm:$0xff]  }
  0x1c   : > { %1837 = vmatpush3.bf16.msra.mxu1 %v2002_v15  ;;  %1816 = vmatprep.subr.bf16.mxu0 %v2003_v16  ;;  %v2034_v49 = vld [vmem:[%s2556_s1 + $0x1a8] sm:$0xff]   ;;  %v2038_v53 = vld [vmem:[%s2556_s1 + $0x1a0] sm:$0xff]   ;;  %v2039_v54 = vld [vmem:[%s2556_s1 + $0x158] sm:$0xff]  }
  0x1d   : > { %1838 = vmatprep.subr.bf16.mxu1 %v2004_v17  ;;  %1291 = vmatprep.mubr.bf16.mxu1 %v1682_v37  ;;  %v2040_v55 = vld [vmem:[%s2556_s1 + $0x118] sm:$0xff]   ;;  %v2043_v58 = vld [vmem:[%s2556_s1 + $0x150] sm:$0xff]   ;;  %v2047_v62 = vld [vmem:[%s2556_s1 + $0x148] sm:$0xff]  }
  0x1e   : > { %v2041_v56 = vld [vmem:[%s2556_s1 + $0x1d8] sm:$0xff]   ;;  %v2044_v59 = vld [vmem:[%s2556_s1 + $0x110] sm:$0xff]   ;;  %v2048_v63 = vld [vmem:[%s2556_s1 + $0x108] sm:$0xff]  }
  0x1f   : > { %1817 = vmatpush3.bf16.msra.mxu0 %v2005_v18  ;;  %v2042_v57 = vld [vmem:[%s2556_s1 + $0x198] sm:$0xff]   ;;  %v2045_v60 = vld [vmem:[%s2556_s1 + $0x1d0] sm:$0xff]   ;;  %v2049_v0 = vld [vmem:[%s2556_s1 + $0x1c8] sm:$0xff]  }
  0x20   : > { %1839 = vmatpush3.bf16.msra.mxu1 %v2006_v19  ;;  %1818 = vmatprep.subr.bf16.mxu0 %v2007_v20  ;;  %v2046_v61 = vld [vmem:[%s2556_s1 + $0x190] sm:$0xff]   ;;  %v2050_v1 = vld [vmem:[%s2556_s1 + $0x188] sm:$0xff]   ;;  %v2051_v2 = vld [vmem:[%s2556_s1 + $0x140] sm:$0xff]  }
  0x21   : > { %1840 = vmatprep.subr.bf16.mxu1 %v2008_v21  ;;  %v2052_v3 = vld [vmem:[%s2556_s1 + $0x100] sm:$0xff]   ;;  %v269_v5 = vld [vmem:[%s2280_s12 + $0x10] sm:$0xff]  ;;  %v2057_v9 = vld [vmem:[%s2556_s1 + $0x278] sm:$0xff]  }
  0x22   : > { %v2053_v4 = vld [vmem:[%s2556_s1 + $0x1c0] sm:$0xff]   ;;  %v1684_v6 = vcombine.high %v269_v5, %v269_v5  ;;  %v1683_v8 = vcombine.low %v269_v5, %v269_v5  ;;  %v270_v10 = vld [vmem:[%s2280_s12 + $0x18] sm:$0xff]  ;;  %v2063_v16 = vld [vmem:[%s2556_s1 + $0x270] sm:$0xff]  }
  0x23   : > { %1819 = vmatpush3.bf16.msra.mxu0 %v2009_v22  ;;  %v2056_v7 = vld [vmem:[%s2556_s1 + $0x180] sm:$0xff]   ;;  %v1685_v11 = vcombine.low %v270_v10, %v270_v10  ;;  %v1686_v12 = vcombine.high %v270_v10, %v270_v10  ;;  %v2060_v13 = vld [vmem:[%s2556_s1 + $0x238] sm:$0xff]   ;;  %v2064_v17 = vld [vmem:[%s2556_s1 + $0x230] sm:$0xff]  }
  0x24   : > { %1841 = vmatpush3.bf16.msra.mxu1 %v2010_v23  ;;  %1820 = vmatprep.subr.bf16.mxu0 %v2011_v24  ;;  %v2061_v14 = vld [vmem:[%s2556_s1 + $0x2f8] sm:$0xff]   ;;  %v2065_v18 = vld [vmem:[%s2556_s1 + $0x2f0] sm:$0xff]   ;;  %v2067_v20 = vld [vmem:[%s2556_s1 + $0x268] sm:$0xff]  }
  0x25   : > { %1842 = vmatprep.subr.bf16.mxu1 %v2012_v25  ;;  %v2062_v15 = vld [vmem:[%s2556_s1 + $0x2b8] sm:$0xff]   ;;  %v2066_v19 = vld [vmem:[%s2556_s1 + $0x2b0] sm:$0xff]   ;;  %v2068_v21 = vld [vmem:[%s2556_s1 + $0x228] sm:$0xff]  }
  0x26   : > { %v2069_v22 = vld [vmem:[%s2556_s1 + $0x2e8] sm:$0xff]   ;;  %v2071_v24 = vld [vmem:[%s2556_s1 + $0x260] sm:$0xff]   ;;  %v2079_v32 = vld [vmem:[%s2556_s1 + $0x250] sm:$0xff]  }
  0x27   : > { %1821 = vmatpush3.bf16.msra.mxu0 %v2013_v26  ;;  %v2070_v23 = vld [vmem:[%s2556_s1 + $0x2a8] sm:$0xff]   ;;  %v2072_v25 = vld [vmem:[%s2556_s1 + $0x220] sm:$0xff]   ;;  %v2080_v33 = vld [vmem:[%s2556_s1 + $0x210] sm:$0xff]  }
  0x28   : > { %1843 = vmatpush3.bf16.msra.mxu1 %v2014_v27  ;;  %1822 = vmatprep.subr.bf16.mxu0 %v2015_v28  ;;  %v2073_v26 = vld [vmem:[%s2556_s1 + $0x2e0] sm:$0xff]   ;;  %v2075_v28 = vld [vmem:[%s2556_s1 + $0x258] sm:$0xff]   ;;  %v2082_v35 = vld [vmem:[%s2556_s1 + $0x290] sm:$0xff]  }
  0x29   : > { %1844 = vmatprep.subr.bf16.mxu1 %v2016_v29  ;;  %v2074_v27 = vld [vmem:[%s2556_s1 + $0x2a0] sm:$0xff]   ;;  %v2076_v29 = vld [vmem:[%s2556_s1 + $0x218] sm:$0xff]   ;;  %v2084_v37 = vld [vmem:[%s2556_s1 + $0x208] sm:$0xff]  }
  0x2b   : > { %1823 = vmatpush3.bf16.msra.mxu0 %v2017_v30  ;;  %v2077_v30 = vld [vmem:[%s2556_s1 + $0x2d8] sm:$0xff]  }
  0x2c   : > { %1845 = vmatpush3.bf16.msra.mxu1 %v2018_v31  ;;  %1852 = vmatprep.subr.bf16.mxu0 %v2023_v38  ;;  %v2078_v31 = vld [vmem:[%s2556_s1 + $0x298] sm:$0xff]   ;;  %v2085_v38 = vld [vmem:[%s2556_s1 + $0x2c8] sm:$0xff]  }
  0x2d   : > { %1874 = vmatprep.subr.bf16.mxu1 %v2025_v40  ;;  %v2087_v40 = vld [vmem:[%s2556_s1 + $0x240] sm:$0xff]  }
  0x2e   : > { %1252 = vmatmul.mubr.bf16.vlgmr.msra.gmra.mxu0 %v1679_v34  ;;  %v2081_v34 = vld [vmem:[%s2556_s1 + $0x2d0] sm:$0xff]  }
  0x2f   : > { %1292 = vmatmul.mubr.bf16.vlgmr.msra.gmra.mxu1 %v1681_v36  ;;  %1853 = vmatpush3.bf16.msra.mxu0 %v2024_v39  ;;  %v2083_v36 = vld [vmem:[%s2556_s1 + $0x248] sm:$0xff]  }
  0x30   : > { %1875 = vmatpush3.bf16.msra.mxu1 %v2026_v41  ;;  %1854 = vmatprep.subr.bf16.mxu0 %v2027_v42  ;;  %v2086_v39 = vld [vmem:[%s2556_s1 + $0x288] sm:$0xff]   ;;  %v2088_v41 = vld [vmem:[%s2556_s1 + $0x200] sm:$0xff]  }
  0x31   : > { %1876 = vmatprep.subr.bf16.mxu1 %v2029_v44  ;;  %1331 = vmatprep.mubr.bf16.mxu0 %v1684_v6  ;;  %v2089_v42 = vld [vmem:[%s2556_s1 + $0x2c0] sm:$0xff]  }
  0x32   : > { %1371 = vmatprep.mubr.bf16.mxu1 %v1686_v12 }
  0x33   : > { %1855 = vmatpush3.bf16.msra.mxu0 %v2028_v43  ;;  %v271_v43 = vld [vmem:[%s2280_s12 + $0x20] sm:$0xff] }
  0x34   : > { %1877 = vmatpush3.bf16.msra.mxu1 %v2030_v45  ;;  %1856 = vmatprep.subr.bf16.mxu0 %v2031_v46  ;;  %v1687_v44 = vcombine.low %v271_v43, %v271_v43  ;;  %v1688_v45 = vcombine.high %v271_v43, %v271_v43  ;;  %v2092_v46 = vld [vmem:[%s2556_s1 + $0x280] sm:$0xff]  }
  0x35   : > { %1878 = vmatprep.subr.bf16.mxu1 %v2033_v48  ;;  %v272_v48 = vld [vmem:[%s2280_s12 + $0x28] sm:$0xff]  ;;  %v1805_v43 = vld [vmem:[%s2557_s2] ss:$0 sm:$0xff] }
  0x37   : > { %1857 = vmatpush3.bf16.msra.mxu0 %v2032_v47  ;;  %v2093_v47 = vld [vmem:[%s2556_s1 + $0x378] sm:$0xff]  }
  0x38   : > { %1879 = vmatpush3.bf16.msra.mxu1 %v2034_v49  ;;  %1858 = vmatprep.subr.bf16.mxu0 %v2035_v50  ;;  %v1689_v49 = vcombine.low %v272_v48, %v272_v48  ;;  %v1690_v50 = vcombine.high %v272_v48, %v272_v48 }
  0x39   : > { %1880 = vmatprep.subr.bf16.mxu1 %v2037_v52  ;;  %v2097_v52 = vld [vmem:[%s2556_s1 + $0x370] sm:$0xff]  }
  0x3b   : > { %1859 = vmatpush3.bf16.msra.mxu0 %v2036_v51  ;;  %v2096_v51 = vld [vmem:[%s2556_s1 + $0x338] sm:$0xff]  }
  0x3c   : > { %1881 = vmatpush3.bf16.msra.mxu1 %v2038_v53  ;;  %1860 = vmatprep.subr.bf16.mxu0 %v2039_v54  ;;  %v2098_v53 = vld [vmem:[%s2556_s1 + $0x330] sm:$0xff]   ;;  %v2099_v54 = vld [vmem:[%s2556_s1 + $0x368] sm:$0xff]  }
  0x3d   : > { %1882 = vmatprep.subr.bf16.mxu1 %v2041_v56  ;;  %v2101_v56 = vld [vmem:[%s2556_s1 + $0x360] sm:$0xff]  }
  0x3f   : > { %1861 = vmatpush3.bf16.msra.mxu0 %v2040_v55  ;;  %v2100_v55 = vld [vmem:[%s2556_s1 + $0x328] sm:$0xff]  }
  0x40   : > { %1883 = vmatpush3.bf16.msra.mxu1 %v2042_v57  ;;  %1862 = vmatprep.subr.bf16.mxu0 %v2043_v58  ;;  %v2102_v57 = vld [vmem:[%s2556_s1 + $0x320] sm:$0xff]   ;;  %v2103_v58 = vld [vmem:[%s2556_s1 + $0x358] sm:$0xff]  }
  0x41   : > { %1884 = vmatprep.subr.bf16.mxu1 %v2045_v60  ;;  %v273_v60 = vld [vmem:[%s2280_s12 + $0x30] sm:$0xff] }
  0x43   : > { %1863 = vmatpush3.bf16.msra.mxu0 %v2044_v59  ;;  %v2104_v59 = vld [vmem:[%s2556_s1 + $0x318] sm:$0xff]  }
  0x44   : > { %1885 = vmatpush3.bf16.msra.mxu1 %v2046_v61  ;;  %1864 = vmatprep.subr.bf16.mxu0 %v2047_v62  ;;  %v2105_v61 = vld [vmem:[%s2556_s1 + $0x350] sm:$0xff]   ;;  %v1692_v62 = vcombine.high %v273_v60, %v273_v60 }
  0x45   : > { %1886 = vmatprep.subr.bf16.mxu1 %v2049_v0  ;;  %v2107_v0 = vld [vmem:[%s2556_s1 + $0x348] sm:$0xff]  }
  0x47   : > { %1865 = vmatpush3.bf16.msra.mxu0 %v2048_v63  ;;  %v2106_v63 = vld [vmem:[%s2556_s1 + $0x310] sm:$0xff]  }
  0x48   : > { %1887 = vmatpush3.bf16.msra.mxu1 %v2050_v1  ;;  %1866 = vmatprep.subr.bf16.mxu0 %v2051_v2  ;;  %v2108_v1 = vld [vmem:[%s2556_s1 + $0x308] sm:$0xff]   ;;  %v2109_v2 = vld [vmem:[%s2556_s1 + $0x340] sm:$0xff]  }
  0x49   : > { %1888 = vmatprep.subr.bf16.mxu1 %v2053_v4  ;;  %v1691_v4 = vcombine.low %v273_v60, %v273_v60 }
  0x4b   : > { %1867 = vmatpush3.bf16.msra.mxu0 %v2052_v3  ;;  %v2110_v3 = vld [vmem:[%s2556_s1 + $0x300] sm:$0xff]  }
  0x4c   : > { %1889 = vmatpush3.bf16.msra.mxu1 %v2056_v7  ;;  %1896 = vmatprep.subr.bf16.mxu0 %v2057_v9 }
  0x4d   : > { %1918 = vmatprep.subr.bf16.mxu1 %v2061_v14 }
  0x4e   : > { %1332 = vmatmul.mubr.bf16.vlgmr.msra.gmra.mxu0 %v1683_v8 }
  0x4f   : > { %1897 = vmatpush3.bf16.msra.mxu0 %v2060_v13  ;;  %1372 = vmatmul.mubr.bf16.vlgmr.msra.gmra.mxu1 %v1685_v11 }
  0x50   : > { %1919 = vmatpush3.bf16.msra.mxu1 %v2062_v15  ;;  %1898 = vmatprep.subr.bf16.mxu0 %v2063_v16 }
  0x51   : > { %1920 = vmatprep.subr.bf16.mxu1 %v2065_v18  ;;  %1411 = vmatprep.mubr.bf16.mxu0 %v1688_v45 }
  0x52   : > { %1451 = vmatprep.mubr.bf16.mxu1 %v1690_v50 }
  0x53   : > { %1899 = vmatpush3.bf16.msra.mxu0 %v2064_v17 }
  0x54   : > { %1921 = vmatpush3.bf16.msra.mxu1 %v2066_v19  ;;  %1900 = vmatprep.subr.bf16.mxu0 %v2067_v20 }
  0x55   : > { %1922 = vmatprep.subr.bf16.mxu1 %v2069_v22 }
  0x57   : > { %1901 = vmatpush3.bf16.msra.mxu0 %v2068_v21 }
  0x58   : > { %1923 = vmatpush3.bf16.msra.mxu1 %v2070_v23  ;;  %1902 = vmatprep.subr.bf16.mxu0 %v2071_v24 }
  0x59   : > { %1924 = vmatprep.subr.bf16.mxu1 %v2073_v26 }
  0x5b   : > { %1903 = vmatpush3.bf16.msra.mxu0 %v2072_v25 }
  0x5c   : > { %1925 = vmatpush3.bf16.msra.mxu1 %v2074_v27  ;;  %1904 = vmatprep.subr.bf16.mxu0 %v2075_v28 }
  0x5d   : > { %1926 = vmatprep.subr.bf16.mxu1 %v2077_v30 }
  0x5f   : > { %1905 = vmatpush3.bf16.msra.mxu0 %v2076_v29 }
  0x60   : > { %1927 = vmatpush3.bf16.msra.mxu1 %v2078_v31  ;;  %1906 = vmatprep.subr.bf16.mxu0 %v2079_v32 }
  0x61   : > { %1928 = vmatprep.subr.bf16.mxu1 %v2081_v34 }
  0x63   : > { %1907 = vmatpush3.bf16.msra.mxu0 %v2080_v33 }
  0x64   : > { %1929 = vmatpush3.bf16.msra.mxu1 %v2082_v35  ;;  %1908 = vmatprep.subr.bf16.mxu0 %v2083_v36 }
  0x65   : > { %1930 = vmatprep.subr.bf16.mxu1 %v2085_v38 }
  0x67   : > { %1909 = vmatpush3.bf16.msra.mxu0 %v2084_v37 }
  0x68   : > { %1931 = vmatpush3.bf16.msra.mxu1 %v2086_v39  ;;  %1910 = vmatprep.subr.bf16.mxu0 %v2087_v40 }
  0x69   : > { %1932 = vmatprep.subr.bf16.mxu1 %v2089_v42 }
  0x6b   : > { %1911 = vmatpush3.bf16.msra.mxu0 %v2088_v41 }
  0x6c   : > { %1933 = vmatpush3.bf16.msra.mxu1 %v2092_v46  ;;  %1940 = vmatprep.subr.bf16.mxu0 %v2093_v47 }
  0x6e   : > { %1412 = vmatmul.mubr.bf16.vlgmr.msra.gmra.mxu0 %v1687_v44 }
  0x6f   : > { %1941 = vmatpush3.bf16.msra.mxu0 %v2096_v51  ;;  %1452 = vmatmul.mubr.bf16.vlgmr.msra.gmra.mxu1 %v1689_v49 }
  0x70   : > { %1942 = vmatprep.subr.bf16.mxu0 %v2097_v52  ;;  %1491 = vmatprep.mubr.bf16.mxu0 %v1692_v62 }
  0x73   : > { %1943 = vmatpush3.bf16.msra.mxu0 %v2098_v53  ;;  %v1513_v53 = vlaneseq }
  0x74   : > { %1944 = vmatprep.subr.bf16.mxu0 %v2099_v54 }
  0x77   : > { %1945 = vmatpush3.bf16.msra.mxu0 %v2100_v55 }
  0x78   : > { %1946 = vmatprep.subr.bf16.mxu0 %v2101_v56 }
  0x7b   : > { %1947 = vmatpush3.bf16.msra.mxu0 %v2102_v57 }
  0x7c   : > { %1948 = vmatprep.subr.bf16.mxu0 %v2103_v58  ;;  %v1514_v58 = vshrl.u32 %v1513_v53, 7 }
  0x7e   : > { %vm1516_vm0 = vcmp.eq.s32.totalorder %v1514_v58, 1  ;;  %vm1515_vm1 = vcmp.eq.s32.totalorder %v1514_v58, 0 }
  0x7f   : > { %1949 = vmatpush3.bf16.msra.mxu0 %v2104_v59 }
  0x80   : > { %1950 = vmatprep.subr.bf16.mxu0 %v2105_v61 }
  0x83   : > { %1951 = vmatpush3.bf16.msra.mxu0 %v2106_v63 }
  0x84   : > { %1952 = vmatprep.subr.bf16.mxu0 %v2107_v0 }
  0x87   : > { %1953 = vmatpush3.bf16.msra.mxu0 %v2108_v1 }
  0x88   : > { %1954 = vmatprep.subr.bf16.mxu0 %v2109_v2 }
  0x8b   : > { %1955 = vmatpush3.bf16.msra.mxu0 %v2110_v3 }
  0x8e   : > { %1492 = vmatmul.mubr.bf16.vlgmr.msra.gmra.mxu0 %v1691_v4 }
  0xee   : > { %v1824_v5 = vpop.f32.mrf.mxu0 }
  0xef   : > { %v1846_v6 = vpop.f32.mrf.mxu1 }
  0xf0   : > { %v1825_v7 = vpop.f32.mrf.mxu0 }
  0xf1   : > { %v1847_v8 = vpop.f32.mrf.mxu1  ;;  %v1826_v9 = vadd.f32 %v1825_v7, %v1824_v5 }
  0xf2   : > { %v1848_v10 = vadd.f32 %v1847_v8, %v1846_v6  ;;  %v1827_v11 = vpop.f32.mrf.mxu0 }
  0xf3   : > { %v1849_v12 = vpop.f32.mrf.mxu1 }
  0xf4   : > { %v1294_v13 = vadd.f32 %v1848_v10, %v1826_v9  ;;  %v1828_v14 = vpop.f32.mrf.mxu0 }
  0xf5   : > { %v1850_v15 = vpop.f32.mrf.mxu1 }
 0x10e   : > { %v1868_v16 = vpop.f32.mrf.mxu0 }
 0x10f   : > { %v1890_v17 = vpop.f32.mrf.mxu1 }
 0x110   : > { %v1869_v18 = vpop.f32.mrf.mxu0 }
 0x111   : > { %v1891_v19 = vpop.f32.mrf.mxu1  ;;  %v1870_v32 = vadd.f32 %v1869_v18, %v1868_v16 }
 0x112   : > { %v1871_v20 = vpop.f32.mrf.mxu0  ;;  %v1892_v34 = vadd.f32 %v1891_v19, %v1890_v17 }
 0x113   : > { %v1893_v21 = vpop.f32.mrf.mxu1  ;;  %v1334_v33 = vadd.f32 %v1870_v32, %v1294_v13 }
 0x114   : > { %v1872_v22 = vpop.f32.mrf.mxu0 }
 0x115   : > { %v1894_v23 = vpop.f32.mrf.mxu1  ;;  %v1374_v36 = vadd.f32 %v1892_v34, %v1334_v33 }
 0x12e   : > { %v1912_v24 = vpop.f32.mrf.mxu0 }
 0x12f   : > { %v1934_v26 = vpop.f32.mrf.mxu1 }
 0x130   : > { %v1913_v25 = vpop.f32.mrf.mxu0 }
 0x131   : > { %v1935_v28 = vpop.f32.mrf.mxu1  ;;  %v1914_v35 = vadd.f32 %v1913_v25, %v1912_v24 }
 0x132   : > { %v1915_v27 = vpop.f32.mrf.mxu0  ;;  %v1936_v38 = vadd.f32 %v1935_v28, %v1934_v26 }
 0x133   : > { %v1937_v30 = vpop.f32.mrf.mxu1  ;;  %v1414_v37 = vadd.f32 %v1914_v35, %v1374_v36 }
 0x134   : > { %v1916_v29 = vpop.f32.mrf.mxu0 }
 0x135   : > { %v1938_v31 = vpop.f32.mrf.mxu1  ;;  %v1454_v41 = vadd.f32 %v1936_v38, %v1414_v37 }
 0x14e   : > { %v1956_v39 = vpop.f32.mrf.mxu0 }
 0x150   : > { %v1957_v40 = vpop.f32.mrf.mxu0 }
 0x151   : > { %v1958_v42 = vadd.f32 %v1957_v40, %v1956_v39 }
 0x152   : > { %v1959_v44 = vpop.f32.mrf.mxu0 }
 0x153   : > { %v1494_v45 = vadd.f32 %v1958_v42, %v1454_v41 }
 0x154   : > { %v1960_v46 = vpop.f32.mrf.mxu0 }
 0x155   : > { %v1500_v47 = vrot.slane %v1494_v45, 4  ;;  %v1506_v48 = vmul.f32 %v1494_v45, %v1494_v45  ;;  %v1526_v49 = vadd.f32 %v1805_v43, %v1494_v45 }
 0x157   : > { %v1501_v50 = vadd.f32 %v1500_v47, %v1494_v45  ;;  %v1507_v51 = vrot.slane %v1506_v48, 4  ;;  %v1527_v52 = vpack.c.bf16 %v1526_v49, %v1526_v49 }
 0x159   : > { %v1502_v54 = vrot.slane %v1501_v50, 2  ;;  %v1508_v55 = vadd.f32 %v1507_v51, %v1506_v48  ;;  %1528 = vst [vmem:[%s258_s13] sm:$0xf] %v1527_v52 }
 0x15b   : > { %v1503_v56 = vadd.f32 %v1502_v54, %v1501_v50  ;;  %v1509_v57 = vrot.slane %v1508_v55, 2 }
 0x15d   : > { %v1510_v59 = vadd.f32 %v1509_v57, %v1508_v55  ;;  %v1504_v60 = vrot.slane %v1503_v56, 1 }
 0x15f   : > { %v1511_v61 = vrot.slane %v1510_v59, 1  ;;  %v1505_v63 = vadd.f32 %v1504_v60, %v1503_v56 }
 0x161   : > { %v1512_v62 = vadd.f32 %v1511_v61, %v1510_v59 }
 0x163   : > { %v1517_v0 = vsel %vm1516_vm0, %v1512_v62, 0.0 }
 0x164   : > { %v1518_v1 = vsel %vm1515_vm1, %v1505_v63, %v1517_v0 }
 0x165   : > { %1519 = vst [vmem:[%s265_s21] sm:$0xff] %v1518_v1 }
 0x166 PF: > { %s15_s17 = sadd.s32 1, %s2135_s17   ;;  %s2560_s15 = smov %s2131_s16 }
 0x167   : > { %p12_p5 = scmp.ge.s32.totalorder %s15_s17, 4   ;;  %s2561_s16 = smov %s2563_s18 }
 0x169   :  { %14 = sbr.rel (!%p12_p5) target bundleno = 2 (0x2), region = 80 }

// kernel: unet_forward.14
= control target key start
LH: loop header
LB: loop body
LE: loop exit
PB: predicated region body
PF: predicated region fallthrough
CT: control target
= control target key end

     0   :  { %s1857_s15 = smov 0   ;;  %s1859_s16 = smov 0   ;;  %s2163_s0 = inlined_call_operand.vmem [shape: bf16[128,896], index: 0, kind: input, shape index: {}]   ;;  %s2164_s1 = inlined_call_operand.vmem [shape: bf16[896,64], index: 1, kind: input, shape index: {}]   ;;  %s2165_s2 = inlined_call_operand.vmem [shape: f32[1,64], index: 2, kind: input, shape index: {}]   ;;  %s2166_s3 = inlined_call_operand.vmem [shape: bf16[128,64], index: 3, kind: output, shape index: {0}]   ;;  %s2167_s4 = inlined_call_operand.vmem [shape: f32[16,64], index: 4, kind: output, shape index: {1}]  }
   0x1   :  { %s1861_s17 = smov 0  }
   0x2 LB: > { %s27_s18 = sadd.s32 1, %s1826_s16  ;;  %p1422_p0 = scmp.ge.s32.totalorder %s1830_s17, 1  ;;  %s1830_s17 = sphi %s1861_s17, %s15_s17   ;;  %s1826_s16 = sphi %s1859_s16, %s2169_s16   ;;  %s1822_s15 = sphi %s1857_s15, %s2168_s15  }
   0x3   : > { %p29_p1 = scmp.ge.s32.totalorder %s27_s18, 2  ;;  %p200_p2 = scmp.lt.s32.totalorder %s1830_s17, 3 }
   0x5   : > { %s2171_s18 = smov (%p29_p1, %s27_s18), 0  ;;  %p201_p3 = pnand %p1422_p0, %p200_p2 }
   0x6   : > { %s1423_s27 = sshll.u32 (!%p201_p3), %s1822_s15, 3  ;;  %p267_p5 = scmp.lt.s32.totalorder (!%p201_p3), %s1822_s15, 1 }
   0x7   : > { %204 = sbr.rel (%p201_p3) target bundleno = 327 (0x147), region = 32  ;;  %p245_p4 = scmp.lt.s32.totalorder (!%p201_p3), %s1423_s27, 15 }
   0xc   : > { %v1712_v0 = vld [vmem:[%s2164_s1 + $0x78] sm:$0xff]   ;;  %v1716_v4 = vld [vmem:[%s2164_s1 + $0x70] sm:$0xff]   ;;  %v1720_v8 = vld [vmem:[%s2164_s1 + $0x68] sm:$0xff]   ;;  %s2173_s27 = smov (!%p245_p4, %s1423_s27), 15  ;;  %vm1264_vm0 = vcmask 519168   ;;  %vm1160_vm1 = vcmask 523264  }
   0xd   : > { %v1713_v1 = vld [vmem:[%s2164_s1 + $0xf8] sm:$0xff]   ;;  %1531 = vmatprep.subr.bf16.mxu0 %v1712_v0  ;;  %v1717_v5 = vld [vmem:[%s2164_s1 + $0xf0] sm:$0xff]   ;;  %v1721_v9 = vld [vmem:[%s2164_s1 + $0xe8] sm:$0xff]   ;;  %s1687_s29 = smul.u32 28, %s2173_s27  ;;  %s1426_s7 = sshll.u32 %s2173_s27, 2 }
   0xe   : > { %v1714_v2 = vld [vmem:[%s2164_s1 + $0x38] sm:$0xff]   ;;  %1571 = vmatprep.subr.bf16.mxu1 %v1713_v1  ;;  %v1718_v6 = vld [vmem:[%s2164_s1 + $0x30] sm:$0xff]   ;;  %v1722_v10 = vld [vmem:[%s2164_s1 + $0x28] sm:$0xff]   ;;  %s2100_s10 = scalar_lea.vmem %s2166_s3, %s1426_s7  ;;  %s2175_s15 = smov (!%p267_p5, %s1822_s15), 1 }
   0xf   : > { %v1715_v3 = vld [vmem:[%s2164_s1 + $0xb8] sm:$0xff]   ;;  %1532 = vmatpush3.bf16.msra.mxu0 %v1714_v2  ;;  %v1719_v7 = vld [vmem:[%s2164_s1 + $0xb0] sm:$0xff]   ;;  %v1723_v11 = vld [vmem:[%s2164_s1 + $0xa8] sm:$0xff]   ;;  %s1974_s14 = scalar_lea.vmem %s2163_s0, %s1687_s29  ;;  %s1427_s27 = sshll.u32 %s2175_s15, 3 }
  0x10   : > { %1572 = vmatpush3.bf16.msra.mxu1 %v1715_v3  ;;  %1533 = vmatprep.subr.bf16.mxu0 %v1716_v4  ;;  %v1724_v12 = vld [vmem:[%s2164_s1 + $0x60] sm:$0xff]   ;;  %v1728_v16 = vld [vmem:[%s2164_s1 + $0x58] sm:$0xff]   ;;  %v1732_v20 = vld [vmem:[%s2164_s1 + $0x50] sm:$0xff]   ;;  %s273_s13 = scalar_lea.vmem %s2167_s4, %s1427_s27 }
  0x11   : > { %1573 = vmatprep.subr.bf16.mxu1 %v1717_v5  ;;  %v1725_v13 = vld [vmem:[%s2164_s1 + $0xe0] sm:$0xff]   ;;  %v1729_v17 = vld [vmem:[%s2164_s1 + $0xd8] sm:$0xff]   ;;  %v1733_v21 = vld [vmem:[%s2164_s1 + $0xd0] sm:$0xff]  }
  0x12   : > { %v1726_v14 = vld [vmem:[%s2164_s1 + $0x20] sm:$0xff]   ;;  %v1730_v18 = vld [vmem:[%s2164_s1 + $0x18] sm:$0xff]   ;;  %v1734_v22 = vld [vmem:[%s2164_s1 + $0x10] sm:$0xff]  }
  0x13   : > { %1534 = vmatpush3.bf16.msra.mxu0 %v1718_v6  ;;  %v1727_v15 = vld [vmem:[%s2164_s1 + $0xa0] sm:$0xff]   ;;  %v1731_v19 = vld [vmem:[%s2164_s1 + $0x98] sm:$0xff]   ;;  %v1735_v23 = vld [vmem:[%s2164_s1 + $0x90] sm:$0xff]  }
  0x14   : > { %1574 = vmatpush3.bf16.msra.mxu1 %v1719_v7  ;;  %1535 = vmatprep.subr.bf16.mxu0 %v1720_v8  ;;  %v1736_v24 = vld [vmem:[%s2164_s1 + $0x48] sm:$0xff]   ;;  %v1740_v28 = vld [vmem:[%s2164_s1 + $0x40] sm:$0xff]   ;;  %v1750_v36 = vld [vmem:[%s2164_s1 + $0x178] sm:$0xff]  }
  0x15   : > { %1575 = vmatprep.subr.bf16.mxu1 %v1721_v9  ;;  %v1737_v25 = vld [vmem:[%s2164_s1 + $0xc8] sm:$0xff]   ;;  %v1741_v29 = vld [vmem:[%s2164_s1 + $0xc0] sm:$0xff]   ;;  %v1751_v37 = vld [vmem:[%s2164_s1 + $0x138] sm:$0xff]  }
  0x16   : > { %v1738_v26 = vld [vmem:[%s2164_s1 + $0x8] sm:$0xff]   ;;  %v1742_v30 = vld [vmem:[%s2164_s1] sm:$0xff]   ;;  %v1752_v38 = vld [vmem:[%s2164_s1 + $0x170] sm:$0xff]  }
  0x17   : > { %1536 = vmatpush3.bf16.msra.mxu0 %v1722_v10  ;;  %v1739_v27 = vld [vmem:[%s2164_s1 + $0x88] sm:$0xff]   ;;  %v1743_v31 = vld [vmem:[%s2164_s1 + $0x80] sm:$0xff]   ;;  %v1753_v39 = vld [vmem:[%s2164_s1 + $0x1b8] sm:$0xff]  }
  0x18   : > { %1576 = vmatpush3.bf16.msra.mxu1 %v1723_v11  ;;  %1537 = vmatprep.subr.bf16.mxu0 %v1724_v12  ;;  %v1744_v32 = vld [vmem:[%s1974_s14] ss:$28 sps:$4 sm:$0xff]   ;;  %v1747_v34 = vld [vmem:[%s1974_s14 + $0x8] ss:$28 sps:$4 sm:$0xff]   ;;  %v1754_v40 = vld [vmem:[%s2164_s1 + $0x130] sm:$0xff]  }
  0x19   : > { %1577 = vmatprep.subr.bf16.mxu1 %v1725_v13  ;;  %v1746_v33 = vld [vmem:[%s1974_s14 + $0x4] ss:$28 sps:$4 sm:$0xff]   ;;  %v1749_v35 = vld [vmem:[%s1974_s14 + $0xc] ss:$28 sps:$4 sm:$0xff]   ;;  %v1755_v41 = vld [vmem:[%s1974_s14 + $0x3c] ss:$28 sps:$4 sm:$0xff]  }
  0x1a   : > { %931 = vmatprep.mubr.bf16.mxu0 %v1746_v33  ;;  %996 = vmatprep.mubr.bf16.mxu1 %v1749_v35  ;;  %v1757_v42 = vld [vmem:[%s1974_s14 + $0x44] ss:$28 sps:$4 sm:$0xff]   ;;  %v1759_v43 = vld [vmem:[%s1974_s14 + $0x38] ss:$28 sps:$4 sm:$0xff]   ;;  %v1761_v45 = vld [vmem:[%s2164_s1 + $0x168] sm:$0xff]  }
  0x1b   : > { %1538 = vmatpush3.bf16.msra.mxu0 %v1726_v14  ;;  %v1760_v44 = vld [vmem:[%s1974_s14 + $0x40] ss:$28 sps:$4 sm:$0xff]   ;;  %v1762_v46 = vld [vmem:[%s2164_s1 + $0x1b0] sm:$0xff]   ;;  %v1763_v47 = vld [vmem:[%s2164_s1 + $0x128] sm:$0xff]  }
  0x1c   : > { %1578 = vmatpush3.bf16.msra.mxu1 %v1727_v15  ;;  %1539 = vmatprep.subr.bf16.mxu0 %v1728_v16  ;;  %v1764_v48 = vld [vmem:[%s2164_s1 + $0x160] sm:$0xff]   ;;  %v1765_v49 = vld [vmem:[%s2164_s1 + $0x1a8] sm:$0xff]   ;;  %v1767_v51 = vld [vmem:[%s1974_s14 + $0x74] ss:$28 sps:$4 sm:$0xff]  }
  0x1d   : > { %1579 = vmatprep.subr.bf16.mxu1 %v1729_v17  ;;  %v1766_v50 = vld [vmem:[%s2164_s1 + $0x120] sm:$0xff]   ;;  %v1769_v52 = vld [vmem:[%s1974_s14 + $0x7c] ss:$28 sps:$4 sm:$0xff]   ;;  %v1771_v53 = vld [vmem:[%s1974_s14 + $0x70] ss:$28 sps:$4 sm:$0xff]  }
  0x1e   : > { %v1772_v54 = vld [vmem:[%s1974_s14 + $0x78] ss:$28 sps:$4 sm:$0xff]   ;;  %v1774_v56 = vld [vmem:[%s2164_s1 + $0x1a0] sm:$0xff]   ;;  %v1779_v61 = vld [vmem:[%s1974_s14 + $0xac] ss:$28 sps:$4 sm:$0xff]  }
  0x1f   : > { %1540 = vmatpush3.bf16.msra.mxu0 %v1730_v18  ;;  %v1773_v55 = vld [vmem:[%s2164_s1 + $0x158] sm:$0xff]   ;;  %v1776_v58 = vld [vmem:[%s2164_s1 + $0x150] sm:$0xff]   ;;  %v1783_v63 = vld [vmem:[%s1974_s14 + $0xa8] ss:$28 sps:$4 sm:$0xff]  }
  0x20   : > { %1580 = vmatpush3.bf16.msra.mxu1 %v1731_v19  ;;  %1541 = vmatprep.subr.bf16.mxu0 %v1732_v20  ;;  %v1775_v57 = vld [vmem:[%s2164_s1 + $0x118] sm:$0xff]   ;;  %v1778_v60 = vld [vmem:[%s2164_s1 + $0x110] sm:$0xff]   ;;  %v1785_v1 = vld [vmem:[%s2164_s1 + $0x148] sm:$0xff]  }
  0x21   : > { %1581 = vmatprep.subr.bf16.mxu1 %v1733_v21  ;;  %v1777_v59 = vld [vmem:[%s2164_s1 + $0x198] sm:$0xff]   ;;  %v1781_v62 = vld [vmem:[%s1974_s14 + $0xb4] ss:$28 sps:$4 sm:$0xff]   ;;  %v1787_v3 = vld [vmem:[%s2164_s1 + $0x108] sm:$0xff]  }
  0x22   : > { %v1784_v0 = vld [vmem:[%s1974_s14 + $0xb0] ss:$28 sps:$4 sm:$0xff]   ;;  %v1788_v4 = vld [vmem:[%s2164_s1 + $0x140] sm:$0xff]   ;;  %v1795_v10 = vld [vmem:[%s1974_s14 + $0x18] ss:$28 sps:$4 sm:$0xff]  }
  0x23   : > { %1542 = vmatpush3.bf16.msra.mxu0 %v1734_v22  ;;  %v1786_v2 = vld [vmem:[%s2164_s1 + $0x190] sm:$0xff]   ;;  %v1789_v5 = vld [vmem:[%s2164_s1 + $0x188] sm:$0xff]   ;;  %v1790_v6 = vld [vmem:[%s2164_s1 + $0x100] sm:$0xff]  }
  0x24   : > { %1582 = vmatpush3.bf16.msra.mxu1 %v1735_v23  ;;  %1543 = vmatprep.subr.bf16.mxu0 %v1736_v24  ;;  %v1791_v7 = vld [vmem:[%s1974_s14 + $0x10] ss:$28 sps:$4 sm:$0xff]   ;;  %v1794_v9 = vld [vmem:[%s2164_s1 + $0x180] sm:$0xff]   ;;  %v1805_v18 = vld [vmem:[%s1974_s14 + $0xbc] ss:$28 sps:$4 sm:$0xff]  }
  0x25   : > { %1583 = vmatprep.subr.bf16.mxu1 %v1737_v25  ;;  %v1793_v8 = vld [vmem:[%s1974_s14 + $0x14] ss:$28 sps:$4 sm:$0xff]   ;;  %v1797_v11 = vld [vmem:[%s1974_s14 + $0x4c] ss:$28 sps:$4 sm:$0xff]   ;;  %v1800_v15 = vld [vmem:[%s1974_s14 + $0x84] ss:$28 sps:$4 sm:$0xff]  }
  0x26   : > { %v1796_v12 = vld [vmem:[%s1974_s14 + $0x50] ss:$28 sps:$4 sm:$0xff]   ;;  %v1803_v13 = vld [vmem:[%s1974_s14 + $0x88] ss:$28 sps:$4 sm:$0xff]   ;;  %v1804_v16 = vld [vmem:[%s1974_s14 + $0xc0] ss:$28 sps:$4 sm:$0xff]  }
  0x27   : > { %1544 = vmatpush3.bf16.msra.mxu0 %v1738_v26  ;;  %v1799_v14 = vld [vmem:[%s1974_s14 + $0x48] ss:$28 sps:$4 sm:$0xff]   ;;  %v1802_v17 = vld [vmem:[%s1974_s14 + $0x80] ss:$28 sps:$4 sm:$0xff]   ;;  %v1807_v19 = vld [vmem:[%s1974_s14 + $0xb8] ss:$28 sps:$4 sm:$0xff]  }
  0x28   : > { %1584 = vmatpush3.bf16.msra.mxu1 %v1739_v27  ;;  %1545 = vmatprep.subr.bf16.mxu0 %v1740_v28 }
  0x29   : > { %1585 = vmatprep.subr.bf16.mxu1 %v1741_v29 }
  0x2b   : > { %1546 = vmatpush3.bf16.msra.mxu0 %v1742_v30 }
  0x2c   : > { %1586 = vmatpush3.bf16.msra.mxu1 %v1743_v31  ;;  %1611 = vmatprep.subr.bf16.mxu0 %v1750_v36 }
  0x2d   : > { %1663 = vmatprep.subr.bf16.mxu1 %v1753_v39 }
  0x2e   : > { %932 = vmatmul.mubr.bf16.vlgmr.msra.gmra.mxu0 %v1744_v32 }
  0x2f   : > { %997 = vmatmul.mubr.bf16.vlgmr.msra.gmra.mxu1 %v1747_v34  ;;  %1612 = vmatpush3.bf16.msra.mxu0 %v1751_v37 }
  0x30   : > { %1613 = vmatprep.subr.bf16.mxu0 %v1752_v38  ;;  %1664 = vmatpush3.bf16.msra.mxu1 %v1753_v39 }
  0x31   : > { %939 = vmatprep.mubr.bf16.mxu0 %v1755_v41  ;;  %1004 = vmatprep.mubr.bf16.mxu1 %v1757_v42 }
  0x32   : > { %1665 = vmatprep.subr.bf16.mxu1 %v1762_v46 }
  0x33   : > { %1614 = vmatpush3.bf16.msra.mxu0 %v1754_v40 }
  0x34   : > { %1615 = vmatprep.subr.bf16.mxu0 %v1761_v45  ;;  %1666 = vmatpush3.bf16.msra.mxu1 %v1762_v46 }
  0x35   : > { %1667 = vmatprep.subr.bf16.mxu1 %v1765_v49 }
  0x36   : > { %940 = vmatmul.mubr.bf16.gmra.mxu0 %v1759_v43 }
  0x37   : > { %1005 = vmatmul.mubr.bf16.gmra.mxu1 %v1760_v44  ;;  %1616 = vmatpush3.bf16.msra.mxu0 %v1763_v47 }
  0x38   : > { %1617 = vmatprep.subr.bf16.mxu0 %v1764_v48  ;;  %1668 = vmatpush3.bf16.msra.mxu1 %v1765_v49 }
  0x39   : > { %947 = vmatprep.mubr.bf16.mxu0 %v1767_v51  ;;  %1012 = vmatprep.mubr.bf16.mxu1 %v1769_v52 }
  0x3a   : > { %1669 = vmatprep.subr.bf16.mxu1 %v1774_v56 }
  0x3b   : > { %1618 = vmatpush3.bf16.msra.mxu0 %v1766_v50 }
  0x3c   : > { %1619 = vmatprep.subr.bf16.mxu0 %v1773_v55  ;;  %1670 = vmatpush3.bf16.msra.mxu1 %v1774_v56 }
  0x3d   : > { %1671 = vmatprep.subr.bf16.mxu1 %v1777_v59 }
  0x3e   : > { %948 = vmatmul.mubr.bf16.gmra.mxu0 %v1771_v53 }
  0x3f   : > { %1013 = vmatmul.mubr.bf16.gmra.mxu1 %v1772_v54  ;;  %1620 = vmatpush3.bf16.msra.mxu0 %v1775_v57 }
  0x40   : > { %1621 = vmatprep.subr.bf16.mxu0 %v1776_v58  ;;  %1672 = vmatpush3.bf16.msra.mxu1 %v1777_v59 }
  0x41   : > { %955 = vmatprep.mubr.bf16.mxu0 %v1779_v61  ;;  %1020 = vmatprep.mubr.bf16.mxu1 %v1781_v62 }
  0x42   : > { %1673 = vmatprep.subr.bf16.mxu1 %v1786_v2 }
  0x43   : > { %1622 = vmatpush3.bf16.msra.mxu0 %v1778_v60 }
  0x44   : > { %1623 = vmatprep.subr.bf16.mxu0 %v1785_v1  ;;  %1674 = vmatpush3.bf16.msra.mxu1 %v1786_v2  ;;  %v2093_v2 = vld [vmem:[%s2165_s2] ss:$0 sm:$0xff] }
  0x45   : > { %1675 = vmatprep.subr.bf16.mxu1 %v1789_v5 }
  0x46   : > { %956 = vmatmul.mubr.bf16.gmra.mxu0 %v1783_v63 }
  0x47   : > { %1021 = vmatmul.mubr.bf16.gmra.mxu1 %v1784_v0  ;;  %1624 = vmatpush3.bf16.msra.mxu0 %v1787_v3 }
  0x48   : > { %1625 = vmatprep.subr.bf16.mxu0 %v1788_v4  ;;  %1676 = vmatpush3.bf16.msra.mxu1 %v1789_v5 }
  0x49   : > { %1061 = vmatprep.mubr.bf16.mxu0 %v1793_v8  ;;  %1677 = vmatprep.subr.bf16.mxu1 %v1794_v9 }
  0x4a   : > { %1679 = vmatprep.mubr.bf16.mxu1 %v1795_v10 }
  0x4b   : > { %1626 = vmatpush3.bf16.msra.mxu0 %v1790_v6 }
  0x4c   : > { %1678 = vmatpush3.bf16.msra.mxu1 %v1794_v9 }
  0x4e   : > { %1062 = vmatmul.mubr.bf16.vlgmr.msra.gmra.mxu0 %v1791_v7 }
  0x4f   : > { %1069 = vmatprep.mubr.bf16.mxu0 %v1797_v11  ;;  %1680 = vmatmul.mubr.bf16.vlgmr.msra.gmra.mxu1 %v1796_v12 }
  0x50   : > { %1683 = vmatprep.mubr.bf16.mxu1 %v1803_v13 }
  0x56   : > { %1070 = vmatmul.mubr.bf16.gmra.mxu0 %v1799_v14 }
  0x57   : > { %1077 = vmatprep.mubr.bf16.mxu0 %v1800_v15  ;;  %1684 = vmatmul.mubr.bf16.gmra.mxu1 %v1804_v16 }
  0x5e   : > { %1078 = vmatmul.mubr.bf16.gmra.mxu0 %v1802_v17 }
  0x5f   : > { %1085 = vmatprep.mubr.bf16.mxu0 %v1805_v18 }
  0x66   : > { %1086 = vmatmul.mubr.bf16.gmra.mxu0 %v1807_v19 }
  0xee   : > { %v1547_v20 = vpop.f32.mrf.mxu0 }
  0xef   : > { %v1587_v21 = vpop.f32.mrf.mxu1 }
  0xf0   : > { %v1548_v22 = vpop.f32.mrf.mxu0 }
  0xf1   : > { %v1588_v23 = vpop.f32.mrf.mxu1  ;;  %v1549_v51 = vadd.f32 %v1548_v22, %v1547_v20 }
  0xf2   : > { %v1550_v24 = vpop.f32.mrf.mxu0  ;;  %v1589_v52 = vadd.f32 %v1588_v23, %v1587_v21 }
  0xf3   : > { %v1590_v25 = vpop.f32.mrf.mxu1 }
  0xf4   : > { %v1551_v26 = vpop.f32.mrf.mxu0  ;;  %v999_v58 = vadd.f32 %v1589_v52, %v1549_v51 }
  0xf5   : > { %v1591_v27 = vpop.f32.mrf.mxu1  ;;  %v1552_v54 = vadd.f32 %v1551_v26, %v1550_v24 }
  0xf6   : > { %v1553_v28 = vpop.f32.mrf.mxu0  ;;  %v1592_v55 = vadd.f32 %v1591_v27, %v1590_v25 }
  0xf7   : > { %v1593_v29 = vpop.f32.mrf.mxu1 }
  0xf8   : > { %v1554_v30 = vpop.f32.mrf.mxu0  ;;  %v1002_v63 = vadd.f32 %v1592_v55, %v1552_v54 }
  0xf9   : > { %v1594_v31 = vpop.f32.mrf.mxu1  ;;  %v1555_v3 = vadd.f32 %v1554_v30, %v1553_v28 }
  0xfa   : > { %v1556_v32 = vpop.f32.mrf.mxu0  ;;  %v1595_v4 = vadd.f32 %v1594_v31, %v1593_v29 }
  0xfb   : > { %v1596_v33 = vpop.f32.mrf.mxu1 }
  0xfc   : > { %v1557_v34 = vpop.f32.mrf.mxu0  ;;  %v1007_v15 = vadd.f32 %v1595_v4, %v1555_v3 }
  0xfd   : > { %v1597_v35 = vpop.f32.mrf.mxu1  ;;  %v1558_v11 = vadd.f32 %v1557_v34, %v1556_v32 }
  0xfe   : > { %v1559_v36 = vpop.f32.mrf.mxu0  ;;  %v1598_v12 = vadd.f32 %v1597_v35, %v1596_v33 }
  0xff   : > { %v1599_v37 = vpop.f32.mrf.mxu1 }
 0x100   : > { %v1560_v38 = vpop.f32.mrf.mxu0  ;;  %v1010_v22 = vadd.f32 %v1598_v12, %v1558_v11 }
 0x101   : > { %v1600_v39 = vpop.f32.mrf.mxu1  ;;  %v1561_v23 = vadd.f32 %v1560_v38, %v1559_v36 }
 0x102   : > { %v1562_v40 = vpop.f32.mrf.mxu0  ;;  %v1601_v26 = vadd.f32 %v1600_v39, %v1599_v37 }
 0x103   : > { %v1602_v41 = vpop.f32.mrf.mxu1 }
 0x104   : > { %v1563_v42 = vpop.f32.mrf.mxu0  ;;  %v1015_v38 = vadd.f32 %v1601_v26, %v1561_v23 }
 0x105   : > { %v1603_v43 = vpop.f32.mrf.mxu1  ;;  %v1564_v33 = vadd.f32 %v1563_v42, %v1562_v40 }
 0x106   : > { %v1565_v44 = vpop.f32.mrf.mxu0  ;;  %v1604_v34 = vadd.f32 %v1603_v43, %v1602_v41 }
 0x107   : > { %v1605_v45 = vpop.f32.mrf.mxu1 }
 0x108   : > { %v1566_v46 = vpop.f32.mrf.mxu0 }
 0x109   : > { %v1606_v47 = vpop.f32.mrf.mxu1  ;;  %v1567_v35 = vadd.f32 %v1566_v46, %v1565_v44 }
 0x10a   : > { %v2082_v48 = vpop.f32.mrf.mxu0  ;;  %v1607_v51 = vadd.f32 %v1606_v47, %v1605_v45 }
 0x10b   : > { %v2086_v50 = vpop.f32.mrf.mxu1 }
 0x10c   : > { %v2084_v49 = vpop.f32.mrf.mxu0 }
 0x10d   : > { %v2088_v56 = vpop.f32.mrf.mxu1 }
 0x10e   : > { %v1627_v53 = vpop.f32.mrf.mxu0 }
 0x10f   : > { %v1681_v61 = vpop.f32.mrf.mxu1 }
 0x110   : > { %v1628_v57 = vpop.f32.mrf.mxu0 }
 0x111   : > { %v1629_v59 = vadd.f32 %v1628_v57, %v1627_v53  ;;  %v1128_v1 = vpop.f32.mrf.mxu1 }
 0x112   : > { %v1630_v60 = vpop.f32.mrf.mxu0 }
 0x113   : > { %v1064_v62 = vadd.f32 %v1629_v59, %v999_v58  ;;  %v1682_v8 = vpop.f32.mrf.mxu1  ;;  %v1018_v59 = vadd.f32 %v1604_v34, %v1564_v33 }
 0x114   : > { %v1631_v0 = vpop.f32.mrf.mxu0 }
 0x115   : > { %v1632_v5 = vadd.f32 %v1631_v0, %v1630_v60  ;;  %v1129_v6 = vadd.f32 %v1128_v1, %v1064_v62  ;;  %v1131_v14 = vpop.f32.mrf.mxu1  ;;  %v1023_v60 = vadd.f32 %v1607_v51, %v1567_v35  ;;  %v1610_v62 = vadd.f32 %v2088_v56, %v2086_v50 }
 0x116   : > { %v1633_v7 = vpop.f32.mrf.mxu0 }
 0x117   : > { %v1224_v9 = vadd.f32 %v2093_v2, %v1129_v6  ;;  %v1067_v10 = vadd.f32 %v1632_v5, %v1002_v63  ;;  %v2105_v25 = vpop.f32.mrf.mxu1  ;;  %v1182_v40 = vmul.f32 %v1129_v6, %v1129_v6  ;;  %v1161_v63 = vsel %vm1160_vm1, %v1129_v6, 0.0 }
 0x118   : > { %v1634_v13 = vpop.f32.mrf.mxu0 }
 0x119   : > { %v1523_v16 = vpack.c.bf16 %v1224_v9, %v1224_v9  ;;  %v1635_v17 = vadd.f32 %v1634_v13, %v1633_v7  ;;  %v1132_v18 = vadd.f32 %v1131_v14, %v1067_v10  ;;  %v1144_v36 = vpop.f32.mrf.mxu1 }
 0x11a   : > { %v1636_v19 = vpop.f32.mrf.mxu0 }
 0x11b   : > { %1265 = vst.msk [vmem:[%s2100_s10] sm:$0xf] %vm1264_vm0, %v1523_v16  ;;  %v1072_v20 = vadd.f32 %v1635_v17, %v1007_v15  ;;  %v1225_v21 = vadd.f32 %v2093_v2, %v1132_v18  ;;  %v1183_v55 = vmul.f32 %v1132_v18, %v1132_v18  ;;  %v1686_v43 = vpop.f32.mrf.mxu1  ;;  %v1162_v44 = vsel %vm1160_vm1, %v1132_v18, 0.0 }
 0x11c   : > { %v1637_v24 = vpop.f32.mrf.mxu0 }
 0x11d   : > { %v1137_v27 = vadd.f32 %v1681_v61, %v1072_v20  ;;  %v1524_v28 = vpack.c.bf16 %v1225_v21, %v1225_v21  ;;  %v1638_v29 = vadd.f32 %v1637_v24, %v1636_v19  ;;  %v1570_v61 = vadd.f32 %v2084_v49, %v2082_v48  ;;  %v1147_v56 = vpop.f32.mrf.mxu1 }
 0x11e   : > { %v1639_v30 = vpop.f32.mrf.mxu0  ;;  %v1191_v4 = vsel %vm1160_vm1, %v1183_v55, 0.0  ;;  %v1163_v48 = vadd.f32 %v1162_v44, %v1161_v63 }
 0x11f   : > { %v1226_v31 = vadd.f32 %v2093_v2, %v1137_v27  ;;  %1266 = vst.msk [vmem:[%s2100_s10 + $0x4] sm:$0xf] %vm1264_vm0, %v1524_v28  ;;  %v1075_v32 = vadd.f32 %v1638_v29, %v1010_v22  ;;  %v1184_v41 = vmul.f32 %v1137_v27, %v1137_v27  ;;  %v1164_v3 = vsel %vm1160_vm1, %v1137_v27, 0.0 }
 0x120   : > { %v1640_v52 = vpop.f32.mrf.mxu0  ;;  %v1165_v13 = vadd.f32 %v1164_v3, %v1163_v48  ;;  %v1026_v21 = vadd.f32 %v1610_v62, %v1570_v61 }
 0x121   : > { %v1525_v53 = vpack.c.bf16 %v1226_v31, %v1226_v31  ;;  %v1140_v54 = vadd.f32 %v1682_v8, %v1075_v32  ;;  %v1641_v37 = vadd.f32 %v1640_v52, %v1639_v30  ;;  %v1190_v8 = vsel %vm1160_vm1, %v1182_v40, 0.0 }
 0x122   : > { %v1642_v39 = vpop.f32.mrf.mxu0  ;;  %v1193_v49 = vsel %vm1160_vm1, %v1184_v41, 0.0  ;;  %v1192_v14 = vadd.f32 %v1191_v4, %v1190_v8 }
 0x123   : > { %1267 = vst.msk [vmem:[%s2100_s10 + $0x8] sm:$0xf] %vm1264_vm0, %v1525_v53  ;;  %v1227_v57 = vadd.f32 %v2093_v2, %v1140_v54  ;;  %v1080_v58 = vadd.f32 %v1641_v37, %v1015_v38  ;;  %v1185_v0 = vmul.f32 %v1140_v54, %v1140_v54  ;;  %v1166_v9 = vsel %vm1160_vm1, %v1140_v54, 0.0 }
 0x124   : > { %v1643_v42 = vpop.f32.mrf.mxu0  ;;  %v1194_v22 = vadd.f32 %v1193_v49, %v1192_v14  ;;  %v1167_v23 = vadd.f32 %v1166_v9, %v1165_v13 }
 0x125   : > { %v1526_v45 = vpack.c.bf16 %v1227_v57, %v1227_v57  ;;  %v1145_v46 = vadd.f32 %v1144_v36, %v1080_v58  ;;  %v1644_v47 = vadd.f32 %v1643_v42, %v1642_v39  ;;  %v1195_v15 = vsel %vm1160_vm1, %v1185_v0, 0.0 }
 0x126   : > { %v1645_v1 = vpop.f32.mrf.mxu0  ;;  %v1196_v32 = vadd.f32 %v1195_v15, %v1194_v22 }
 0x127   : > { %1268 = vst.msk [vmem:[%s2100_s10 + $0xc] sm:$0xf] %vm1264_vm0, %v1526_v45  ;;  %v1228_v5 = vadd.f32 %v2093_v2, %v1145_v46  ;;  %v1083_v7 = vadd.f32 %v1644_v47, %v1018_v59  ;;  %v1186_v50 = vmul.f32 %v1145_v46, %v1145_v46  ;;  %v1168_v17 = vsel %vm1160_vm1, %v1145_v46, 0.0 }
 0x128   : > { %v1646_v6 = vpop.f32.mrf.mxu0  ;;  %v1169_v31 = vadd.f32 %v1168_v17, %v1167_v23  ;;  %v1211_v46 = vlaneseq }
 0x129   : > { %v1527_v10 = vpack.c.bf16 %v1228_v5, %v1228_v5  ;;  %v1148_v11 = vadd.f32 %v1147_v56, %v1083_v7  ;;  %v1647_v12 = vadd.f32 %v1646_v6, %v1645_v1  ;;  %v1197_v24 = vsel %vm1160_vm1, %v1186_v50, 0.0 }
 0x12a   : > { %v1648_v16 = vpop.f32.mrf.mxu0  ;;  %v1198_v36 = vadd.f32 %v1197_v24, %v1196_v32  ;;  %v1212_v0 = vshrl.u32 %v1211_v46, 7 }
 0x12b   : > { %1269 = vst.msk [vmem:[%s2100_s10 + $0x10] sm:$0xf] %vm1264_vm0, %v1527_v10  ;;  %v1187_v18 = vmul.f32 %v1148_v11, %v1148_v11  ;;  %v1229_v19 = vadd.f32 %v2093_v2, %v1148_v11  ;;  %v1088_v20 = vadd.f32 %v1647_v12, %v1023_v60  ;;  %v1170_v27 = vsel %vm1160_vm1, %v1148_v11, 0.0 }
 0x12c   : > { %v1649_v26 = vpop.f32.mrf.mxu0  ;;  %v1171_v38 = vadd.f32 %v1170_v27, %v1169_v31  ;;  %vm1214_vm2 = vcmp.eq.s32.totalorder %v1212_v0, 1  ;;  %vm1213_vm3 = vcmp.eq.s32.totalorder %v1212_v0, 0 }
 0x12d   : > { %v1528_v28 = vpack.c.bf16 %v1229_v19, %v1229_v19  ;;  %v1153_v29 = vadd.f32 %v2105_v25, %v1088_v20  ;;  %v1650_v30 = vadd.f32 %v1649_v26, %v1648_v16  ;;  %v1199_v33 = vsel %vm1160_vm1, %v1187_v18, 0.0 }
 0x12e   : > { %v1200_v37 = vadd.f32 %v1199_v33, %v1198_v36 }
 0x12f   : > { %1270 = vst.msk [vmem:[%s2100_s10 + $0x14] sm:$0xf] %vm1264_vm0, %v1528_v28  ;;  %v1172_v34 = vsel %vm1160_vm1, %v1153_v29, 0.0  ;;  %v1188_v35 = vmul.f32 %v1153_v29, %v1153_v29  ;;  %v1230_v51 = vadd.f32 %v2093_v2, %v1153_v29  ;;  %v1091_v52 = vadd.f32 %v1650_v30, %v1026_v21 }
 0x130   : > { %v1173_v39 = vadd.f32 %v1172_v34, %v1171_v38 }
 0x131   : > { %v1201_v53 = vsel %vm1160_vm1, %v1188_v35, 0.0  ;;  %v1529_v25 = vpack.c.bf16 %v1230_v51, %v1230_v51  ;;  %v1156_v54 = vadd.f32 %v1686_v43, %v1091_v52 }
 0x132   : > { %v1202_v59 = vadd.f32 %v1201_v53, %v1200_v37 }
 0x133   : > { %1271 = vst.msk [vmem:[%s2100_s10 + $0x18] sm:$0xf] %vm1264_vm0, %v1529_v25  ;;  %v1174_v55 = vsel %vm1160_vm1, %v1156_v54, 0.0  ;;  %v1189_v57 = vmul.f32 %v1156_v54, %v1156_v54  ;;  %v1231_v58 = vadd.f32 %v2093_v2, %v1156_v54 }
 0x134   : > { %v1175_v60 = vadd.f32 %v1174_v55, %v1173_v39 }
 0x135   : > { %v1203_v40 = vsel %vm1160_vm1, %v1189_v57, 0.0  ;;  %v1530_v41 = vpack.c.bf16 %v1231_v58, %v1231_v58 }
 0x136   : > { %v1176_v42 = vrot.slane %v1175_v60, 4  ;;  %v1204_v44 = vadd.f32 %v1203_v40, %v1202_v59 }
 0x137   : > { %1272 = vst.msk [vmem:[%s2100_s10 + $0x1c] sm:$0xf] %vm1264_vm0, %v1530_v41 }
 0x138   : > { %v1177_v43 = vadd.f32 %v1176_v42, %v1175_v60  ;;  %v1205_v45 = vrot.slane %v1204_v44, 4 }
 0x13a   : > { %v1178_v47 = vrot.slane %v1177_v43, 2  ;;  %v1206_v61 = vadd.f32 %v1205_v45, %v1204_v44 }
 0x13c   : > { %v1179_v62 = vadd.f32 %v1178_v47, %v1177_v43  ;;  %v1207_v63 = vrot.slane %v1206_v61, 2 }
 0x13e   : > { %v1208_v2 = vadd.f32 %v1207_v63, %v1206_v61  ;;  %v1180_v1 = vrot.slane %v1179_v62, 1 }
 0x140   : > { %v1209_v3 = vrot.slane %v1208_v2, 1  ;;  %v1181_v5 = vadd.f32 %v1180_v1, %v1179_v62 }
 0x142   : > { %v1210_v4 = vadd.f32 %v1209_v3, %v1208_v2 }
 0x144   : > { %v1215_v7 = vsel %vm1214_vm2, %v1210_v4, 0.0 }
 0x145   : > { %v1216_v8 = vsel %vm1213_vm3, %v1181_v5, %v1215_v7 }
 0x146   : > { %1217 = vst.msk [vmem:[%s273_s13] sm:$0xff] %vm1160_vm1, %v1216_v8 }
 0x147 PF: > { %s15_s17 = sadd.s32 1, %s1830_s17   ;;  %s2168_s15 = smov %s1826_s16 }
 0x148   : > { %p12_p6 = scmp.ge.s32.totalorder %s15_s17, 4   ;;  %s2169_s16 = smov %s2171_s18 }
 0x14a   :  { %14 = sbr.rel (!%p12_p6) target bundleno = 2 (0x2), region = 80 }

// kernel: unet_forward.15
= control target key start
LH: loop header
LB: loop body
LE: loop exit
PB: predicated region body
PF: predicated region fallthrough
CT: control target
= control target key end

     0   :  { %10 = vsyncpa [#allocation3], 0  ;;  %s4113_s0 = inlined_call_operand.vmem [shape: bf16[1024,512], index: 0, kind: input, shape index: {}]   ;;  %s4114_s1 = inlined_call_operand.vmem [shape: bf16[512,8], index: 1, kind: input, shape index: {}]   ;;  %s4115_s2 = inlined_call_operand.vmem [shape: f32[1,8], index: 2, kind: input, shape index: {}]   ;;  %s4116_s3 = inlined_call_operand.vmem [shape: f32[1024,8], index: 3, kind: output, shape index: {0}]   ;;  %s4117_s4 = inlined_call_operand.hbm [shape: f32[16,8], index: 4, kind: output, shape index: {1}]  }
   0x1   :  { %12 = vsyncpa [#allocation3 + $0x1], 0  ;;  %s3251_s15 = smov 0   ;;  %s3253_s16 = smov 0  }
   0x2   :  { %s3255_s17 = smov 0   ;;  %s3257_s18 = smov 0  }
   0x3   :  { %s3259_s19 = smov 0   ;;  %s3261_s20 = smov 0  }
   0x4 LB: > { %s2562_s21 = sadd.s32 4294967295, %s3222_s20   ;;  %s2563_s22 = sadd.s32 4294967294, %s3222_s20   ;;  %s3222_s20 = sphi %s3261_s20, %s18_s20   ;;  %s3218_s19 = sphi %s3259_s19, %s4124_s19   ;;  %s3214_s18 = sphi %s3257_s18, %s4123_s18   ;;  %s3210_s17 = sphi %s3255_s17, %s4122_s17   ;;  %s3206_s16 = sphi %s3253_s16, %s4121_s16   ;;  %s3202_s15 = sphi %s3251_s15, %s4120_s15  }
   0x5   : > { %s30_s23 = sadd.s32 1, %s3218_s19  ;;  %s145_s24 = sadd.s32 1, %s3210_s17 }
   0x6   : > { %p32_p0 = scmp.ge.s32.totalorder %s30_s23, 2  ;;  %p155_p1 = scmp.ne.s32.totalorder %s3210_s17, %s3206_s16 }
   0x7   : > { %p156_p2 = scmp.eq.s32.totalorder %s2562_s21, 1  ;;  %p161_p3 = scmp.ne.s32.totalorder %s3206_s16, %s3202_s15 }
   0x8   : > { %s4126_s23 = smov (%p32_p0, %s30_s23), 0  ;;  %p162_p5 = scmp.eq.s32.totalorder %s2563_s22, 1 }
   0x9   : > { %p3291_p4 = por %p156_p2, %p155_p1  ;;  %s140_s26 = ssub.s32 %s3218_s19, %s4126_s23 }
   0xa   : > { %p2568_p6 = scmp.ge.s32.totalorder %s3222_s20, 1  ;;  %p143_p7 = scmp.eq.s32.totalorder %s140_s26, 0 }
   0xb   : > { %p3298_p8 = por %p162_p5, %p161_p3  ;;  %p203_p9 = scmp.lt.s32.totalorder %s3222_s20, 3 }
   0xc   : > { %s3304_s28 = scalar_select %p143_p7, %s3210_s17, %s145_s24  }
   0xd   : > { %p204_p10 = pnand %p2568_p6, %p203_p9 }
   0xe   : > { %s2570_s7 = sshll.u32 (!%p204_p10), %s3214_s18, 6  ;;  %s242_s29 = sand.u32 (!%p204_p10), 1, %s3206_s16  }
   0xf   : > { %207 = sbr.rel (%p204_p10) target bundleno = 565 (0x235), region = 32  ;;  %p246_p11 = scmp.lt.s32.totalorder (!%p204_p10), %s2570_s7, 127 }
  0x10   : > { %s2737_s5 = sshll.u32 (!%p204_p10), %s3214_s18, 7  ;;  %s2417_s18 = scalar_lea.sflag (!%p204_p10), [#allocation3], %s242_s29 }
  0x11   : > { %s4072_s12 = scalar_lea.hbm (!%p204_p10), %s4117_s4, %s2737_s5  ;;  %s3225_s14 = smov (!%p204_p10), [#allocation2]  }
  0x14   : > { %v2797_v0 = vld [vmem:[%s4114_s1 + $0x38] sm:$0xff]   ;;  %v3224_v1 = vmov 0   ;;  %v2799_v3 = vld [vmem:[%s4114_s1 + $0x30] sm:$0xff]   ;;  %v2801_v5 = vld [vmem:[%s4114_s1 + $0x28] sm:$0xff]   ;;  %s4128_s7 = smov (!%p246_p11, %s2570_s7), 127  ;;  %vm1872_vm0 = vcmask 64512  }
  0x15   : > { %1293 = vmatprep.subr.bf16.mxu0 %v3224_v1  ;;  %1582 = vmatprep.subr.bf16.mxu1 %v3224_v1  ;;  %v2798_v2 = vld [vmem:[%s4114_s1 + $0xb8] sm:$0xff]   ;;  %v2800_v4 = vld [vmem:[%s4114_s1 + $0xb0] sm:$0xff]   ;;  %v2802_v6 = vld [vmem:[%s4114_s1 + $0xa8] sm:$0xff]   ;;  %s2740_s30 = sshll.u32 %s4128_s7, 4  ;;  %s2574_s21 = sshll.u32 %s4128_s7, 3 }
  0x16   : > { %1294 = vmatpush1.bf16.msra.mxu0 %v2797_v0  ;;  %1583 = vmatpush1.bf16.msra.mxu1 %v2798_v2  ;;  %v2803_v7 = vld [vmem:[%s4114_s1 + $0x20] sm:$0xff]   ;;  %v2805_v9 = vld [vmem:[%s4114_s1 + $0x18] sm:$0xff]   ;;  %v2807_v11 = vld [vmem:[%s4114_s1 + $0x10] sm:$0xff]   ;;  %s3380_s10 = scalar_lea.vmem %s4113_s0, %s2740_s30  ;;  %s3576_s7 = scalar_lea.vmem %s4116_s3, %s2574_s21 }
  0x17   : > { %1295 = vmatprep.subr.bf16.mxu0 %v3224_v1  ;;  %1584 = vmatprep.subr.bf16.mxu1 %v3224_v1  ;;  %v2804_v8 = vld [vmem:[%s4114_s1 + $0xa0] sm:$0xff]   ;;  %v2806_v10 = vld [vmem:[%s4114_s1 + $0x98] sm:$0xff]   ;;  %v2808_v12 = vld [vmem:[%s4114_s1 + $0x90] sm:$0xff]   ;;  %s2569_s30 = sshll.u32 %s242_s29, 3  ;;  %s3150_s21 = sshll.u32 %s3225_s14, 4  ;;  %s3151_s21 = int_to_ptr.vmem [resolvable:$false] %s3150_s21 }
  0x18   : > { %v2809_v13 = vld [vmem:[%s4114_s1 + $0x8] sm:$0xff]   ;;  %v2811_v15 = vld [vmem:[%s4114_s1] sm:$0xff]   ;;  %v2813_v17 = vld [vmem:[%s4114_s1 + $0x78] sm:$0xff]   ;;  %s244_s6 = scalar_lea.vmem [#allocation2], %s2569_s30  ;;  %s3152_s22 = scalar_lea.vmem %s3151_s21, 256 }
  0x19   : > { %v2810_v14 = vld [vmem:[%s4114_s1 + $0x88] sm:$0xff]   ;;  %v2812_v16 = vld [vmem:[%s4114_s1 + $0x80] sm:$0xff]   ;;  %v2814_v18 = vld [vmem:[%s4114_s1 + $0xf8] sm:$0xff]   ;;  %s2435_s8 = sshll.u32 %s244_s6, 4  ;;  %s2436_s8 = int_to_ptr.vmem [resolvable:$true] %s2435_s8 }
  0x1a   : > { %1296 = vmatpush1.bf16.msra.mxu0 %v2799_v3  ;;  %1585 = vmatpush1.bf16.msra.mxu1 %v2800_v4  ;;  %v2831_v19 = vld [vmem:[%s3380_s10 + $0x4] ss:$16 sps:$4 sm:$0xff]   ;;  %v2834_v21 = vld [vmem:[%s3380_s10 + $0xc] ss:$16 sps:$4 sm:$0xff]   ;;  %v2829_v35 = vld [vmem:[%s3380_s10] ss:$16 sps:$4 sm:$0xff]   ;;  %p3153_p1 = scmp.lt.s32.totalorder %s2436_s8, %s3151_s21 }
  0x1b   : > { %1297 = vmatprep.subr.bf16.mxu0 %v3224_v1  ;;  %1586 = vmatprep.subr.bf16.mxu1 %v3224_v1  ;;  %v2815_v20 = vld [vmem:[%s4114_s1 + $0x70] sm:$0xff]   ;;  %v2817_v23 = vld [vmem:[%s4114_s1 + $0x68] sm:$0xff]   ;;  %v2819_v25 = vld [vmem:[%s4114_s1 + $0x60] sm:$0xff]   ;;  %s3146_s13 = scalar_lea.vmem %s2436_s8, 128 }
  0x1c   : > { %v2816_v22 = vld [vmem:[%s4114_s1 + $0xf0] sm:$0xff]   ;;  %1325 = vmatprep.mubr.bf16.mxu0 %v2831_v19  ;;  %1614 = vmatprep.mubr.bf16.mxu1 %v2834_v21  ;;  %v2818_v24 = vld [vmem:[%s4114_s1 + $0xe8] sm:$0xff]   ;;  %v2820_v26 = vld [vmem:[%s4114_s1 + $0xe0] sm:$0xff]   ;;  %p3147_p12 = scmp.ne.s32.totalorder %s2436_s8, %s3146_s13  ;;  %p3154_p2 = scmp.lt.s32.totalorder %s3152_s22, %s3146_s13 }
  0x1d   : > { %v2821_v27 = vld [vmem:[%s4114_s1 + $0x58] sm:$0xff]   ;;  %v2823_v29 = vld [vmem:[%s4114_s1 + $0x50] sm:$0xff]   ;;  %v2825_v31 = vld [vmem:[%s4114_s1 + $0x48] sm:$0xff]  }
  0x1e   : > { %1298 = vmatpush1.bf16.msra.mxu0 %v2801_v5  ;;  %1587 = vmatpush1.bf16.msra.mxu1 %v2802_v6  ;;  %v2822_v28 = vld [vmem:[%s4114_s1 + $0xd8] sm:$0xff]   ;;  %v2824_v30 = vld [vmem:[%s4114_s1 + $0xd0] sm:$0xff]   ;;  %v2826_v32 = vld [vmem:[%s4114_s1 + $0xc8] sm:$0xff]   ;;  %p3148_p13 = pnand %p3147_p12, %p3291_p4  ;;  %p3155_p3 = por %p3154_p2, %p3153_p1 }
  0x1f   : > { %1299 = vmatprep.subr.bf16.mxu0 %v3224_v1  ;;  %1588 = vmatprep.subr.bf16.mxu1 %v3224_v1  ;;  %v2827_v33 = vld [vmem:[%s4114_s1 + $0x40] sm:$0xff]   ;;  %v2832_v36 = vld [vmem:[%s3380_s10 + $0x8] ss:$16 sps:$4 sm:$0xff]   ;;  %v2837_v38 = vld [vmem:[%s3380_s10 + $0x2c] ss:$16 sps:$4 sm:$0xff]  }
  0x20   : > { %v2828_v34 = vld [vmem:[%s4114_s1 + $0xc0] sm:$0xff]   ;;  %v2840_v40 = vld [vmem:[%s3380_s10 + $0x28] ss:$16 sps:$4 sm:$0xff]   ;;  %v2843_v42 = vld [vmem:[%s3380_s10 + $0x4c] ss:$16 sps:$4 sm:$0xff]   ;;  %p3149_p0 = pneg %p3148_p13 }
  0x21   : > { %v2835_v37 = vld [vmem:[%s3380_s10 + $0x24] ss:$16 sps:$4 sm:$0xff]   ;;  %v2839_v39 = vld [vmem:[%s3380_s10 + $0x20] ss:$16 sps:$4 sm:$0xff]   ;;  %v2846_v44 = vld [vmem:[%s3380_s10 + $0x48] ss:$16 sps:$4 sm:$0xff]  }
  0x22   : > { %1300 = vmatpush1.bf16.msra.mxu0 %v2803_v7  ;;  %1589 = vmatpush1.bf16.msra.mxu1 %v2804_v8  ;;  %v2841_v41 = vld [vmem:[%s3380_s10 + $0x44] ss:$16 sps:$4 sm:$0xff]   ;;  %v2845_v43 = vld [vmem:[%s3380_s10 + $0x40] ss:$16 sps:$4 sm:$0xff]   ;;  %v2849_v46 = vld [vmem:[%s3380_s10 + $0x6c] ss:$16 sps:$4 sm:$0xff]   ;;  %p3156_p5 = pnand %p3155_p3, %p3149_p0 }
  0x23   : > { %1301 = vmatprep.subr.bf16.mxu0 %v3224_v1  ;;  %1590 = vmatprep.subr.bf16.mxu1 %v3224_v1  ;;  %v2847_v45 = vld [vmem:[%s3380_s10 + $0x64] ss:$16 sps:$4 sm:$0xff]   ;;  %v2851_v47 = vld [vmem:[%s3380_s10 + $0x60] ss:$16 sps:$4 sm:$0xff]   ;;  %v2852_v48 = vld [vmem:[%s3380_s10 + $0x68] ss:$16 sps:$4 sm:$0xff]  }
  0x24   : > { %v2853_v49 = vld [vmem:[%s3380_s10 + $0x84] ss:$16 sps:$4 sm:$0xff]   ;;  %v2855_v50 = vld [vmem:[%s3380_s10 + $0x8c] ss:$16 sps:$4 sm:$0xff]   ;;  %v2857_v51 = vld [vmem:[%s3380_s10 + $0x80] ss:$16 sps:$4 sm:$0xff]  }
  0x25   : > { %v2858_v52 = vld [vmem:[%s3380_s10 + $0x88] ss:$16 sps:$4 sm:$0xff]   ;;  %v2859_v53 = vld [vmem:[%s3380_s10 + $0xa4] ss:$16 sps:$4 sm:$0xff]   ;;  %v2861_v54 = vld [vmem:[%s3380_s10 + $0xac] ss:$16 sps:$4 sm:$0xff]  }
  0x26   : > { %1302 = vmatpush1.bf16.msra.mxu0 %v2805_v9  ;;  %1591 = vmatpush1.bf16.msra.mxu1 %v2806_v10  ;;  %v2863_v55 = vld [vmem:[%s3380_s10 + $0xa0] ss:$16 sps:$4 sm:$0xff]   ;;  %v2864_v56 = vld [vmem:[%s3380_s10 + $0xa8] ss:$16 sps:$4 sm:$0xff]   ;;  %v2865_v57 = vld [vmem:[%s3380_s10 + $0xc4] ss:$16 sps:$4 sm:$0xff]  }
  0x27   : > { %1303 = vmatprep.subr.bf16.mxu0 %v3224_v1  ;;  %1592 = vmatprep.subr.bf16.mxu1 %v3224_v1  ;;  %v2867_v58 = vld [vmem:[%s3380_s10 + $0xcc] ss:$16 sps:$4 sm:$0xff]   ;;  %v2869_v59 = vld [vmem:[%s3380_s10 + $0xc0] ss:$16 sps:$4 sm:$0xff]   ;;  %v2870_v60 = vld [vmem:[%s3380_s10 + $0xc8] ss:$16 sps:$4 sm:$0xff]  }
  0x28   : > { %v2871_v61 = vld [vmem:[%s3380_s10 + $0xe4] ss:$16 sps:$4 sm:$0xff]   ;;  %v2873_v62 = vld [vmem:[%s3380_s10 + $0xec] ss:$16 sps:$4 sm:$0xff]   ;;  %v2875_v63 = vld [vmem:[%s3380_s10 + $0xe0] ss:$16 sps:$4 sm:$0xff]  }
  0x29   : > { %v2876_v0 = vld [vmem:[%s3380_s10 + $0xe8] ss:$16 sps:$4 sm:$0xff]   ;;  %v2879_v2 = vld [vmem:[%s3380_s10 + $0x10c] ss:$16 sps:$4 sm:$0xff]   ;;  %v2881_v3 = vld [vmem:[%s3380_s10 + $0x100] ss:$16 sps:$4 sm:$0xff]  }
  0x2a   : > { %1304 = vmatpush1.bf16.msra.mxu0 %v2807_v11  ;;  %1593 = vmatpush1.bf16.msra.mxu1 %v2808_v12  ;;  %v2882_v4 = vld [vmem:[%s3380_s10 + $0x108] ss:$16 sps:$4 sm:$0xff]   ;;  %v2883_v5 = vld [vmem:[%s3380_s10 + $0x124] ss:$16 sps:$4 sm:$0xff]   ;;  %v2885_v6 = vld [vmem:[%s3380_s10 + $0x12c] ss:$16 sps:$4 sm:$0xff]  }
  0x2b   : > { %1305 = vmatprep.subr.bf16.mxu0 %v3224_v1  ;;  %1594 = vmatprep.subr.bf16.mxu1 %v3224_v1  ;;  %v2887_v7 = vld [vmem:[%s3380_s10 + $0x120] ss:$16 sps:$4 sm:$0xff]   ;;  %v2888_v8 = vld [vmem:[%s3380_s10 + $0x128] ss:$16 sps:$4 sm:$0xff]   ;;  %v2889_v9 = vld [vmem:[%s3380_s10 + $0x144] ss:$16 sps:$4 sm:$0xff]  }
  0x2c   : > { %v2891_v10 = vld [vmem:[%s3380_s10 + $0x14c] ss:$16 sps:$4 sm:$0xff]   ;;  %v2893_v11 = vld [vmem:[%s3380_s10 + $0x140] ss:$16 sps:$4 sm:$0xff]   ;;  %v2894_v12 = vld [vmem:[%s3380_s10 + $0x148] ss:$16 sps:$4 sm:$0xff]  }
  0x2d   : > { %v2905_v19 = vld [vmem:[%s3380_s10 + $0x180] ss:$16 sps:$4 sm:$0xff]   ;;  %v2907_v21 = vld [vmem:[%s3380_s10 + $0x1a4] ss:$16 sps:$4 sm:$0xff]  }
  0x2e   : > { %1306 = vmatpush1.bf16.msra.mxu0 %v2809_v13  ;;  %1595 = vmatpush1.bf16.msra.mxu1 %v2810_v14  ;;  %v2895_v13 = vld [vmem:[%s3380_s10 + $0x164] ss:$16 sps:$4 sm:$0xff]   ;;  %v2897_v14 = vld [vmem:[%s3380_s10 + $0x16c] ss:$16 sps:$4 sm:$0xff]  }
  0x2f   : > { %1307 = vmatprep.subr.bf16.mxu0 %v3224_v1  ;;  %1596 = vmatprep.subr.bf16.mxu1 %v3224_v1 }
  0x32   : > { %1308 = vmatpush1.bf16.msra.mxu0 %v2811_v15  ;;  %1597 = vmatpush1.bf16.msra.mxu1 %v2812_v16  ;;  %v2899_v15 = vld [vmem:[%s3380_s10 + $0x160] ss:$16 sps:$4 sm:$0xff]   ;;  %v2900_v16 = vld [vmem:[%s3380_s10 + $0x168] ss:$16 sps:$4 sm:$0xff]  }
  0x33   : > { %1309 = vmatprep.subr.bf16.mxu0 %v3224_v1  ;;  %1598 = vmatprep.subr.bf16.mxu1 %v3224_v1 }
  0x36   : > { %1310 = vmatpush2.bf16.msra.mxu0 %v2813_v17  ;;  %1599 = vmatpush2.bf16.msra.mxu1 %v2814_v18  ;;  %v2901_v17 = vld [vmem:[%s3380_s10 + $0x184] ss:$16 sps:$4 sm:$0xff]   ;;  %v2903_v18 = vld [vmem:[%s3380_s10 + $0x18c] ss:$16 sps:$4 sm:$0xff]  }
  0x37   : > { %1311 = vmatprep.subr.bf16.mxu0 %v3224_v1  ;;  %1600 = vmatprep.subr.bf16.mxu1 %v3224_v1 }
  0x3a   : > { %1312 = vmatpush2.bf16.msra.mxu0 %v2815_v20  ;;  %1601 = vmatpush2.bf16.msra.mxu1 %v2816_v22  ;;  %v2906_v20 = vld [vmem:[%s3380_s10 + $0x188] ss:$16 sps:$4 sm:$0xff]   ;;  %v2909_v22 = vld [vmem:[%s3380_s10 + $0x1ac] ss:$16 sps:$4 sm:$0xff]  }
  0x3b   : > { %1313 = vmatprep.subr.bf16.mxu0 %v3224_v1  ;;  %1602 = vmatprep.subr.bf16.mxu1 %v3224_v1 }
  0x3e   : > { %1314 = vmatpush2.bf16.msra.mxu0 %v2817_v23  ;;  %1603 = vmatpush2.bf16.msra.mxu1 %v2818_v24  ;;  %v2911_v23 = vld [vmem:[%s3380_s10 + $0x1a0] ss:$16 sps:$4 sm:$0xff]   ;;  %v2912_v24 = vld [vmem:[%s3380_s10 + $0x1a8] ss:$16 sps:$4 sm:$0xff]  }
  0x3f   : > { %1315 = vmatprep.subr.bf16.mxu0 %v3224_v1  ;;  %1604 = vmatprep.subr.bf16.mxu1 %v3224_v1 }
  0x42   : > { %1316 = vmatpush2.bf16.msra.mxu0 %v2819_v25  ;;  %1605 = vmatpush2.bf16.msra.mxu1 %v2820_v26  ;;  %v2913_v25 = vld [vmem:[%s3380_s10 + $0x1c4] ss:$16 sps:$4 sm:$0xff]   ;;  %v2915_v26 = vld [vmem:[%s3380_s10 + $0x1cc] ss:$16 sps:$4 sm:$0xff]  }
  0x43   : > { %1317 = vmatprep.subr.bf16.mxu0 %v3224_v1  ;;  %1606 = vmatprep.subr.bf16.mxu1 %v3224_v1 }
  0x46   : > { %1318 = vmatpush2.bf16.msra.mxu0 %v2821_v27  ;;  %1607 = vmatpush2.bf16.msra.mxu1 %v2822_v28  ;;  %v2917_v27 = vld [vmem:[%s3380_s10 + $0x1c0] ss:$16 sps:$4 sm:$0xff]   ;;  %v2918_v28 = vld [vmem:[%s3380_s10 + $0x1c8] ss:$16 sps:$4 sm:$0xff]  }
  0x47   : > { %1319 = vmatprep.subr.bf16.mxu0 %v3224_v1  ;;  %1608 = vmatprep.subr.bf16.mxu1 %v3224_v1 }
  0x4a   : > { %1320 = vmatpush2.bf16.msra.mxu0 %v2823_v29  ;;  %1609 = vmatpush2.bf16.msra.mxu1 %v2824_v30  ;;  %v2919_v29 = vld [vmem:[%s3380_s10 + $0x1e4] ss:$16 sps:$4 sm:$0xff]   ;;  %v2921_v30 = vld [vmem:[%s3380_s10 + $0x1ec] ss:$16 sps:$4 sm:$0xff]  }
  0x4b   : > { %1321 = vmatprep.subr.bf16.mxu0 %v3224_v1  ;;  %1610 = vmatprep.subr.bf16.mxu1 %v3224_v1 }
  0x4e   : > { %1322 = vmatpush2.bf16.msra.mxu0 %v2825_v31  ;;  %1611 = vmatpush2.bf16.msra.mxu1 %v2826_v32  ;;  %v2923_v31 = vld [vmem:[%s3380_s10 + $0x1e0] ss:$16 sps:$4 sm:$0xff]   ;;  %v2924_v32 = vld [vmem:[%s3380_s10 + $0x1e8] ss:$16 sps:$4 sm:$0xff]  }
  0x4f   : > { %1323 = vmatprep.subr.bf16.mxu0 %v3224_v1  ;;  %1612 = vmatprep.subr.bf16.mxu1 %v3224_v1  ;;  %v2877_v1 = vld [vmem:[%s3380_s10 + $0x104] ss:$16 sps:$4 sm:$0xff]  }
  0x52   : > { %1324 = vmatpush2.bf16.msra.mxu0 %v2827_v33  ;;  %1613 = vmatpush2.bf16.msra.mxu1 %v2828_v34  ;;  %v2925_v33 = vld [vmem:[%s3380_s10 + $0x204] ss:$16 sps:$4 sm:$0xff]   ;;  %v2927_v34 = vld [vmem:[%s3380_s10 + $0x20c] ss:$16 sps:$4 sm:$0xff]  }
  0x55   : > { %1326 = vmatmul.mubr.bf16.vlgmr.msra.gmra.mxu0 %v2829_v35  ;;  %1615 = vmatmul.mubr.bf16.vlgmr.msra.gmra.mxu1 %v2832_v36  ;;  %v2929_v35 = vld [vmem:[%s3380_s10 + $0x200] ss:$16 sps:$4 sm:$0xff]   ;;  %v2930_v36 = vld [vmem:[%s3380_s10 + $0x208] ss:$16 sps:$4 sm:$0xff]  }
  0x56   : > { %1333 = vmatprep.mubr.bf16.mxu0 %v2835_v37  ;;  %1622 = vmatprep.mubr.bf16.mxu1 %v2837_v38  ;;  %v2931_v37 = vld [vmem:[%s3380_s10 + $0x224] ss:$16 sps:$4 sm:$0xff]   ;;  %v2933_v38 = vld [vmem:[%s3380_s10 + $0x22c] ss:$16 sps:$4 sm:$0xff]  }
  0x5d   : > { %1334 = vmatmul.mubr.bf16.gmra.mxu0 %v2839_v39  ;;  %1623 = vmatmul.mubr.bf16.gmra.mxu1 %v2840_v40  ;;  %v2935_v39 = vld [vmem:[%s3380_s10 + $0x220] ss:$16 sps:$4 sm:$0xff]   ;;  %v2936_v40 = vld [vmem:[%s3380_s10 + $0x228] ss:$16 sps:$4 sm:$0xff]  }
  0x5e   : > { %1341 = vmatprep.mubr.bf16.mxu0 %v2841_v41  ;;  %1630 = vmatprep.mubr.bf16.mxu1 %v2843_v42  ;;  %v2937_v41 = vld [vmem:[%s3380_s10 + $0x244] ss:$16 sps:$4 sm:$0xff]   ;;  %v2939_v42 = vld [vmem:[%s3380_s10 + $0x24c] ss:$16 sps:$4 sm:$0xff]  }
  0x65   : > { %1342 = vmatmul.mubr.bf16.gmra.mxu0 %v2845_v43  ;;  %1631 = vmatmul.mubr.bf16.gmra.mxu1 %v2846_v44  ;;  %v2941_v43 = vld [vmem:[%s3380_s10 + $0x240] ss:$16 sps:$4 sm:$0xff]   ;;  %v2942_v44 = vld [vmem:[%s3380_s10 + $0x248] ss:$16 sps:$4 sm:$0xff]  }
  0x66   : > { %1349 = vmatprep.mubr.bf16.mxu0 %v2847_v45  ;;  %1638 = vmatprep.mubr.bf16.mxu1 %v2849_v46  ;;  %v2943_v45 = vld [vmem:[%s3380_s10 + $0x264] ss:$16 sps:$4 sm:$0xff]   ;;  %v2945_v46 = vld [vmem:[%s3380_s10 + $0x26c] ss:$16 sps:$4 sm:$0xff]  }
  0x6d   : > { %1350 = vmatmul.mubr.bf16.gmra.mxu0 %v2851_v47  ;;  %1639 = vmatmul.mubr.bf16.gmra.mxu1 %v2852_v48  ;;  %v2947_v47 = vld [vmem:[%s3380_s10 + $0x260] ss:$16 sps:$4 sm:$0xff]   ;;  %v2948_v48 = vld [vmem:[%s3380_s10 + $0x268] ss:$16 sps:$4 sm:$0xff]  }
  0x6e   : > { %1357 = vmatprep.mubr.bf16.mxu0 %v2853_v49  ;;  %1646 = vmatprep.mubr.bf16.mxu1 %v2855_v50  ;;  %v2949_v49 = vld [vmem:[%s3380_s10 + $0x284] ss:$16 sps:$4 sm:$0xff]   ;;  %v2951_v50 = vld [vmem:[%s3380_s10 + $0x28c] ss:$16 sps:$4 sm:$0xff]  }
  0x75   : > { %1358 = vmatmul.mubr.bf16.gmra.mxu0 %v2857_v51  ;;  %1647 = vmatmul.mubr.bf16.gmra.mxu1 %v2858_v52  ;;  %v2953_v51 = vld [vmem:[%s3380_s10 + $0x280] ss:$16 sps:$4 sm:$0xff]   ;;  %v2954_v52 = vld [vmem:[%s3380_s10 + $0x288] ss:$16 sps:$4 sm:$0xff]  }
  0x76   : > { %1365 = vmatprep.mubr.bf16.mxu0 %v2859_v53  ;;  %1654 = vmatprep.mubr.bf16.mxu1 %v2861_v54  ;;  %v2955_v53 = vld [vmem:[%s3380_s10 + $0x2a4] ss:$16 sps:$4 sm:$0xff]   ;;  %v2957_v54 = vld [vmem:[%s3380_s10 + $0x2ac] ss:$16 sps:$4 sm:$0xff]  }
  0x7d   : > { %1366 = vmatmul.mubr.bf16.gmra.mxu0 %v2863_v55  ;;  %1655 = vmatmul.mubr.bf16.gmra.mxu1 %v2864_v56  ;;  %v2959_v55 = vld [vmem:[%s3380_s10 + $0x2a0] ss:$16 sps:$4 sm:$0xff]   ;;  %v2960_v56 = vld [vmem:[%s3380_s10 + $0x2a8] ss:$16 sps:$4 sm:$0xff]  }
  0x7e   : > { %1373 = vmatprep.mubr.bf16.mxu0 %v2865_v57  ;;  %1662 = vmatprep.mubr.bf16.mxu1 %v2867_v58  ;;  %v2961_v57 = vld [vmem:[%s3380_s10 + $0x2c4] ss:$16 sps:$4 sm:$0xff]   ;;  %v2963_v58 = vld [vmem:[%s3380_s10 + $0x2cc] ss:$16 sps:$4 sm:$0xff]  }
  0x85   : > { %1374 = vmatmul.mubr.bf16.gmra.mxu0 %v2869_v59  ;;  %1663 = vmatmul.mubr.bf16.gmra.mxu1 %v2870_v60  ;;  %v2965_v59 = vld [vmem:[%s3380_s10 + $0x2c0] ss:$16 sps:$4 sm:$0xff]   ;;  %v2966_v60 = vld [vmem:[%s3380_s10 + $0x2c8] ss:$16 sps:$4 sm:$0xff]  }
  0x86   : > { %1381 = vmatprep.mubr.bf16.mxu0 %v2871_v61  ;;  %1670 = vmatprep.mubr.bf16.mxu1 %v2873_v62  ;;  %v2967_v61 = vld [vmem:[%s3380_s10 + $0x2e4] ss:$16 sps:$4 sm:$0xff]   ;;  %v2969_v62 = vld [vmem:[%s3380_s10 + $0x2ec] ss:$16 sps:$4 sm:$0xff]  }
  0x8d   : > { %1382 = vmatmul.mubr.bf16.gmra.mxu0 %v2875_v63  ;;  %1671 = vmatmul.mubr.bf16.gmra.mxu1 %v2876_v0  ;;  %v2971_v63 = vld [vmem:[%s3380_s10 + $0x2e0] ss:$16 sps:$4 sm:$0xff]   ;;  %v2972_v0 = vld [vmem:[%s3380_s10 + $0x2e8] ss:$16 sps:$4 sm:$0xff]  }
  0x8e   : > { %1389 = vmatprep.mubr.bf16.mxu0 %v2877_v1  ;;  %1678 = vmatprep.mubr.bf16.mxu1 %v2879_v2  ;;  %v2973_v1 = vld [vmem:[%s3380_s10 + $0x304] ss:$16 sps:$4 sm:$0xff]   ;;  %v2975_v2 = vld [vmem:[%s3380_s10 + $0x30c] ss:$16 sps:$4 sm:$0xff]  }
  0x95   : > { %1390 = vmatmul.mubr.bf16.gmra.mxu0 %v2881_v3  ;;  %1679 = vmatmul.mubr.bf16.gmra.mxu1 %v2882_v4  ;;  %v366_v3 = vld [vmem:[%s3380_s10 + $0x308] sm:$0xff]  ;;  %v368_v4 = vld [vmem:[%s3380_s10 + $0x318] sm:$0xff] }
  0x96   : > { %1397 = vmatprep.mubr.bf16.mxu0 %v2883_v5  ;;  %1686 = vmatprep.mubr.bf16.mxu1 %v2885_v6  ;;  %v2977_v5 = vld [vmem:[%s3380_s10 + $0x300] ss:$16 sps:$4 sm:$0xff]   ;;  %v2673_v6 = vcombine.low %v366_v3, %v368_v4  ;;  %v378_v3 = vld [vmem:[%s3380_s10 + $0x368] sm:$0xff]  ;;  %v380_v4 = vld [vmem:[%s3380_s10 + $0x378] sm:$0xff] }
  0x9d   : > { %1398 = vmatmul.mubr.bf16.gmra.mxu0 %v2887_v7  ;;  %1687 = vmatmul.mubr.bf16.gmra.mxu1 %v2888_v8  ;;  %v2978_v7 = vld [vmem:[%s3380_s10 + $0x324] ss:$16 sps:$4 sm:$0xff]   ;;  %v2980_v8 = vld [vmem:[%s3380_s10 + $0x32c] ss:$16 sps:$4 sm:$0xff]  }
  0x9e   : > { %1405 = vmatprep.mubr.bf16.mxu0 %v2889_v9  ;;  %1694 = vmatprep.mubr.bf16.mxu1 %v2891_v10 }
  0xa5   : > { %1406 = vmatmul.mubr.bf16.gmra.mxu0 %v2893_v11  ;;  %1695 = vmatmul.mubr.bf16.gmra.mxu1 %v2894_v12  ;;  %v3549_v11 = vld [vmem:[%s4115_s2] ss:$0 sm:$0xff] }
  0xa6   : > { %1413 = vmatprep.mubr.bf16.mxu0 %v2895_v13  ;;  %1702 = vmatprep.mubr.bf16.mxu1 %v2897_v14  ;;  %v370_v14 = vld [vmem:[%s3380_s10 + $0x328] sm:$0xff] }
  0xad   : > { %1414 = vmatmul.mubr.bf16.gmra.mxu0 %v2899_v15  ;;  %1703 = vmatmul.mubr.bf16.gmra.mxu1 %v2900_v16  ;;  %v372_v15 = vld [vmem:[%s3380_s10 + $0x338] sm:$0xff] }
  0xae   : > { %1421 = vmatprep.mubr.bf16.mxu0 %v2901_v17  ;;  %1710 = vmatprep.mubr.bf16.mxu1 %v2903_v18 }
  0xb5   : > { %1422 = vmatmul.mubr.bf16.gmra.mxu0 %v2905_v19  ;;  %1711 = vmatmul.mubr.bf16.gmra.mxu1 %v2906_v20  ;;  %v2982_v19 = vld [vmem:[%s3380_s10 + $0x320] ss:$16 sps:$4 sm:$0xff]  }
  0xb6   : > { %1429 = vmatprep.mubr.bf16.mxu0 %v2907_v21  ;;  %1718 = vmatprep.mubr.bf16.mxu1 %v2909_v22  ;;  %v2677_v21 = vcombine.low %v370_v14, %v372_v15  ;;  %v2983_v22 = vld [vmem:[%s3380_s10 + $0x344] ss:$16 sps:$4 sm:$0xff]  }
  0xbd   : > { %1430 = vmatmul.mubr.bf16.gmra.mxu0 %v2911_v23  ;;  %1719 = vmatmul.mubr.bf16.gmra.mxu1 %v2912_v24 }
  0xbe   : > { %1437 = vmatprep.mubr.bf16.mxu0 %v2913_v25  ;;  %1726 = vmatprep.mubr.bf16.mxu1 %v2915_v26  ;;  %v2985_v26 = vld [vmem:[%s3380_s10 + $0x34c] ss:$16 sps:$4 sm:$0xff]  }
  0xc5   : > { %1438 = vmatmul.mubr.bf16.gmra.mxu0 %v2917_v27  ;;  %1727 = vmatmul.mubr.bf16.gmra.mxu1 %v2918_v28 }
  0xc6   : > { %1445 = vmatprep.mubr.bf16.mxu0 %v2919_v29  ;;  %1734 = vmatprep.mubr.bf16.mxu1 %v2921_v30 }
  0xcd   : > { %1446 = vmatmul.mubr.bf16.gmra.mxu0 %v2923_v31  ;;  %1735 = vmatmul.mubr.bf16.gmra.mxu1 %v2924_v32 }
  0xce   : > { %1453 = vmatprep.mubr.bf16.mxu0 %v2925_v33  ;;  %1742 = vmatprep.mubr.bf16.mxu1 %v2927_v34 }
  0xd5   : > { %1454 = vmatmul.mubr.bf16.gmra.mxu0 %v2929_v35  ;;  %1743 = vmatmul.mubr.bf16.gmra.mxu1 %v2930_v36 }
  0xd6   : > { %1461 = vmatprep.mubr.bf16.mxu0 %v2931_v37  ;;  %1750 = vmatprep.mubr.bf16.mxu1 %v2933_v38 }
  0xdd   : > { %1462 = vmatmul.mubr.bf16.gmra.mxu0 %v2935_v39  ;;  %1751 = vmatmul.mubr.bf16.gmra.mxu1 %v2936_v40  ;;  %v374_v39 = vld [vmem:[%s3380_s10 + $0x348] sm:$0xff]  ;;  %v376_v40 = vld [vmem:[%s3380_s10 + $0x358] sm:$0xff] }
  0xde   : > { %1469 = vmatprep.mubr.bf16.mxu0 %v2937_v41  ;;  %1758 = vmatprep.mubr.bf16.mxu1 %v2939_v42 }
  0xe5   : > { %1470 = vmatmul.mubr.bf16.gmra.mxu0 %v2941_v43  ;;  %1759 = vmatmul.mubr.bf16.gmra.mxu1 %v2942_v44 }
  0xe6   : > { %1477 = vmatprep.mubr.bf16.mxu0 %v2943_v45  ;;  %1766 = vmatprep.mubr.bf16.mxu1 %v2945_v46 }
  0xed   : > { %1478 = vmatmul.mubr.bf16.gmra.mxu0 %v2947_v47  ;;  %1767 = vmatmul.mubr.bf16.gmra.mxu1 %v2948_v48  ;;  %v2987_v47 = vld [vmem:[%s3380_s10 + $0x340] ss:$16 sps:$4 sm:$0xff]  }
  0xee   : > { %1485 = vmatprep.mubr.bf16.mxu0 %v2949_v49  ;;  %1774 = vmatprep.mubr.bf16.mxu1 %v2951_v50  ;;  %v2681_v50 = vcombine.low %v374_v39, %v376_v40 }
  0xf5   : > { %1486 = vmatmul.mubr.bf16.gmra.mxu0 %v2953_v51  ;;  %1775 = vmatmul.mubr.bf16.gmra.mxu1 %v2954_v52  ;;  %v2988_v51 = vld [vmem:[%s3380_s10 + $0x364] ss:$16 sps:$4 sm:$0xff]  }
  0xf6   : > { %1493 = vmatprep.mubr.bf16.mxu0 %v2955_v53  ;;  %1782 = vmatprep.mubr.bf16.mxu1 %v2957_v54 }
  0xfd   : > { %1494 = vmatmul.mubr.bf16.gmra.mxu0 %v2959_v55  ;;  %1783 = vmatmul.mubr.bf16.gmra.mxu1 %v2960_v56  ;;  %v2990_v55 = vld [vmem:[%s3380_s10 + $0x36c] ss:$16 sps:$4 sm:$0xff]  }
  0xfe   : > { %1501 = vmatprep.mubr.bf16.mxu0 %v2961_v57  ;;  %1790 = vmatprep.mubr.bf16.mxu1 %v2963_v58 }
 0x105   : > { %1502 = vmatmul.mubr.bf16.gmra.mxu0 %v2965_v59  ;;  %1791 = vmatmul.mubr.bf16.gmra.mxu1 %v2966_v60 }
 0x106   : > { %1509 = vmatprep.mubr.bf16.mxu0 %v2967_v61  ;;  %1798 = vmatprep.mubr.bf16.mxu1 %v2969_v62 }
 0x10d   : > { %1510 = vmatmul.mubr.bf16.gmra.mxu0 %v2971_v63  ;;  %1799 = vmatmul.mubr.bf16.gmra.mxu1 %v2972_v0 }
 0x10e   : > { %1517 = vmatprep.mubr.bf16.mxu0 %v2973_v1  ;;  %1806 = vmatprep.mubr.bf16.mxu1 %v2975_v2 }
 0x115   : > { %v1327_v9 = vpop.f32.mrf.mxu0  ;;  %1518 = vmatmul.mubr.bf16.gmra.mxu0 %v2977_v5  ;;  %v1616_v10 = vpop.f32.mrf.mxu1  ;;  %1807 = vmatmul.mubr.bf16.gmra.mxu1 %v2673_v6 }
 0x116   : > { %1525 = vmatprep.mubr.bf16.mxu0 %v2978_v7  ;;  %v1617_v12 = vadd.f32 %v1616_v10, %v1327_v9  ;;  %1814 = vmatprep.mubr.bf16.mxu1 %v2980_v8 }
 0x117   : > { %v1329_v13 = vpop.f32.mrf.mxu0  ;;  %v1618_v16 = vpop.f32.mrf.mxu1 }
 0x118   : > { %v2216_v17 = vadd.f32 %v3549_v11, %v1617_v12  ;;  %v2006_v23 = vmul.f32 %v1617_v12, %v1617_v12  ;;  %v1873_v28 = vsel %vm1872_vm0, %v1617_v12, 0.0  ;;  %v2992_v13 = vld [vmem:[%s3380_s10 + $0x360] ss:$16 sps:$4 sm:$0xff]   ;;  %v2685_v16 = vcombine.low %v378_v3, %v380_v4 }
 0x119   : > { %v1330_v18 = vpop.f32.mrf.mxu0  ;;  %v1619_v20 = vpop.f32.mrf.mxu1 }
 0x11a   : > { %3017 = vtanh.f32 %v2216_v17  ;;  %v1620_v24 = vadd.f32 %v1619_v20, %v1330_v18  ;;  %v2070_v35 = vsel %vm1872_vm0, %v2006_v23, 0.0  ;;  %v2995_v17 = vld [vmem:[%s3380_s10 + $0x384] ss:$16 sps:$4 sm:$0xff]  }
 0x11b   : > { %v1332_v25 = vpop.f32.mrf.mxu0  ;;  %v1621_v27 = vpop.f32.mrf.mxu1 }
 0x11c   : > { %v1874_v29 = vsel %vm1872_vm0, %v1620_v24, 0.0  ;;  %v2007_v30 = vmul.f32 %v1620_v24, %v1620_v24  ;;  %v2217_v31 = vadd.f32 %v3549_v11, %v1620_v24 }
 0x11d   : > { %v1335_v32 = vpop.f32.mrf.mxu0  ;;  %1526 = vmatmul.mubr.bf16.gmra.mxu0 %v2982_v19  ;;  %v1875_v33 = vadd.f32 %v1874_v29, %v1873_v28  ;;  %v1624_v34 = vpop.f32.mrf.mxu1  ;;  %1815 = vmatmul.mubr.bf16.gmra.mxu1 %v2677_v21  ;;  %v2998_v21 = vld [vmem:[%s3380_s10 + $0x38c] ss:$16 sps:$4 sm:$0xff]  }
 0x11e   : > { %1533 = vmatprep.mubr.bf16.mxu0 %v2983_v22  ;;  %v2071_v36 = vsel %vm1872_vm0, %v2007_v30, 0.0  ;;  %3019 = vtanh.f32 %v2217_v31  ;;  %v1625_v37 = vadd.f32 %v1624_v34, %v1335_v32  ;;  %1822 = vmatprep.mubr.bf16.mxu1 %v2985_v26 }
 0x11f   : > { %v1337_v38 = vpop.f32.mrf.mxu0  ;;  %v2072_v41 = vadd.f32 %v2071_v36, %v2070_v35  ;;  %v1626_v42 = vpop.f32.mrf.mxu1 }
 0x120   : > { %v1876_v43 = vsel %vm1872_vm0, %v1625_v37, 0.0  ;;  %v2008_v44 = vmul.f32 %v1625_v37, %v1625_v37  ;;  %v2218_v45 = vadd.f32 %v3549_v11, %v1625_v37 }
 0x121   : > { %v1338_v46 = vpop.f32.mrf.mxu0  ;;  %v1877_v48 = vadd.f32 %v1876_v43, %v1875_v33  ;;  %v1627_v49 = vpop.f32.mrf.mxu1 }
 0x122   : > { %v2073_v52 = vsel %vm1872_vm0, %v2008_v44, 0.0  ;;  %3021 = vtanh.f32 %v2218_v45  ;;  %v1628_v53 = vadd.f32 %v1627_v49, %v1338_v46  ;;  %v2996_v44 = vld [vmem:[%s3380_s10 + $0x388] ss:$16 sps:$4 sm:$0xff]   ;;  %v3001_v45 = vld [vmem:[%s3380_s10 + $0x3a4] ss:$16 sps:$4 sm:$0xff]  }
 0x123   : > { %v1340_v54 = vpop.f32.mrf.mxu0  ;;  %v2074_v56 = vadd.f32 %v2073_v52, %v2072_v41  ;;  %v1629_v57 = vpop.f32.mrf.mxu1  ;;  %v2993_v41 = vld [vmem:[%s3380_s10 + $0x380] ss:$16 sps:$4 sm:$0xff]   ;;  %v3004_v49 = vld [vmem:[%s3380_s10 + $0x3ac] ss:$16 sps:$4 sm:$0xff]  }
 0x124   : > { %v1878_v58 = vsel %vm1872_vm0, %v1628_v53, 0.0  ;;  %v2009_v59 = vmul.f32 %v1628_v53, %v1628_v53  ;;  %v2219_v60 = vadd.f32 %v3549_v11, %v1628_v53 }
 0x125   : > { %v1343_v61 = vpop.f32.mrf.mxu0  ;;  %1534 = vmatmul.mubr.bf16.gmra.mxu0 %v2987_v47  ;;  %v1879_v62 = vadd.f32 %v1878_v58, %v1877_v48  ;;  %v1632_v63 = vpop.f32.mrf.mxu1  ;;  %1823 = vmatmul.mubr.bf16.gmra.mxu1 %v2681_v50 }
 0x126   : > { %1541 = vmatprep.mubr.bf16.mxu0 %v2988_v51  ;;  %v2075_v0 = vsel %vm1872_vm0, %v2009_v59, 0.0  ;;  %3023 = vtanh.f32 %v2219_v60  ;;  %v1633_v1 = vadd.f32 %v1632_v63, %v1343_v61  ;;  %1830 = vmatprep.mubr.bf16.mxu1 %v2990_v55 }
 0x127   : > { %v1345_v2 = vpop.f32.mrf.mxu0  ;;  %v3018_v5 = vpop.eup %3017  ;;  %v2076_v6 = vadd.f32 %v2075_v0, %v2074_v56 }
 0x128   : > { %v1634_v7 = vpop.f32.mrf.mxu1  ;;  %2344 = vst.msk [vmem:[%s3576_s7] sm:$0xff] %vm1872_vm0, %v3018_v5  ;;  %v1880_v8 = vsel %vm1872_vm0, %v1633_v1, 0.0  ;;  %v2010_v9 = vmul.f32 %v1633_v1, %v1633_v1  ;;  %v2220_v10 = vadd.f32 %v3549_v11, %v1633_v1  ;;  %v2999_v5 = vld [vmem:[%s3380_s10 + $0x3a0] ss:$16 sps:$4 sm:$0xff]  }
 0x129   : > { %v1346_v12 = vpop.f32.mrf.mxu0  ;;  %v1881_v14 = vadd.f32 %v1880_v8, %v1879_v62  ;;  %v3002_v8 = vld [vmem:[%s3380_s10 + $0x3a8] ss:$16 sps:$4 sm:$0xff]  }
 0x12a   : > { %v1635_v15 = vpop.f32.mrf.mxu1  ;;  %v2077_v18 = vsel %vm1872_vm0, %v2010_v9, 0.0  ;;  %3025 = vtanh.f32 %v2220_v10  ;;  %v3007_v9 = vld [vmem:[%s3380_s10 + $0x3c4] ss:$16 sps:$4 sm:$0xff]  }
 0x12b   : > { %v1636_v19 = vadd.f32 %v1635_v15, %v1346_v12  ;;  %v1348_v20 = vpop.f32.mrf.mxu0  ;;  %v3020_v22 = vpop.eup %3019  ;;  %v2078_v23 = vadd.f32 %v2077_v18, %v2076_v6 }
 0x12c   : > { %v1637_v24 = vpop.f32.mrf.mxu1  ;;  %2345 = vst.msk [vmem:[%s3576_s7 + $0x8] sm:$0xff] %vm1872_vm0, %v3020_v22 }
 0x12d   : > { %v1882_v25 = vsel %vm1872_vm0, %v1636_v19, 0.0  ;;  %v2011_v26 = vmul.f32 %v1636_v19, %v1636_v19  ;;  %v2221_v27 = vadd.f32 %v3549_v11, %v1636_v19  ;;  %v1351_v28 = vpop.f32.mrf.mxu0  ;;  %1542 = vmatmul.mubr.bf16.gmra.mxu0 %v2992_v13  ;;  %1831 = vmatmul.mubr.bf16.gmra.mxu1 %v2685_v16 }
 0x12e   : > { %v1883_v29 = vadd.f32 %v1882_v25, %v1881_v14  ;;  %v1640_v30 = vpop.f32.mrf.mxu1  ;;  %1549 = vmatprep.mubr.bf16.mxu0 %v2995_v17  ;;  %1838 = vmatprep.mubr.bf16.mxu1 %v2998_v21  ;;  %v3010_v14 = vld [vmem:[%s3380_s10 + $0x3cc] ss:$16 sps:$4 sm:$0xff]  }
 0x12f   : > { %v2079_v31 = vsel %vm1872_vm0, %v2011_v26, 0.0  ;;  %3027 = vtanh.f32 %v2221_v27  ;;  %v1641_v32 = vadd.f32 %v1640_v30, %v1351_v28  ;;  %v1353_v33 = vpop.f32.mrf.mxu0  ;;  %v3022_v34 = vpop.eup %3021 }
 0x130   : > { %v2080_v35 = vadd.f32 %v2079_v31, %v2078_v23  ;;  %v1642_v36 = vpop.f32.mrf.mxu1  ;;  %2346 = vst.msk [vmem:[%s3576_s7 + $0x10] sm:$0xff] %vm1872_vm0, %v3022_v34  ;;  %v3005_v34 = vld [vmem:[%s3380_s10 + $0x3c0] ss:$16 sps:$4 sm:$0xff]  }
 0x131   : > { %v1884_v37 = vsel %vm1872_vm0, %v1641_v32, 0.0  ;;  %v2012_v38 = vmul.f32 %v1641_v32, %v1641_v32  ;;  %v2222_v39 = vadd.f32 %v3549_v11, %v1641_v32  ;;  %v1354_v40 = vpop.f32.mrf.mxu0 }
 0x132   : > { %v1885_v42 = vadd.f32 %v1884_v37, %v1883_v29  ;;  %v1643_v43 = vpop.f32.mrf.mxu1  ;;  %v3008_v37 = vld [vmem:[%s3380_s10 + $0x3c8] ss:$16 sps:$4 sm:$0xff]  }
 0x133   : > { %v2081_v46 = vsel %vm1872_vm0, %v2012_v38, 0.0  ;;  %3029 = vtanh.f32 %v2222_v39  ;;  %v1644_v47 = vadd.f32 %v1643_v43, %v1354_v40  ;;  %v1356_v48 = vpop.f32.mrf.mxu0  ;;  %v3024_v50 = vpop.eup %3023  ;;  %v3013_v38 = vld [vmem:[%s3380_s10 + $0x3e4] ss:$16 sps:$4 sm:$0xff]  }
 0x134   : > { %v2082_v51 = vadd.f32 %v2081_v46, %v2080_v35  ;;  %v1645_v52 = vpop.f32.mrf.mxu1  ;;  %2347 = vst.msk [vmem:[%s3576_s7 + $0x18] sm:$0xff] %vm1872_vm0, %v3024_v50 }
 0x135   : > { %v1886_v53 = vsel %vm1872_vm0, %v1644_v47, 0.0  ;;  %v2013_v54 = vmul.f32 %v1644_v47, %v1644_v47  ;;  %v2223_v55 = vadd.f32 %v3549_v11, %v1644_v47  ;;  %v1359_v56 = vpop.f32.mrf.mxu0  ;;  %1550 = vmatmul.mubr.bf16.gmra.mxu0 %v2993_v41  ;;  %1839 = vmatmul.mubr.bf16.gmra.mxu1 %v2996_v44 }
 0x136   : > { %v1887_v57 = vadd.f32 %v1886_v53, %v1885_v42  ;;  %v1648_v58 = vpop.f32.mrf.mxu1  ;;  %1557 = vmatprep.mubr.bf16.mxu0 %v3001_v45  ;;  %1846 = vmatprep.mubr.bf16.mxu1 %v3004_v49  ;;  %v3016_v42 = vld [vmem:[%s3380_s10 + $0x3ec] ss:$16 sps:$4 sm:$0xff]  }
 0x137   : > { %v2083_v59 = vsel %vm1872_vm0, %v2013_v54, 0.0  ;;  %3031 = vtanh.f32 %v2223_v55  ;;  %v1649_v60 = vadd.f32 %v1648_v58, %v1359_v56  ;;  %v1361_v61 = vpop.f32.mrf.mxu0  ;;  %v3026_v62 = vpop.eup %3025 }
 0x138   : > { %v2084_v63 = vadd.f32 %v2083_v59, %v2082_v51  ;;  %v1650_v0 = vpop.f32.mrf.mxu1  ;;  %2348 = vst.msk [vmem:[%s3576_s7 + $0x20] sm:$0xff] %vm1872_vm0, %v3026_v62  ;;  %v3011_v62 = vld [vmem:[%s3380_s10 + $0x3e0] ss:$16 sps:$4 sm:$0xff]  }
 0x139   : > { %v1888_v1 = vsel %vm1872_vm0, %v1649_v60, 0.0  ;;  %v2014_v2 = vmul.f32 %v1649_v60, %v1649_v60  ;;  %v2224_v3 = vadd.f32 %v3549_v11, %v1649_v60  ;;  %v1362_v4 = vpop.f32.mrf.mxu0 }
 0x13a   : > { %v1889_v6 = vadd.f32 %v1888_v1, %v1887_v57  ;;  %v1651_v7 = vpop.f32.mrf.mxu1  ;;  %v3014_v1 = vld [vmem:[%s3380_s10 + $0x3e8] ss:$16 sps:$4 sm:$0xff]  }
 0x13b   : > { %v2085_v10 = vsel %vm1872_vm0, %v2014_v2, 0.0  ;;  %3033 = vtanh.f32 %v2224_v3  ;;  %v1652_v12 = vadd.f32 %v1651_v7, %v1362_v4  ;;  %v1364_v13 = vpop.f32.mrf.mxu0 }
 0x13c   : > { %v3028_v15 = vpop.eup %3027  ;;  %v2086_v16 = vadd.f32 %v2085_v10, %v2084_v63  ;;  %v1653_v17 = vpop.f32.mrf.mxu1 }
 0x13d   : > { %2349 = vst.msk [vmem:[%s3576_s7 + $0x28] sm:$0xff] %vm1872_vm0, %v3028_v15  ;;  %v1890_v18 = vsel %vm1872_vm0, %v1652_v12, 0.0  ;;  %v2015_v19 = vmul.f32 %v1652_v12, %v1652_v12  ;;  %v2225_v20 = vadd.f32 %v3549_v11, %v1652_v12  ;;  %v1367_v21 = vpop.f32.mrf.mxu0  ;;  %1558 = vmatmul.mubr.bf16.gmra.mxu0 %v2999_v5  ;;  %1847 = vmatmul.mubr.bf16.gmra.mxu1 %v3002_v8 }
 0x13e   : > { %v1891_v22 = vadd.f32 %v1890_v18, %v1889_v6  ;;  %v1656_v23 = vpop.f32.mrf.mxu1  ;;  %1565 = vmatprep.mubr.bf16.mxu0 %v3007_v9  ;;  %1854 = vmatprep.mubr.bf16.mxu1 %v3010_v14 }
 0x13f   : > { %v2087_v24 = vsel %vm1872_vm0, %v2015_v19, 0.0  ;;  %3035 = vtanh.f32 %v2225_v20  ;;  %v1657_v25 = vadd.f32 %v1656_v23, %v1367_v21  ;;  %v1369_v26 = vpop.f32.mrf.mxu0 }
 0x140   : > { %v3030_v27 = vpop.eup %3029  ;;  %v2088_v28 = vadd.f32 %v2087_v24, %v2086_v16  ;;  %v1658_v29 = vpop.f32.mrf.mxu1 }
 0x141   : > { %2350 = vst.msk [vmem:[%s3576_s7 + $0x30] sm:$0xff] %vm1872_vm0, %v3030_v27  ;;  %v1892_v30 = vsel %vm1872_vm0, %v1657_v25, 0.0  ;;  %v2016_v31 = vmul.f32 %v1657_v25, %v1657_v25  ;;  %v2226_v32 = vadd.f32 %v3549_v11, %v1657_v25  ;;  %v1370_v33 = vpop.f32.mrf.mxu0 }
 0x142   : > { %v1893_v35 = vadd.f32 %v1892_v30, %v1891_v22  ;;  %v1659_v36 = vpop.f32.mrf.mxu1 }
 0x143   : > { %v2089_v39 = vsel %vm1872_vm0, %v2016_v31, 0.0  ;;  %3037 = vtanh.f32 %v2226_v32  ;;  %v1660_v40 = vadd.f32 %v1659_v36, %v1370_v33  ;;  %v1372_v41 = vpop.f32.mrf.mxu0 }
 0x144   : > { %v3032_v43 = vpop.eup %3031  ;;  %v2090_v44 = vadd.f32 %v2089_v39, %v2088_v28  ;;  %v1661_v45 = vpop.f32.mrf.mxu1 }
 0x145   : > { %2351 = vst.msk [vmem:[%s3576_s7 + $0x38] sm:$0xff] %vm1872_vm0, %v3032_v43  ;;  %v1894_v46 = vsel %vm1872_vm0, %v1660_v40, 0.0  ;;  %v2017_v47 = vmul.f32 %v1660_v40, %v1660_v40  ;;  %v2227_v48 = vadd.f32 %v3549_v11, %v1660_v40  ;;  %v1375_v49 = vpop.f32.mrf.mxu0  ;;  %1566 = vmatmul.mubr.bf16.gmra.mxu0 %v3005_v34  ;;  %1855 = vmatmul.mubr.bf16.gmra.mxu1 %v3008_v37 }
 0x146   : > { %v1895_v50 = vadd.f32 %v1894_v46, %v1893_v35  ;;  %v1664_v51 = vpop.f32.mrf.mxu1  ;;  %1573 = vmatprep.mubr.bf16.mxu0 %v3013_v38  ;;  %1862 = vmatprep.mubr.bf16.mxu1 %v3016_v42 }
 0x147   : > { %v2091_v52 = vsel %vm1872_vm0, %v2017_v47, 0.0  ;;  %3039 = vtanh.f32 %v2227_v48  ;;  %v1665_v53 = vadd.f32 %v1664_v51, %v1375_v49  ;;  %v1377_v54 = vpop.f32.mrf.mxu0 }
 0x148   : > { %v3034_v55 = vpop.eup %3033  ;;  %v2092_v56 = vadd.f32 %v2091_v52, %v2090_v44  ;;  %v1666_v57 = vpop.f32.mrf.mxu1 }
 0x149   : > { %2352 = vst.msk [vmem:[%s3576_s7 + $0x40] sm:$0xff] %vm1872_vm0, %v3034_v55  ;;  %v1896_v58 = vsel %vm1872_vm0, %v1665_v53, 0.0  ;;  %v2018_v59 = vmul.f32 %v1665_v53, %v1665_v53  ;;  %v2228_v60 = vadd.f32 %v3549_v11, %v1665_v53  ;;  %v1378_v61 = vpop.f32.mrf.mxu0 }
 0x14a   : > { %v1897_v63 = vadd.f32 %v1896_v58, %v1895_v50  ;;  %v1667_v0 = vpop.f32.mrf.mxu1 }
 0x14b   : > { %v2093_v2 = vsel %vm1872_vm0, %v2018_v59, 0.0  ;;  %3041 = vtanh.f32 %v2228_v60  ;;  %v1668_v3 = vadd.f32 %v1667_v0, %v1378_v61  ;;  %v1380_v4 = vpop.f32.mrf.mxu0 }
 0x14c   : > { %v3036_v5 = vpop.eup %3035  ;;  %v2094_v6 = vadd.f32 %v2093_v2, %v2092_v56  ;;  %v1669_v7 = vpop.f32.mrf.mxu1 }
 0x14d   : > { %2353 = vst.msk [vmem:[%s3576_s7 + $0x48] sm:$0xff] %vm1872_vm0, %v3036_v5  ;;  %v1898_v8 = vsel %vm1872_vm0, %v1668_v3, 0.0  ;;  %v2019_v9 = vmul.f32 %v1668_v3, %v1668_v3  ;;  %v2229_v10 = vadd.f32 %v3549_v11, %v1668_v3  ;;  %v1383_v12 = vpop.f32.mrf.mxu0  ;;  %1574 = vmatmul.mubr.bf16.gmra.mxu0 %v3011_v62  ;;  %1863 = vmatmul.mubr.bf16.gmra.mxu1 %v3014_v1 }
 0x14e   : > { %v1899_v13 = vadd.f32 %v1898_v8, %v1897_v63  ;;  %v1672_v14 = vpop.f32.mrf.mxu1 }
 0x14f   : > { %v2095_v15 = vsel %vm1872_vm0, %v2019_v9, 0.0  ;;  %3043 = vtanh.f32 %v2229_v10  ;;  %v1673_v16 = vadd.f32 %v1672_v14, %v1383_v12  ;;  %v1385_v17 = vpop.f32.mrf.mxu0 }
 0x150   : > { %v3038_v18 = vpop.eup %3037  ;;  %v2096_v19 = vadd.f32 %v2095_v15, %v2094_v6  ;;  %v1674_v20 = vpop.f32.mrf.mxu1 }
 0x151   : > { %2354 = vst.msk [vmem:[%s3576_s7 + $0x50] sm:$0xff] %vm1872_vm0, %v3038_v18  ;;  %v1900_v21 = vsel %vm1872_vm0, %v1673_v16, 0.0  ;;  %v2020_v22 = vmul.f32 %v1673_v16, %v1673_v16  ;;  %v2230_v23 = vadd.f32 %v3549_v11, %v1673_v16  ;;  %v1386_v24 = vpop.f32.mrf.mxu0 }
 0x152   : > { %v1901_v25 = vadd.f32 %v1900_v21, %v1899_v13  ;;  %v1675_v26 = vpop.f32.mrf.mxu1 }
 0x153   : > { %v2097_v27 = vsel %vm1872_vm0, %v2020_v22, 0.0  ;;  %3045 = vtanh.f32 %v2230_v23  ;;  %v1676_v28 = vadd.f32 %v1675_v26, %v1386_v24  ;;  %v1388_v29 = vpop.f32.mrf.mxu0 }
 0x154   : > { %v3040_v30 = vpop.eup %3039  ;;  %v2098_v31 = vadd.f32 %v2097_v27, %v2096_v19  ;;  %v1677_v32 = vpop.f32.mrf.mxu1 }
 0x155   : > { %2355 = vst.msk [vmem:[%s3576_s7 + $0x58] sm:$0xff] %vm1872_vm0, %v3040_v30  ;;  %v1902_v33 = vsel %vm1872_vm0, %v1676_v28, 0.0  ;;  %v2021_v34 = vmul.f32 %v1676_v28, %v1676_v28  ;;  %v2231_v35 = vadd.f32 %v3549_v11, %v1676_v28  ;;  %v1391_v36 = vpop.f32.mrf.mxu0 }
 0x156   : > { %v1903_v37 = vadd.f32 %v1902_v33, %v1901_v25  ;;  %v1680_v38 = vpop.f32.mrf.mxu1 }
 0x157   : > { %v2099_v39 = vsel %vm1872_vm0, %v2021_v34, 0.0  ;;  %3047 = vtanh.f32 %v2231_v35  ;;  %v1681_v40 = vadd.f32 %v1680_v38, %v1391_v36  ;;  %v1393_v41 = vpop.f32.mrf.mxu0 }
 0x158   : > { %v3042_v42 = vpop.eup %3041  ;;  %v2100_v43 = vadd.f32 %v2099_v39, %v2098_v31  ;;  %v1682_v44 = vpop.f32.mrf.mxu1 }
 0x159   : > { %2356 = vst.msk [vmem:[%s3576_s7 + $0x60] sm:$0xff] %vm1872_vm0, %v3042_v42  ;;  %v1904_v45 = vsel %vm1872_vm0, %v1681_v40, 0.0  ;;  %v2022_v46 = vmul.f32 %v1681_v40, %v1681_v40  ;;  %v2232_v47 = vadd.f32 %v3549_v11, %v1681_v40  ;;  %v1394_v48 = vpop.f32.mrf.mxu0 }
 0x15a   : > { %v1905_v49 = vadd.f32 %v1904_v45, %v1903_v37  ;;  %v1683_v50 = vpop.f32.mrf.mxu1 }
 0x15b   : > { %v2101_v51 = vsel %vm1872_vm0, %v2022_v46, 0.0  ;;  %3049 = vtanh.f32 %v2232_v47  ;;  %v1684_v52 = vadd.f32 %v1683_v50, %v1394_v48  ;;  %v1396_v53 = vpop.f32.mrf.mxu0 }
 0x15c   : > { %v3044_v54 = vpop.eup %3043  ;;  %v2102_v55 = vadd.f32 %v2101_v51, %v2100_v43  ;;  %v1685_v56 = vpop.f32.mrf.mxu1 }
 0x15d   : > { %2357 = vst.msk [vmem:[%s3576_s7 + $0x68] sm:$0xff] %vm1872_vm0, %v3044_v54  ;;  %v1906_v57 = vsel %vm1872_vm0, %v1684_v52, 0.0  ;;  %v2023_v58 = vmul.f32 %v1684_v52, %v1684_v52  ;;  %v2233_v59 = vadd.f32 %v3549_v11, %v1684_v52  ;;  %v1399_v60 = vpop.f32.mrf.mxu0 }
 0x15e   : > { %v1907_v61 = vadd.f32 %v1906_v57, %v1905_v49  ;;  %v1688_v62 = vpop.f32.mrf.mxu1 }
 0x15f   : > { %v2103_v63 = vsel %vm1872_vm0, %v2023_v58, 0.0  ;;  %3051 = vtanh.f32 %v2233_v59  ;;  %v1689_v0 = vadd.f32 %v1688_v62, %v1399_v60  ;;  %v1401_v1 = vpop.f32.mrf.mxu0 }
 0x160   : > { %v3046_v2 = vpop.eup %3045  ;;  %v2104_v3 = vadd.f32 %v2103_v63, %v2102_v55  ;;  %v1690_v4 = vpop.f32.mrf.mxu1 }
 0x161   : > { %2358 = vst.msk [vmem:[%s3576_s7 + $0x70] sm:$0xff] %vm1872_vm0, %v3046_v2  ;;  %v1908_v5 = vsel %vm1872_vm0, %v1689_v0, 0.0  ;;  %v2024_v6 = vmul.f32 %v1689_v0, %v1689_v0  ;;  %v2234_v7 = vadd.f32 %v3549_v11, %v1689_v0  ;;  %v1402_v8 = vpop.f32.mrf.mxu0 }
 0x162   : > { %v1909_v9 = vadd.f32 %v1908_v5, %v1907_v61  ;;  %v1691_v10 = vpop.f32.mrf.mxu1 }
 0x163   : > { %v2105_v12 = vsel %vm1872_vm0, %v2024_v6, 0.0  ;;  %3053 = vtanh.f32 %v2234_v7  ;;  %v1692_v13 = vadd.f32 %v1691_v10, %v1402_v8  ;;  %v1404_v14 = vpop.f32.mrf.mxu0 }
 0x164   : > { %v3048_v15 = vpop.eup %3047  ;;  %v2106_v16 = vadd.f32 %v2105_v12, %v2104_v3  ;;  %v1693_v17 = vpop.f32.mrf.mxu1 }
 0x165   : > { %2359 = vst.msk [vmem:[%s3576_s7 + $0x78] sm:$0xff] %vm1872_vm0, %v3048_v15  ;;  %v1910_v18 = vsel %vm1872_vm0, %v1692_v13, 0.0  ;;  %v2025_v19 = vmul.f32 %v1692_v13, %v1692_v13  ;;  %v2235_v20 = vadd.f32 %v3549_v11, %v1692_v13  ;;  %v1407_v21 = vpop.f32.mrf.mxu0 }
 0x166   : > { %v1911_v22 = vadd.f32 %v1910_v18, %v1909_v9  ;;  %v1696_v23 = vpop.f32.mrf.mxu1 }
 0x167   : > { %v2107_v24 = vsel %vm1872_vm0, %v2025_v19, 0.0  ;;  %3055 = vtanh.f32 %v2235_v20  ;;  %v1697_v25 = vadd.f32 %v1696_v23, %v1407_v21  ;;  %v1409_v26 = vpop.f32.mrf.mxu0 }
 0x168   : > { %v3050_v27 = vpop.eup %3049  ;;  %v2108_v28 = vadd.f32 %v2107_v24, %v2106_v16  ;;  %v1698_v29 = vpop.f32.mrf.mxu1 }
 0x169   : > { %2360 = vst.msk [vmem:[%s3576_s7 + $0x80] sm:$0xff] %vm1872_vm0, %v3050_v27  ;;  %v1912_v30 = vsel %vm1872_vm0, %v1697_v25, 0.0  ;;  %v2026_v31 = vmul.f32 %v1697_v25, %v1697_v25  ;;  %v2236_v32 = vadd.f32 %v3549_v11, %v1697_v25  ;;  %v1410_v33 = vpop.f32.mrf.mxu0 }
 0x16a   : > { %v1913_v34 = vadd.f32 %v1912_v30, %v1911_v22  ;;  %v1699_v35 = vpop.f32.mrf.mxu1 }
 0x16b   : > { %v2109_v36 = vsel %vm1872_vm0, %v2026_v31, 0.0  ;;  %3057 = vtanh.f32 %v2236_v32  ;;  %v1700_v37 = vadd.f32 %v1699_v35, %v1410_v33  ;;  %v1412_v38 = vpop.f32.mrf.mxu0 }
 0x16c   : > { %v3052_v39 = vpop.eup %3051  ;;  %v2110_v40 = vadd.f32 %v2109_v36, %v2108_v28  ;;  %v1701_v41 = vpop.f32.mrf.mxu1 }
 0x16d   : > { %2361 = vst.msk [vmem:[%s3576_s7 + $0x88] sm:$0xff] %vm1872_vm0, %v3052_v39  ;;  %v1914_v42 = vsel %vm1872_vm0, %v1700_v37, 0.0  ;;  %v2027_v43 = vmul.f32 %v1700_v37, %v1700_v37  ;;  %v2237_v44 = vadd.f32 %v3549_v11, %v1700_v37  ;;  %v1415_v45 = vpop.f32.mrf.mxu0 }
 0x16e   : > { %v1915_v46 = vadd.f32 %v1914_v42, %v1913_v34  ;;  %v1704_v47 = vpop.f32.mrf.mxu1 }
 0x16f   : > { %v2111_v48 = vsel %vm1872_vm0, %v2027_v43, 0.0  ;;  %3059 = vtanh.f32 %v2237_v44  ;;  %v1705_v49 = vadd.f32 %v1704_v47, %v1415_v45  ;;  %v1417_v50 = vpop.f32.mrf.mxu0 }
 0x170   : > { %v3054_v51 = vpop.eup %3053  ;;  %v2112_v52 = vadd.f32 %v2111_v48, %v2110_v40  ;;  %v1706_v53 = vpop.f32.mrf.mxu1 }
 0x171   : > { %2362 = vst.msk [vmem:[%s3576_s7 + $0x90] sm:$0xff] %vm1872_vm0, %v3054_v51  ;;  %v1916_v54 = vsel %vm1872_vm0, %v1705_v49, 0.0  ;;  %v2028_v55 = vmul.f32 %v1705_v49, %v1705_v49  ;;  %v2238_v56 = vadd.f32 %v3549_v11, %v1705_v49  ;;  %v1418_v57 = vpop.f32.mrf.mxu0 }
 0x172   : > { %v1917_v58 = vadd.f32 %v1916_v54, %v1915_v46  ;;  %v1707_v59 = vpop.f32.mrf.mxu1 }
 0x173   : > { %v2113_v60 = vsel %vm1872_vm0, %v2028_v55, 0.0  ;;  %3061 = vtanh.f32 %v2238_v56  ;;  %v1708_v61 = vadd.f32 %v1707_v59, %v1418_v57  ;;  %v1420_v62 = vpop.f32.mrf.mxu0 }
 0x174   : > { %v3056_v63 = vpop.eup %3055  ;;  %v2114_v0 = vadd.f32 %v2113_v60, %v2112_v52  ;;  %v1709_v1 = vpop.f32.mrf.mxu1 }
 0x175   : > { %2363 = vst.msk [vmem:[%s3576_s7 + $0x98] sm:$0xff] %vm1872_vm0, %v3056_v63  ;;  %v1918_v2 = vsel %vm1872_vm0, %v1708_v61, 0.0  ;;  %v2029_v3 = vmul.f32 %v1708_v61, %v1708_v61  ;;  %v2239_v4 = vadd.f32 %v3549_v11, %v1708_v61  ;;  %v1423_v5 = vpop.f32.mrf.mxu0 }
 0x176   : > { %v1919_v6 = vadd.f32 %v1918_v2, %v1917_v58  ;;  %v1712_v7 = vpop.f32.mrf.mxu1 }
 0x177   : > { %v2115_v8 = vsel %vm1872_vm0, %v2029_v3, 0.0  ;;  %3063 = vtanh.f32 %v2239_v4  ;;  %v1713_v9 = vadd.f32 %v1712_v7, %v1423_v5  ;;  %v1425_v10 = vpop.f32.mrf.mxu0 }
 0x178   : > { %v3058_v12 = vpop.eup %3057  ;;  %v2116_v13 = vadd.f32 %v2115_v8, %v2114_v0  ;;  %v1714_v14 = vpop.f32.mrf.mxu1 }
 0x179   : > { %2364 = vst.msk [vmem:[%s3576_s7 + $0xa0] sm:$0xff] %vm1872_vm0, %v3058_v12  ;;  %v1920_v15 = vsel %vm1872_vm0, %v1713_v9, 0.0  ;;  %v2030_v16 = vmul.f32 %v1713_v9, %v1713_v9  ;;  %v2240_v17 = vadd.f32 %v3549_v11, %v1713_v9  ;;  %v1426_v18 = vpop.f32.mrf.mxu0 }
 0x17a   : > { %v1921_v19 = vadd.f32 %v1920_v15, %v1919_v6  ;;  %v1715_v20 = vpop.f32.mrf.mxu1 }
 0x17b   : > { %v2117_v21 = vsel %vm1872_vm0, %v2030_v16, 0.0  ;;  %3065 = vtanh.f32 %v2240_v17  ;;  %v1716_v22 = vadd.f32 %v1715_v20, %v1426_v18  ;;  %v1428_v23 = vpop.f32.mrf.mxu0 }
 0x17c   : > { %v3060_v24 = vpop.eup %3059  ;;  %v2118_v25 = vadd.f32 %v2117_v21, %v2116_v13  ;;  %v1717_v26 = vpop.f32.mrf.mxu1 }
 0x17d   : > { %2365 = vst.msk [vmem:[%s3576_s7 + $0xa8] sm:$0xff] %vm1872_vm0, %v3060_v24  ;;  %v1922_v27 = vsel %vm1872_vm0, %v1716_v22, 0.0  ;;  %v2031_v28 = vmul.f32 %v1716_v22, %v1716_v22  ;;  %v2241_v29 = vadd.f32 %v3549_v11, %v1716_v22  ;;  %v1431_v30 = vpop.f32.mrf.mxu0 }
 0x17e   : > { %v1923_v31 = vadd.f32 %v1922_v27, %v1921_v19  ;;  %v1720_v32 = vpop.f32.mrf.mxu1 }
 0x17f   : > { %v2119_v33 = vsel %vm1872_vm0, %v2031_v28, 0.0  ;;  %3067 = vtanh.f32 %v2241_v29  ;;  %v1721_v34 = vadd.f32 %v1720_v32, %v1431_v30  ;;  %v1433_v35 = vpop.f32.mrf.mxu0 }
 0x180   : > { %v3062_v36 = vpop.eup %3061  ;;  %v2120_v37 = vadd.f32 %v2119_v33, %v2118_v25  ;;  %v1722_v38 = vpop.f32.mrf.mxu1 }
 0x181   : > { %2366 = vst.msk [vmem:[%s3576_s7 + $0xb0] sm:$0xff] %vm1872_vm0, %v3062_v36  ;;  %v1924_v39 = vsel %vm1872_vm0, %v1721_v34, 0.0  ;;  %v2032_v40 = vmul.f32 %v1721_v34, %v1721_v34  ;;  %v2242_v41 = vadd.f32 %v3549_v11, %v1721_v34  ;;  %v1434_v42 = vpop.f32.mrf.mxu0 }
 0x182   : > { %v1925_v43 = vadd.f32 %v1924_v39, %v1923_v31  ;;  %v1723_v44 = vpop.f32.mrf.mxu1 }
 0x183   : > { %v2121_v45 = vsel %vm1872_vm0, %v2032_v40, 0.0  ;;  %3069 = vtanh.f32 %v2242_v41  ;;  %v1724_v46 = vadd.f32 %v1723_v44, %v1434_v42  ;;  %v1436_v47 = vpop.f32.mrf.mxu0 }
 0x184   : > { %v3064_v48 = vpop.eup %3063  ;;  %v2122_v49 = vadd.f32 %v2121_v45, %v2120_v37  ;;  %v1725_v50 = vpop.f32.mrf.mxu1 }
 0x185   : > { %2367 = vst.msk [vmem:[%s3576_s7 + $0xb8] sm:$0xff] %vm1872_vm0, %v3064_v48  ;;  %v1926_v51 = vsel %vm1872_vm0, %v1724_v46, 0.0  ;;  %v2033_v52 = vmul.f32 %v1724_v46, %v1724_v46  ;;  %v2243_v53 = vadd.f32 %v3549_v11, %v1724_v46  ;;  %v1439_v54 = vpop.f32.mrf.mxu0 }
 0x186   : > { %v1927_v55 = vadd.f32 %v1926_v51, %v1925_v43  ;;  %v1728_v56 = vpop.f32.mrf.mxu1 }
 0x187   : > { %v2123_v57 = vsel %vm1872_vm0, %v2033_v52, 0.0  ;;  %3071 = vtanh.f32 %v2243_v53  ;;  %v1729_v58 = vadd.f32 %v1728_v56, %v1439_v54  ;;  %v1441_v59 = vpop.f32.mrf.mxu0 }
 0x188   : > { %v3066_v60 = vpop.eup %3065  ;;  %v2124_v61 = vadd.f32 %v2123_v57, %v2122_v49  ;;  %v1730_v62 = vpop.f32.mrf.mxu1 }
 0x189   : > { %2368 = vst.msk [vmem:[%s3576_s7 + $0xc0] sm:$0xff] %vm1872_vm0, %v3066_v60  ;;  %v1928_v63 = vsel %vm1872_vm0, %v1729_v58, 0.0  ;;  %v2034_v0 = vmul.f32 %v1729_v58, %v1729_v58  ;;  %v2244_v1 = vadd.f32 %v3549_v11, %v1729_v58  ;;  %v1442_v2 = vpop.f32.mrf.mxu0  ;;  %v3757_v58 = vld [vmem:[%s4115_s2] ss:$0 sm:$0xff] }
 0x18a   : > { %v1929_v3 = vadd.f32 %v1928_v63, %v1927_v55  ;;  %v1731_v4 = vpop.f32.mrf.mxu1 }
 0x18b   : > { %v2125_v5 = vsel %vm1872_vm0, %v2034_v0, 0.0  ;;  %3073 = vtanh.f32 %v2244_v1  ;;  %v1732_v6 = vadd.f32 %v1731_v4, %v1442_v2  ;;  %v1444_v7 = vpop.f32.mrf.mxu0 }
 0x18c   : > { %v3068_v8 = vpop.eup %3067  ;;  %v2126_v9 = vadd.f32 %v2125_v5, %v2124_v61  ;;  %v1733_v10 = vpop.f32.mrf.mxu1 }
 0x18d   : > { %2369 = vst.msk [vmem:[%s3576_s7 + $0xc8] sm:$0xff] %vm1872_vm0, %v3068_v8  ;;  %v1930_v12 = vsel %vm1872_vm0, %v1732_v6, 0.0  ;;  %v2035_v13 = vmul.f32 %v1732_v6, %v1732_v6  ;;  %v2245_v14 = vadd.f32 %v3549_v11, %v1732_v6  ;;  %v1447_v15 = vpop.f32.mrf.mxu0 }
 0x18e   : > { %v1931_v16 = vadd.f32 %v1930_v12, %v1929_v3  ;;  %v1736_v17 = vpop.f32.mrf.mxu1 }
 0x18f   : > { %v2127_v18 = vsel %vm1872_vm0, %v2035_v13, 0.0  ;;  %3075 = vtanh.f32 %v2245_v14  ;;  %v1737_v19 = vadd.f32 %v1736_v17, %v1447_v15  ;;  %v1449_v20 = vpop.f32.mrf.mxu0 }
 0x190   : > { %v3070_v21 = vpop.eup %3069  ;;  %v2128_v22 = vadd.f32 %v2127_v18, %v2126_v9  ;;  %v1738_v23 = vpop.f32.mrf.mxu1 }
 0x191   : > { %2370 = vst.msk [vmem:[%s3576_s7 + $0xd0] sm:$0xff] %vm1872_vm0, %v3070_v21  ;;  %v1932_v24 = vsel %vm1872_vm0, %v1737_v19, 0.0  ;;  %v2036_v25 = vmul.f32 %v1737_v19, %v1737_v19  ;;  %v2246_v26 = vadd.f32 %v3549_v11, %v1737_v19  ;;  %v1450_v27 = vpop.f32.mrf.mxu0 }
 0x192   : > { %v1933_v28 = vadd.f32 %v1932_v24, %v1931_v16  ;;  %v1739_v29 = vpop.f32.mrf.mxu1 }
 0x193   : > { %v2129_v30 = vsel %vm1872_vm0, %v2036_v25, 0.0  ;;  %3077 = vtanh.f32 %v2246_v26  ;;  %v1740_v31 = vadd.f32 %v1739_v29, %v1450_v27  ;;  %v1452_v32 = vpop.f32.mrf.mxu0 }
 0x194   : > { %v3072_v33 = vpop.eup %3071  ;;  %v2130_v34 = vadd.f32 %v2129_v30, %v2128_v22  ;;  %v1741_v35 = vpop.f32.mrf.mxu1 }
 0x195   : > { %2371 = vst.msk [vmem:[%s3576_s7 + $0xd8] sm:$0xff] %vm1872_vm0, %v3072_v33  ;;  %v1934_v36 = vsel %vm1872_vm0, %v1740_v31, 0.0  ;;  %v2037_v37 = vmul.f32 %v1740_v31, %v1740_v31  ;;  %v2247_v38 = vadd.f32 %v3549_v11, %v1740_v31  ;;  %v1455_v39 = vpop.f32.mrf.mxu0 }
 0x196   : > { %v1935_v40 = vadd.f32 %v1934_v36, %v1933_v28  ;;  %v1744_v41 = vpop.f32.mrf.mxu1 }
 0x197   : > { %v2131_v42 = vsel %vm1872_vm0, %v2037_v37, 0.0  ;;  %3079 = vtanh.f32 %v2247_v38  ;;  %v3738_v43 = vadd.f32 %v1744_v41, %v1455_v39  ;;  %v1457_v44 = vpop.f32.mrf.mxu0 }
 0x198   : > { %v3074_v45 = vpop.eup %3073  ;;  %v3740_v46 = vadd.f32 %v2131_v42, %v2130_v34  ;;  %v1746_v47 = vpop.f32.mrf.mxu1 }
 0x199   : > { %2372 = vst.msk [vmem:[%s3576_s7 + $0xe0] sm:$0xff] %vm1872_vm0, %v3074_v45  ;;  %v1936_v48 = vsel %vm1872_vm0, %v3738_v43, 0.0  ;;  %v2248_v49 = vadd.f32 %v3549_v11, %v3738_v43  ;;  %v1458_v50 = vpop.f32.mrf.mxu0 }
 0x19a   : > { %v1937_v51 = vadd.f32 %v1936_v48, %v1935_v40  ;;  %v1747_v52 = vpop.f32.mrf.mxu1 }
 0x19b   : > { %3081 = vtanh.f32 %v2248_v49  ;;  %v3748_v53 = vadd.f32 %v1747_v52, %v1458_v50  ;;  %v1460_v54 = vpop.f32.mrf.mxu0 }
 0x19c   : > { %v3076_v55 = vpop.eup %3075  ;;  %v1749_v56 = vpop.f32.mrf.mxu1 }
 0x19d   : > { %2373 = vst.msk [vmem:[%s3576_s7 + $0xe8] sm:$0xff] %vm1872_vm0, %v3076_v55  ;;  %v1938_v57 = vsel %vm1872_vm0, %v3748_v53, 0.0  ;;  %v2249_v11 = vadd.f32 %v3757_v58, %v3748_v53  ;;  %v1463_v59 = vpop.f32.mrf.mxu0 }
 0x19e   : > { %v3761_v60 = vadd.f32 %v1938_v57, %v1937_v51  ;;  %v1752_v61 = vpop.f32.mrf.mxu1 }
 0x19f   : > { %3083 = vtanh.f32 %v2249_v11  ;;  %v3763_v62 = vadd.f32 %v1752_v61, %v1463_v59  ;;  %v1465_v63 = vpop.f32.mrf.mxu0 }
 0x1a0   : > { %v3078_v0 = vpop.eup %3077  ;;  %v1754_v1 = vpop.f32.mrf.mxu1 }
 0x1a1   : > { %2374 = vst.msk [vmem:[%s3576_s7 + $0xf0] sm:$0xff] %vm1872_vm0, %v3078_v0  ;;  %v2250_v2 = vadd.f32 %v3757_v58, %v3763_v62  ;;  %v1466_v3 = vpop.f32.mrf.mxu0 }
 0x1a2   : > { %v1755_v4 = vpop.f32.mrf.mxu1 }
 0x1a3   : > { %3085 = vtanh.f32 %v2250_v2  ;;  %v3769_v5 = vadd.f32 %v1755_v4, %v1466_v3  ;;  %v1468_v6 = vpop.f32.mrf.mxu0 }
 0x1a4   : > { %v3080_v7 = vpop.eup %3079  ;;  %v1757_v8 = vpop.f32.mrf.mxu1 }
 0x1a5   : > { %2375 = vst.msk [vmem:[%s3576_s7 + $0xf8] sm:$0xff] %vm1872_vm0, %v3080_v7  ;;  %v2251_v9 = vadd.f32 %v3757_v58, %v3769_v5  ;;  %v1471_v10 = vpop.f32.mrf.mxu0 }
 0x1a6   : > { %v1760_v12 = vpop.f32.mrf.mxu1 }
 0x1a7   : > { %3087 = vtanh.f32 %v2251_v9  ;;  %v3775_v13 = vadd.f32 %v1760_v12, %v1471_v10  ;;  %v1473_v14 = vpop.f32.mrf.mxu0 }
 0x1a8   : > { %v3082_v15 = vpop.eup %3081  ;;  %v1762_v16 = vpop.f32.mrf.mxu1 }
 0x1a9   : > { %2376 = vst.msk [vmem:[%s3576_s7 + $0x100] sm:$0xff] %vm1872_vm0, %v3082_v15  ;;  %v2252_v17 = vadd.f32 %v3757_v58, %v3775_v13  ;;  %v1474_v18 = vpop.f32.mrf.mxu0 }
 0x1aa   : > { %v1763_v19 = vpop.f32.mrf.mxu1 }
 0x1ab   : > { %3089 = vtanh.f32 %v2252_v17  ;;  %v3781_v20 = vadd.f32 %v1763_v19, %v1474_v18  ;;  %v1476_v21 = vpop.f32.mrf.mxu0 }
 0x1ac   : > { %v3084_v22 = vpop.eup %3083  ;;  %v1765_v23 = vpop.f32.mrf.mxu1 }
 0x1ad   : > { %2377 = vst.msk [vmem:[%s3576_s7 + $0x108] sm:$0xff] %vm1872_vm0, %v3084_v22  ;;  %v2253_v24 = vadd.f32 %v3757_v58, %v3781_v20  ;;  %v1479_v25 = vpop.f32.mrf.mxu0 }
 0x1ae   : > { %v1768_v26 = vpop.f32.mrf.mxu1 }
 0x1af   : > { %3091 = vtanh.f32 %v2253_v24  ;;  %v3787_v27 = vadd.f32 %v1768_v26, %v1479_v25  ;;  %v1481_v28 = vpop.f32.mrf.mxu0 }
 0x1b0   : > { %v3086_v29 = vpop.eup %3085  ;;  %v1770_v30 = vpop.f32.mrf.mxu1 }
 0x1b1   : > { %2378 = vst.msk [vmem:[%s3576_s7 + $0x110] sm:$0xff] %vm1872_vm0, %v3086_v29  ;;  %v2254_v31 = vadd.f32 %v3757_v58, %v3787_v27  ;;  %v1482_v32 = vpop.f32.mrf.mxu0 }
 0x1b2   : > { %v1771_v33 = vpop.f32.mrf.mxu1 }
 0x1b3   : > { %3093 = vtanh.f32 %v2254_v31  ;;  %v3793_v34 = vadd.f32 %v1771_v33, %v1482_v32  ;;  %v1484_v35 = vpop.f32.mrf.mxu0 }
 0x1b4   : > { %v3088_v36 = vpop.eup %3087  ;;  %v1773_v37 = vpop.f32.mrf.mxu1 }
 0x1b5   : > { %2379 = vst.msk [vmem:[%s3576_s7 + $0x118] sm:$0xff] %vm1872_vm0, %v3088_v36  ;;  %v2255_v38 = vadd.f32 %v3757_v58, %v3793_v34  ;;  %v1487_v39 = vpop.f32.mrf.mxu0  ;;  %v2038_v37 = vmul.f32 %v3738_v43, %v3738_v43 }
 0x1b6   : > { %v1776_v40 = vpop.f32.mrf.mxu1 }
 0x1b7   : > { %3095 = vtanh.f32 %v2255_v38  ;;  %v3799_v41 = vadd.f32 %v1776_v40, %v1487_v39  ;;  %v1489_v42 = vpop.f32.mrf.mxu0 }
 0x1b8   : > { %v3090_v44 = vpop.eup %3089  ;;  %v1778_v45 = vpop.f32.mrf.mxu1 }
 0x1b9   : > { %2380 = vst.msk [vmem:[%s3576_s7 + $0x120] sm:$0xff] %vm1872_vm0, %v3090_v44  ;;  %v2256_v47 = vadd.f32 %v3757_v58, %v3799_v41  ;;  %v1490_v48 = vpop.f32.mrf.mxu0  ;;  %v2039_v44 = vmul.f32 %v3748_v53, %v3748_v53 }
 0x1ba   : > { %v1779_v49 = vpop.f32.mrf.mxu1 }
 0x1bb   : > { %3097 = vtanh.f32 %v2256_v47  ;;  %v3805_v50 = vadd.f32 %v1779_v49, %v1490_v48  ;;  %v1492_v51 = vpop.f32.mrf.mxu0  ;;  %v2040_v48 = vmul.f32 %v3763_v62, %v3763_v62  ;;  %v2133_v49 = vsel %vm1872_vm0, %v2038_v37, 0.0 }
 0x1bc   : > { %v3092_v52 = vpop.eup %3091  ;;  %v1781_v54 = vpop.f32.mrf.mxu1  ;;  %v2135_v53 = vsel %vm1872_vm0, %v2039_v44, 0.0 }
 0x1bd   : > { %2381 = vst.msk [vmem:[%s3576_s7 + $0x128] sm:$0xff] %vm1872_vm0, %v3092_v52  ;;  %v2257_v55 = vadd.f32 %v3757_v58, %v3805_v50  ;;  %v1495_v56 = vpop.f32.mrf.mxu0 }
 0x1be   : > { %v1784_v57 = vpop.f32.mrf.mxu1 }
 0x1bf   : > { %3099 = vtanh.f32 %v2257_v55  ;;  %v3811_v11 = vadd.f32 %v1784_v57, %v1495_v56  ;;  %v1497_v59 = vpop.f32.mrf.mxu0  ;;  %v1940_v56 = vsel %vm1872_vm0, %v3763_v62, 0.0  ;;  %v2041_v57 = vmul.f32 %v3769_v5, %v3769_v5 }
 0x1c0   : > { %v3094_v61 = vpop.eup %3093  ;;  %v1786_v63 = vpop.f32.mrf.mxu1  ;;  %v2042_v62 = vmul.f32 %v3775_v13, %v3775_v13 }
 0x1c1   : > { %2382 = vst.msk [vmem:[%s3576_s7 + $0x130] sm:$0xff] %vm1872_vm0, %v3094_v61  ;;  %v2258_v0 = vadd.f32 %v3757_v58, %v3811_v11  ;;  %v1498_v1 = vpop.f32.mrf.mxu0  ;;  %v2134_v63 = vadd.f32 %v2133_v49, %v3740_v46  ;;  %v2139_v46 = vsel %vm1872_vm0, %v2041_v57, 0.0 }
 0x1c2   : > { %v1787_v2 = vpop.f32.mrf.mxu1 }
 0x1c3   : > { %3101 = vtanh.f32 %v2258_v0  ;;  %v3817_v3 = vadd.f32 %v1787_v2, %v1498_v1  ;;  %v1500_v4 = vpop.f32.mrf.mxu0  ;;  %v2137_v0 = vsel %vm1872_vm0, %v2040_v48, 0.0  ;;  %v1942_v2 = vsel %vm1872_vm0, %v3769_v5, 0.0 }
 0x1c4   : > { %v3096_v6 = vpop.eup %3095  ;;  %v1789_v7 = vpop.f32.mrf.mxu1  ;;  %v2043_v5 = vmul.f32 %v3781_v20, %v3781_v20 }
 0x1c5   : > { %2383 = vst.msk [vmem:[%s3576_s7 + $0x138] sm:$0xff] %vm1872_vm0, %v3096_v6  ;;  %v2259_v8 = vadd.f32 %v3757_v58, %v3817_v3  ;;  %v1503_v9 = vpop.f32.mrf.mxu0 }
 0x1c6   : > { %v1792_v10 = vpop.f32.mrf.mxu1 }
 0x1c7   : > { %3103 = vtanh.f32 %v2259_v8  ;;  %v3823_v12 = vadd.f32 %v1792_v10, %v1503_v9  ;;  %v1505_v14 = vpop.f32.mrf.mxu0  ;;  %v2136_v8 = vadd.f32 %v2135_v53, %v2134_v63  ;;  %v1941_v9 = vadd.f32 %v1940_v56, %v3761_v60 }
 0x1c8   : > { %v3098_v15 = vpop.eup %3097  ;;  %v1794_v16 = vpop.f32.mrf.mxu1  ;;  %v1944_v14 = vsel %vm1872_vm0, %v3775_v13, 0.0  ;;  %v2044_v60 = vmul.f32 %v3787_v27, %v3787_v27  ;;  %v1946_v13 = vsel %vm1872_vm0, %v3781_v20, 0.0 }
 0x1c9   : > { %2384 = vst.msk [vmem:[%s3576_s7 + $0x140] sm:$0xff] %vm1872_vm0, %v3098_v15  ;;  %v2260_v17 = vadd.f32 %v3757_v58, %v3823_v12  ;;  %v1506_v18 = vpop.f32.mrf.mxu0 }
 0x1ca   : > { %v1795_v19 = vpop.f32.mrf.mxu1 }
 0x1cb   : > { %3105 = vtanh.f32 %v2260_v17  ;;  %v3829_v21 = vadd.f32 %v1795_v19, %v1506_v18  ;;  %v1508_v22 = vpop.f32.mrf.mxu0  ;;  %v2138_v17 = vadd.f32 %v2137_v0, %v2136_v8  ;;  %v1943_v18 = vadd.f32 %v1942_v2, %v1941_v9 }
 0x1cc   : > { %v3100_v23 = vpop.eup %3099  ;;  %v1797_v24 = vpop.f32.mrf.mxu1  ;;  %v2141_v22 = vsel %vm1872_vm0, %v2042_v62, 0.0  ;;  %v1956_v9 = vsel %vm1872_vm0, %v3811_v11, 0.0 }
 0x1cd   : > { %2385 = vst.msk [vmem:[%s3576_s7 + $0x148] sm:$0xff] %vm1872_vm0, %v3100_v23  ;;  %v2261_v25 = vadd.f32 %v3757_v58, %v3829_v21  ;;  %v1511_v26 = vpop.f32.mrf.mxu0 }
 0x1ce   : > { %v1800_v28 = vpop.f32.mrf.mxu1 }
 0x1cf   : > { %3107 = vtanh.f32 %v2261_v25  ;;  %v3835_v29 = vadd.f32 %v1800_v28, %v1511_v26  ;;  %v1513_v30 = vpop.f32.mrf.mxu0  ;;  %v2140_v26 = vadd.f32 %v2139_v46, %v2138_v17  ;;  %v1945_v28 = vadd.f32 %v1944_v14, %v1943_v18 }
 0x1d0   : > { %v3102_v31 = vpop.eup %3101  ;;  %v1802_v32 = vpop.f32.mrf.mxu1  ;;  %v1958_v17 = vsel %vm1872_vm0, %v3817_v3, 0.0 }
 0x1d1   : > { %2386 = vst.msk [vmem:[%s3576_s7 + $0x150] sm:$0xff] %vm1872_vm0, %v3102_v31  ;;  %v2262_v33 = vadd.f32 %v3757_v58, %v3835_v29  ;;  %v1514_v35 = vpop.f32.mrf.mxu0  ;;  %v2143_v31 = vsel %vm1872_vm0, %v2043_v5, 0.0  ;;  %v1948_v32 = vsel %vm1872_vm0, %v3787_v27, 0.0  ;;  %v1947_v37 = vadd.f32 %v1946_v13, %v1945_v28 }
 0x1d2   : > { %v1803_v36 = vpop.f32.mrf.mxu1  ;;  %v2046_v27 = vmul.f32 %v3799_v41, %v3799_v41  ;;  %v2051_v28 = vmul.f32 %v3829_v21, %v3829_v21 }
 0x1d3   : > { %3109 = vtanh.f32 %v2262_v33  ;;  %v3843_v38 = vadd.f32 %v1803_v36, %v1514_v35  ;;  %v1516_v39 = vpop.f32.mrf.mxu0  ;;  %v2045_v33 = vmul.f32 %v3793_v34, %v3793_v34  ;;  %v2142_v36 = vadd.f32 %v2141_v22, %v2140_v26 }
 0x1d4   : > { %v3104_v40 = vpop.eup %3103  ;;  %v1805_v42 = vpop.f32.mrf.mxu1  ;;  %v2145_v39 = vsel %vm1872_vm0, %v2044_v60, 0.0  ;;  %v2149_v63 = vsel %vm1872_vm0, %v2046_v27, 0.0  ;;  %v1960_v26 = vsel %vm1872_vm0, %v3823_v12, 0.0 }
 0x1d5   : > { %2387 = vst.msk [vmem:[%s3576_s7 + $0x158] sm:$0xff] %vm1872_vm0, %v3104_v40  ;;  %v2263_v45 = vadd.f32 %v3757_v58, %v3843_v38  ;;  %v1519_v47 = vpop.f32.mrf.mxu0  ;;  %v1950_v42 = vsel %vm1872_vm0, %v3793_v34, 0.0  ;;  %v2144_v48 = vadd.f32 %v2143_v31, %v2142_v36 }
 0x1d6   : > { %v1808_v43 = vpop.f32.mrf.mxu1 }
 0x1d7   : > { %3111 = vtanh.f32 %v2263_v45  ;;  %v3854_v51 = vadd.f32 %v1808_v43, %v1519_v47  ;;  %v1521_v52 = vpop.f32.mrf.mxu0  ;;  %v1949_v43 = vadd.f32 %v1948_v32, %v1947_v37  ;;  %v2146_v56 = vadd.f32 %v2145_v39, %v2144_v48 }
 0x1d8   : > { %v3106_v54 = vpop.eup %3105  ;;  %v1810_v55 = vpop.f32.mrf.mxu1  ;;  %v2147_v52 = vsel %vm1872_vm0, %v2045_v33, 0.0  ;;  %v2052_v33 = vmul.f32 %v3835_v29, %v3835_v29  ;;  %v2053_v48 = vmul.f32 %v3843_v38, %v3843_v38 }
 0x1d9   : > { %2388 = vst.msk [vmem:[%s3576_s7 + $0x160] sm:$0xff] %vm1872_vm0, %v3106_v54  ;;  %v2264_v59 = vadd.f32 %v3757_v58, %v3854_v51  ;;  %v1522_v61 = vpop.f32.mrf.mxu0  ;;  %v1952_v54 = vsel %vm1872_vm0, %v3799_v41, 0.0  ;;  %v2047_v55 = vmul.f32 %v3805_v50, %v3805_v50  ;;  %v1951_v57 = vadd.f32 %v1950_v42, %v1949_v43 }
 0x1da   : > { %v1811_v1 = vpop.f32.mrf.mxu1  ;;  %v1954_v41 = vsel %vm1872_vm0, %v3805_v50, 0.0  ;;  %v2148_v62 = vadd.f32 %v2147_v52, %v2146_v56 }
 0x1db   : > { %3113 = vtanh.f32 %v2264_v59  ;;  %v3871_v4 = vadd.f32 %v1811_v1, %v1522_v61  ;;  %v1524_v6 = vpop.f32.mrf.mxu0  ;;  %v2048_v59 = vmul.f32 %v3811_v11, %v3811_v11  ;;  %v2151_v8 = vsel %vm1872_vm0, %v2047_v55, 0.0 }
 0x1dc   : > { %v3108_v7 = vpop.eup %3107  ;;  %v1813_v10 = vpop.f32.mrf.mxu1  ;;  %v1953_v6 = vadd.f32 %v1952_v54, %v1951_v57  ;;  %v2150_v14 = vadd.f32 %v2149_v63, %v2148_v62  ;;  %v2050_v11 = vmul.f32 %v3823_v12, %v3823_v12  ;;  %v1962_v12 = vsel %vm1872_vm0, %v3829_v21, 0.0 }
 0x1dd   : > { %2389 = vst.msk [vmem:[%s3576_s7 + $0x168] sm:$0xff] %vm1872_vm0, %v3108_v7  ;;  %v2265_v15 = vadd.f32 %v3757_v58, %v3871_v4  ;;  %v1527_v16 = vpop.f32.mrf.mxu0  ;;  %v2049_v10 = vmul.f32 %v3817_v3, %v3817_v3  ;;  %v2161_v54 = vsel %vm1872_vm0, %v2052_v33, 0.0 }
 0x1de   : > { %v1816_v19 = vpop.f32.mrf.mxu1  ;;  %v1955_v5 = vadd.f32 %v1954_v41, %v1953_v6  ;;  %v2152_v22 = vadd.f32 %v2151_v8, %v2150_v14  ;;  %v2163_v41 = vsel %vm1872_vm0, %v2053_v48, 0.0 }
 0x1df   : > { %3115 = vtanh.f32 %v2265_v15  ;;  %v3888_v23 = vadd.f32 %v1816_v19, %v1527_v16  ;;  %v1529_v24 = vpop.f32.mrf.mxu0  ;;  %v2153_v15 = vsel %vm1872_vm0, %v2048_v59, 0.0 }
 0x1e0   : > { %v3110_v25 = vpop.eup %3109  ;;  %v1818_v30 = vpop.f32.mrf.mxu1  ;;  %v1957_v13 = vadd.f32 %v1956_v9, %v1955_v5  ;;  %v2154_v31 = vadd.f32 %v2153_v15, %v2152_v22 }
 0x1e1   : > { %2390 = vst.msk [vmem:[%s3576_s7 + $0x170] sm:$0xff] %vm1872_vm0, %v3110_v25  ;;  %v2266_v20 = vadd.f32 %v3757_v58, %v3888_v23  ;;  %v1530_v35 = vpop.f32.mrf.mxu0  ;;  %v2155_v25 = vsel %vm1872_vm0, %v2049_v10, 0.0  ;;  %v2056_v8 = vmul.f32 %v3888_v23, %v3888_v23 }
 0x1e2   : > { %v1819_v40 = vpop.f32.mrf.mxu1  ;;  %v1959_v32 = vadd.f32 %v1958_v17, %v1957_v13 }
 0x1e3   : > { %3117 = vtanh.f32 %v2266_v20  ;;  %v3904_v44 = vadd.f32 %v1819_v40, %v1530_v35  ;;  %v1532_v45 = vpop.f32.mrf.mxu0  ;;  %v2157_v35 = vsel %vm1872_vm0, %v2050_v11, 0.0  ;;  %v2156_v40 = vadd.f32 %v2155_v25, %v2154_v31 }
 0x1e4   : > { %v3112_v47 = vpop.eup %3111  ;;  %v1821_v49 = vpop.f32.mrf.mxu1  ;;  %v1961_v42 = vadd.f32 %v1960_v26, %v1959_v32  ;;  %v2159_v45 = vsel %vm1872_vm0, %v2051_v28, 0.0  ;;  %v1972_v11 = vsel %vm1872_vm0, %v3888_v23, 0.0 }
 0x1e5   : > { %2391 = vst.msk [vmem:[%s3576_s7 + $0x178] sm:$0xff] %vm1872_vm0, %v3112_v47  ;;  %v2267_v34 = vadd.f32 %v3757_v58, %v3904_v44  ;;  %v1535_v53 = vpop.f32.mrf.mxu0  ;;  %v1964_v47 = vsel %vm1872_vm0, %v3835_v29, 0.0  ;;  %v2158_v49 = vadd.f32 %v2157_v35, %v2156_v40  ;;  %v2054_v29 = vmul.f32 %v3854_v51, %v3854_v51 }
 0x1e6   : > { %v1824_v61 = vpop.f32.mrf.mxu1  ;;  %v1963_v52 = vadd.f32 %v1962_v12, %v1961_v42  ;;  %v1974_v26 = vsel %vm1872_vm0, %v3904_v44, 0.0 }
 0x1e7   : > { %3119 = vtanh.f32 %v2267_v34  ;;  %v3920_v0 = vadd.f32 %v1824_v61, %v1535_v53  ;;  %v1537_v1 = vpop.f32.mrf.mxu0  ;;  %v1966_v34 = vsel %vm1872_vm0, %v3843_v38, 0.0  ;;  %v2160_v59 = vadd.f32 %v2159_v45, %v2158_v49 }
 0x1e8   : > { %v3114_v2 = vpop.eup %3113  ;;  %v1826_v7 = vpop.f32.mrf.mxu1  ;;  %v1965_v61 = vadd.f32 %v1964_v47, %v1963_v52  ;;  %v1968_v1 = vsel %vm1872_vm0, %v3854_v51, 0.0  ;;  %v2165_v10 = vsel %vm1872_vm0, %v2054_v29, 0.0  ;;  %v1970_v51 = vsel %vm1872_vm0, %v3871_v4, 0.0 }
 0x1e9   : > { %2392 = vst.msk [vmem:[%s3576_s7 + $0x180] sm:$0xff] %vm1872_vm0, %v3114_v2  ;;  %v2268_v50 = vadd.f32 %v3757_v58, %v3920_v0  ;;  %v1538_v46 = vpop.f32.mrf.mxu0  ;;  %v2055_v2 = vmul.f32 %v3871_v4, %v3871_v4  ;;  %v2162_v6 = vadd.f32 %v2161_v54, %v2160_v59  ;;  %v2058_v23 = vmul.f32 %v3920_v0, %v3920_v0 }
 0x1ea   : > { %v1827_v16 = vpop.f32.mrf.mxu1  ;;  %v1967_v7 = vadd.f32 %v1966_v34, %v1965_v61  ;;  %v1976_v35 = vsel %vm1872_vm0, %v3920_v0, 0.0 }
 0x1eb   : > { %3121 = vtanh.f32 %v2268_v50  ;;  %v3936_v18 = vadd.f32 %v1827_v16, %v1538_v46  ;;  %v1540_v60 = vpop.f32.mrf.mxu0  ;;  %v2164_v5 = vadd.f32 %v2163_v41, %v2162_v6  ;;  %v2167_v17 = vsel %vm1872_vm0, %v2055_v2, 0.0 }
 0x1ec   : > { %v3116_v19 = vpop.eup %3115  ;;  %v1829_v24 = vpop.f32.mrf.mxu1  ;;  %v1969_v15 = vadd.f32 %v1968_v1, %v1967_v7  ;;  %v2057_v60 = vmul.f32 %v3904_v44, %v3904_v44  ;;  %v2173_v45 = vsel %vm1872_vm0, %v2058_v23, 0.0 }
 0x1ed   : > { %2393 = vst.msk [vmem:[%s3576_s7 + $0x188] sm:$0xff] %vm1872_vm0, %v3116_v19  ;;  %v2269_v3 = vadd.f32 %v3757_v58, %v3936_v18  ;;  %v1543_v30 = vpop.f32.mrf.mxu0  ;;  %v2166_v22 = vadd.f32 %v2165_v10, %v2164_v5  ;;  %v2169_v24 = vsel %vm1872_vm0, %v2056_v8, 0.0  ;;  %v2059_v12 = vmul.f32 %v3936_v18, %v3936_v18 }
 0x1ee   : > { %v1832_v20 = vpop.f32.mrf.mxu1  ;;  %v1971_v13 = vadd.f32 %v1970_v51, %v1969_v15  ;;  %v1978_v0 = vsel %vm1872_vm0, %v3936_v18, 0.0 }
 0x1ef   : > { %3123 = vtanh.f32 %v2269_v3  ;;  %v3952_v36 = vadd.f32 %v1832_v20, %v1543_v30  ;;  %v1545_v37 = vpop.f32.mrf.mxu0  ;;  %v2168_v31 = vadd.f32 %v2167_v17, %v2166_v22  ;;  %v2171_v20 = vsel %vm1872_vm0, %v2057_v60, 0.0 }
 0x1f0   : > { %v3118_v39 = vpop.eup %3117  ;;  %v1834_v27 = vpop.f32.mrf.mxu1  ;;  %v1973_v32 = vadd.f32 %v1972_v11, %v1971_v13  ;;  %v2175_v54 = vsel %vm1872_vm0, %v2059_v12, 0.0 }
 0x1f1   : > { %2394 = vst.msk [vmem:[%s3576_s7 + $0x190] sm:$0xff] %vm1872_vm0, %v3118_v39  ;;  %v2270_v21 = vadd.f32 %v3757_v58, %v3952_v36  ;;  %v1546_v43 = vpop.f32.mrf.mxu0  ;;  %v2170_v39 = vadd.f32 %v2169_v24, %v2168_v31  ;;  %v2060_v42 = vmul.f32 %v3952_v36, %v3952_v36 }
 0x1f2   : > { %v1835_v55 = vpop.f32.mrf.mxu1  ;;  %v1975_v40 = vadd.f32 %v1974_v26, %v1973_v32 }
 0x1f3   : > { %3125 = vtanh.f32 %v2270_v21  ;;  %v3968_v53 = vadd.f32 %v1835_v55, %v1546_v43  ;;  %v1548_v56 = vpop.f32.mrf.mxu0  ;;  %v2172_v43 = vadd.f32 %v2171_v20, %v2170_v39  ;;  %v1980_v55 = vsel %vm1872_vm0, %v3952_v36, 0.0 }
 0x1f4   : > { %v3120_v57 = vpop.eup %3119  ;;  %v1837_v63 = vpop.f32.mrf.mxu1  ;;  %v1977_v49 = vadd.f32 %v1976_v35, %v1975_v40  ;;  %v2177_v59 = vsel %vm1872_vm0, %v2060_v42, 0.0 }
 0x1f5   : > { %2395 = vst.msk [vmem:[%s3576_s7 + $0x198] sm:$0xff] %vm1872_vm0, %v3120_v57  ;;  %v2271_v38 = vadd.f32 %v3757_v58, %v3968_v53  ;;  %v1551_v62 = vpop.f32.mrf.mxu0  ;;  %v2061_v34 = vmul.f32 %v3968_v53, %v3968_v53  ;;  %v2174_v56 = vadd.f32 %v2173_v45, %v2172_v43  ;;  %v1982_v63 = vsel %vm1872_vm0, %v3968_v53, 0.0 }
 0x1f6   : > { %v1840_v9 = vpop.f32.mrf.mxu1  ;;  %v1979_v57 = vadd.f32 %v1978_v0, %v1977_v49 }
 0x1f7   : > { %3127 = vtanh.f32 %v2271_v38  ;;  %v3984_v50 = vadd.f32 %v1840_v9, %v1551_v62  ;;  %v1553_v46 = vpop.f32.mrf.mxu0  ;;  %v2176_v38 = vadd.f32 %v2175_v54, %v2174_v56  ;;  %v2179_v7 = vsel %vm1872_vm0, %v2061_v34, 0.0 }
 0x1f8   : > { %v3122_v14 = vpop.eup %3121  ;;  %v1842_v16 = vpop.f32.mrf.mxu1  ;;  %v1981_v62 = vadd.f32 %v1980_v55, %v1979_v57 }
 0x1f9   : > { %2396 = vst.msk [vmem:[%s3576_s7 + $0x1a0] sm:$0xff] %vm1872_vm0, %v3122_v14  ;;  %v2272_v4 = vadd.f32 %v3757_v58, %v3984_v50  ;;  %v1554_v19 = vpop.f32.mrf.mxu0  ;;  %v2062_v36 = vmul.f32 %v3984_v50, %v3984_v50  ;;  %v1984_v8 = vsel %vm1872_vm0, %v3984_v50, 0.0  ;;  %v2178_v51 = vadd.f32 %v2177_v59, %v2176_v38 }
 0x1fa   : > { %v1843_v25 = vpop.f32.mrf.mxu1  ;;  %v1983_v46 = vadd.f32 %v1982_v63, %v1981_v62 }
 0x1fb   : > { %3129 = vtanh.f32 %v2272_v4  ;;  %v1844_v28 = vadd.f32 %v1843_v25, %v1554_v19  ;;  %v1556_v3 = vpop.f32.mrf.mxu0  ;;  %v2181_v15 = vsel %vm1872_vm0, %v2062_v36, 0.0  ;;  %v2180_v4 = vadd.f32 %v2179_v7, %v2178_v51 }
 0x1fc   : > { %v3124_v30 = vpop.eup %3123  ;;  %v1845_v33 = vpop.f32.mrf.mxu1  ;;  %v1985_v19 = vadd.f32 %v1984_v8, %v1983_v46 }
 0x1fd   : > { %2397 = vst.msk [vmem:[%s3576_s7 + $0x1a8] sm:$0xff] %vm1872_vm0, %v3124_v30  ;;  %v2273_v44 = vadd.f32 %v3757_v58, %v1844_v28  ;;  %v1559_v37 = vpop.f32.mrf.mxu0  ;;  %v2063_v9 = vmul.f32 %v1844_v28, %v1844_v28  ;;  %v1986_v16 = vsel %vm1872_vm0, %v1844_v28, 0.0  ;;  %v2182_v23 = vadd.f32 %v2181_v15, %v2180_v4 }
 0x1fe   : > { %v1848_v27 = vpop.f32.mrf.mxu1  ;;  %v1987_v28 = vadd.f32 %v1986_v16, %v1985_v19 }
 0x1ff   : > { %3131 = vtanh.f32 %v2273_v44  ;;  %v1849_v47 = vadd.f32 %v1848_v27, %v1559_v37  ;;  %v1561_v48 = vpop.f32.mrf.mxu0  ;;  %v2183_v22 = vsel %vm1872_vm0, %v2063_v9, 0.0 }
 0x200   : > { %v3126_v21 = vpop.eup %3125  ;;  %v1850_v52 = vpop.f32.mrf.mxu1  ;;  %v2184_v12 = vadd.f32 %v2183_v22, %v2182_v23 }
 0x201   : > { %2398 = vst.msk [vmem:[%s3576_s7 + $0x1b0] sm:$0xff] %vm1872_vm0, %v3126_v21  ;;  %v2274_v29 = vadd.f32 %v3757_v58, %v1849_v47  ;;  %v1562_v18 = vpop.f32.mrf.mxu0  ;;  %v2064_v14 = vmul.f32 %v1849_v47, %v1849_v47  ;;  %v1988_v13 = vsel %vm1872_vm0, %v1849_v47, 0.0 }
 0x202   : > { %v1851_v61 = vpop.f32.mrf.mxu1  ;;  %v1989_v44 = vadd.f32 %v1988_v13, %v1987_v28 }
 0x203   : > { %3133 = vtanh.f32 %v2274_v29  ;;  %v1852_v41 = vadd.f32 %v1851_v61, %v1562_v18  ;;  %v1564_v1 = vpop.f32.mrf.mxu0  ;;  %v2185_v3 = vsel %vm1872_vm0, %v2064_v14, 0.0 }
 0x204   : > { %v3128_v2 = vpop.eup %3127  ;;  %v1853_v6 = vpop.f32.mrf.mxu1  ;;  %v2186_v0 = vadd.f32 %v2185_v3, %v2184_v12 }
 0x205   : > { %2399 = vst.msk [vmem:[%s3576_s7 + $0x1b8] sm:$0xff] %vm1872_vm0, %v3128_v2  ;;  %v2275_v53 = vadd.f32 %v3757_v58, %v1852_v41  ;;  %v1567_v10 = vpop.f32.mrf.mxu0  ;;  %v2065_v24 = vmul.f32 %v1852_v41, %v1852_v41  ;;  %v1990_v31 = vsel %vm1872_vm0, %v1852_v41, 0.0 }
 0x206   : > { %v1856_v5 = vpop.f32.mrf.mxu1  ;;  %v1991_v47 = vadd.f32 %v1990_v31, %v1989_v44 }
 0x207   : > { %3135 = vtanh.f32 %v2275_v53  ;;  %v1857_v17 = vadd.f32 %v1856_v5, %v1567_v10  ;;  %v1569_v11 = vpop.f32.mrf.mxu0  ;;  %v2187_v39 = vsel %vm1872_vm0, %v2065_v24, 0.0 }
 0x208   : > { %v3130_v60 = vpop.eup %3129  ;;  %v1858_v50 = vpop.f32.mrf.mxu1  ;;  %v2188_v55 = vadd.f32 %v2187_v39, %v2186_v0 }
 0x209   : > { %2400 = vst.msk [vmem:[%s3576_s7 + $0x1c0] sm:$0xff] %vm1872_vm0, %v3130_v60  ;;  %v2276_v25 = vadd.f32 %v3757_v58, %v1857_v17  ;;  %v1570_v26 = vpop.f32.mrf.mxu0  ;;  %v2066_v32 = vmul.f32 %v1857_v17, %v1857_v17  ;;  %v1992_v40 = vsel %vm1872_vm0, %v1857_v17, 0.0  ;;  %v2203_v60 = vlaneseq }
 0x20a   : > { %v1859_v30 = vpop.f32.mrf.mxu1  ;;  %v1993_v34 = vadd.f32 %v1992_v40, %v1991_v47 }
 0x20b   : > { %3137 = vtanh.f32 %v2276_v25  ;;  %v1860_v33 = vadd.f32 %v1859_v30, %v1570_v26  ;;  %v1572_v20 = vpop.f32.mrf.mxu0  ;;  %v2189_v21 = vsel %vm1872_vm0, %v2066_v32, 0.0  ;;  %v2204_v13 = vshrl.u32 %v2203_v60, 7 }
 0x20c   : > { %v3132_v35 = vpop.eup %3131  ;;  %v1861_v37 = vpop.f32.mrf.mxu1  ;;  %v2190_v63 = vadd.f32 %v2189_v21, %v2188_v55 }
 0x20d   : > { %2401 = vst.msk [vmem:[%s3576_s7 + $0x1c8] sm:$0xff] %vm1872_vm0, %v3132_v35  ;;  %v2067_v42 = vmul.f32 %v1860_v33, %v1860_v33  ;;  %v2277_v27 = vadd.f32 %v3757_v58, %v1860_v33  ;;  %v1575_v45 = vpop.f32.mrf.mxu0  ;;  %v1994_v43 = vsel %vm1872_vm0, %v1860_v33, 0.0  ;;  %vm2206_vm1 = vcmp.eq.s32.totalorder %v2204_v13, 1 }
 0x20e   : > { %v1864_v48 = vpop.f32.mrf.mxu1  ;;  %v1995_v36 = vadd.f32 %v1994_v43, %v1993_v34  ;;  %vm2205_vm2 = vcmp.eq.s32.totalorder %v2204_v13, 0 }
 0x20f   : > { %3139 = vtanh.f32 %v2277_v27  ;;  %v1865_v49 = vadd.f32 %v1864_v48, %v1575_v45  ;;  %v1577_v52 = vpop.f32.mrf.mxu0  ;;  %v2191_v18 = vsel %vm1872_vm0, %v2067_v42, 0.0 }
 0x210   : > { %v3134_v54 = vpop.eup %3133  ;;  %v1866_v29 = vpop.f32.mrf.mxu1  ;;  %v2192_v6 = vadd.f32 %v2191_v18, %v2190_v63 }
 0x211   : > { %2402 = vst.msk [vmem:[%s3576_s7 + $0x1d0] sm:$0xff] %vm1872_vm0, %v3134_v54  ;;  %v1996_v56 = vsel %vm1872_vm0, %v1865_v49, 0.0  ;;  %v2068_v57 = vmul.f32 %v1865_v49, %v1865_v49  ;;  %v2278_v59 = vadd.f32 %v3757_v58, %v1865_v49  ;;  %v1578_v61 = vpop.f32.mrf.mxu0 }
 0x212   : > { %v1867_v41 = vpop.f32.mrf.mxu1  ;;  %v1997_v7 = vadd.f32 %v1996_v56, %v1995_v36 }
 0x213   : > { %v2193_v1 = vsel %vm1872_vm0, %v2068_v57, 0.0  ;;  %3141 = vtanh.f32 %v2278_v59  ;;  %v1868_v2 = vadd.f32 %v1867_v41, %v1578_v61  ;;  %v1580_v38 = vpop.f32.mrf.mxu0 }
 0x214   : > { %v3136_v62 = vpop.eup %3135  ;;  %v1869_v8 = vpop.f32.mrf.mxu1  ;;  %v2194_v51 = vadd.f32 %v2193_v1, %v2192_v6 }
 0x215   : > { %2403 = vst.msk [vmem:[%s3576_s7 + $0x1d8] sm:$0xff] %vm1872_vm0, %v3136_v62  ;;  %v1998_v9 = vsel %vm1872_vm0, %v1868_v2, 0.0  ;;  %v2069_v53 = vmul.f32 %v1868_v2, %v1868_v2  ;;  %v2279_v10 = vadd.f32 %v3757_v58, %v1868_v2 }
 0x216   : > { %v1999_v46 = vadd.f32 %v1998_v9, %v1997_v7 }
 0x217   : > { %v2195_v14 = vsel %vm1872_vm0, %v2069_v53, 0.0  ;;  %3143 = vtanh.f32 %v2279_v10 }
 0x218   : > { %v3138_v5 = vpop.eup %3137  ;;  %v2000_v15 = vrot.slane %v1999_v46, 4  ;;  %v2196_v16 = vadd.f32 %v2195_v14, %v2194_v51 }
 0x219   : > { %2404 = vst.msk [vmem:[%s3576_s7 + $0x1e0] sm:$0xff] %vm1872_vm0, %v3138_v5 }
 0x21a   : > { %v2001_v17 = vadd.f32 %v2000_v15, %v1999_v46  ;;  %v2197_v11 = vrot.slane %v2196_v16, 4 }
 0x21c   : > { %v3140_v4 = vpop.eup %3139  ;;  %v2002_v19 = vrot.slane %v2001_v17, 2  ;;  %v2198_v58 = vadd.f32 %v2197_v11, %v2196_v16 }
 0x21d   : > { %2405 = vst.msk [vmem:[%s3576_s7 + $0x1e8] sm:$0xff] %vm1872_vm0, %v3140_v4 }
 0x21e   : > { %v2003_v50 = vadd.f32 %v2002_v19, %v2001_v17  ;;  %v2199_v22 = vrot.slane %v2198_v58, 2 }
 0x220   : > { %v3142_v24 = vpop.eup %3141  ;;  %v2200_v25 = vadd.f32 %v2199_v22, %v2198_v58  ;;  %v2004_v26 = vrot.slane %v2003_v50, 1 }
 0x221   : > { %2406 = vst.msk [vmem:[%s3576_s7 + $0x1f0] sm:$0xff] %vm1872_vm0, %v3142_v24 }
 0x222   : > { %v2201_v23 = vrot.slane %v2200_v25, 1  ;;  %v2005_v30 = vadd.f32 %v2004_v26, %v2003_v50 }
 0x224   : > { %v3144_v28 = vpop.eup %3143  ;;  %v2202_v3 = vadd.f32 %v2201_v23, %v2200_v25 }
 0x225   : > { %2407 = vst.msk [vmem:[%s3576_s7 + $0x1f8] sm:$0xff] %vm1872_vm0, %v3144_v28 }
 0x226   : > { %v2207_v31 = vsel %vm2206_vm1, %v2202_v3, 0.0 }
 0x227   : > { %v2208_v32 = vsel %vm2205_vm2, %v2005_v30, %v2207_v31 }
 0x228   : > { %2209 = vst.msk [vmem:[%s244_s6] sm:$0xff] %vm1872_vm0, %v2208_v32 }
 0x229   : > { %3159 = shalt.err (!%p3156_p5)
}
 0x22a   : > { %s3160_s24 = scalar_lea.hbm %s4072_s12, 128  ;;  %s3164_s26 = scalar_lea.hbm %s4117_s4, 256 }
 0x22b   : > { %p3161_p6 = scmp.ne.s32.totalorder %s4072_s12, %s3160_s24  ;;  %p3165_p10 = scmp.lt.s32.totalorder %s4072_s12, %s4117_s4 }
 0x22c   : > { %p3166_p11 = scmp.lt.s32.totalorder %s3164_s26, %s3160_s24 }
 0x22d   : > { %p3162_p7 = pnand %p3161_p6, %p3291_p4 }
 0x22e   : > { %p3167_p12 = por %p3166_p11, %p3165_p10 }
 0x22f   : > { %p3163_p9 = pneg %p3162_p7 }
 0x231   : > { %p3168_p13 = pnand %p3167_p12, %p3163_p9 }
 0x233   : > { %3171 = shalt.err (!%p3168_p13)
}
 0x234   : > { %2741 = dma.vmem_to_hbm [thread:$0]  (%p3291_p4), %s2436_s8, 128, %s4072_s12, %s2417_s18  }
 0x235 PF: > { %p2747_p0 = scmp.ge.s32.totalorder %s3222_s20, 2  ;;  %s2458_s5 = sand.u32 1, %s3202_s15  }
 0x236   : > { %s2459_s6 = scalar_lea.sflag [#allocation3], %s2458_s5 }
 0x237   : > { %p2744_p1 = pnand %p2747_p0, %p3298_p8 }
 0x239   : > { %p2745_p2 = pneg %p2744_p1 }
 0x23b   : > { %3197 = dma.done.wait (%p2745_p2), %s2459_s6, 128  }
 0x23c   : > { %3199 = vsyncadd (%p2745_p2), %s2459_s6, 4294967168  ;;  %s18_s20 = sadd.s32 1, %s3222_s20   ;;  %s4120_s15 = smov %s3206_s16 }
 0x23d   : > { %p15_p3 = scmp.ge.s32.totalorder %s18_s20, 4   ;;  %s4121_s16 = smov %s3210_s17 }
 0x23e   : > { %s4122_s17 = smov %s3304_s28  ;;  %s4123_s18 = smov %s3218_s19 }
 0x23f   : > { %s4124_s19 = smov %s4126_s23  ;;  %17 = sbr.rel (!%p15_p3) target bundleno = 4 (0x4), region = 85 }
 0x244   :  { %2464 = vsyncpa [#allocation3], 1 }
 0x245   :  { %2466 = vsyncpa [#allocation3 + $0x1], 1 }

</bundles_post_ra>
